<compile_context>
chip_gen: v6e
topology: v6e:2x2x1
jax: 0.10.0
libtpu: 0.0.40
codegen_flags: <defaults>
</compile_context>

<pallas_src>
import jax
import jax.numpy as jnp
from jax.experimental import pallas as pl
from jax.experimental.pallas import tpu as pltpu

HIDDEN = 128       # hidden_size (module default 256; 128 keeps the demo small but lane-aligned)
VOCAB = 256        # output_size
MAX_LENGTH = 10    # max_length (attention span)
L_PAD = 128        # max_length padded up to one full lane group
T_STEPS = 8        # number of fused decoder steps (teacher-forced tokens)
NEG = -1e30        # "minus infinity" for padded softmax lanes


def attn_decoder_kernel(
    # VMEM-resident inputs
    emb_all_ref,        # (T, H)       pre-gathered embedding rows
    hid0_ref,           # (1, H)       initial hidden
    enc_ref,            # (LP, H)      encoder outputs, zero-padded rows
    w_emb_ref,          # (H, LP+H)    [w_attn_emb(pad) | w_comb_emb]
    w_hid_ref,          # (H, LP+3H)   [w_attn_hid(pad) | w_h]
    w_comb_a_ref,       # (H, H)       attn_combine half applied to attn_applied
    w_i_ref,            # (H, 3H)      GRU input weights, gates packed [r|z|n]
    b_attn_ref,         # (1, LP)      attn bias, pad lanes = -1e30
    b_comb_ref,         # (1, H)
    b_i_ref,            # (1, 3H)
    b_h_ref,            # (1, 3H)
    w_out_ref,          # (H, V)
    b_out_ref,          # (1, V)
    # outputs
    logp_ref,           # (T, V)
    hid_out_ref,        # (T, H)
    attn_ref,           # (T, LP)
):
    T, H = emb_all_ref.shape
    LP = b_attn_ref.shape[1]

    # ---- prologue: batched hidden-independent matmul (one (T,H)@(H,LP+H) push) ----
    # columns [0:LP]   -> emb @ w_attn[:H]   (attention-logit contribution)
    # columns [LP:]    -> emb @ w_comb[:H]   (attn_combine contribution)
    emb_pre = jnp.dot(emb_all_ref[...], w_emb_ref[...],
                      preferred_element_type=jnp.float32)          # (T, LP+H)

    enc = enc_ref[...]
    w_hid = w_hid_ref[...]
    w_ca = w_comb_a_ref[...]
    w_i = w_i_ref[...]
    b_attn = b_attn_ref[...]
    b_comb = b_comb_ref[...]
    b_i = b_i_ref[...]
    b_h = b_h_ref[...]

    hid = hid0_ref[...]                                            # (1, H), lives in vregs
    h_rows, a_rows = [], []

    # Fully-unrolled recurrence: T is small & static, so Python unrolling gives
    # concrete step indices (free vreg slices of emb_pre, no dynamic indexing)
    # and full LLO scheduling visibility across steps.
    for t in range(T):
        # one fused hidden-dependent MXU push: [attn logits (hid part) | GRU gh]
        hp = jnp.dot(hid, w_hid, preferred_element_type=jnp.float32)   # (1, LP+3H)

        # attn_weights = softmax(Linear_{2H->L}(cat(emb, hid)))  (pad lanes -> -1e30 -> 0)
        attn_logits = emb_pre[t:t + 1, 0:LP] + hp[:, 0:LP] + b_attn    # (1, LP)
        m = jnp.max(attn_logits, axis=1, keepdims=True)
        e = jnp.exp(attn_logits - m)
        attn_w = e / jnp.sum(e, axis=1, keepdims=True)                 # exact reciprocal

        # attn_applied = attn_weights @ encoder_outputs
        attn_applied = jnp.dot(attn_w, enc, preferred_element_type=jnp.float32)   # (1, H)

        # x = relu(Linear_{2H->H}(cat(emb, attn_applied)))   (emb half precomputed)
        x = (emb_pre[t:t + 1, LP:LP + H]
             + jnp.dot(attn_applied, w_ca, preferred_element_type=jnp.float32)
             + b_comb)
        x = jnp.maximum(x, 0.0)                                        # (1, H)

        # Single-step GRU with packed gates [r|z|n]; gh comes from the fused push.
        gi = jnp.dot(x, w_i, preferred_element_type=jnp.float32) + b_i  # (1, 3H)
        gh = hp[:, LP:LP + 3 * H] + b_h                                  # (1, 3H)
        r = jax.nn.sigmoid(gi[:, 0:H] + gh[:, 0:H])
        z = jax.nn.sigmoid(gi[:, H:2 * H] + gh[:, H:2 * H])
        n = jnp.tanh(gi[:, 2 * H:3 * H] + r * gh[:, 2 * H:3 * H])
        hid = (1.0 - z) * n + z * hid                                    # (1, H)

        h_rows.append(hid)
        a_rows.append(attn_w)

    h_all = jnp.concatenate(h_rows, axis=0)        # (T, H)
    a_all = jnp.concatenate(a_rows, axis=0)        # (T, LP)

    # ---- epilogue: batched output projection + log_softmax ((T,H)@(H,V)) ----
    logits = jnp.dot(h_all, w_out_ref[...], preferred_element_type=jnp.float32) + b_out_ref[...]
    mo = jnp.max(logits, axis=1, keepdims=True)
    lse = jnp.log(jnp.sum(jnp.exp(logits - mo), axis=1, keepdims=True)) + mo

    # Full-block, lane-dense stores (single writeback per output).
    logp_ref[...] = logits - lse
    hid_out_ref[...] = h_all
    attn_ref[...] = a_all


def attn_decoder_forward(token_ids, hidden, encoder_outputs, params):
    H, V, L, LP = HIDDEN, VOCAB, MAX_LENGTH, L_PAD
    T = token_ids.shape[0]
    hid0 = hidden.reshape(1, H)

    # Hidden-independent gather of all T embedding rows, done once up front.
    # TODO(synk): nn.Dropout(p=0.1) is treated as eval-mode identity (no RNG mask).
    emb_all = params["embedding"][token_ids]                            # (T, H)

    # ---- one-time weight packing / lane padding (tiny XLA ops, outside kernel) ----
    w_attn_pad = jnp.zeros((2 * H, LP), jnp.float32).at[:, :L].set(params["w_attn"])
    b_attn_pad = jnp.full((1, LP), NEG, jnp.float32).at[:, :L].set(params["b_attn"])
    enc_pad = jnp.zeros((LP, H), jnp.float32).at[:L, :].set(encoder_outputs)

    # prologue weight: emb @ [w_attn_emb | w_comb_emb]
    w_emb = jnp.concatenate([w_attn_pad[:H], params["w_comb"][:H]], axis=1)    # (H, LP+H)
    # per-step fused hid weight: hid @ [w_attn_hid | w_h]
    w_hid = jnp.concatenate([w_attn_pad[H:], params["w_h"]], axis=1)           # (H, LP+3H)
    w_comb_a = params["w_comb"][H:]                                            # (H, H)

    tensor_inputs = (
        emb_all, hid0, enc_pad,
        w_emb, w_hid, w_comb_a, params["w_i"],
        b_attn_pad, params["b_comb"], params["b_i"], params["b_h"],
        params["w_out"], params["b_out"],
    )

    vmem = pl.BlockSpec(memory_space=pltpu.MemorySpace.VMEM)   # whole array, VMEM-resident

    logp_all, hid_all, attn_pad = pl.pallas_call(
        attn_decoder_kernel,
        out_shape=(
            jax.ShapeDtypeStruct((T, V), jnp.float32),   # per-step log-probs
            jax.ShapeDtypeStruct((T, H), jnp.float32),   # per-step hidden (last row = final)
            jax.ShapeDtypeStruct((T, LP), jnp.float32),  # per-step attention weights (padded)
        ),
        in_specs=[vmem] * len(tensor_inputs),
        out_specs=(vmem, vmem, vmem),
    )(*tensor_inputs)

    return logp_all, hid_all, attn_pad[:, :L]


def make_params(key):
    H, V, L = HIDDEN, VOCAB, MAX_LENGTH
    ks = jax.random.split(key, 11)
    s = 0.1

    def rnd(k, shape):
        return jax.random.normal(k, shape, dtype=jnp.float32) * s

    return {
        "embedding": rnd(ks[0], (V, H)),
        # attn: Linear(2H -> L), stored (2H, L) so the math is cat(emb, hid) @ W
        "w_attn": rnd(ks[1], (2 * H, L)), "b_attn": rnd(ks[2], (1, L)),
        # attn_combine: Linear(2H -> H)
        "w_comb": rnd(ks[3], (2 * H, H)), "b_comb": rnd(ks[4], (1, H)),
        # GRU: PyTorch weight_ih/hh are (3H, H) with gate order [r|z|n]; stored
        # transposed (H, 3H) so the kernel computes x @ W and lane-slices gates.
        "w_i": rnd(ks[5], (3 * H, H)).T, "b_i": rnd(ks[6], (3 * H,)).reshape(1, 3 * H),
        "w_h": rnd(ks[7], (3 * H, H)).T, "b_h": rnd(ks[8], (3 * H,)).reshape(1, 3 * H),
        # out: Linear(H -> V)
        "w_out": rnd(ks[9], (H, V)), "b_out": rnd(ks[10], (1, V)),
    }


def reference_forward(token_ids, hidden, encoder_outputs, params):
    """Pure-JAX reference: the PyTorch forward (eval mode) applied T times."""
    H = HIDDEN
    hid = hidden.reshape(1, H)
    logps, hids, attns = [], [], []
    for t in range(int(token_ids.shape[0])):
        emb = params["embedding"][token_ids[t]].reshape(1, H)
        attn_logits = jnp.concatenate([emb, hid], axis=1) @ params["w_attn"] + params["b_attn"]
        attn_w = jax.nn.softmax(attn_logits, axis=1)
        attn_applied = attn_w @ encoder_outputs
        x = jnp.maximum(
            jnp.concatenate([emb, attn_applied], axis=1) @ params["w_comb"] + params["b_comb"],
            0.0)
        gi = x @ params["w_i"] + params["b_i"]
        gh = hid @ params["w_h"] + params["b_h"]
        r = jax.nn.sigmoid(gi[:, :H] + gh[:, :H])
        z = jax.nn.sigmoid(gi[:, H:2 * H] + gh[:, H:2 * H])
        n = jnp.tanh(gi[:, 2 * H:] + r * gh[:, 2 * H:])
        hid = (1.0 - z) * n + z * hid
        logp = jax.nn.log_softmax(hid @ params["w_out"] + params["b_out"], axis=1)
        logps.append(logp)
        hids.append(hid)
        attns.append(attn_w)
    return (jnp.concatenate(logps, axis=0),
            jnp.concatenate(hids, axis=0),
            jnp.concatenate(attns, axis=0))


if __name__ == "__main__":
    key = jax.random.PRNGKey(0)
    k_params, k_hid, k_enc, k_tok = jax.random.split(key, 4)

    params = make_params(k_params)
    token_ids = jax.random.randint(k_tok, (T_STEPS,), 0, VOCAB, dtype=jnp.int32)
    hidden = jax.random.normal(k_hid, (1, 1, HIDDEN), dtype=jnp.float32)
    encoder_outputs = jax.random.normal(k_enc, (MAX_LENGTH, HIDDEN), dtype=jnp.float32)

    logp_all, hid_all, attn_all = jax.jit(attn_decoder_forward)(
        token_ids, hidden, encoder_outputs, params)
    jax.block_until_ready((logp_all, hid_all, attn_all))

    # final hidden in the module's (1, 1, H) layout
    hidden_final = hid_all[-1].reshape(1, 1, HIDDEN)
    assert hidden_final.shape == (1, 1, HIDDEN)
    assert logp_all.shape == (T_STEPS, VOCAB)
    assert attn_all.shape == (T_STEPS, MAX_LENGTH)

    ref_logp, ref_hid, ref_attn = reference_forward(token_ids, hidden, encoder_outputs, params)
    # The approx EUP reciprocal is gone (exact divide); the remaining tolerance
    # covers MXU-vs-XLA f32 matmul default-precision rounding compounded over
    # the 8-step recurrence.
    assert jnp.allclose(logp_all, ref_logp, atol=5e-3, rtol=5e-3)
    assert jnp.allclose(hid_all, ref_hid, atol=5e-3, rtol=5e-3)
    assert jnp.allclose(attn_all, ref_attn, atol=5e-3, rtol=5e-3)

    print("KERNEL_OK")
</pallas_src>

<mosaic_0001>
module attributes {stable_mosaic.version = 11 : i64} {
  func.func @attn_decoder_kernel(%arg0: memref<8x128xf32, #tpu.memory_space<vmem>>, %arg1: memref<1x128xf32, #tpu.memory_space<vmem>>, %arg2: memref<128x128xf32, #tpu.memory_space<vmem>>, %arg3: memref<128x256xf32, #tpu.memory_space<vmem>>, %arg4: memref<128x512xf32, #tpu.memory_space<vmem>>, %arg5: memref<128x128xf32, #tpu.memory_space<vmem>>, %arg6: memref<128x384xf32, #tpu.memory_space<vmem>>, %arg7: memref<1x128xf32, #tpu.memory_space<vmem>>, %arg8: memref<1x128xf32, #tpu.memory_space<vmem>>, %arg9: memref<1x384xf32, #tpu.memory_space<vmem>>, %arg10: memref<1x384xf32, #tpu.memory_space<vmem>>, %arg11: memref<128x256xf32, #tpu.memory_space<vmem>>, %arg12: memref<1x256xf32, #tpu.memory_space<vmem>>, %arg13: memref<8x256xf32, #tpu.memory_space<vmem>>, %arg14: memref<8x128xf32, #tpu.memory_space<vmem>>, %arg15: memref<8x128xf32, #tpu.memory_space<vmem>>) attributes {dimension_semantics = [], scalar_prefetch = 0 : i64, scratch_operands = 0 : i64, tpu.core_type = #tpu.core_type<tc>} {
    %c0 = arith.constant 0 : index
    %c0_0 = arith.constant 0 : index
    %0 = vector.load %arg0[%c0, %c0_0] : memref<8x128xf32, #tpu.memory_space<vmem>>, vector<8x128xf32>
    %c0_1 = arith.constant 0 : index
    %c0_2 = arith.constant 0 : index
    %1 = vector.load %arg3[%c0_1, %c0_2] : memref<128x256xf32, #tpu.memory_space<vmem>>, vector<128x256xf32>
    %cst = arith.constant dense<0.000000e+00> : vector<8x256xf32>
    %2 = tpu.matmul %0, %1, %cst {dimension_numbers = #tpu.dot_dimension_numbers<[1], [0], [0], [1], [0, 0, 1, 1], [], []>} : vector<8x128xf32>, vector<128x256xf32>, vector<8x256xf32> -> vector<8x256xf32>
    %c0_3 = arith.constant 0 : index
    %c0_4 = arith.constant 0 : index
    %3 = vector.load %arg2[%c0_3, %c0_4] : memref<128x128xf32, #tpu.memory_space<vmem>>, vector<128x128xf32>
    %c0_5 = arith.constant 0 : index
    %c0_6 = arith.constant 0 : index
    %4 = vector.load %arg4[%c0_5, %c0_6] : memref<128x512xf32, #tpu.memory_space<vmem>>, vector<128x512xf32>
    %c0_7 = arith.constant 0 : index
    %c0_8 = arith.constant 0 : index
    %5 = vector.load %arg5[%c0_7, %c0_8] : memref<128x128xf32, #tpu.memory_space<vmem>>, vector<128x128xf32>
    %c0_9 = arith.constant 0 : index
    %c0_10 = arith.constant 0 : index
    %6 = vector.load %arg6[%c0_9, %c0_10] : memref<128x384xf32, #tpu.memory_space<vmem>>, vector<128x384xf32>
    %c0_11 = arith.constant 0 : index
    %c0_12 = arith.constant 0 : index
    %7 = vector.load %arg7[%c0_11, %c0_12] : memref<1x128xf32, #tpu.memory_space<vmem>>, vector<1x128xf32>
    %c0_13 = arith.constant 0 : index
    %c0_14 = arith.constant 0 : index
    %8 = vector.load %arg8[%c0_13, %c0_14] : memref<1x128xf32, #tpu.memory_space<vmem>>, vector<1x128xf32>
    %c0_15 = arith.constant 0 : index
    %c0_16 = arith.constant 0 : index
    %9 = vector.load %arg9[%c0_15, %c0_16] : memref<1x384xf32, #tpu.memory_space<vmem>>, vector<1x384xf32>
    %c0_17 = arith.constant 0 : index
    %c0_18 = arith.constant 0 : index
    %10 = vector.load %arg10[%c0_17, %c0_18] : memref<1x384xf32, #tpu.memory_space<vmem>>, vector<1x384xf32>
    %c0_19 = arith.constant 0 : index
    %c0_20 = arith.constant 0 : index
    %11 = vector.load %arg1[%c0_19, %c0_20] : memref<1x128xf32, #tpu.memory_space<vmem>>, vector<1x128xf32>
    %cst_21 = arith.constant dense<0.000000e+00> : vector<1x512xf32>
    %12 = tpu.matmul %11, %4, %cst_21 {dimension_numbers = #tpu.dot_dimension_numbers<[1], [0], [0], [1], [0, 0, 1, 1], [], []>} : vector<1x128xf32>, vector<128x512xf32>, vector<1x512xf32> -> vector<1x512xf32>
    %13 = vector.extract_strided_slice %2 {offsets = [0, 0], sizes = [1, 128], strides = [1, 1]} : vector<8x256xf32> to vector<1x128xf32>
    %14 = vector.extract_strided_slice %12 {offsets = [0, 0], sizes = [1, 128], strides = [1, 1]} : vector<1x512xf32> to vector<1x128xf32>
    %15 = arith.addf %13, %14 : vector<1x128xf32>
    %16 = arith.addf %15, %7 : vector<1x128xf32>
    %cst_22 = arith.constant dense<0xFF800000> : vector<1xf32>
    %17 = vector.multi_reduction <maximumf>, %16, %cst_22 [1] : vector<1x128xf32> to vector<1xf32>
    %18 = vector.shape_cast %17 : vector<1xf32> to vector<1x1xf32>
    %19 = vector.broadcast %18 : vector<1x1xf32> to vector<1x128xf32>
    %20 = arith.subf %16, %19 : vector<1x128xf32>
    %21 = math.exp %20 : vector<1x128xf32>
    %cst_23 = arith.constant dense<0.000000e+00> : vector<1xf32>
    %22 = vector.multi_reduction <add>, %21, %cst_23 [1] : vector<1x128xf32> to vector<1xf32>
    %23 = vector.shape_cast %22 : vector<1xf32> to vector<1x1xf32>
    %24 = vector.broadcast %23 : vector<1x1xf32> to vector<1x128xf32>
    %25 = arith.divf %21, %24 : vector<1x128xf32>
    %cst_24 = arith.constant dense<0.000000e+00> : vector<1x128xf32>
    %26 = tpu.matmul %25, %3, %cst_24 {dimension_numbers = #tpu.dot_dimension_numbers<[1], [0], [0], [1], [0, 0, 1, 1], [], []>} : vector<1x128xf32>, vector<128x128xf32>, vector<1x128xf32> -> vector<1x128xf32>
    %27 = vector.extract_strided_slice %2 {offsets = [0, 128], sizes = [1, 128], strides = [1, 1]} : vector<8x256xf32> to vector<1x128xf32>
    %cst_25 = arith.constant dense<0.000000e+00> : vector<1x128xf32>
    %28 = tpu.matmul %26, %5, %cst_25 {dimension_numbers = #tpu.dot_dimension_numbers<[1], [0], [0], [1], [0, 0, 1, 1], [], []>} : vector<1x128xf32>, vector<128x128xf32>, vector<1x128xf32> -> vector<1x128xf32>
    %29 = arith.addf %27, %28 : vector<1x128xf32>
    %30 = arith.addf %29, %8 : vector<1x128xf32>
    %cst_26 = arith.constant 0.000000e+00 : f32
    %31 = vector.broadcast %cst_26 : f32 to vector<1x128xf32>
    %32 = arith.maximumf %30, %31 : vector<1x128xf32>
    %cst_27 = arith.constant dense<0.000000e+00> : vector<1x384xf32>
    %33 = tpu.matmul %32, %6, %cst_27 {dimension_numbers = #tpu.dot_dimension_numbers<[1], [0], [0], [1], [0, 0, 1, 1], [], []>} : vector<1x128xf32>, vector<128x384xf32>, vector<1x384xf32> -> vector<1x384xf32>
    %34 = arith.addf %33, %9 : vector<1x384xf32>
    %35 = vector.extract_strided_slice %12 {offsets = [0, 128], sizes = [1, 384], strides = [1, 1]} : vector<1x512xf32> to vector<1x384xf32>
    %36 = arith.addf %35, %10 : vector<1x384xf32>
    %37 = vector.extract_strided_slice %34 {offsets = [0, 0], sizes = [1, 128], strides = [1, 1]} : vector<1x384xf32> to vector<1x128xf32>
    %38 = vector.extract_strided_slice %36 {offsets = [0, 0], sizes = [1, 128], strides = [1, 1]} : vector<1x384xf32> to vector<1x128xf32>
    %39 = arith.addf %37, %38 : vector<1x128xf32>
    %40 = arith.negf %39 : vector<1x128xf32>
    %41 = math.exp %40 : vector<1x128xf32>
    %cst_28 = arith.constant 1.000000e+00 : f32
    %42 = vector.broadcast %cst_28 : f32 to vector<1x128xf32>
    %43 = arith.addf %42, %41 : vector<1x128xf32>
    %44 = arith.divf %42, %43 : vector<1x128xf32>
    %45 = vector.extract_strided_slice %34 {offsets = [0, 128], sizes = [1, 128], strides = [1, 1]} : vector<1x384xf32> to vector<1x128xf32>
    %46 = vector.extract_strided_slice %36 {offsets = [0, 128], sizes = [1, 128], strides = [1, 1]} : vector<1x384xf32> to vector<1x128xf32>
    %47 = arith.addf %45, %46 : vector<1x128xf32>
    %48 = arith.negf %47 : vector<1x128xf32>
    %49 = math.exp %48 : vector<1x128xf32>
    %cst_29 = arith.constant 1.000000e+00 : f32
    %50 = vector.broadcast %cst_29 : f32 to vector<1x128xf32>
    %51 = arith.addf %50, %49 : vector<1x128xf32>
    %52 = arith.divf %50, %51 : vector<1x128xf32>
    %53 = vector.extract_strided_slice %34 {offsets = [0, 256], sizes = [1, 128], strides = [1, 1]} : vector<1x384xf32> to vector<1x128xf32>
    %54 = vector.extract_strided_slice %36 {offsets = [0, 256], sizes = [1, 128], strides = [1, 1]} : vector<1x384xf32> to vector<1x128xf32>
    %55 = arith.mulf %44, %54 : vector<1x128xf32>
    %56 = arith.addf %53, %55 : vector<1x128xf32>
    %57 = math.tanh %56 : vector<1x128xf32>
    %cst_30 = arith.constant 1.000000e+00 : f32
    %58 = vector.broadcast %cst_30 : f32 to vector<1x128xf32>
    %59 = arith.subf %58, %52 : vector<1x128xf32>
    %60 = arith.mulf %59, %57 : vector<1x128xf32>
    %61 = arith.mulf %52, %11 : vector<1x128xf32>
    %62 = arith.addf %60, %61 : vector<1x128xf32>
    %cst_31 = arith.constant dense<0.000000e+00> : vector<1x512xf32>
    %63 = tpu.matmul %62, %4, %cst_31 {dimension_numbers = #tpu.dot_dimension_numbers<[1], [0], [0], [1], [0, 0, 1, 1], [], []>} : vector<1x128xf32>, vector<128x512xf32>, vector<1x512xf32> -> vector<1x512xf32>
    %64 = vector.extract_strided_slice %2 {offsets = [1, 0], sizes = [1, 128], strides = [1, 1]} : vector<8x256xf32> to vector<1x128xf32>
    %65 = vector.extract_strided_slice %63 {offsets = [0, 0], sizes = [1, 128], strides = [1, 1]} : vector<1x512xf32> to vector<1x128xf32>
    %66 = arith.addf %64, %65 : vector<1x128xf32>
    %67 = arith.addf %66, %7 : vector<1x128xf32>
    %cst_32 = arith.constant dense<0xFF800000> : vector<1xf32>
    %68 = vector.multi_reduction <maximumf>, %67, %cst_32 [1] : vector<1x128xf32> to vector<1xf32>
    %69 = vector.shape_cast %68 : vector<1xf32> to vector<1x1xf32>
    %70 = vector.broadcast %69 : vector<1x1xf32> to vector<1x128xf32>
    %71 = arith.subf %67, %70 : vector<1x128xf32>
    %72 = math.exp %71 : vector<1x128xf32>
    %cst_33 = arith.constant dense<0.000000e+00> : vector<1xf32>
    %73 = vector.multi_reduction <add>, %72, %cst_33 [1] : vector<1x128xf32> to vector<1xf32>
    %74 = vector.shape_cast %73 : vector<1xf32> to vector<1x1xf32>
    %75 = vector.broadcast %74 : vector<1x1xf32> to vector<1x128xf32>
    %76 = arith.divf %72, %75 : vector<1x128xf32>
    %cst_34 = arith.constant dense<0.000000e+00> : vector<1x128xf32>
    %77 = tpu.matmul %76, %3, %cst_34 {dimension_numbers = #tpu.dot_dimension_numbers<[1], [0], [0], [1], [0, 0, 1, 1], [], []>} : vector<1x128xf32>, vector<128x128xf32>, vector<1x128xf32> -> vector<1x128xf32>
    %78 = vector.extract_strided_slice %2 {offsets = [1, 128], sizes = [1, 128], strides = [1, 1]} : vector<8x256xf32> to vector<1x128xf32>
    %cst_35 = arith.constant dense<0.000000e+00> : vector<1x128xf32>
    %79 = tpu.matmul %77, %5, %cst_35 {dimension_numbers = #tpu.dot_dimension_numbers<[1], [0], [0], [1], [0, 0, 1, 1], [], []>} : vector<1x128xf32>, vector<128x128xf32>, vector<1x128xf32> -> vector<1x128xf32>
    %80 = arith.addf %78, %79 : vector<1x128xf32>
    %81 = arith.addf %80, %8 : vector<1x128xf32>
    %cst_36 = arith.constant 0.000000e+00 : f32
    %82 = vector.broadcast %cst_36 : f32 to vector<1x128xf32>
    %83 = arith.maximumf %81, %82 : vector<1x128xf32>
    %cst_37 = arith.constant dense<0.000000e+00> : vector<1x384xf32>
    %84 = tpu.matmul %83, %6, %cst_37 {dimension_numbers = #tpu.dot_dimension_numbers<[1], [0], [0], [1], [0, 0, 1, 1], [], []>} : vector<1x128xf32>, vector<128x384xf32>, vector<1x384xf32> -> vector<1x384xf32>
    %85 = arith.addf %84, %9 : vector<1x384xf32>
    %86 = vector.extract_strided_slice %63 {offsets = [0, 128], sizes = [1, 384], strides = [1, 1]} : vector<1x512xf32> to vector<1x384xf32>
    %87 = arith.addf %86, %10 : vector<1x384xf32>
    %88 = vector.extract_strided_slice %85 {offsets = [0, 0], sizes = [1, 128], strides = [1, 1]} : vector<1x384xf32> to vector<1x128xf32>
    %89 = vector.extract_strided_slice %87 {offsets = [0, 0], sizes = [1, 128], strides = [1, 1]} : vector<1x384xf32> to vector<1x128xf32>
    %90 = arith.addf %88, %89 : vector<1x128xf32>
    %91 = arith.negf %90 : vector<1x128xf32>
    %92 = math.exp %91 : vector<1x128xf32>
    %cst_38 = arith.constant 1.000000e+00 : f32
    %93 = vector.broadcast %cst_38 : f32 to vector<1x128xf32>
    %94 = arith.addf %93, %92 : vector<1x128xf32>
    %95 = arith.divf %93, %94 : vector<1x128xf32>
    %96 = vector.extract_strided_slice %85 {offsets = [0, 128], sizes = [1, 128], strides = [1, 1]} : vector<1x384xf32> to vector<1x128xf32>
    %97 = vector.extract_strided_slice %87 {offsets = [0, 128], sizes = [1, 128], strides = [1, 1]} : vector<1x384xf32> to vector<1x128xf32>
    %98 = arith.addf %96, %97 : vector<1x128xf32>
    %99 = arith.negf %98 : vector<1x128xf32>
    %100 = math.exp %99 : vector<1x128xf32>
    %cst_39 = arith.constant 1.000000e+00 : f32
    %101 = vector.broadcast %cst_39 : f32 to vector<1x128xf32>
    %102 = arith.addf %101, %100 : vector<1x128xf32>
    %103 = arith.divf %101, %102 : vector<1x128xf32>
    %104 = vector.extract_strided_slice %85 {offsets = [0, 256], sizes = [1, 128], strides = [1, 1]} : vector<1x384xf32> to vector<1x128xf32>
    %105 = vector.extract_strided_slice %87 {offsets = [0, 256], sizes = [1, 128], strides = [1, 1]} : vector<1x384xf32> to vector<1x128xf32>
    %106 = arith.mulf %95, %105 : vector<1x128xf32>
    %107 = arith.addf %104, %106 : vector<1x128xf32>
    %108 = math.tanh %107 : vector<1x128xf32>
    %cst_40 = arith.constant 1.000000e+00 : f32
    %109 = vector.broadcast %cst_40 : f32 to vector<1x128xf32>
    %110 = arith.subf %109, %103 : vector<1x128xf32>
    %111 = arith.mulf %110, %108 : vector<1x128xf32>
    %112 = arith.mulf %103, %62 : vector<1x128xf32>
    %113 = arith.addf %111, %112 : vector<1x128xf32>
    %cst_41 = arith.constant dense<0.000000e+00> : vector<1x512xf32>
    %114 = tpu.matmul %113, %4, %cst_41 {dimension_numbers = #tpu.dot_dimension_numbers<[1], [0], [0], [1], [0, 0, 1, 1], [], []>} : vector<1x128xf32>, vector<128x512xf32>, vector<1x512xf32> -> vector<1x512xf32>
    %115 = vector.extract_strided_slice %2 {offsets = [2, 0], sizes = [1, 128], strides = [1, 1]} : vector<8x256xf32> to vector<1x128xf32>
    %116 = vector.extract_strided_slice %114 {offsets = [0, 0], sizes = [1, 128], strides = [1, 1]} : vector<1x512xf32> to vector<1x128xf32>
    %117 = arith.addf %115, %116 : vector<1x128xf32>
    %118 = arith.addf %117, %7 : vector<1x128xf32>
    %cst_42 = arith.constant dense<0xFF800000> : vector<1xf32>
    %119 = vector.multi_reduction <maximumf>, %118, %cst_42 [1] : vector<1x128xf32> to vector<1xf32>
    %120 = vector.shape_cast %119 : vector<1xf32> to vector<1x1xf32>
    %121 = vector.broadcast %120 : vector<1x1xf32> to vector<1x128xf32>
    %122 = arith.subf %118, %121 : vector<1x128xf32>
    %123 = math.exp %122 : vector<1x128xf32>
    %cst_43 = arith.constant dense<0.000000e+00> : vector<1xf32>
    %124 = vector.multi_reduction <add>, %123, %cst_43 [1] : vector<1x128xf32> to vector<1xf32>
    %125 = vector.shape_cast %124 : vector<1xf32> to vector<1x1xf32>
    %126 = vector.broadcast %125 : vector<1x1xf32> to vector<1x128xf32>
    %127 = arith.divf %123, %126 : vector<1x128xf32>
    %cst_44 = arith.constant dense<0.000000e+00> : vector<1x128xf32>
    %128 = tpu.matmul %127, %3, %cst_44 {dimension_numbers = #tpu.dot_dimension_numbers<[1], [0], [0], [1], [0, 0, 1, 1], [], []>} : vector<1x128xf32>, vector<128x128xf32>, vector<1x128xf32> -> vector<1x128xf32>
    %129 = vector.extract_strided_slice %2 {offsets = [2, 128], sizes = [1, 128], strides = [1, 1]} : vector<8x256xf32> to vector<1x128xf32>
    %cst_45 = arith.constant dense<0.000000e+00> : vector<1x128xf32>
    %130 = tpu.matmul %128, %5, %cst_45 {dimension_numbers = #tpu.dot_dimension_numbers<[1], [0], [0], [1], [0, 0, 1, 1], [], []>} : vector<1x128xf32>, vector<128x128xf32>, vector<1x128xf32> -> vector<1x128xf32>
    %131 = arith.addf %129, %130 : vector<1x128xf32>
    %132 = arith.addf %131, %8 : vector<1x128xf32>
    %cst_46 = arith.constant 0.000000e+00 : f32
    %133 = vector.broadcast %cst_46 : f32 to vector<1x128xf32>
    %134 = arith.maximumf %132, %133 : vector<1x128xf32>
    %cst_47 = arith.constant dense<0.000000e+00> : vector<1x384xf32>
    %135 = tpu.matmul %134, %6, %cst_47 {dimension_numbers = #tpu.dot_dimension_numbers<[1], [0], [0], [1], [0, 0, 1, 1], [], []>} : vector<1x128xf32>, vector<128x384xf32>, vector<1x384xf32> -> vector<1x384xf32>
    %136 = arith.addf %135, %9 : vector<1x384xf32>
    %137 = vector.extract_strided_slice %114 {offsets = [0, 128], sizes = [1, 384], strides = [1, 1]} : vector<1x512xf32> to vector<1x384xf32>
    %138 = arith.addf %137, %10 : vector<1x384xf32>
    %139 = vector.extract_strided_slice %136 {offsets = [0, 0], sizes = [1, 128], strides = [1, 1]} : vector<1x384xf32> to vector<1x128xf32>
    %140 = vector.extract_strided_slice %138 {offsets = [0, 0], sizes = [1, 128], strides = [1, 1]} : vector<1x384xf32> to vector<1x128xf32>
    %141 = arith.addf %139, %140 : vector<1x128xf32>
    %142 = arith.negf %141 : vector<1x128xf32>
    %143 = math.exp %142 : vector<1x128xf32>
    %cst_48 = arith.constant 1.000000e+00 : f32
    %144 = vector.broadcast %cst_48 : f32 to vector<1x128xf32>
    %145 = arith.addf %144, %143 : vector<1x128xf32>
    %146 = arith.divf %144, %145 : vector<1x128xf32>
    %147 = vector.extract_strided_slice %136 {offsets = [0, 128], sizes = [1, 128], strides = [1, 1]} : vector<1x384xf32> to vector<1x128xf32>
    %148 = vector.extract_strided_slice %138 {offsets = [0, 128], sizes = [1, 128], strides = [1, 1]} : vector<1x384xf32> to vector<1x128xf32>
    %149 = arith.addf %147, %148 : vector<1x128xf32>
    %150 = arith.negf %149 : vector<1x128xf32>
    %151 = math.exp %150 : vector<1x128xf32>
    %cst_49 = arith.constant 1.000000e+00 : f32
    %152 = vector.broadcast %cst_49 : f32 to vector<1x128xf32>
    %153 = arith.addf %152, %151 : vector<1x128xf32>
    %154 = arith.divf %152, %153 : vector<1x128xf32>
    %155 = vector.extract_strided_slice %136 {offsets = [0, 256], sizes = [1, 128], strides = [1, 1]} : vector<1x384xf32> to vector<1x128xf32>
    %156 = vector.extract_strided_slice %138 {offsets = [0, 256], sizes = [1, 128], strides = [1, 1]} : vector<1x384xf32> to vector<1x128xf32>
    %157 = arith.mulf %146, %156 : vector<1x128xf32>
    %158 = arith.addf %155, %157 : vector<1x128xf32>
    %159 = math.tanh %158 : vector<1x128xf32>
    %cst_50 = arith.constant 1.000000e+00 : f32
    %160 = vector.broadcast %cst_50 : f32 to vector<1x128xf32>
    %161 = arith.subf %160, %154 : vector<1x128xf32>
    %162 = arith.mulf %161, %159 : vector<1x128xf32>
    %163 = arith.mulf %154, %113 : vector<1x128xf32>
    %164 = arith.addf %162, %163 : vector<1x128xf32>
    %cst_51 = arith.constant dense<0.000000e+00> : vector<1x512xf32>
    %165 = tpu.matmul %164, %4, %cst_51 {dimension_numbers = #tpu.dot_dimension_numbers<[1], [0], [0], [1], [0, 0, 1, 1], [], []>} : vector<1x128xf32>, vector<128x512xf32>, vector<1x512xf32> -> vector<1x512xf32>
    %166 = vector.extract_strided_slice %2 {offsets = [3, 0], sizes = [1, 128], strides = [1, 1]} : vector<8x256xf32> to vector<1x128xf32>
    %167 = vector.extract_strided_slice %165 {offsets = [0, 0], sizes = [1, 128], strides = [1, 1]} : vector<1x512xf32> to vector<1x128xf32>
    %168 = arith.addf %166, %167 : vector<1x128xf32>
    %169 = arith.addf %168, %7 : vector<1x128xf32>
    %cst_52 = arith.constant dense<0xFF800000> : vector<1xf32>
    %170 = vector.multi_reduction <maximumf>, %169, %cst_52 [1] : vector<1x128xf32> to vector<1xf32>
    %171 = vector.shape_cast %170 : vector<1xf32> to vector<1x1xf32>
    %172 = vector.broadcast %171 : vector<1x1xf32> to vector<1x128xf32>
    %173 = arith.subf %169, %172 : vector<1x128xf32>
    %174 = math.exp %173 : vector<1x128xf32>
    %cst_53 = arith.constant dense<0.000000e+00> : vector<1xf32>
    %175 = vector.multi_reduction <add>, %174, %cst_53 [1] : vector<1x128xf32> to vector<1xf32>
    %176 = vector.shape_cast %175 : vector<1xf32> to vector<1x1xf32>
    %177 = vector.broadcast %176 : vector<1x1xf32> to vector<1x128xf32>
    %178 = arith.divf %174, %177 : vector<1x128xf32>
    %cst_54 = arith.constant dense<0.000000e+00> : vector<1x128xf32>
    %179 = tpu.matmul %178, %3, %cst_54 {dimension_numbers = #tpu.dot_dimension_numbers<[1], [0], [0], [1], [0, 0, 1, 1], [], []>} : vector<1x128xf32>, vector<128x128xf32>, vector<1x128xf32> -> vector<1x128xf32>
    %180 = vector.extract_strided_slice %2 {offsets = [3, 128], sizes = [1, 128], strides = [1, 1]} : vector<8x256xf32> to vector<1x128xf32>
    %cst_55 = arith.constant dense<0.000000e+00> : vector<1x128xf32>
    %181 = tpu.matmul %179, %5, %cst_55 {dimension_numbers = #tpu.dot_dimension_numbers<[1], [0], [0], [1], [0, 0, 1, 1], [], []>} : vector<1x128xf32>, vector<128x128xf32>, vector<1x128xf32> -> vector<1x128xf32>
    %182 = arith.addf %180, %181 : vector<1x128xf32>
    %183 = arith.addf %182, %8 : vector<1x128xf32>
    %cst_56 = arith.constant 0.000000e+00 : f32
    %184 = vector.broadcast %cst_56 : f32 to vector<1x128xf32>
    %185 = arith.maximumf %183, %184 : vector<1x128xf32>
    %cst_57 = arith.constant dense<0.000000e+00> : vector<1x384xf32>
    %186 = tpu.matmul %185, %6, %cst_57 {dimension_numbers = #tpu.dot_dimension_numbers<[1], [0], [0], [1], [0, 0, 1, 1], [], []>} : vector<1x128xf32>, vector<128x384xf32>, vector<1x384xf32> -> vector<1x384xf32>
    %187 = arith.addf %186, %9 : vector<1x384xf32>
    %188 = vector.extract_strided_slice %165 {offsets = [0, 128], sizes = [1, 384], strides = [1, 1]} : vector<1x512xf32> to vector<1x384xf32>
    %189 = arith.addf %188, %10 : vector<1x384xf32>
    %190 = vector.extract_strided_slice %187 {offsets = [0, 0], sizes = [1, 128], strides = [1, 1]} : vector<1x384xf32> to vector<1x128xf32>
    %191 = vector.extract_strided_slice %189 {offsets = [0, 0], sizes = [1, 128], strides = [1, 1]} : vector<1x384xf32> to vector<1x128xf32>
    %192 = arith.addf %190, %191 : vector<1x128xf32>
    %193 = arith.negf %192 : vector<1x128xf32>
    %194 = math.exp %193 : vector<1x128xf32>
    %cst_58 = arith.constant 1.000000e+00 : f32
    %195 = vector.broadcast %cst_58 : f32 to vector<1x128xf32>
    %196 = arith.addf %195, %194 : vector<1x128xf32>
    %197 = arith.divf %195, %196 : vector<1x128xf32>
    %198 = vector.extract_strided_slice %187 {offsets = [0, 128], sizes = [1, 128], strides = [1, 1]} : vector<1x384xf32> to vector<1x128xf32>
    %199 = vector.extract_strided_slice %189 {offsets = [0, 128], sizes = [1, 128], strides = [1, 1]} : vector<1x384xf32> to vector<1x128xf32>
    %200 = arith.addf %198, %199 : vector<1x128xf32>
    %201 = arith.negf %200 : vector<1x128xf32>
    %202 = math.exp %201 : vector<1x128xf32>
    %cst_59 = arith.constant 1.000000e+00 : f32
    %203 = vector.broadcast %cst_59 : f32 to vector<1x128xf32>
    %204 = arith.addf %203, %202 : vector<1x128xf32>
    %205 = arith.divf %203, %204 : vector<1x128xf32>
    %206 = vector.extract_strided_slice %187 {offsets = [0, 256], sizes = [1, 128], strides = [1, 1]} : vector<1x384xf32> to vector<1x128xf32>
    %207 = vector.extract_strided_slice %189 {offsets = [0, 256], sizes = [1, 128], strides = [1, 1]} : vector<1x384xf32> to vector<1x128xf32>
    %208 = arith.mulf %197, %207 : vector<1x128xf32>
    %209 = arith.addf %206, %208 : vector<1x128xf32>
    %210 = math.tanh %209 : vector<1x128xf32>
    %cst_60 = arith.constant 1.000000e+00 : f32
    %211 = vector.broadcast %cst_60 : f32 to vector<1x128xf32>
    %212 = arith.subf %211, %205 : vector<1x128xf32>
    %213 = arith.mulf %212, %210 : vector<1x128xf32>
    %214 = arith.mulf %205, %164 : vector<1x128xf32>
    %215 = arith.addf %213, %214 : vector<1x128xf32>
    %cst_61 = arith.constant dense<0.000000e+00> : vector<1x512xf32>
    %216 = tpu.matmul %215, %4, %cst_61 {dimension_numbers = #tpu.dot_dimension_numbers<[1], [0], [0], [1], [0, 0, 1, 1], [], []>} : vector<1x128xf32>, vector<128x512xf32>, vector<1x512xf32> -> vector<1x512xf32>
    %217 = vector.extract_strided_slice %2 {offsets = [4, 0], sizes = [1, 128], strides = [1, 1]} : vector<8x256xf32> to vector<1x128xf32>
    %218 = vector.extract_strided_slice %216 {offsets = [0, 0], sizes = [1, 128], strides = [1, 1]} : vector<1x512xf32> to vector<1x128xf32>
    %219 = arith.addf %217, %218 : vector<1x128xf32>
    %220 = arith.addf %219, %7 : vector<1x128xf32>
    %cst_62 = arith.constant dense<0xFF800000> : vector<1xf32>
    %221 = vector.multi_reduction <maximumf>, %220, %cst_62 [1] : vector<1x128xf32> to vector<1xf32>
    %222 = vector.shape_cast %221 : vector<1xf32> to vector<1x1xf32>
    %223 = vector.broadcast %222 : vector<1x1xf32> to vector<1x128xf32>
    %224 = arith.subf %220, %223 : vector<1x128xf32>
    %225 = math.exp %224 : vector<1x128xf32>
    %cst_63 = arith.constant dense<0.000000e+00> : vector<1xf32>
    %226 = vector.multi_reduction <add>, %225, %cst_63 [1] : vector<1x128xf32> to vector<1xf32>
    %227 = vector.shape_cast %226 : vector<1xf32> to vector<1x1xf32>
    %228 = vector.broadcast %227 : vector<1x1xf32> to vector<1x128xf32>
    %229 = arith.divf %225, %228 : vector<1x128xf32>
    %cst_64 = arith.constant dense<0.000000e+00> : vector<1x128xf32>
    %230 = tpu.matmul %229, %3, %cst_64 {dimension_numbers = #tpu.dot_dimension_numbers<[1], [0], [0], [1], [0, 0, 1, 1], [], []>} : vector<1x128xf32>, vector<128x128xf32>, vector<1x128xf32> -> vector<1x128xf32>
    %231 = vector.extract_strided_slice %2 {offsets = [4, 128], sizes = [1, 128], strides = [1, 1]} : vector<8x256xf32> to vector<1x128xf32>
    %cst_65 = arith.constant dense<0.000000e+00> : vector<1x128xf32>
    %232 = tpu.matmul %230, %5, %cst_65 {dimension_numbers = #tpu.dot_dimension_numbers<[1], [0], [0], [1], [0, 0, 1, 1], [], []>} : vector<1x128xf32>, vector<128x128xf32>, vector<1x128xf32> -> vector<1x128xf32>
    %233 = arith.addf %231, %232 : vector<1x128xf32>
    %234 = arith.addf %233, %8 : vector<1x128xf32>
    %cst_66 = arith.constant 0.000000e+00 : f32
    %235 = vector.broadcast %cst_66 : f32 to vector<1x128xf32>
    %236 = arith.maximumf %234, %235 : vector<1x128xf32>
    %cst_67 = arith.constant dense<0.000000e+00> : vector<1x384xf32>
    %237 = tpu.matmul %236, %6, %cst_67 {dimension_numbers = #tpu.dot_dimension_numbers<[1], [0], [0], [1], [0, 0, 1, 1], [], []>} : vector<1x128xf32>, vector<128x384xf32>, vector<1x384xf32> -> vector<1x384xf32>
    %238 = arith.addf %237, %9 : vector<1x384xf32>
    %239 = vector.extract_strided_slice %216 {offsets = [0, 128], sizes = [1, 384], strides = [1, 1]} : vector<1x512xf32> to vector<1x384xf32>
    %240 = arith.addf %239, %10 : vector<1x384xf32>
    %241 = vector.extract_strided_slice %238 {offsets = [0, 0], sizes = [1, 128], strides = [1, 1]} : vector<1x384xf32> to vector<1x128xf32>
    %242 = vector.extract_strided_slice %240 {offsets = [0, 0], sizes = [1, 128], strides = [1, 1]} : vector<1x384xf32> to vector<1x128xf32>
    %243 = arith.addf %241, %242 : vector<1x128xf32>
    %244 = arith.negf %243 : vector<1x128xf32>
    %245 = math.exp %244 : vector<1x128xf32>
    %cst_68 = arith.constant 1.000000e+00 : f32
    %246 = vector.broadcast %cst_68 : f32 to vector<1x128xf32>
    %247 = arith.addf %246, %245 : vector<1x128xf32>
    %248 = arith.divf %246, %247 : vector<1x128xf32>
    %249 = vector.extract_strided_slice %238 {offsets = [0, 128], sizes = [1, 128], strides = [1, 1]} : vector<1x384xf32> to vector<1x128xf32>
    %250 = vector.extract_strided_slice %240 {offsets = [0, 128], sizes = [1, 128], strides = [1, 1]} : vector<1x384xf32> to vector<1x128xf32>
    %251 = arith.addf %249, %250 : vector<1x128xf32>
    %252 = arith.negf %251 : vector<1x128xf32>
    %253 = math.exp %252 : vector<1x128xf32>
    %cst_69 = arith.constant 1.000000e+00 : f32
    %254 = vector.broadcast %cst_69 : f32 to vector<1x128xf32>
    %255 = arith.addf %254, %253 : vector<1x128xf32>
    %256 = arith.divf %254, %255 : vector<1x128xf32>
    %257 = vector.extract_strided_slice %238 {offsets = [0, 256], sizes = [1, 128], strides = [1, 1]} : vector<1x384xf32> to vector<1x128xf32>
    %258 = vector.extract_strided_slice %240 {offsets = [0, 256], sizes = [1, 128], strides = [1, 1]} : vector<1x384xf32> to vector<1x128xf32>
    %259 = arith.mulf %248, %258 : vector<1x128xf32>
    %260 = arith.addf %257, %259 : vector<1x128xf32>
    %261 = math.tanh %260 : vector<1x128xf32>
    %cst_70 = arith.constant 1.000000e+00 : f32
    %262 = vector.broadcast %cst_70 : f32 to vector<1x128xf32>
    %263 = arith.subf %262, %256 : vector<1x128xf32>
    %264 = arith.mulf %263, %261 : vector<1x128xf32>
    %265 = arith.mulf %256, %215 : vector<1x128xf32>
    %266 = arith.addf %264, %265 : vector<1x128xf32>
    %cst_71 = arith.constant dense<0.000000e+00> : vector<1x512xf32>
    %267 = tpu.matmul %266, %4, %cst_71 {dimension_numbers = #tpu.dot_dimension_numbers<[1], [0], [0], [1], [0, 0, 1, 1], [], []>} : vector<1x128xf32>, vector<128x512xf32>, vector<1x512xf32> -> vector<1x512xf32>
    %268 = vector.extract_strided_slice %2 {offsets = [5, 0], sizes = [1, 128], strides = [1, 1]} : vector<8x256xf32> to vector<1x128xf32>
    %269 = vector.extract_strided_slice %267 {offsets = [0, 0], sizes = [1, 128], strides = [1, 1]} : vector<1x512xf32> to vector<1x128xf32>
    %270 = arith.addf %268, %269 : vector<1x128xf32>
    %271 = arith.addf %270, %7 : vector<1x128xf32>
    %cst_72 = arith.constant dense<0xFF800000> : vector<1xf32>
    %272 = vector.multi_reduction <maximumf>, %271, %cst_72 [1] : vector<1x128xf32> to vector<1xf32>
    %273 = vector.shape_cast %272 : vector<1xf32> to vector<1x1xf32>
    %274 = vector.broadcast %273 : vector<1x1xf32> to vector<1x128xf32>
    %275 = arith.subf %271, %274 : vector<1x128xf32>
    %276 = math.exp %275 : vector<1x128xf32>
    %cst_73 = arith.constant dense<0.000000e+00> : vector<1xf32>
    %277 = vector.multi_reduction <add>, %276, %cst_73 [1] : vector<1x128xf32> to vector<1xf32>
    %278 = vector.shape_cast %277 : vector<1xf32> to vector<1x1xf32>
    %279 = vector.broadcast %278 : vector<1x1xf32> to vector<1x128xf32>
    %280 = arith.divf %276, %279 : vector<1x128xf32>
    %cst_74 = arith.constant dense<0.000000e+00> : vector<1x128xf32>
    %281 = tpu.matmul %280, %3, %cst_74 {dimension_numbers = #tpu.dot_dimension_numbers<[1], [0], [0], [1], [0, 0, 1, 1], [], []>} : vector<1x128xf32>, vector<128x128xf32>, vector<1x128xf32> -> vector<1x128xf32>
    %282 = vector.extract_strided_slice %2 {offsets = [5, 128], sizes = [1, 128], strides = [1, 1]} : vector<8x256xf32> to vector<1x128xf32>
    %cst_75 = arith.constant dense<0.000000e+00> : vector<1x128xf32>
    %283 = tpu.matmul %281, %5, %cst_75 {dimension_numbers = #tpu.dot_dimension_numbers<[1], [0], [0], [1], [0, 0, 1, 1], [], []>} : vector<1x128xf32>, vector<128x128xf32>, vector<1x128xf32> -> vector<1x128xf32>
    %284 = arith.addf %282, %283 : vector<1x128xf32>
    %285 = arith.addf %284, %8 : vector<1x128xf32>
    %cst_76 = arith.constant 0.000000e+00 : f32
    %286 = vector.broadcast %cst_76 : f32 to vector<1x128xf32>
    %287 = arith.maximumf %285, %286 : vector<1x128xf32>
    %cst_77 = arith.constant dense<0.000000e+00> : vector<1x384xf32>
    %288 = tpu.matmul %287, %6, %cst_77 {dimension_numbers = #tpu.dot_dimension_numbers<[1], [0], [0], [1], [0, 0, 1, 1], [], []>} : vector<1x128xf32>, vector<128x384xf32>, vector<1x384xf32> -> vector<1x384xf32>
    %289 = arith.addf %288, %9 : vector<1x384xf32>
    %290 = vector.extract_strided_slice %267 {offsets = [0, 128], sizes = [1, 384], strides = [1, 1]} : vector<1x512xf32> to vector<1x384xf32>
    %291 = arith.addf %290, %10 : vector<1x384xf32>
    %292 = vector.extract_strided_slice %289 {offsets = [0, 0], sizes = [1, 128], strides = [1, 1]} : vector<1x384xf32> to vector<1x128xf32>
    %293 = vector.extract_strided_slice %291 {offsets = [0, 0], sizes = [1, 128], strides = [1, 1]} : vector<1x384xf32> to vector<1x128xf32>
    %294 = arith.addf %292, %293 : vector<1x128xf32>
    %295 = arith.negf %294 : vector<1x128xf32>
    %296 = math.exp %295 : vector<1x128xf32>
    %cst_78 = arith.constant 1.000000e+00 : f32
    %297 = vector.broadcast %cst_78 : f32 to vector<1x128xf32>
    %298 = arith.addf %297, %296 : vector<1x128xf32>
    %299 = arith.divf %297, %298 : vector<1x128xf32>
    %300 = vector.extract_strided_slice %289 {offsets = [0, 128], sizes = [1, 128], strides = [1, 1]} : vector<1x384xf32> to vector<1x128xf32>
    %301 = vector.extract_strided_slice %291 {offsets = [0, 128], sizes = [1, 128], strides = [1, 1]} : vector<1x384xf32> to vector<1x128xf32>
    %302 = arith.addf %300, %301 : vector<1x128xf32>
    %303 = arith.negf %302 : vector<1x128xf32>
    %304 = math.exp %303 : vector<1x128xf32>
    %cst_79 = arith.constant 1.000000e+00 : f32
    %305 = vector.broadcast %cst_79 : f32 to vector<1x128xf32>
    %306 = arith.addf %305, %304 : vector<1x128xf32>
    %307 = arith.divf %305, %306 : vector<1x128xf32>
    %308 = vector.extract_strided_slice %289 {offsets = [0, 256], sizes = [1, 128], strides = [1, 1]} : vector<1x384xf32> to vector<1x128xf32>
    %309 = vector.extract_strided_slice %291 {offsets = [0, 256], sizes = [1, 128], strides = [1, 1]} : vector<1x384xf32> to vector<1x128xf32>
    %310 = arith.mulf %299, %309 : vector<1x128xf32>
    %311 = arith.addf %308, %310 : vector<1x128xf32>
    %312 = math.tanh %311 : vector<1x128xf32>
    %cst_80 = arith.constant 1.000000e+00 : f32
    %313 = vector.broadcast %cst_80 : f32 to vector<1x128xf32>
    %314 = arith.subf %313, %307 : vector<1x128xf32>
    %315 = arith.mulf %314, %312 : vector<1x128xf32>
    %316 = arith.mulf %307, %266 : vector<1x128xf32>
    %317 = arith.addf %315, %316 : vector<1x128xf32>
    %cst_81 = arith.constant dense<0.000000e+00> : vector<1x512xf32>
    %318 = tpu.matmul %317, %4, %cst_81 {dimension_numbers = #tpu.dot_dimension_numbers<[1], [0], [0], [1], [0, 0, 1, 1], [], []>} : vector<1x128xf32>, vector<128x512xf32>, vector<1x512xf32> -> vector<1x512xf32>
    %319 = vector.extract_strided_slice %2 {offsets = [6, 0], sizes = [1, 128], strides = [1, 1]} : vector<8x256xf32> to vector<1x128xf32>
    %320 = vector.extract_strided_slice %318 {offsets = [0, 0], sizes = [1, 128], strides = [1, 1]} : vector<1x512xf32> to vector<1x128xf32>
    %321 = arith.addf %319, %320 : vector<1x128xf32>
    %322 = arith.addf %321, %7 : vector<1x128xf32>
    %cst_82 = arith.constant dense<0xFF800000> : vector<1xf32>
    %323 = vector.multi_reduction <maximumf>, %322, %cst_82 [1] : vector<1x128xf32> to vector<1xf32>
    %324 = vector.shape_cast %323 : vector<1xf32> to vector<1x1xf32>
    %325 = vector.broadcast %324 : vector<1x1xf32> to vector<1x128xf32>
    %326 = arith.subf %322, %325 : vector<1x128xf32>
    %327 = math.exp %326 : vector<1x128xf32>
    %cst_83 = arith.constant dense<0.000000e+00> : vector<1xf32>
    %328 = vector.multi_reduction <add>, %327, %cst_83 [1] : vector<1x128xf32> to vector<1xf32>
    %329 = vector.shape_cast %328 : vector<1xf32> to vector<1x1xf32>
    %330 = vector.broadcast %329 : vector<1x1xf32> to vector<1x128xf32>
    %331 = arith.divf %327, %330 : vector<1x128xf32>
    %cst_84 = arith.constant dense<0.000000e+00> : vector<1x128xf32>
    %332 = tpu.matmul %331, %3, %cst_84 {dimension_numbers = #tpu.dot_dimension_numbers<[1], [0], [0], [1], [0, 0, 1, 1], [], []>} : vector<1x128xf32>, vector<128x128xf32>, vector<1x128xf32> -> vector<1x128xf32>
    %333 = vector.extract_strided_slice %2 {offsets = [6, 128], sizes = [1, 128], strides = [1, 1]} : vector<8x256xf32> to vector<1x128xf32>
    %cst_85 = arith.constant dense<0.000000e+00> : vector<1x128xf32>
    %334 = tpu.matmul %332, %5, %cst_85 {dimension_numbers = #tpu.dot_dimension_numbers<[1], [0], [0], [1], [0, 0, 1, 1], [], []>} : vector<1x128xf32>, vector<128x128xf32>, vector<1x128xf32> -> vector<1x128xf32>
    %335 = arith.addf %333, %334 : vector<1x128xf32>
    %336 = arith.addf %335, %8 : vector<1x128xf32>
    %cst_86 = arith.constant 0.000000e+00 : f32
    %337 = vector.broadcast %cst_86 : f32 to vector<1x128xf32>
    %338 = arith.maximumf %336, %337 : vector<1x128xf32>
    %cst_87 = arith.constant dense<0.000000e+00> : vector<1x384xf32>
    %339 = tpu.matmul %338, %6, %cst_87 {dimension_numbers = #tpu.dot_dimension_numbers<[1], [0], [0], [1], [0, 0, 1, 1], [], []>} : vector<1x128xf32>, vector<128x384xf32>, vector<1x384xf32> -> vector<1x384xf32>
    %340 = arith.addf %339, %9 : vector<1x384xf32>
    %341 = vector.extract_strided_slice %318 {offsets = [0, 128], sizes = [1, 384], strides = [1, 1]} : vector<1x512xf32> to vector<1x384xf32>
    %342 = arith.addf %341, %10 : vector<1x384xf32>
    %343 = vector.extract_strided_slice %340 {offsets = [0, 0], sizes = [1, 128], strides = [1, 1]} : vector<1x384xf32> to vector<1x128xf32>
    %344 = vector.extract_strided_slice %342 {offsets = [0, 0], sizes = [1, 128], strides = [1, 1]} : vector<1x384xf32> to vector<1x128xf32>
    %345 = arith.addf %343, %344 : vector<1x128xf32>
    %346 = arith.negf %345 : vector<1x128xf32>
    %347 = math.exp %346 : vector<1x128xf32>
    %cst_88 = arith.constant 1.000000e+00 : f32
    %348 = vector.broadcast %cst_88 : f32 to vector<1x128xf32>
    %349 = arith.addf %348, %347 : vector<1x128xf32>
    %350 = arith.divf %348, %349 : vector<1x128xf32>
    %351 = vector.extract_strided_slice %340 {offsets = [0, 128], sizes = [1, 128], strides = [1, 1]} : vector<1x384xf32> to vector<1x128xf32>
    %352 = vector.extract_strided_slice %342 {offsets = [0, 128], sizes = [1, 128], strides = [1, 1]} : vector<1x384xf32> to vector<1x128xf32>
    %353 = arith.addf %351, %352 : vector<1x128xf32>
    %354 = arith.negf %353 : vector<1x128xf32>
    %355 = math.exp %354 : vector<1x128xf32>
    %cst_89 = arith.constant 1.000000e+00 : f32
    %356 = vector.broadcast %cst_89 : f32 to vector<1x128xf32>
    %357 = arith.addf %356, %355 : vector<1x128xf32>
    %358 = arith.divf %356, %357 : vector<1x128xf32>
    %359 = vector.extract_strided_slice %340 {offsets = [0, 256], sizes = [1, 128], strides = [1, 1]} : vector<1x384xf32> to vector<1x128xf32>
    %360 = vector.extract_strided_slice %342 {offsets = [0, 256], sizes = [1, 128], strides = [1, 1]} : vector<1x384xf32> to vector<1x128xf32>
    %361 = arith.mulf %350, %360 : vector<1x128xf32>
    %362 = arith.addf %359, %361 : vector<1x128xf32>
    %363 = math.tanh %362 : vector<1x128xf32>
    %cst_90 = arith.constant 1.000000e+00 : f32
    %364 = vector.broadcast %cst_90 : f32 to vector<1x128xf32>
    %365 = arith.subf %364, %358 : vector<1x128xf32>
    %366 = arith.mulf %365, %363 : vector<1x128xf32>
    %367 = arith.mulf %358, %317 : vector<1x128xf32>
    %368 = arith.addf %366, %367 : vector<1x128xf32>
    %cst_91 = arith.constant dense<0.000000e+00> : vector<1x512xf32>
    %369 = tpu.matmul %368, %4, %cst_91 {dimension_numbers = #tpu.dot_dimension_numbers<[1], [0], [0], [1], [0, 0, 1, 1], [], []>} : vector<1x128xf32>, vector<128x512xf32>, vector<1x512xf32> -> vector<1x512xf32>
    %370 = vector.extract_strided_slice %2 {offsets = [7, 0], sizes = [1, 128], strides = [1, 1]} : vector<8x256xf32> to vector<1x128xf32>
    %371 = vector.extract_strided_slice %369 {offsets = [0, 0], sizes = [1, 128], strides = [1, 1]} : vector<1x512xf32> to vector<1x128xf32>
    %372 = arith.addf %370, %371 : vector<1x128xf32>
    %373 = arith.addf %372, %7 : vector<1x128xf32>
    %cst_92 = arith.constant dense<0xFF800000> : vector<1xf32>
    %374 = vector.multi_reduction <maximumf>, %373, %cst_92 [1] : vector<1x128xf32> to vector<1xf32>
    %375 = vector.shape_cast %374 : vector<1xf32> to vector<1x1xf32>
    %376 = vector.broadcast %375 : vector<1x1xf32> to vector<1x128xf32>
    %377 = arith.subf %373, %376 : vector<1x128xf32>
    %378 = math.exp %377 : vector<1x128xf32>
    %cst_93 = arith.constant dense<0.000000e+00> : vector<1xf32>
    %379 = vector.multi_reduction <add>, %378, %cst_93 [1] : vector<1x128xf32> to vector<1xf32>
    %380 = vector.shape_cast %379 : vector<1xf32> to vector<1x1xf32>
    %381 = vector.broadcast %380 : vector<1x1xf32> to vector<1x128xf32>
    %382 = arith.divf %378, %381 : vector<1x128xf32>
    %cst_94 = arith.constant dense<0.000000e+00> : vector<1x128xf32>
    %383 = tpu.matmul %382, %3, %cst_94 {dimension_numbers = #tpu.dot_dimension_numbers<[1], [0], [0], [1], [0, 0, 1, 1], [], []>} : vector<1x128xf32>, vector<128x128xf32>, vector<1x128xf32> -> vector<1x128xf32>
    %384 = vector.extract_strided_slice %2 {offsets = [7, 128], sizes = [1, 128], strides = [1, 1]} : vector<8x256xf32> to vector<1x128xf32>
    %cst_95 = arith.constant dense<0.000000e+00> : vector<1x128xf32>
    %385 = tpu.matmul %383, %5, %cst_95 {dimension_numbers = #tpu.dot_dimension_numbers<[1], [0], [0], [1], [0, 0, 1, 1], [], []>} : vector<1x128xf32>, vector<128x128xf32>, vector<1x128xf32> -> vector<1x128xf32>
    %386 = arith.addf %384, %385 : vector<1x128xf32>
    %387 = arith.addf %386, %8 : vector<1x128xf32>
    %cst_96 = arith.constant 0.000000e+00 : f32
    %388 = vector.broadcast %cst_96 : f32 to vector<1x128xf32>
    %389 = arith.maximumf %387, %388 : vector<1x128xf32>
    %cst_97 = arith.constant dense<0.000000e+00> : vector<1x384xf32>
    %390 = tpu.matmul %389, %6, %cst_97 {dimension_numbers = #tpu.dot_dimension_numbers<[1], [0], [0], [1], [0, 0, 1, 1], [], []>} : vector<1x128xf32>, vector<128x384xf32>, vector<1x384xf32> -> vector<1x384xf32>
    %391 = arith.addf %390, %9 : vector<1x384xf32>
    %392 = vector.extract_strided_slice %369 {offsets = [0, 128], sizes = [1, 384], strides = [1, 1]} : vector<1x512xf32> to vector<1x384xf32>
    %393 = arith.addf %392, %10 : vector<1x384xf32>
    %394 = vector.extract_strided_slice %391 {offsets = [0, 0], sizes = [1, 128], strides = [1, 1]} : vector<1x384xf32> to vector<1x128xf32>
    %395 = vector.extract_strided_slice %393 {offsets = [0, 0], sizes = [1, 128], strides = [1, 1]} : vector<1x384xf32> to vector<1x128xf32>
    %396 = arith.addf %394, %395 : vector<1x128xf32>
    %397 = arith.negf %396 : vector<1x128xf32>
    %398 = math.exp %397 : vector<1x128xf32>
    %cst_98 = arith.constant 1.000000e+00 : f32
    %399 = vector.broadcast %cst_98 : f32 to vector<1x128xf32>
    %400 = arith.addf %399, %398 : vector<1x128xf32>
    %401 = arith.divf %399, %400 : vector<1x128xf32>
    %402 = vector.extract_strided_slice %391 {offsets = [0, 128], sizes = [1, 128], strides = [1, 1]} : vector<1x384xf32> to vector<1x128xf32>
    %403 = vector.extract_strided_slice %393 {offsets = [0, 128], sizes = [1, 128], strides = [1, 1]} : vector<1x384xf32> to vector<1x128xf32>
    %404 = arith.addf %402, %403 : vector<1x128xf32>
    %405 = arith.negf %404 : vector<1x128xf32>
    %406 = math.exp %405 : vector<1x128xf32>
    %cst_99 = arith.constant 1.000000e+00 : f32
    %407 = vector.broadcast %cst_99 : f32 to vector<1x128xf32>
    %408 = arith.addf %407, %406 : vector<1x128xf32>
    %409 = arith.divf %407, %408 : vector<1x128xf32>
    %410 = vector.extract_strided_slice %391 {offsets = [0, 256], sizes = [1, 128], strides = [1, 1]} : vector<1x384xf32> to vector<1x128xf32>
    %411 = vector.extract_strided_slice %393 {offsets = [0, 256], sizes = [1, 128], strides = [1, 1]} : vector<1x384xf32> to vector<1x128xf32>
    %412 = arith.mulf %401, %411 : vector<1x128xf32>
    %413 = arith.addf %410, %412 : vector<1x128xf32>
    %414 = math.tanh %413 : vector<1x128xf32>
    %cst_100 = arith.constant 1.000000e+00 : f32
    %415 = vector.broadcast %cst_100 : f32 to vector<1x128xf32>
    %416 = arith.subf %415, %409 : vector<1x128xf32>
    %417 = arith.mulf %416, %414 : vector<1x128xf32>
    %418 = arith.mulf %409, %368 : vector<1x128xf32>
    %419 = arith.addf %417, %418 : vector<1x128xf32>
    %420 = tpu.concatenate %62, %113, %164, %215, %266, %317, %368, %419 in 0 : vector<1x128xf32>, vector<1x128xf32>, vector<1x128xf32>, vector<1x128xf32>, vector<1x128xf32>, vector<1x128xf32>, vector<1x128xf32>, vector<1x128xf32> -> vector<8x128xf32>
    %421 = tpu.concatenate %25, %76, %127, %178, %229, %280, %331, %382 in 0 : vector<1x128xf32>, vector<1x128xf32>, vector<1x128xf32>, vector<1x128xf32>, vector<1x128xf32>, vector<1x128xf32>, vector<1x128xf32>, vector<1x128xf32> -> vector<8x128xf32>
    %c0_101 = arith.constant 0 : index
    %c0_102 = arith.constant 0 : index
    %422 = vector.load %arg11[%c0_101, %c0_102] : memref<128x256xf32, #tpu.memory_space<vmem>>, vector<128x256xf32>
    %cst_103 = arith.constant dense<0.000000e+00> : vector<8x256xf32>
    %423 = tpu.matmul %420, %422, %cst_103 {dimension_numbers = #tpu.dot_dimension_numbers<[1], [0], [0], [1], [0, 0, 1, 1], [], []>} : vector<8x128xf32>, vector<128x256xf32>, vector<8x256xf32> -> vector<8x256xf32>
    %c0_104 = arith.constant 0 : index
    %c0_105 = arith.constant 0 : index
    %424 = vector.load %arg12[%c0_104, %c0_105] : memref<1x256xf32, #tpu.memory_space<vmem>>, vector<1x256xf32>
    %425 = vector.broadcast %424 : vector<1x256xf32> to vector<8x256xf32>
    %426 = arith.addf %423, %425 : vector<8x256xf32>
    %cst_106 = arith.constant dense<0xFF800000> : vector<8xf32>
    %427 = vector.multi_reduction <maximumf>, %426, %cst_106 [1] : vector<8x256xf32> to vector<8xf32>
    %428 = vector.shape_cast %427 : vector<8xf32> to vector<8x1xf32>
    %429 = vector.broadcast %428 : vector<8x1xf32> to vector<8x256xf32>
    %430 = arith.subf %426, %429 : vector<8x256xf32>
    %431 = math.exp %430 : vector<8x256xf32>
    %cst_107 = arith.constant dense<0.000000e+00> : vector<8xf32>
    %432 = vector.multi_reduction <add>, %431, %cst_107 [1] : vector<8x256xf32> to vector<8xf32>
    %433 = vector.shape_cast %432 : vector<8xf32> to vector<8x1xf32>
    %434 = math.log %433 : vector<8x1xf32>
    %435 = arith.addf %434, %428 : vector<8x1xf32>
    %436 = vector.broadcast %435 : vector<8x1xf32> to vector<8x256xf32>
    %437 = arith.subf %426, %436 : vector<8x256xf32>
    %c0_108 = arith.constant 0 : index
    %c0_109 = arith.constant 0 : index
    %438 = vector.load %arg13[%c0_108, %c0_109] : memref<8x256xf32, #tpu.memory_space<vmem>>, vector<8x256xf32>
    tpu.vector_store %arg13[%c0_108, %c0_109], %437 {strides = array<i32>} : memref<8x256xf32, #tpu.memory_space<vmem>>, vector<8x256xf32>,
    %c0_110 = arith.constant 0 : index
    %c0_111 = arith.constant 0 : index
    %439 = vector.load %arg14[%c0_110, %c0_111] : memref<8x128xf32, #tpu.memory_space<vmem>>, vector<8x128xf32>
    tpu.vector_store %arg14[%c0_110, %c0_111], %420 {strides = array<i32>} : memref<8x128xf32, #tpu.memory_space<vmem>>, vector<8x128xf32>,
    %c0_112 = arith.constant 0 : index
    %c0_113 = arith.constant 0 : index
    %440 = vector.load %arg15[%c0_112, %c0_113] : memref<8x128xf32, #tpu.memory_space<vmem>>, vector<8x128xf32>
    tpu.vector_store %arg15[%c0_112, %c0_113], %421 {strides = array<i32>} : memref<8x128xf32, #tpu.memory_space<vmem>>, vector<8x128xf32>,
    return
  }
}

</mosaic_0001>

<bundles_post_ra>
// kernel: attn_decoder_forward.1
= control target key start
LH: loop header
LB: loop body
LE: loop exit
PB: predicated region body
PF: predicated region fallthrough
CT: control target
= control target key end

     0   :  { %21 = vsyncpa [#allocation3], 0  ;;  %s11320_s0 = inlined_call_operand.vmem [shape: f32[8,128], index: 0, kind: input, shape index: {}]   ;;  %s11321_s1 = inlined_call_operand.vmem [shape: f32[1,128], index: 1, kind: input, shape index: {}]   ;;  %s11322_s2 = inlined_call_operand.vmem [shape: f32[128,128], index: 2, kind: input, shape index: {}]   ;;  %s11323_s3 = inlined_call_operand.vmem [shape: f32[128,256], index: 3, kind: input, shape index: {}]   ;;  %s11324_s4 = inlined_call_operand.vmem [shape: f32[128,512], index: 4, kind: input, shape index: {}]   ;;  %s11325_s5 = inlined_call_operand.vmem [shape: f32[128,128], index: 5, kind: input, shape index: {}]   ;;  %s11326_s6 = inlined_call_operand.vmem [shape: f32[128,384], index: 6, kind: input, shape index: {}]   ;;  %s11327_s7 = inlined_call_operand.vmem [shape: f32[1,128], index: 7, kind: input, shape index: {}]   ;;  %s11328_s8 = inlined_call_operand.vmem [shape: f32[1,128], index: 8, kind: input, shape index: {}]   ;;  %s11329_s9 = inlined_call_operand.vmem [shape: f32[1,384], index: 9, kind: input, shape index: {}]   ;;  %s11330_s10 = inlined_call_operand.vmem [shape: f32[1,384], index: 10, kind: input, shape index: {}]   ;;  %s11331_s11 = inlined_call_operand.vmem [shape: f32[128,256], index: 11, kind: input, shape index: {}]   ;;  %s11332_s12 = inlined_call_operand.vmem [shape: f32[1,256], index: 12, kind: input, shape index: {}]   ;;  %s11333_s13 = inlined_call_operand.hbm [shape: f32[8,256], index: 13, kind: output, shape index: {0}]   ;;  %s11334_s14 = inlined_call_operand.hbm [shape: f32[8,128], index: 14, kind: output, shape index: {1}]   ;;  %s11335_s15 = inlined_call_operand.hbm [shape: f32[8,128], index: 15, kind: output, shape index: {2}]  }
   0x1   :  { %v81_v0 = vld [vmem:[%s11323_s3 + $0xf8] sm:$0xff]  ;;  %v6334_v1 = vld [vmem:[%s11324_s4 + $0x1e8] sm:$0xff]  ;;  %v80_v2 = vld [vmem:[%s11323_s3 + $0xf0] sm:$0xff] }
   0x2   :  { %82 = vmatprep.subr.mxu0 %v81_v0  ;;  %302 = vmatprep.subr.mxu1 %v6334_v1  ;;  %v6343_v3 = vld [vmem:[%s11324_s4 + $0x1e0] sm:$0xff]  ;;  %v79_v4 = vld [vmem:[%s11323_s3 + $0xe8] sm:$0xff]  ;;  %v77_v8 = vld [vmem:[%s11323_s3 + $0xd8] sm:$0xff] }
   0x3   :  { %v6351_v5 = vld [vmem:[%s11324_s4 + $0x1c8] sm:$0xff]  ;;  %83 = vmatpush1.msra.mxu0 %v80_v2  ;;  %303 = vmatpush1.msra.mxu1 %v6343_v3  ;;  %v78_v6 = vld [vmem:[%s11323_s3 + $0xe0] sm:$0xff]  ;;  %v76_v10 = vld [vmem:[%s11323_s3 + $0xd0] sm:$0xff] }
   0x4   :  { %v6360_v7 = vld [vmem:[%s11324_s4 + $0x1c0] sm:$0xff]  ;;  %84 = vmatprep.subr.mxu0 %v79_v4  ;;  %304 = vmatprep.subr.mxu1 %v6351_v5  ;;  %v6369_v9 = vld [vmem:[%s11324_s4 + $0x1a8] sm:$0xff]  ;;  %v73_v16 = vld [vmem:[%s11323_s3 + $0xb8] sm:$0xff] }
   0x5   :  { %v6377_v11 = vld [vmem:[%s11324_s4 + $0x1a0] sm:$0xff]  ;;  %85 = vmatpush1.msra.mxu0 %v78_v6  ;;  %305 = vmatpush1.msra.mxu1 %v6360_v7  ;;  %v75_v12 = vld [vmem:[%s11323_s3 + $0xc8] sm:$0xff]  ;;  %v72_v18 = vld [vmem:[%s11323_s3 + $0xb0] sm:$0xff] }
   0x6   :  { %v6386_v13 = vld [vmem:[%s11324_s4 + $0x188] sm:$0xff]  ;;  %86 = vmatprep.subr.mxu0 %v77_v8  ;;  %306 = vmatprep.subr.mxu1 %v6369_v9  ;;  %v74_v14 = vld [vmem:[%s11323_s3 + $0xc0] sm:$0xff]  ;;  %v69_v24 = vld [vmem:[%s11323_s3 + $0x98] sm:$0xff] }
   0x7   :  { %v6395_v15 = vld [vmem:[%s11324_s4 + $0x180] sm:$0xff]  ;;  %87 = vmatpush1.msra.mxu0 %v76_v10  ;;  %307 = vmatpush1.msra.mxu1 %v6377_v11  ;;  %v6404_v17 = vld [vmem:[%s11324_s4 + $0x168] sm:$0xff]  ;;  %v68_v26 = vld [vmem:[%s11323_s3 + $0x90] sm:$0xff] }
   0x8   :  { %88 = vmatprep.subr.mxu0 %v75_v12  ;;  %308 = vmatprep.subr.mxu1 %v6386_v13  ;;  %v6413_v19 = vld [vmem:[%s11324_s4 + $0x160] sm:$0xff]  ;;  %v71_v20 = vld [vmem:[%s11323_s3 + $0xa8] sm:$0xff]  ;;  %v65_v32 = vld [vmem:[%s11323_s3 + $0x78] sm:$0xff] }
   0x9   :  { %89 = vmatpush1.msra.mxu0 %v74_v14  ;;  %309 = vmatpush1.msra.mxu1 %v6395_v15  ;;  %v6422_v21 = vld [vmem:[%s11324_s4 + $0x148] sm:$0xff]  ;;  %v70_v22 = vld [vmem:[%s11323_s3 + $0xa0] sm:$0xff]  ;;  %v64_v34 = vld [vmem:[%s11323_s3 + $0x70] sm:$0xff] }
   0xa   :  { %90 = vmatprep.subr.mxu0 %v73_v16  ;;  %310 = vmatprep.subr.mxu1 %v6404_v17  ;;  %v6431_v23 = vld [vmem:[%s11324_s4 + $0x140] sm:$0xff]  ;;  %v6440_v25 = vld [vmem:[%s11324_s4 + $0x128] sm:$0xff]  ;;  %v61_v40 = vld [vmem:[%s11323_s3 + $0x58] sm:$0xff] }
   0xb   :  { %91 = vmatpush1.msra.mxu0 %v72_v18  ;;  %311 = vmatpush1.msra.mxu1 %v6413_v19  ;;  %v6449_v27 = vld [vmem:[%s11324_s4 + $0x120] sm:$0xff]  ;;  %v67_v28 = vld [vmem:[%s11323_s3 + $0x88] sm:$0xff]  ;;  %v60_v42 = vld [vmem:[%s11323_s3 + $0x50] sm:$0xff] }
   0xc   :  { %92 = vmatprep.subr.mxu0 %v71_v20  ;;  %312 = vmatprep.subr.mxu1 %v6422_v21  ;;  %v6458_v29 = vld [vmem:[%s11324_s4 + $0x108] sm:$0xff]  ;;  %v66_v30 = vld [vmem:[%s11323_s3 + $0x80] sm:$0xff]  ;;  %v57_v48 = vld [vmem:[%s11323_s3 + $0x38] sm:$0xff] }
   0xd   :  { %93 = vmatpush1.msra.mxu0 %v70_v22  ;;  %313 = vmatpush1.msra.mxu1 %v6431_v23  ;;  %v6467_v31 = vld [vmem:[%s11324_s4 + $0x100] sm:$0xff]  ;;  %v6476_v33 = vld [vmem:[%s11324_s4 + $0xe8] sm:$0xff] }
   0xe   :  { %94 = vmatprep.subr.mxu0 %v69_v24  ;;  %314 = vmatprep.subr.mxu1 %v6440_v25  ;;  %v6485_v35 = vld [vmem:[%s11324_s4 + $0xe0] sm:$0xff]  ;;  %v63_v36 = vld [vmem:[%s11323_s3 + $0x68] sm:$0xff] }
   0xf   :  { %95 = vmatpush1.msra.mxu0 %v68_v26  ;;  %315 = vmatpush1.msra.mxu1 %v6449_v27  ;;  %v6494_v37 = vld [vmem:[%s11324_s4 + $0xc8] sm:$0xff]  ;;  %v62_v38 = vld [vmem:[%s11323_s3 + $0x60] sm:$0xff] }
  0x10   :  { %96 = vmatprep.subr.mxu0 %v67_v28  ;;  %316 = vmatprep.subr.mxu1 %v6458_v29  ;;  %v6503_v39 = vld [vmem:[%s11324_s4 + $0xc0] sm:$0xff]  ;;  %v6512_v41 = vld [vmem:[%s11324_s4 + $0xa8] sm:$0xff] }
  0x11   :  { %97 = vmatpush1.msra.mxu0 %v66_v30  ;;  %317 = vmatpush1.msra.mxu1 %v6467_v31  ;;  %v6521_v43 = vld [vmem:[%s11324_s4 + $0xa0] sm:$0xff]  ;;  %v59_v44 = vld [vmem:[%s11323_s3 + $0x48] sm:$0xff] }
  0x12   :  { %98 = vmatprep.subr.mxu0 %v65_v32  ;;  %318 = vmatprep.subr.mxu1 %v6476_v33  ;;  %v6530_v45 = vld [vmem:[%s11324_s4 + $0x88] sm:$0xff]  ;;  %v58_v46 = vld [vmem:[%s11323_s3 + $0x40] sm:$0xff] }
  0x13   :  { %99 = vmatpush1.msra.mxu0 %v64_v34  ;;  %319 = vmatpush1.msra.mxu1 %v6485_v35  ;;  %v6539_v47 = vld [vmem:[%s11324_s4 + $0x80] sm:$0xff]  ;;  %v6548_v49 = vld [vmem:[%s11324_s4 + $0x68] sm:$0xff] }
  0x14   :  { %100 = vmatprep.subr.mxu0 %v63_v36  ;;  %320 = vmatprep.subr.mxu1 %v6494_v37 }
  0x15   :  { %101 = vmatpush1.msra.mxu0 %v62_v38  ;;  %321 = vmatpush1.msra.mxu1 %v6503_v39 }
  0x16   :  { %102 = vmatprep.subr.mxu0 %v61_v40  ;;  %322 = vmatprep.subr.mxu1 %v6512_v41 }
  0x17   :  { %103 = vmatpush1.msra.mxu0 %v60_v42  ;;  %323 = vmatpush1.msra.mxu1 %v6521_v43 }
  0x18   :  { %22 = vsyncpa [#allocation5], 0  ;;  %104 = vmatprep.subr.mxu0 %v59_v44  ;;  %324 = vmatprep.subr.mxu1 %v6530_v45  ;;  %v56_v50 = vld [vmem:[%s11323_s3 + $0x30] sm:$0xff]  ;;  %v6557_v51 = vld [vmem:[%s11324_s4 + $0x60] sm:$0xff]  ;;  %v11336_v4 = vmov 0.0   ;;  %vm446_vm0 = vcmask 1040384  }
  0x19   :  { %105 = vmatpush1.msra.mxu0 %v58_v46  ;;  %325 = vmatpush1.msra.mxu1 %v6539_v47  ;;  %v55_v52 = vld [vmem:[%s11323_s3 + $0x28] sm:$0xff]  ;;  %v54_v54 = vld [vmem:[%s11323_s3 + $0x20] sm:$0xff]  ;;  %v53_v56 = vld [vmem:[%s11323_s3 + $0x18] sm:$0xff]  ;;  %vm6244_vm1 = vmmov 0   ;;  %vm951_vm2 = vcmask 1041409   ;;  %vm1433_vm3 = vcmask 1042434  }
  0x1a   :  { %v6566_v53 = vld [vmem:[%s11324_s4 + $0x48] sm:$0xff]  ;;  %106 = vmatprep.subr.mxu0 %v57_v48  ;;  %326 = vmatprep.subr.mxu1 %v6548_v49  ;;  %v6575_v55 = vld [vmem:[%s11324_s4 + $0x40] sm:$0xff]  ;;  %v52_v58 = vld [vmem:[%s11323_s3 + $0x10] sm:$0xff]  ;;  %vm4164_vm4 = vcmask 1041408   ;;  %vm1909_vm5 = vcmask 1043459   ;;  %vm4166_vm6 = vcmask 1042432  }
  0x1b   :  { %107 = vmatpush1.msra.mxu0 %v56_v50  ;;  %327 = vmatpush1.msra.mxu1 %v6557_v51  ;;  %v6584_v57 = vld [vmem:[%s11324_s4 + $0x28] sm:$0xff]  ;;  %v6593_v59 = vld [vmem:[%s11324_s4 + $0x20] sm:$0xff]  ;;  %v6642_v18 = vld [vmem:[%s11322_s2 + $0x78] sm:$0xff]  ;;  %vm2385_vm7 = vcmask 1044484   ;;  %vm4168_vm8 = vcmask 1043456   ;;  %vm2861_vm9 = vcmask 1045509  }
  0x1c   :  { %11745 = vst [vmem:[#allocation9_spill] sm:$0xff] %v6584_v57  ;;  %108 = vmatprep.subr.mxu0 %v55_v52  ;;  %328 = vmatprep.subr.mxu1 %v6566_v53  ;;  %11746 = vst [vmem:[#allocation10_spill] sm:$0xff] %v6593_v59  ;;  %v51_v60 = vld [vmem:[%s11323_s3 + $0x8] sm:$0xff]  ;;  %v50_v62 = vld [vmem:[%s11323_s3] sm:$0xff]  ;;  %vm4170_vm10 = vcmask 1044480   ;;  %vm3337_vm11 = vcmask 1046534  }
  0x1d   :  { %109 = vmatpush1.msra.mxu0 %v54_v54  ;;  %329 = vmatpush1.msra.mxu1 %v6575_v55  ;;  %v6602_v61 = vld [vmem:[%s11324_s4 + $0x8] sm:$0xff]  ;;  %v6612_v63 = vld [vmem:[%s11324_s4] sm:$0xff]  ;;  %11752 = vst [vmem:[#allocation16_spill] sm:$0xff] %v6642_v18  ;;  %v6647_v20 = vld [vmem:[%s11322_s2 + $0x70] sm:$0xff]  ;;  %vm4172_vm12 = vcmask 1045504   ;;  %vm3813_vm13 = vcmask 1047559  }
  0x1e   :  { %11747 = vst [vmem:[#allocation11_spill] sm:$0xff] %v6602_v61  ;;  %110 = vmatprep.subr.mxu0 %v53_v56  ;;  %330 = vmatprep.subr.mxu1 %v6584_v57  ;;  %11748 = vst [vmem:[#allocation12_spill] sm:$0xff] %v6612_v63  ;;  %v49_v0 = vld [vmem:[%s11320_s0] sm:$0xff]  ;;  %v6654_v22 = vld [vmem:[%s11322_s2 + $0x68] sm:$0xff]  ;;  %v11774_v57 = vmov 0.0   ;;  %vm4174_vm14 = vcmask 1046528  }
  0x1f   :  { %111 = vmatpush1.msra.mxu0 %v52_v58  ;;  %331 = vmatpush1.msra.mxu1 %v6593_v59  ;;  %v6621_v2 = vld [vmem:[%s11321_s1] sm:$0x1]  ;;  %11753 = vst [vmem:[#allocation17_spill] sm:$0xff] %v6647_v20  ;;  %11754 = vst [vmem:[#allocation18_spill] sm:$0xff] %v6654_v22  ;;  %v6668_v26 = vld [vmem:[%s11322_s2 + $0x58] sm:$0xff] }
  0x20   :  { %112 = vmatprep.subr.mxu0 %v51_v60  ;;  %332 = vmatprep.subr.mxu1 %v6602_v61  ;;  %11749 = vst [vmem:[#allocation13_spill] sm:$0xff] %v6621_v2  ;;  %v6634_v10 = vld [vmem:[%s11327_s7] sm:$0x1]  ;;  %11756 = vst [vmem:[#allocation20_spill] sm:$0xff] %v6668_v26  ;;  %v6675_v28 = vld [vmem:[%s11322_s2 + $0x50] sm:$0xff] }
  0x21   :  { %113 = vmatpush1.msra.mxu0 %v50_v62  ;;  %146 = vmatprep.mubr.f32.mxu0 %v11336_v4  ;;  %11751 = vst [vmem:[#allocation15_spill] sm:$0xff] %v6634_v10  ;;  %v6661_v24 = vld [vmem:[%s11322_s2 + $0x60] sm:$0xff]  ;;  %11757 = vst [vmem:[#allocation21_spill] sm:$0xff] %v6675_v28  ;;  %v6682_v30 = vld [vmem:[%s11322_s2 + $0x48] sm:$0xff] }
  0x22   :  { %333 = vmatpush1.msra.mxu1 %v6612_v63  ;;  %366 = vmatprep.mubr.f32.mxu1 %v11336_v4  ;;  %11755 = vst [vmem:[#allocation19_spill] sm:$0xff] %v6661_v24  ;;  %11758 = vst [vmem:[#allocation22_spill] sm:$0xff] %v6682_v30  ;;  %v6689_v32 = vld [vmem:[%s11322_s2 + $0x40] sm:$0xff]  ;;  %v6702_v44 = vld [vmem:[%s11322_s2 + $0x38] sm:$0xff] }
  0x23   :  { %147 = vmatmul.mubr.f32.vlgmr.msra.gmra.mxu0 %v49_v0  ;;  %367 = vmatmul.mubr.f32.vlgmr.msra.gmra.mxu1 %v6621_v2  ;;  %11759 = vst [vmem:[#allocation23_spill] sm:$0xff] %v6689_v32  ;;  %11760 = vst [vmem:[#allocation24_spill] sm:$0xff] %v6702_v44  ;;  %v6707_v46 = vld [vmem:[%s11322_s2 + $0x30] sm:$0xff]  ;;  %v6716_v48 = vld [vmem:[%s11322_s2 + $0x28] sm:$0xff] }
  0x24   :  { %4784 = vmatprep.subr.mxu1 %v11336_v4  ;;  %437 = vmatprep.mubr.f32.mxu0 %v11336_v4  ;;  %11761 = vst [vmem:[#allocation25_spill] sm:$0xff] %v6707_v46  ;;  %11762 = vst [vmem:[#allocation26_spill] sm:$0xff] %v6716_v48  ;;  %v6723_v50 = vld [vmem:[%s11322_s2 + $0x20] sm:$0xff]  ;;  %v6730_v52 = vld [vmem:[%s11322_s2 + $0x18] sm:$0xff] }
  0x25   :  { %4785 = vmatpush3.msra.mxu1 %v6642_v18  ;;  %4816 = vmatprep.mubr.msk.f32.mxu1 %vm6244_vm1, %v11336_v4  ;;  %11763 = vst [vmem:[#allocation27_spill] sm:$0xff] %v6723_v50  ;;  %11764 = vst [vmem:[#allocation28_spill] sm:$0xff] %v6730_v52  ;;  %v6737_v54 = vld [vmem:[%s11322_s2 + $0x10] sm:$0xff]  ;;  %v6744_v56 = vld [vmem:[%s11322_s2 + $0x8] sm:$0xff] }
  0x26   :  { %4786 = vmatprep.subr.mxu1 %v11336_v4  ;;  %11765 = vst [vmem:[#allocation29_spill] sm:$0xff] %v6737_v54  ;;  %11766 = vst [vmem:[#allocation30_spill] sm:$0xff] %v6744_v56  ;;  %v6751_v58 = vld [vmem:[%s11322_s2] sm:$0xff]  ;;  %v6759_v60 = vld [vmem:[%s11324_s4 + $0x1f8] sm:$0xff] }
  0x27   :  { %4787 = vmatpush3.msra.mxu1 %v6647_v20  ;;  %11767 = vst [vmem:[#allocation31_spill] sm:$0xff] %v6751_v58  ;;  %v6764_v62 = vld [vmem:[%s11324_s4 + $0x1f0] sm:$0xff]  ;;  %v6769_v0 = vld [vmem:[%s11324_s4 + $0x1d8] sm:$0xff]  ;;  %373 = vmatprep.subr.mxu0 %v6759_v60 }
  0x28   :  { %4788 = vmatprep.subr.mxu1 %v11336_v4  ;;  %374 = vmatpush1.msra.mxu0 %v6764_v62  ;;  %v6925_v20 = vld [vmem:[%s11324_s4 + $0x38] sm:$0xff]  ;;  %v6931_v18 = vld [vmem:[%s11324_s4 + $0x30] sm:$0xff] }
  0x29   :  { %4789 = vmatpush3.msra.mxu1 %v6654_v22  ;;  %375 = vmatprep.subr.mxu0 %v6769_v0  ;;  %v6919_v22 = vld [vmem:[%s11324_s4 + $0x50] sm:$0xff]  ;;  %11769 = vst [vmem:[#allocation33_spill] sm:$0xff] %v6925_v20  ;;  %11770 = vst [vmem:[#allocation34_spill] sm:$0xff] %v6931_v18  ;;  %v6937_v63 = vld [vmem:[%s11324_s4 + $0x18] sm:$0xff] }
  0x2a   :  { %4790 = vmatprep.subr.mxu1 %v11336_v4  ;;  %11768 = vst [vmem:[#allocation32_spill] sm:$0xff] %v6919_v22  ;;  %11771 = vst [vmem:[#allocation35_spill] sm:$0xff] %v6937_v63  ;;  %v6943_v61 = vld [vmem:[%s11324_s4 + $0x10] sm:$0xff]  ;;  %v6950_v59 = vld [vmem:[%s11325_s5 + $0x78] sm:$0xff] }
  0x2b   :  { %4791 = vmatpush3.msra.mxu1 %v6661_v24  ;;  %v6913_v24 = vld [vmem:[%s11324_s4 + $0x58] sm:$0xff]  ;;  %11772 = vst [vmem:[#allocation36_spill] sm:$0xff] %v6943_v61  ;;  %11773 = vst [vmem:[#allocation37_spill] sm:$0xff] %v6950_v59 }
  0x2c   :  { %4792 = vmatprep.subr.mxu1 %v11336_v4 }
  0x2d   :  { %4793 = vmatpush3.msra.mxu1 %v6668_v26  ;;  %v6907_v26 = vld [vmem:[%s11324_s4 + $0x70] sm:$0xff] }
  0x2e   :  { %4794 = vmatprep.subr.mxu1 %v11336_v4 }
  0x2f   :  { %4795 = vmatpush3.msra.mxu1 %v6675_v28  ;;  %v6901_v28 = vld [vmem:[%s11324_s4 + $0x78] sm:$0xff] }
  0x30   :  { %4796 = vmatprep.subr.mxu1 %v11336_v4 }
  0x31   :  { %4797 = vmatpush3.msra.mxu1 %v6682_v30  ;;  %v6895_v30 = vld [vmem:[%s11324_s4 + $0x90] sm:$0xff] }
  0x32   :  { %4798 = vmatprep.subr.mxu1 %v11336_v4 }
  0x33   :  { %4799 = vmatpush3.msra.mxu1 %v6689_v32  ;;  %v6889_v32 = vld [vmem:[%s11324_s4 + $0x98] sm:$0xff] }
  0x34   :  { %4800 = vmatprep.subr.mxu1 %v11336_v4 }
  0x35   :  { %4801 = vmatpush3.msra.mxu1 %v6702_v44  ;;  %v6883_v44 = vld [vmem:[%s11324_s4 + $0xb0] sm:$0xff] }
  0x36   :  { %4802 = vmatprep.subr.mxu1 %v11336_v4 }
  0x37   :  { %4803 = vmatpush3.msra.mxu1 %v6707_v46  ;;  %v6877_v46 = vld [vmem:[%s11324_s4 + $0xb8] sm:$0xff] }
  0x38   :  { %4804 = vmatprep.subr.mxu1 %v11336_v4 }
  0x39   :  { %4805 = vmatpush3.msra.mxu1 %v6716_v48  ;;  %v6871_v48 = vld [vmem:[%s11324_s4 + $0xd0] sm:$0xff] }
  0x3a   :  { %4806 = vmatprep.subr.mxu1 %v11336_v4 }
  0x3b   :  { %4807 = vmatpush3.msra.mxu1 %v6723_v50  ;;  %v6865_v50 = vld [vmem:[%s11324_s4 + $0xd8] sm:$0xff] }
  0x3c   :  { %4808 = vmatprep.subr.mxu1 %v11336_v4 }
  0x3d   :  { %4809 = vmatpush3.msra.mxu1 %v6730_v52  ;;  %v6859_v52 = vld [vmem:[%s11324_s4 + $0xf0] sm:$0xff] }
  0x3e   :  { %4810 = vmatprep.subr.mxu1 %v11336_v4 }
  0x3f   :  { %4811 = vmatpush3.msra.mxu1 %v6737_v54  ;;  %v6853_v54 = vld [vmem:[%s11324_s4 + $0xf8] sm:$0xff] }
  0x40   :  { %4812 = vmatprep.subr.mxu1 %v11336_v4 }
  0x41   :  { %4813 = vmatpush3.msra.mxu1 %v6744_v56  ;;  %v6847_v56 = vld [vmem:[%s11324_s4 + $0x110] sm:$0xff] }
  0x42   :  { %4814 = vmatprep.subr.mxu1 %v11336_v4  ;;  %v6823_v4 = vld [vmem:[%s11324_s4 + $0x150] sm:$0xff] }
  0x43   :  { %4815 = vmatpush3.msra.mxu1 %v6751_v58  ;;  %v6841_v58 = vld [vmem:[%s11324_s4 + $0x118] sm:$0xff] }
  0xe3   :  { %v6629_v6 = vpop.f32.mrf.mxu0  ;;  %v368_v8 = vpop.f32.mrf.mxu1 }
  0xe4   :  { %11750 = vst [vmem:[#allocation14_spill] sm:$0xff] %v6629_v6  ;;  %v444_v12 = vadd.f32 %v368_v8, %v6629_v6  ;;  %v6775_v8 = vld [vmem:[%s11324_s4 + $0x1d0] sm:$0xff]  ;;  %v6829_v6 = vld [vmem:[%s11324_s4 + $0x138] sm:$0xff] }
  0xe5   :  { %376 = vmatpush1.msra.mxu0 %v6775_v8 }
  0xe6   :  { %v445_v14 = vadd.f32 %v444_v12, %v6634_v10  ;;  %v6781_v12 = vld [vmem:[%s11324_s4 + $0x1b8] sm:$0xff]  ;;  %v6835_v10 = vld [vmem:[%s11324_s4 + $0x130] sm:$0xff] }
  0xe7   :  { %377 = vmatprep.subr.mxu0 %v6781_v12 }
  0xe8   :  { %v447_v16 = vsel %vm446_vm0, %v445_v14, -inf }
  0xe9   :  { %448 = vmax.xlane.f32.xlu0 %v447_v16  ;;  %v6793_v16 = vld [vmem:[%s11324_s4 + $0x198] sm:$0xff] }
 0x172   :  { %v449_v34 = vpop.xlane.xlu0 %448 }
 0x173   :  { %v450_v36 = vsub.f32 %v445_v14, %v449_v34  ;;  %v6787_v14 = vld [vmem:[%s11324_s4 + $0x1b0] sm:$0xff] }
 0x174   :  { %v6799_v34 = vld [vmem:[%s11324_s4 + $0x190] sm:$0xff]  ;;  %378 = vmatpush1.msra.mxu0 %v6787_v14 }
 0x175   :  { %v451_v38 = vmul.f32 1.442695, %v450_v36  ;;  %v6805_v36 = vld [vmem:[%s11324_s4 + $0x178] sm:$0xff]  ;;  %379 = vmatprep.subr.mxu0 %v6793_v16 }
 0x176   :  { %380 = vmatpush1.msra.mxu0 %v6799_v34 }
 0x177   :  { %5629 = vpow2.f32 %v451_v38  ;;  %v6811_v38 = vld [vmem:[%s11324_s4 + $0x170] sm:$0xff]  ;;  %381 = vmatprep.subr.mxu0 %v6805_v36 }
 0x178   :  { %382 = vmatpush1.msra.mxu0 %v6811_v38 }
 0x184   :  { %v6695_v40 = vpop.eup %5629 }
 0x185   :  { %v453_v42 = vsel %vm446_vm0, %v6695_v40, 0.0 }
 0x186   :  { %454 = vadd.xlane.f32.xlu0 %v453_v42  ;;  %v6817_v42 = vld [vmem:[%s11324_s4 + $0x158] sm:$0xff] }
 0x187   :  { %383 = vmatprep.subr.mxu0 %v6817_v42 }
 0x188   :  { %384 = vmatpush1.msra.mxu0 %v6823_v4 }
 0x189   :  { %385 = vmatprep.subr.mxu0 %v6829_v6 }
 0x18a   :  { %386 = vmatpush1.msra.mxu0 %v6835_v10 }
 0x18b   :  { %387 = vmatprep.subr.mxu0 %v6841_v58 }
 0x18c   :  { %388 = vmatpush1.msra.mxu0 %v6847_v56 }
 0x18d   :  { %389 = vmatprep.subr.mxu0 %v6853_v54 }
 0x18e   :  { %390 = vmatpush1.msra.mxu0 %v6859_v52 }
 0x18f   :  { %391 = vmatprep.subr.mxu0 %v6865_v50 }
 0x190   :  { %392 = vmatpush1.msra.mxu0 %v6871_v48 }
 0x191   :  { %393 = vmatprep.subr.mxu0 %v6877_v46 }
 0x192   :  { %394 = vmatpush1.msra.mxu0 %v6883_v44 }
 0x193   :  { %395 = vmatprep.subr.mxu0 %v6889_v32 }
 0x194   :  { %396 = vmatpush1.msra.mxu0 %v6895_v30 }
 0x195   :  { %397 = vmatprep.subr.mxu0 %v6901_v28 }
 0x196   :  { %398 = vmatpush1.msra.mxu0 %v6907_v26 }
 0x197   :  { %399 = vmatprep.subr.mxu0 %v6913_v24 }
 0x198   :  { %400 = vmatpush1.msra.mxu0 %v6919_v22 }
 0x199   :  { %401 = vmatprep.subr.mxu0 %v6925_v20  ;;  %v6958_v20 = vld [vmem:[%s11325_s5 + $0x70] sm:$0xff] }
 0x19a   :  { %402 = vmatpush1.msra.mxu0 %v6931_v18  ;;  %11775 = vst [vmem:[#allocation38_spill] sm:$0xff] %v6958_v20 }
 0x19b   :  { %403 = vmatprep.subr.mxu0 %v6937_v63 }
 0x19c   :  { %404 = vmatpush1.msra.mxu0 %v6943_v61  ;;  %v6967_v61 = vld [vmem:[%s11325_s5 + $0x68] sm:$0xff] }
 0x19d   :  { %438 = vmatmul.mubr.f32.vlgmr.msra.gmra.mxu0 %v6621_v2  ;;  %4819 = vmatprep.subr.mxu0 %v11774_v57  ;;  %11776 = vst [vmem:[#allocation39_spill] sm:$0xff] %v6967_v61  ;;  %v6974_v2 = vld [vmem:[%s11325_s5 + $0x60] sm:$0xff] }
 0x19e   :  { %4820 = vmatpush3.msra.mxu0 %v6950_v59  ;;  %4851 = vmatprep.mubr.msk.f32.mxu0 %vm6244_vm1, %v11774_v57  ;;  %11777 = vst [vmem:[#allocation40_spill] sm:$0xff] %v6974_v2  ;;  %v6981_v59 = vld [vmem:[%s11325_s5 + $0x58] sm:$0xff] }
 0x19f   :  { %4821 = vmatprep.subr.mxu0 %v11774_v57  ;;  %11778 = vst [vmem:[#allocation41_spill] sm:$0xff] %v6981_v59 }
 0x1a0   :  { %4822 = vmatpush3.msra.mxu0 %v6958_v20  ;;  %v6988_v20 = vld [vmem:[%s11325_s5 + $0x50] sm:$0xff] }
 0x1a1   :  { %4823 = vmatprep.subr.mxu0 %v11774_v57  ;;  %11779 = vst [vmem:[#allocation42_spill] sm:$0xff] %v6988_v20 }
 0x1a2   :  { %4824 = vmatpush3.msra.mxu0 %v6967_v61  ;;  %v6995_v61 = vld [vmem:[%s11325_s5 + $0x48] sm:$0xff] }
 0x1a3   :  { %4825 = vmatprep.subr.mxu0 %v11774_v57  ;;  %11780 = vst [vmem:[#allocation43_spill] sm:$0xff] %v6995_v61 }
 0x1a4   :  { %4826 = vmatpush3.msra.mxu0 %v6974_v2  ;;  %v7002_v2 = vld [vmem:[%s11325_s5 + $0x40] sm:$0xff] }
 0x1a5   :  { %4827 = vmatprep.subr.mxu0 %v11774_v57  ;;  %11781 = vst [vmem:[#allocation44_spill] sm:$0xff] %v7002_v2 }
 0x1a6   :  { %4828 = vmatpush3.msra.mxu0 %v6981_v59  ;;  %v7009_v59 = vld [vmem:[%s11325_s5 + $0x38] sm:$0xff] }
 0x1a7   :  { %4829 = vmatprep.subr.mxu0 %v11774_v57  ;;  %11782 = vst [vmem:[#allocation45_spill] sm:$0xff] %v7009_v59 }
 0x1a8   :  { %4830 = vmatpush3.msra.mxu0 %v6988_v20  ;;  %v7016_v20 = vld [vmem:[%s11325_s5 + $0x30] sm:$0xff] }
 0x1a9   :  { %4831 = vmatprep.subr.mxu0 %v11774_v57  ;;  %11783 = vst [vmem:[#allocation46_spill] sm:$0xff] %v7016_v20 }
 0x1aa   :  { %4832 = vmatpush3.msra.mxu0 %v6995_v61  ;;  %v7023_v61 = vld [vmem:[%s11325_s5 + $0x28] sm:$0xff] }
 0x1ab   :  { %4833 = vmatprep.subr.mxu0 %v11774_v57  ;;  %11784 = vst [vmem:[#allocation47_spill] sm:$0xff] %v7023_v61 }
 0x1ac   :  { %4834 = vmatpush3.msra.mxu0 %v7002_v2  ;;  %v7030_v2 = vld [vmem:[%s11325_s5 + $0x20] sm:$0xff] }
 0x1ad   :  { %4835 = vmatprep.subr.mxu0 %v11774_v57  ;;  %11785 = vst [vmem:[#allocation48_spill] sm:$0xff] %v7030_v2 }
 0x1ae   :  { %4836 = vmatpush3.msra.mxu0 %v7009_v59  ;;  %v7037_v59 = vld [vmem:[%s11325_s5 + $0x18] sm:$0xff] }
 0x1af   :  { %4837 = vmatprep.subr.mxu0 %v11774_v57  ;;  %11786 = vst [vmem:[#allocation49_spill] sm:$0xff] %v7037_v59 }
 0x1b0   :  { %4838 = vmatpush3.msra.mxu0 %v7016_v20  ;;  %v7044_v20 = vld [vmem:[%s11325_s5 + $0x10] sm:$0xff] }
 0x1b1   :  { %4839 = vmatprep.subr.mxu0 %v11774_v57  ;;  %11787 = vst [vmem:[#allocation50_spill] sm:$0xff] %v7044_v20 }
 0x1b2   :  { %4840 = vmatpush3.msra.mxu0 %v7023_v61  ;;  %v7051_v61 = vld [vmem:[%s11325_s5 + $0x8] sm:$0xff] }
 0x1b3   :  { %4841 = vmatprep.subr.mxu0 %v11774_v57  ;;  %11788 = vst [vmem:[#allocation51_spill] sm:$0xff] %v7051_v61 }
 0x1b4   :  { %4842 = vmatpush3.msra.mxu0 %v7030_v2 }
 0x1b5   :  { %4843 = vmatprep.subr.mxu0 %v11774_v57 }
 0x1b6   :  { %4844 = vmatpush3.msra.mxu0 %v7037_v59 }
 0x1b7   :  { %4845 = vmatprep.subr.mxu0 %v11774_v57 }
 0x1b8   :  { %4846 = vmatpush3.msra.mxu0 %v7044_v20  ;;  %v7065_v20 = vld [vmem:[%s11325_s5] sm:$0xff] }
 0x1b9   :  { %4847 = vmatprep.subr.mxu0 %v11774_v57  ;;  %11790 = vst [vmem:[#allocation53_spill] sm:$0xff] %v7065_v20 }
 0x1ba   :  { %4848 = vmatpush3.msra.mxu0 %v7051_v61  ;;  %v7106_v61 = vld [vmem:[%s11326_s6 + $0x128] sm:$0xff] }
 0x1bb   :  { %4849 = vmatprep.subr.mxu0 %v11774_v57  ;;  %11797 = vst [vmem:[#allocation60_spill] sm:$0xff] %v7106_v61 }
 0x1bc   :  { %4850 = vmatpush3.msra.mxu0 %v7065_v20  ;;  %v7094_v20 = vld [vmem:[%s11326_s6 + $0x140] sm:$0xff] }
 0x1bd   :  { %4854 = vmatprep.subr.mxu0 %v11774_v57  ;;  %11795 = vst [vmem:[#allocation58_spill] sm:$0xff] %v7094_v20 }
 0x20f   :  { %v455_v2 = vpop.xlane.xlu0 %454 }
 0x210   :  { %5631 = vrcp.f32 %v455_v2  ;;  %v7072_v2 = vld [vmem:[%s11326_s6 + $0x170] sm:$0xff] }
 0x211   :  { %11791 = vst [vmem:[#allocation54_spill] sm:$0xff] %v7072_v2  ;;  %617 = vmatprep.subr.mxu1 %v7072_v2  ;;  %v7100_v2 = vld [vmem:[%s11326_s6 + $0x138] sm:$0xff] }
 0x212   :  { %11796 = vst [vmem:[#allocation59_spill] sm:$0xff] %v7100_v2 }
 0x21d   :  { %v5632_v63 = vpop.eup %5631 }
 0x21e   :  { %v7058_v59 = vmul.f32 %v5632_v63, %v6695_v40  ;;  %v7077_v63 = vld [vmem:[%s11326_s6 + $0x168] sm:$0xff]  ;;  %v7083_v40 = vld [vmem:[%s11326_s6 + $0x158] sm:$0xff] }
 0x21f   :  { %11792 = vst [vmem:[#allocation55_spill] sm:$0xff] %v7077_v63  ;;  %11793 = vst [vmem:[#allocation56_spill] sm:$0xff] %v7083_v40 }
 0x220   :  { %11789 = vst [vmem:[#allocation52_spill] sm:$0xff] %v7058_v59  ;;  %4817 = vmatmul.mubr.f32.vlgmr.msra.gmra.mxu1 %v7058_v59  ;;  %v7088_v59 = vld [vmem:[%s11326_s6 + $0x150] sm:$0xff] }
 0x221   :  { %681 = vmatprep.mubr.f32.mxu1 %v11774_v57  ;;  %11794 = vst [vmem:[#allocation57_spill] sm:$0xff] %v7088_v59  ;;  %618 = vmatpush1.msra.mxu1 %v7077_v63  ;;  %v7112_v63 = vld [vmem:[%s11326_s6 + $0x120] sm:$0xff] }
 0x222   :  { %619 = vmatprep.subr.mxu1 %v7083_v40  ;;  %11798 = vst [vmem:[#allocation61_spill] sm:$0xff] %v7112_v63  ;;  %v7118_v40 = vld [vmem:[%s11326_s6 + $0x110] sm:$0xff] }
 0x223   :  { %620 = vmatpush1.msra.mxu1 %v7088_v59  ;;  %11799 = vst [vmem:[#allocation62_spill] sm:$0xff] %v7118_v40  ;;  %v7124_v59 = vld [vmem:[%s11326_s6 + $0x108] sm:$0xff] }
 0x224   :  { %621 = vmatprep.subr.mxu1 %v7094_v20  ;;  %11800 = vst [vmem:[#allocation63_spill] sm:$0xff] %v7124_v59  ;;  %v7130_v20 = vld [vmem:[%s11326_s6 + $0xf8] sm:$0xff] }
 0x225   :  { %622 = vmatpush1.msra.mxu1 %v7100_v2  ;;  %11801 = vst [vmem:[#allocation64_spill] sm:$0xff] %v7130_v20  ;;  %v7136_v2 = vld [vmem:[%s11326_s6 + $0xf0] sm:$0xff] }
 0x226   :  { %623 = vmatprep.subr.mxu1 %v7106_v61  ;;  %11802 = vst [vmem:[#allocation65_spill] sm:$0xff] %v7136_v2  ;;  %v7142_v61 = vld [vmem:[%s11326_s6 + $0xe0] sm:$0xff] }
 0x227   :  { %624 = vmatpush1.msra.mxu1 %v7112_v63  ;;  %11803 = vst [vmem:[#allocation66_spill] sm:$0xff] %v7142_v61  ;;  %v7148_v63 = vld [vmem:[%s11326_s6 + $0xd8] sm:$0xff] }
 0x228   :  { %625 = vmatprep.subr.mxu1 %v7118_v40  ;;  %11804 = vst [vmem:[#allocation67_spill] sm:$0xff] %v7148_v63  ;;  %v7154_v40 = vld [vmem:[%s11326_s6 + $0xc8] sm:$0xff] }
 0x229   :  { %626 = vmatpush1.msra.mxu1 %v7124_v59  ;;  %11805 = vst [vmem:[#allocation68_spill] sm:$0xff] %v7154_v40  ;;  %v7160_v59 = vld [vmem:[%s11326_s6 + $0xc0] sm:$0xff] }
 0x22a   :  { %627 = vmatprep.subr.mxu1 %v7130_v20  ;;  %11806 = vst [vmem:[#allocation69_spill] sm:$0xff] %v7160_v59  ;;  %v7166_v20 = vld [vmem:[%s11326_s6 + $0xb0] sm:$0xff] }
 0x22b   :  { %628 = vmatpush1.msra.mxu1 %v7136_v2  ;;  %11807 = vst [vmem:[#allocation70_spill] sm:$0xff] %v7166_v20  ;;  %v7172_v2 = vld [vmem:[%s11326_s6 + $0xa8] sm:$0xff] }
 0x22c   :  { %629 = vmatprep.subr.mxu1 %v7142_v61  ;;  %11808 = vst [vmem:[#allocation71_spill] sm:$0xff] %v7172_v2  ;;  %v7178_v61 = vld [vmem:[%s11326_s6 + $0x98] sm:$0xff] }
 0x22d   :  { %630 = vmatpush1.msra.mxu1 %v7148_v63  ;;  %11809 = vst [vmem:[#allocation72_spill] sm:$0xff] %v7178_v61  ;;  %v7184_v63 = vld [vmem:[%s11326_s6 + $0x90] sm:$0xff] }
 0x22e   :  { %631 = vmatprep.subr.mxu1 %v7154_v40  ;;  %11810 = vst [vmem:[#allocation73_spill] sm:$0xff] %v7184_v63  ;;  %v7190_v40 = vld [vmem:[%s11326_s6 + $0x80] sm:$0xff] }
 0x22f   :  { %632 = vmatpush1.msra.mxu1 %v7160_v59  ;;  %11811 = vst [vmem:[#allocation74_spill] sm:$0xff] %v7190_v40  ;;  %v7196_v59 = vld [vmem:[%s11326_s6 + $0x78] sm:$0xff] }
 0x230   :  { %633 = vmatprep.subr.mxu1 %v7166_v20  ;;  %11812 = vst [vmem:[#allocation75_spill] sm:$0xff] %v7196_v59  ;;  %v7202_v20 = vld [vmem:[%s11326_s6 + $0x68] sm:$0xff] }
 0x231   :  { %634 = vmatpush1.msra.mxu1 %v7172_v2  ;;  %11813 = vst [vmem:[#allocation76_spill] sm:$0xff] %v7202_v20  ;;  %v7208_v2 = vld [vmem:[%s11326_s6 + $0x60] sm:$0xff] }
 0x232   :  { %635 = vmatprep.subr.mxu1 %v7178_v61  ;;  %11814 = vst [vmem:[#allocation77_spill] sm:$0xff] %v7208_v2  ;;  %v7214_v61 = vld [vmem:[%s11326_s6 + $0x50] sm:$0xff] }
 0x233   :  { %636 = vmatpush1.msra.mxu1 %v7184_v63  ;;  %11815 = vst [vmem:[#allocation78_spill] sm:$0xff] %v7214_v61  ;;  %v7219_v63 = vpop.f32.mrf.mxu1 }
 0x234   :  { %637 = vmatprep.subr.mxu1 %v7190_v40  ;;  %11816 = vst [vmem:[#allocation79_spill] sm:$0xff] %v7219_v63  ;;  %v7224_v40 = vld [vmem:[%s11326_s6 + $0x178] sm:$0xff] }
 0x235   :  { %638 = vmatpush1.msra.mxu1 %v7196_v59  ;;  %11817 = vst [vmem:[#allocation80_spill] sm:$0xff] %v7224_v40  ;;  %v7229_v59 = vld [vmem:[%s11326_s6 + $0x160] sm:$0xff] }
 0x236   :  { %639 = vmatprep.subr.mxu1 %v7202_v20  ;;  %11818 = vst [vmem:[#allocation81_spill] sm:$0xff] %v7229_v59 }
 0x237   :  { %640 = vmatpush1.msra.mxu1 %v7208_v2  ;;  %v7387_v2 = vld [vmem:[%s11328_s8] sm:$0x1] }
 0x238   :  { %641 = vmatprep.subr.mxu1 %v7214_v61  ;;  %v7238_v61 = vld [vmem:[%s11326_s6 + $0x148] sm:$0xff] }
 0x239   :  { %11819 = vst [vmem:[#allocation82_spill] sm:$0xff] %v7238_v61 }
 0x2e0   :  { %v524_v18 = vpop.f32.mrf.mxu1 }
 0x2e1   :  { %4852 = vmatmul.mubr.f32.vlgmr.msra.gmra.mxu0 %v524_v18  ;;  %v7245_v18 = vld [vmem:[%s11326_s6 + $0x130] sm:$0xff] }
 0x2e2   :  { %v4818_v22 = vpop.f32.mrf.mxu1  ;;  %4855 = vmatpush3.msra.mxu0 %v7224_v40  ;;  %4886 = vmatprep.mubr.msk.f32.mxu0 %vm6244_vm1, %v11774_v57  ;;  %11820 = vst [vmem:[#allocation83_spill] sm:$0xff] %v7245_v18  ;;  %v7334_v40 = vld [vmem:[%s11326_s6 + $0x40] sm:$0xff] }
 0x2e3   :  { %4856 = vmatprep.subr.mxu0 %v11774_v57  ;;  %v7252_v22 = vld [vmem:[%s11326_s6 + $0x118] sm:$0xff]  ;;  %11833 = vst [vmem:[#allocation96_spill] sm:$0xff] %v7334_v40 }
 0x2e4   :  { %4857 = vmatpush3.msra.mxu0 %v7229_v59  ;;  %11821 = vst [vmem:[#allocation84_spill] sm:$0xff] %v7252_v22  ;;  %v7259_v59 = vld [vmem:[%s11326_s6 + $0x100] sm:$0xff] }
 0x2e5   :  { %4858 = vmatprep.subr.mxu0 %v11774_v57  ;;  %11822 = vst [vmem:[#allocation85_spill] sm:$0xff] %v7259_v59 }
 0x2e6   :  { %4859 = vmatpush3.msra.mxu0 %v7238_v61  ;;  %v7266_v61 = vld [vmem:[%s11326_s6 + $0xe8] sm:$0xff] }
 0x2e7   :  { %4860 = vmatprep.subr.mxu0 %v11774_v57  ;;  %11823 = vst [vmem:[#allocation86_spill] sm:$0xff] %v7266_v61 }
 0x2e8   :  { %4861 = vmatpush3.msra.mxu0 %v7245_v18  ;;  %v7273_v18 = vld [vmem:[%s11326_s6 + $0xd0] sm:$0xff] }
 0x2e9   :  { %4862 = vmatprep.subr.mxu0 %v11774_v57  ;;  %11824 = vst [vmem:[#allocation87_spill] sm:$0xff] %v7273_v18 }
 0x2ea   :  { %4863 = vmatpush3.msra.mxu0 %v7252_v22  ;;  %v7280_v22 = vld [vmem:[%s11326_s6 + $0xb8] sm:$0xff] }
 0x2eb   :  { %4864 = vmatprep.subr.mxu0 %v11774_v57  ;;  %11825 = vst [vmem:[#allocation88_spill] sm:$0xff] %v7280_v22 }
 0x2ec   :  { %4865 = vmatpush3.msra.mxu0 %v7259_v59  ;;  %v7287_v59 = vld [vmem:[%s11326_s6 + $0xa0] sm:$0xff] }
 0x2ed   :  { %4866 = vmatprep.subr.mxu0 %v11774_v57  ;;  %11826 = vst [vmem:[#allocation89_spill] sm:$0xff] %v7287_v59 }
 0x2ee   :  { %4867 = vmatpush3.msra.mxu0 %v7266_v61  ;;  %v7294_v61 = vld [vmem:[%s11326_s6 + $0x88] sm:$0xff] }
 0x2ef   :  { %4868 = vmatprep.subr.mxu0 %v11774_v57  ;;  %11827 = vst [vmem:[#allocation90_spill] sm:$0xff] %v7294_v61 }
 0x2f0   :  { %4869 = vmatpush3.msra.mxu0 %v7273_v18  ;;  %v7301_v18 = vld [vmem:[%s11326_s6 + $0x70] sm:$0xff] }
 0x2f1   :  { %4870 = vmatprep.subr.mxu0 %v11774_v57  ;;  %11828 = vst [vmem:[#allocation91_spill] sm:$0xff] %v7301_v18 }
 0x2f2   :  { %4871 = vmatpush3.msra.mxu0 %v7280_v22  ;;  %v7310_v22 = vld [vmem:[%s11326_s6 + $0x48] sm:$0xff] }
 0x2f3   :  { %4872 = vmatprep.subr.mxu0 %v11774_v57  ;;  %11829 = vst [vmem:[#allocation92_spill] sm:$0xff] %v7310_v22  ;;  %642 = vmatpush1.msra.mxu1 %v7310_v22 }
 0x2f4   :  { %4873 = vmatpush3.msra.mxu0 %v7287_v59  ;;  %v7315_v59 = vld [vmem:[%s11326_s6 + $0x58] sm:$0xff] }
 0x2f5   :  { %4874 = vmatprep.subr.mxu0 %v11774_v57  ;;  %11830 = vst [vmem:[#allocation93_spill] sm:$0xff] %v7315_v59 }
 0x2f6   :  { %4875 = vmatpush3.msra.mxu0 %v7294_v61  ;;  %v7329_v61 = vld [vmem:[%s11326_s6 + $0x30] sm:$0xff] }
 0x2f7   :  { %4876 = vmatprep.subr.mxu0 %v11774_v57  ;;  %11832 = vst [vmem:[#allocation95_spill] sm:$0xff] %v7329_v61 }
 0x2f8   :  { %4877 = vmatpush3.msra.mxu0 %v7301_v18  ;;  %v7322_v18 = vld [vmem:[%s11326_s6 + $0x38] sm:$0xff] }
 0x2f9   :  { %4878 = vmatprep.subr.mxu0 %v11774_v57  ;;  %11831 = vst [vmem:[#allocation94_spill] sm:$0xff] %v7322_v18  ;;  %643 = vmatprep.subr.mxu1 %v7322_v18  ;;  %v7348_v18 = vld [vmem:[%s11326_s6 + $0x18] sm:$0xff] }
 0x2fa   :  { %4879 = vmatpush3.msra.mxu0 %v7315_v59  ;;  %644 = vmatpush1.msra.mxu1 %v7329_v61  ;;  %v7341_v59 = vld [vmem:[%s11326_s6 + $0x20] sm:$0xff]  ;;  %11835 = vst [vmem:[#allocation98_spill] sm:$0xff] %v7348_v18  ;;  %v7353_v61 = vld [vmem:[%s11326_s6 + $0x28] sm:$0xff] }
 0x2fb   :  { %4880 = vmatprep.subr.mxu0 %v11774_v57  ;;  %11834 = vst [vmem:[#allocation97_spill] sm:$0xff] %v7341_v59  ;;  %645 = vmatprep.subr.mxu1 %v7341_v59  ;;  %11836 = vst [vmem:[#allocation99_spill] sm:$0xff] %v7353_v61  ;;  %v7367_v59 = vld [vmem:[%s11326_s6] sm:$0xff] }
 0x2fc   :  { %4881 = vmatpush3.msra.mxu0 %v7334_v40  ;;  %646 = vmatpush1.msra.mxu1 %v7348_v18  ;;  %v7360_v40 = vld [vmem:[%s11326_s6 + $0x8] sm:$0xff]  ;;  %11838 = vst [vmem:[#allocation101_spill] sm:$0xff] %v7367_v59  ;;  %v7372_v18 = vld [vmem:[%s11326_s6 + $0x10] sm:$0xff] }
 0x2fd   :  { %4882 = vmatprep.subr.mxu0 %v11774_v57  ;;  %11837 = vst [vmem:[#allocation100_spill] sm:$0xff] %v7360_v40  ;;  %647 = vmatprep.subr.mxu1 %v7360_v40  ;;  %11839 = vst [vmem:[#allocation102_spill] sm:$0xff] %v7372_v18 }
 0x2fe   :  { %4883 = vmatpush3.msra.mxu0 %v7353_v61  ;;  %648 = vmatpush1.msra.mxu1 %v7367_v59  ;;  %v7378_v61 = vpop.f32.mrf.mxu0 }
 0x2ff   :  { %4884 = vmatprep.subr.mxu0 %v11774_v57  ;;  %798 = vmatprep.subr.mxu1 %v6334_v1 }
 0x300   :  { %4885 = vmatpush3.msra.mxu0 %v7372_v18  ;;  %v7380_v40 = vpop.f32.mrf.mxu0 }
 0x301   :  { %869 = vmatprep.subr.mxu0 %v6759_v60 }
 0x302   :  { %v7382_v22 = vpop.f32.mrf.mxu0 }
 0x3a1   :  { %v594_v20 = vpop.f32.mrf.mxu0 }
 0x3a2   :  { %v598_v59 = vadd.f32 %v594_v20, %v7378_v61 }
 0x3a3   :  { %v4853_v63 = vpop.f32.mrf.mxu0 }
 0x3a4   :  { %v599_v18 = vadd.f32 %v598_v59, %v7387_v2  ;;  %v11859_v63 = vld [vmem:[#allocation39_spill] sm:$0xff] }
 0x3a6   :  { %v600_v1 = vmax.f32 %v599_v18, 0.0  ;;  %v11861_v18 = vld [vmem:[#allocation40_spill] sm:$0xff] }
 0x3a8   :  { %682 = vmatmul.mubr.f32.vlgmr.msra.gmra.mxu1 %v600_v1  ;;  %4887 = vmatmul.mubr.f32.vlgmr.msra.gmra.mxu0 %v600_v1  ;;  %v11863_v1 = vld [vmem:[#allocation41_spill] sm:$0xff] }
 0x3a9   :  { %799 = vmatpush1.msra.mxu1 %v6343_v3  ;;  %870 = vmatpush1.msra.mxu0 %v6764_v62  ;;  %v11840_v3 = vld [vmem:[#allocation32_spill] sm:$0xff] }
 0x3aa   :  { %800 = vmatprep.subr.mxu1 %v6351_v5  ;;  %871 = vmatprep.subr.mxu0 %v6769_v0  ;;  %v11841_v5 = vld [vmem:[#allocation9_spill] sm:$0xff] }
 0x3ab   :  { %801 = vmatpush1.msra.mxu1 %v6360_v7  ;;  %872 = vmatpush1.msra.mxu0 %v6775_v8  ;;  %v11842_v7 = vld [vmem:[#allocation33_spill] sm:$0xff] }
 0x3ac   :  { %802 = vmatprep.subr.mxu1 %v6369_v9  ;;  %873 = vmatprep.subr.mxu0 %v6781_v12  ;;  %v11843_v9 = vld [vmem:[#allocation10_spill] sm:$0xff]  ;;  %v11852_v8 = vld [vmem:[#allocation13_spill] sm:$0xff] }
 0x3ad   :  { %803 = vmatpush1.msra.mxu1 %v6377_v11  ;;  %874 = vmatpush1.msra.mxu0 %v6787_v14  ;;  %v11844_v11 = vld [vmem:[#allocation34_spill] sm:$0xff] }
 0x3ae   :  { %804 = vmatprep.subr.mxu1 %v6386_v13  ;;  %875 = vmatprep.subr.mxu0 %v6793_v16  ;;  %v11845_v13 = vld [vmem:[#allocation11_spill] sm:$0xff]  ;;  %v11854_v16 = vld [vmem:[#allocation16_spill] sm:$0xff] }
 0x3af   :  { %805 = vmatpush1.msra.mxu1 %v6395_v15  ;;  %876 = vmatpush1.msra.mxu0 %v6799_v34  ;;  %v11846_v15 = vld [vmem:[#allocation35_spill] sm:$0xff]  ;;  %v11855_v34 = vld [vmem:[#allocation37_spill] sm:$0xff] }
 0x3b0   :  { %806 = vmatprep.subr.mxu1 %v6404_v17  ;;  %877 = vmatprep.subr.mxu0 %v6805_v36  ;;  %v11847_v17 = vld [vmem:[#allocation12_spill] sm:$0xff]  ;;  %v11856_v36 = vld [vmem:[#allocation17_spill] sm:$0xff] }
 0x3b1   :  { %807 = vmatpush1.msra.mxu1 %v6413_v19  ;;  %878 = vmatpush1.msra.mxu0 %v6811_v38  ;;  %v11848_v19 = vld [vmem:[#allocation36_spill] sm:$0xff]  ;;  %v11857_v38 = vld [vmem:[#allocation38_spill] sm:$0xff] }
 0x3b2   :  { %808 = vmatprep.subr.mxu1 %v6422_v21  ;;  %879 = vmatprep.subr.mxu0 %v6817_v42  ;;  %v602_v21 = vlaneseq  ;;  %v11858_v42 = vld [vmem:[#allocation18_spill] sm:$0xff] }
 0x3b3   :  { %809 = vmatpush1.msra.mxu1 %v6431_v23  ;;  %880 = vmatpush1.msra.mxu0 %v6823_v4 }
 0x3b4   :  { %810 = vmatprep.subr.mxu1 %v6440_v25  ;;  %881 = vmatprep.subr.mxu0 %v6829_v6  ;;  %v603_v23 = vshrl.u32 %v602_v21, 7  ;;  %v11873_v21 = vld [vmem:[#allocation46_spill] sm:$0xff] }
 0x3b5   :  { %811 = vmatpush1.msra.mxu1 %v6449_v27  ;;  %882 = vmatpush1.msra.mxu0 %v6835_v10  ;;  %v300_v27 = vld [vmem:[%s11330_s10] sm:$0x7] }
 0x3b6   :  { %812 = vmatprep.subr.mxu1 %v6458_v29  ;;  %883 = vmatprep.subr.mxu0 %v6841_v58  ;;  %v7457_v25 = vsub.s32 0, %v603_v23  ;;  %v299_v29 = vld [vmem:[%s11329_s9] sm:$0x7] }
 0x3b7   :  { %813 = vmatpush1.msra.mxu1 %v6467_v31  ;;  %884 = vmatpush1.msra.mxu0 %v6847_v56 }
 0x3b8   :  { %814 = vmatprep.subr.mxu1 %v6476_v33  ;;  %885 = vmatprep.subr.mxu0 %v6853_v54  ;;  %11849 = vst [vmem:[#allocation32_spill] sm:$0xff] %v7457_v25  ;;  %v7466_v31 = vrot.slane %v300_v27, %v7457_v25  ;;  %v7469_v33 = vrot.slane %v299_v29, %v7457_v25 }
 0x3b9   :  { %815 = vmatpush1.msra.mxu1 %v6485_v35  ;;  %886 = vmatpush1.msra.mxu0 %v6859_v52  ;;  %v7471_v35 = vsub.s32 1, %v603_v23 }
 0x3ba   :  { %816 = vmatprep.subr.mxu1 %v6494_v37  ;;  %887 = vmatprep.subr.mxu0 %v6865_v50 }
 0x3bb   :  { %817 = vmatpush1.msra.mxu1 %v6503_v39  ;;  %888 = vmatpush1.msra.mxu0 %v6871_v48  ;;  %11850 = vst [vmem:[#allocation9_spill] sm:$0xff] %v7471_v35 }
 0x3bc   :  { %818 = vmatprep.subr.mxu1 %v6512_v41  ;;  %889 = vmatprep.subr.mxu0 %v6877_v46  ;;  %v11851_v41 = vld [vmem:[#allocation79_spill] sm:$0xff] }
 0x3bd   :  { %819 = vmatpush1.msra.mxu1 %v6521_v43  ;;  %890 = vmatpush1.msra.mxu0 %v6883_v44  ;;  %v774_v43 = vadd.f32 %v7466_v31, %v11851_v41  ;;  %v11879_v41 = vld [vmem:[#allocation49_spill] sm:$0xff] }
 0x3be   :  { %820 = vmatprep.subr.mxu1 %v6530_v45  ;;  %891 = vmatprep.subr.mxu0 %v6889_v32 }
 0x3bf   :  { %821 = vmatpush1.msra.mxu1 %v6539_v47  ;;  %892 = vmatpush1.msra.mxu0 %v6895_v30  ;;  %v7477_v47 = vrot.slane %v299_v29, %v7471_v35 }
 0x3c0   :  { %822 = vmatprep.subr.mxu1 %v6548_v49  ;;  %893 = vmatprep.subr.mxu0 %v6901_v28  ;;  %v612_v28 = vsub.s32 2, %v603_v23  ;;  %v11874_v23 = vld [vmem:[#allocation26_spill] sm:$0xff] }
 0x3c1   :  { %823 = vmatpush1.msra.mxu1 %v6557_v51  ;;  %894 = vmatpush1.msra.mxu0 %v6907_v26 }
 0x3c2   :  { %824 = vmatprep.subr.mxu1 %v6566_v53  ;;  %895 = vmatprep.subr.mxu0 %v6913_v24  ;;  %v7480_v53 = vrot.slane %v300_v27, %v7471_v35  ;;  %v7485_v32 = vrot.slane %v300_v27, %v612_v28  ;;  %v7487_v44 = vrot.slane %v299_v29, %v612_v28  ;;  %v11875_v27 = vld [vmem:[#allocation47_spill] sm:$0xff]  ;;  %v7930_v35 = vld [vmem:[%s11324_s4 + $0x80] sm:$0xff] }
 0x3c3   :  { %825 = vmatpush1.msra.mxu1 %v6575_v55  ;;  %896 = vmatpush1.msra.mxu0 %v11840_v3  ;;  %v11864_v3 = vld [vmem:[#allocation21_spill] sm:$0xff]  ;;  %v11876_v29 = vld [vmem:[#allocation27_spill] sm:$0xff]  ;;  %11949 = vst [vmem:[#allocation39_spill] sm:$0xff] %v7930_v35 }
 0x3c4   :  { %826 = vmatprep.subr.mxu1 %v11841_v5  ;;  %897 = vmatprep.subr.mxu0 %v11842_v7  ;;  %v775_v6 = vadd.f32 %v7480_v53, %v7380_v40  ;;  %v776_v48 = vadd.f32 %v7485_v32, %v7382_v22  ;;  %v11860_v40 = vld [vmem:[#allocation19_spill] sm:$0xff]  ;;  %v11862_v22 = vld [vmem:[#allocation20_spill] sm:$0xff]  ;;  %v11865_v5 = vld [vmem:[#allocation42_spill] sm:$0xff] }
 0x3c5   :  { %827 = vmatpush1.msra.mxu1 %v11843_v9  ;;  %898 = vmatpush1.msra.mxu0 %v11844_v11  ;;  %v11866_v7 = vld [vmem:[#allocation22_spill] sm:$0xff]  ;;  %v11867_v9 = vld [vmem:[#allocation43_spill] sm:$0xff] }
 0x3c6   :  { %828 = vmatprep.subr.mxu1 %v11845_v13  ;;  %899 = vmatprep.subr.mxu0 %v11846_v15  ;;  %v11868_v11 = vld [vmem:[#allocation23_spill] sm:$0xff]  ;;  %v11869_v13 = vld [vmem:[#allocation44_spill] sm:$0xff] }
 0x3c7   :  { %829 = vmatpush1.msra.mxu1 %v11847_v17  ;;  %862 = vmatprep.mubr.f32.mxu1 %v11774_v57  ;;  %v11870_v15 = vld [vmem:[#allocation24_spill] sm:$0xff]  ;;  %v11871_v17 = vld [vmem:[#allocation45_spill] sm:$0xff] }
 0x3c8   :  { %900 = vmatpush1.msra.mxu0 %v11848_v19  ;;  %933 = vmatprep.mubr.f32.mxu0 %v11774_v57  ;;  %v11872_v19 = vld [vmem:[#allocation25_spill] sm:$0xff] }
 0x3c9   :  { %4889 = vmatprep.subr.mxu1 %v11774_v57  ;;  %4924 = vmatprep.subr.mxu0 %v11774_v57 }
 0x468   :  { %v683_v37 = vpop.f32.mrf.mxu1  ;;  %v754_v39 = vpop.f32.mrf.mxu0 }
 0x469   :  { %v684_v45 = vadd.f32 %v683_v37, %v7469_v33  ;;  %v755_v52 = vadd.f32 %v754_v39, %v7487_v44  ;;  %v11877_v37 = vld [vmem:[#allocation48_spill] sm:$0xff] }
 0x46a   :  { %v685_v49 = vpop.f32.mrf.mxu1  ;;  %v4888_v51 = vpop.f32.mrf.mxu0  ;;  %v11878_v39 = vld [vmem:[#allocation28_spill] sm:$0xff] }
 0x46b   :  { %v777_v55 = vadd.f32 %v774_v43, %v684_v45  ;;  %v686_v4 = vadd.f32 %v685_v49, %v7477_v47  ;;  %v11880_v43 = vld [vmem:[#allocation29_spill] sm:$0xff]  ;;  %v11881_v45 = vld [vmem:[#allocation50_spill] sm:$0xff]  ;;  %v11883_v51 = vld [vmem:[#allocation51_spill] sm:$0xff] }
 0x46c   :  { %v11882_v49 = vld [vmem:[#allocation30_spill] sm:$0xff] }
 0x46d   :  { %v4360_v59 = vmul.f32 -1.442695, %v777_v55  ;;  %v784_v10 = vadd.f32 %v775_v6, %v686_v4  ;;  %v11884_v55 = vld [vmem:[#allocation31_spill] sm:$0xff]  ;;  %v11886_v4 = vld [vmem:[#allocation54_spill] sm:$0xff] }
 0x46f   :  { %5633 = vpow2.f32 %v4360_v59  ;;  %v4361_v20 = vmul.f32 -1.442695, %v784_v10  ;;  %v11885_v59 = vld [vmem:[#allocation53_spill] sm:$0xff]  ;;  %v11887_v10 = vld [vmem:[#allocation15_spill] sm:$0xff] }
 0x471   :  { %5635 = vpow2.f32 %v4361_v20  ;;  %v7567_v20 = vrot.slane %v11887_v10, %v7457_v25  ;;  %v11921_v10 = vld [vmem:[#allocation81_spill] sm:$0xff] }
 0x47c   :  { %v5634_v24 = vpop.eup %5633 }
 0x47d   :  { %v781_v26 = vadd.f32 1.0, %v5634_v24 }
 0x47e   :  { %v5636_v30 = vpop.eup %5635 }
 0x47f   :  { %5637 = vrcp.f32 %v781_v26  ;;  %v788_v46 = vadd.f32 1.0, %v5636_v30  ;;  %v11888_v26 = vld [vmem:[#allocation14_spill] sm:$0xff] }
 0x481   :  { %5639 = vrcp.f32 %v788_v46 }
 0x48c   :  { %v5638_v50 = vpop.eup %5637 }
 0x48d   :  { %v791_v54 = vmul.f32 %v5638_v50, %v776_v48 }
 0x48e   :  { %v5640_v58 = vpop.eup %5639 }
 0x48f   :  { %v792_v56 = vadd.f32 %v791_v54, %v755_v52  ;;  %v794_v60 = vsub.f32 1.0, %v5640_v58  ;;  %v796_v12 = vmul.f32 %v5640_v58, %v11852_v8  ;;  %v11889_v8 = vld [vmem:[#allocation55_spill] sm:$0xff] }
 0x491   :  { %5641 = vtanh.f32 %v792_v56 }
 0x49e   :  { %v5642_v62 = vpop.eup %5641 }
 0x49f   :  { %v795_v0 = vmul.f32 %v5642_v62, %v794_v60 }
 0x4a1   :  { %v7493_v14 = vadd.f32 %v796_v12, %v795_v0  ;;  %v11890_v12 = vld [vmem:[#allocation56_spill] sm:$0xff] }
 0x4a3   :  { %11853 = vst [vmem:[#allocation33_spill] sm:$0xff] %v7493_v14  ;;  %863 = vmatmul.mubr.f32.vlgmr.msra.gmra.mxu1 %v7493_v14  ;;  %934 = vmatmul.mubr.f32.vlgmr.msra.gmra.mxu0 %v7493_v14 }
 0x4a4   :  { %4890 = vmatpush3.msra.mxu1 %v11854_v16  ;;  %4921 = vmatprep.mubr.msk.f32.mxu1 %vm6244_vm1, %v11774_v57  ;;  %v11891_v16 = vld [vmem:[#allocation57_spill] sm:$0xff] }
 0x4a5   :  { %4891 = vmatprep.subr.mxu1 %v11774_v57  ;;  %4925 = vmatpush3.msra.mxu0 %v11855_v34  ;;  %v11892_v34 = vld [vmem:[#allocation58_spill] sm:$0xff] }
 0x4a6   :  { %4892 = vmatpush3.msra.mxu1 %v11856_v36  ;;  %4926 = vmatprep.subr.mxu0 %v11774_v57  ;;  %v11893_v36 = vld [vmem:[#allocation59_spill] sm:$0xff] }
 0x4a7   :  { %4893 = vmatprep.subr.mxu1 %v11774_v57  ;;  %4927 = vmatpush3.msra.mxu0 %v11857_v38  ;;  %v11894_v38 = vld [vmem:[#allocation60_spill] sm:$0xff] }
 0x4a8   :  { %4894 = vmatpush3.msra.mxu1 %v11858_v42  ;;  %4928 = vmatprep.subr.mxu0 %v11774_v57  ;;  %v11895_v42 = vld [vmem:[#allocation61_spill] sm:$0xff] }
 0x4a9   :  { %4895 = vmatprep.subr.mxu1 %v11774_v57  ;;  %4929 = vmatpush3.msra.mxu0 %v11859_v63  ;;  %v11896_v63 = vld [vmem:[#allocation62_spill] sm:$0xff] }
 0x4aa   :  { %4896 = vmatpush3.msra.mxu1 %v11860_v40  ;;  %4930 = vmatprep.subr.mxu0 %v11774_v57  ;;  %v11897_v40 = vld [vmem:[#allocation63_spill] sm:$0xff] }
 0x4ab   :  { %4897 = vmatprep.subr.mxu1 %v11774_v57  ;;  %4931 = vmatpush3.msra.mxu0 %v11861_v18  ;;  %v11898_v18 = vld [vmem:[#allocation64_spill] sm:$0xff] }
 0x4ac   :  { %4898 = vmatpush3.msra.mxu1 %v11862_v22  ;;  %4932 = vmatprep.subr.mxu0 %v11774_v57  ;;  %v11899_v22 = vld [vmem:[#allocation65_spill] sm:$0xff] }
 0x4ad   :  { %4899 = vmatprep.subr.mxu1 %v11774_v57  ;;  %4933 = vmatpush3.msra.mxu0 %v11863_v1  ;;  %v11900_v1 = vld [vmem:[#allocation66_spill] sm:$0xff] }
 0x4ae   :  { %4900 = vmatpush3.msra.mxu1 %v11864_v3  ;;  %4934 = vmatprep.subr.mxu0 %v11774_v57  ;;  %v11901_v3 = vld [vmem:[#allocation67_spill] sm:$0xff] }
 0x4af   :  { %4901 = vmatprep.subr.mxu1 %v11774_v57  ;;  %4935 = vmatpush3.msra.mxu0 %v11865_v5  ;;  %v11902_v5 = vld [vmem:[#allocation68_spill] sm:$0xff] }
 0x4b0   :  { %4902 = vmatpush3.msra.mxu1 %v11866_v7  ;;  %4936 = vmatprep.subr.mxu0 %v11774_v57  ;;  %v11903_v7 = vld [vmem:[#allocation69_spill] sm:$0xff] }
 0x4b1   :  { %4903 = vmatprep.subr.mxu1 %v11774_v57  ;;  %4937 = vmatpush3.msra.mxu0 %v11867_v9  ;;  %v11904_v9 = vld [vmem:[#allocation70_spill] sm:$0xff] }
 0x4b2   :  { %4904 = vmatpush3.msra.mxu1 %v11868_v11  ;;  %4938 = vmatprep.subr.mxu0 %v11774_v57  ;;  %v11905_v11 = vld [vmem:[#allocation71_spill] sm:$0xff] }
 0x4b3   :  { %4905 = vmatprep.subr.mxu1 %v11774_v57  ;;  %4939 = vmatpush3.msra.mxu0 %v11869_v13  ;;  %v11906_v13 = vld [vmem:[#allocation72_spill] sm:$0xff] }
 0x4b4   :  { %4906 = vmatpush3.msra.mxu1 %v11870_v15  ;;  %4940 = vmatprep.subr.mxu0 %v11774_v57  ;;  %v11907_v15 = vld [vmem:[#allocation73_spill] sm:$0xff] }
 0x4b5   :  { %4907 = vmatprep.subr.mxu1 %v11774_v57  ;;  %4941 = vmatpush3.msra.mxu0 %v11871_v17  ;;  %v11908_v17 = vld [vmem:[#allocation74_spill] sm:$0xff] }
 0x4b6   :  { %4908 = vmatpush3.msra.mxu1 %v11872_v19  ;;  %4942 = vmatprep.subr.mxu0 %v11774_v57  ;;  %v11909_v19 = vld [vmem:[#allocation75_spill] sm:$0xff] }
 0x4b7   :  { %4909 = vmatprep.subr.mxu1 %v11774_v57  ;;  %4943 = vmatpush3.msra.mxu0 %v11873_v21  ;;  %v11910_v21 = vld [vmem:[#allocation76_spill] sm:$0xff] }
 0x4b8   :  { %4910 = vmatpush3.msra.mxu1 %v11874_v23  ;;  %4944 = vmatprep.subr.mxu0 %v11774_v57  ;;  %v11911_v23 = vld [vmem:[#allocation77_spill] sm:$0xff] }
 0x4b9   :  { %4911 = vmatprep.subr.mxu1 %v11774_v57  ;;  %4945 = vmatpush3.msra.mxu0 %v11875_v27  ;;  %v11912_v27 = vld [vmem:[#allocation78_spill] sm:$0xff] }
 0x4ba   :  { %4912 = vmatpush3.msra.mxu1 %v11876_v29  ;;  %4946 = vmatprep.subr.mxu0 %v11774_v57  ;;  %v11913_v29 = vld [vmem:[#allocation92_spill] sm:$0xff] }
 0x4bb   :  { %4913 = vmatprep.subr.mxu1 %v11774_v57  ;;  %4947 = vmatpush3.msra.mxu0 %v11877_v37  ;;  %v11914_v37 = vld [vmem:[#allocation94_spill] sm:$0xff] }
 0x4bc   :  { %4914 = vmatpush3.msra.mxu1 %v11878_v39  ;;  %4948 = vmatprep.subr.mxu0 %v11774_v57  ;;  %v11915_v39 = vld [vmem:[#allocation95_spill] sm:$0xff] }
 0x4bd   :  { %4915 = vmatprep.subr.mxu1 %v11774_v57  ;;  %4949 = vmatpush3.msra.mxu0 %v11879_v41  ;;  %v11916_v41 = vld [vmem:[#allocation97_spill] sm:$0xff] }
 0x4be   :  { %4916 = vmatpush3.msra.mxu1 %v11880_v43  ;;  %4950 = vmatprep.subr.mxu0 %v11774_v57  ;;  %v11917_v43 = vld [vmem:[#allocation98_spill] sm:$0xff] }
 0x4bf   :  { %4917 = vmatprep.subr.mxu1 %v11774_v57  ;;  %4951 = vmatpush3.msra.mxu0 %v11881_v45  ;;  %v11918_v45 = vld [vmem:[#allocation100_spill] sm:$0xff] }
 0x4c0   :  { %4918 = vmatpush3.msra.mxu1 %v11882_v49  ;;  %4952 = vmatprep.subr.mxu0 %v11774_v57  ;;  %v11919_v49 = vld [vmem:[#allocation101_spill] sm:$0xff] }
 0x4c1   :  { %4919 = vmatprep.subr.mxu1 %v11774_v57  ;;  %4953 = vmatpush3.msra.mxu0 %v11883_v51  ;;  %v7609_v51 = vld [vmem:[%s11324_s4 + $0x1e8] sm:$0xff] }
 0x4c2   :  { %4920 = vmatpush3.msra.mxu1 %v11884_v55  ;;  %4954 = vmatprep.subr.mxu0 %v11774_v57 }
 0x4c3   :  { %4955 = vmatpush3.msra.mxu0 %v11885_v59  ;;  %4956 = vmatprep.mubr.msk.f32.mxu0 %vm6244_vm1, %v11774_v57 }
 0x4c4   :  { %1121 = vmatprep.subr.mxu1 %v11886_v4  ;;  %4959 = vmatprep.subr.mxu0 %v11774_v57 }
 0x563   :  { %v864_v6 = vpop.f32.mrf.mxu1 }
 0x564   :  { %v941_v24 = vrot.slane %v864_v6, 7  ;;  %v11920_v6 = vld [vmem:[#allocation80_spill] sm:$0xff] }
 0x565   :  { %v7612_v55 = vpop.f32.mrf.mxu1 }
 0x566   :  { %v943_v28 = vadd.f32 %v941_v24, %v11888_v26  ;;  %v11922_v24 = vld [vmem:[#allocation82_spill] sm:$0xff] }
 0x568   :  { %v950_v30 = vadd.f32 %v7567_v20, %v943_v28  ;;  %v11923_v28 = vld [vmem:[#allocation83_spill] sm:$0xff] }
 0x56a   :  { %v952_v46 = vsel %vm951_vm2, %v950_v30, -inf }
 0x56b   :  { %953 = vmax.xlane.f32.xlu1 %v952_v46  ;;  %v11925_v46 = vld [vmem:[#allocation85_spill] sm:$0xff] }
 0x5f4   :  { %v954_v48 = vpop.xlane.xlu1 %953 }
 0x5f5   :  { %v955_v50 = vsub.f32 %v950_v30, %v954_v48  ;;  %v11924_v30 = vld [vmem:[#allocation84_spill] sm:$0xff]  ;;  %v11926_v48 = vld [vmem:[#allocation86_spill] sm:$0xff] }
 0x5f7   :  { %v956_v52 = vmul.f32 1.442695, %v955_v50  ;;  %v11927_v50 = vld [vmem:[#allocation87_spill] sm:$0xff] }
 0x5f9   :  { %5643 = vpow2.f32 %v956_v52  ;;  %v11928_v52 = vld [vmem:[#allocation88_spill] sm:$0xff] }
 0x606   :  { %v5644_v54 = vpop.eup %5643 }
 0x607   :  { %v958_v56 = vsel %vm951_vm2, %v5644_v54, 0.0 }
 0x608   :  { %959 = vadd.xlane.f32.xlu1 %v958_v56  ;;  %v11930_v56 = vld [vmem:[#allocation90_spill] sm:$0xff] }
 0x691   :  { %v960_v58 = vpop.xlane.xlu1 %959 }
 0x692   :  { %5645 = vrcp.f32 %v960_v58  ;;  %v11931_v58 = vld [vmem:[#allocation91_spill] sm:$0xff] }
 0x69f   :  { %v5646_v60 = vpop.eup %5645 }
 0x6a0   :  { %v7571_v62 = vmul.f32 %v5646_v60, %v5644_v54  ;;  %v11929_v54 = vld [vmem:[#allocation89_spill] sm:$0xff] }
 0x6a1   :  { %v11932_v60 = vld [vmem:[#allocation93_spill] sm:$0xff] }
 0x6a2   :  { %v964_v0 = vrot.slane %v7571_v62, 1 }
 0x6a4   :  { %4922 = vmatmul.mubr.f32.vlgmr.msra.gmra.mxu1 %v964_v0  ;;  %v11933_v0 = vld [vmem:[#allocation96_spill] sm:$0xff] }
 0x6a5   :  { %1122 = vmatpush1.msra.mxu1 %v11889_v8  ;;  %1185 = vmatprep.mubr.f32.mxu1 %v11774_v57  ;;  %v11934_v8 = vld [vmem:[#allocation99_spill] sm:$0xff] }
 0x6a6   :  { %1123 = vmatprep.subr.mxu1 %v11890_v12  ;;  %v11935_v12 = vld [vmem:[#allocation102_spill] sm:$0xff] }
 0x6a7   :  { %1124 = vmatpush1.msra.mxu1 %v11891_v16  ;;  %v7650_v16 = vld [vmem:[%s11324_s4 + $0x1f8] sm:$0xff] }
 0x6a8   :  { %1125 = vmatprep.subr.mxu1 %v11892_v34  ;;  %v7653_v34 = vpop.f32.mrf.mxu0 }
 0x6a9   :  { %1126 = vmatpush1.msra.mxu1 %v11893_v36 }
 0x6aa   :  { %1127 = vmatprep.subr.mxu1 %v11894_v38  ;;  %v7655_v36 = vpop.f32.mrf.mxu0 }
 0x6ab   :  { %1128 = vmatpush1.msra.mxu1 %v11895_v42  ;;  %v7659_v42 = vrot.slane %v7387_v2, %v7457_v25  ;;  %v7672_v2 = vld [vmem:[%s11324_s4 + $0x1f0] sm:$0xff] }
 0x6ac   :  { %1129 = vmatprep.subr.mxu1 %v11896_v63  ;;  %v7936_v25 = vld [vmem:[%s11324_s4 + $0x90] sm:$0xff] }
 0x6ad   :  { %1130 = vmatpush1.msra.mxu1 %v11897_v40  ;;  %11950 = vst [vmem:[#allocation19_spill] sm:$0xff] %v7936_v25 }
 0x6ae   :  { %1131 = vmatprep.subr.mxu1 %v11898_v18 }
 0x6af   :  { %1132 = vmatpush1.msra.mxu1 %v11899_v22 }
 0x6b0   :  { %1133 = vmatprep.subr.mxu1 %v11900_v1 }
 0x6b1   :  { %1134 = vmatpush1.msra.mxu1 %v11901_v3 }
 0x6b2   :  { %1135 = vmatprep.subr.mxu1 %v11902_v5  ;;  %v7666_v5 = vld [vmem:[%s11324_s4 + $0x1e0] sm:$0xff] }
 0x6b3   :  { %1136 = vmatpush1.msra.mxu1 %v11903_v7  ;;  %v7678_v7 = vld [vmem:[%s11324_s4 + $0x1c8] sm:$0xff] }
 0x6b4   :  { %1137 = vmatprep.subr.mxu1 %v11904_v9  ;;  %v7684_v9 = vld [vmem:[%s11324_s4 + $0x1d8] sm:$0xff] }
 0x6b5   :  { %1138 = vmatpush1.msra.mxu1 %v11905_v11  ;;  %v7690_v11 = vld [vmem:[%s11324_s4 + $0x1c0] sm:$0xff] }
 0x6b6   :  { %1139 = vmatprep.subr.mxu1 %v11906_v13  ;;  %v7696_v13 = vld [vmem:[%s11324_s4 + $0x1d0] sm:$0xff] }
 0x6b7   :  { %1140 = vmatpush1.msra.mxu1 %v11907_v15  ;;  %v7702_v15 = vld [vmem:[%s11324_s4 + $0x1a8] sm:$0xff] }
 0x6b8   :  { %1141 = vmatprep.subr.mxu1 %v11908_v17  ;;  %v7708_v17 = vld [vmem:[%s11324_s4 + $0x1b8] sm:$0xff] }
 0x6b9   :  { %1142 = vmatpush1.msra.mxu1 %v11909_v19  ;;  %v7714_v19 = vld [vmem:[%s11324_s4 + $0x1a0] sm:$0xff] }
 0x6ba   :  { %1143 = vmatprep.subr.mxu1 %v11910_v21  ;;  %v7720_v21 = vld [vmem:[%s11324_s4 + $0x1b0] sm:$0xff] }
 0x6bb   :  { %1144 = vmatpush1.msra.mxu1 %v11911_v23  ;;  %v7726_v23 = vld [vmem:[%s11324_s4 + $0x188] sm:$0xff] }
 0x6bc   :  { %1145 = vmatprep.subr.mxu1 %v11912_v27  ;;  %v7732_v27 = vld [vmem:[%s11324_s4 + $0x198] sm:$0xff] }
 0x6bd   :  { %1146 = vmatpush1.msra.mxu1 %v11913_v29  ;;  %v7738_v29 = vld [vmem:[%s11324_s4 + $0x180] sm:$0xff] }
 0x6be   :  { %1147 = vmatprep.subr.mxu1 %v11914_v37  ;;  %v7744_v37 = vld [vmem:[%s11324_s4 + $0x190] sm:$0xff] }
 0x6bf   :  { %1148 = vmatpush1.msra.mxu1 %v11915_v39  ;;  %v7750_v39 = vld [vmem:[%s11324_s4 + $0x168] sm:$0xff] }
 0x6c0   :  { %1149 = vmatprep.subr.mxu1 %v11916_v41  ;;  %v7756_v41 = vld [vmem:[%s11324_s4 + $0x178] sm:$0xff] }
 0x6c1   :  { %1150 = vmatpush1.msra.mxu1 %v11917_v43  ;;  %v7762_v43 = vld [vmem:[%s11324_s4 + $0x160] sm:$0xff] }
 0x6c2   :  { %1151 = vmatprep.subr.mxu1 %v11918_v45  ;;  %v7768_v45 = vld [vmem:[%s11324_s4 + $0x170] sm:$0xff] }
 0x6c3   :  { %1152 = vmatpush1.msra.mxu1 %v11919_v49  ;;  %v7774_v49 = vld [vmem:[%s11324_s4 + $0x148] sm:$0xff] }
 0x6c4   :  { %1286 = vmatprep.subr.mxu1 %v7609_v51 }
 0x764   :  { %v1032_v59 = vpop.f32.mrf.mxu1 }
 0x765   :  { %4957 = vmatmul.mubr.f32.vlgmr.msra.gmra.mxu0 %v1032_v59  ;;  %v7780_v59 = vld [vmem:[%s11324_s4 + $0x158] sm:$0xff] }
 0x766   :  { %v4923_v4 = vpop.f32.mrf.mxu1  ;;  %4960 = vmatpush3.msra.mxu0 %v11920_v6  ;;  %4991 = vmatprep.mubr.msk.f32.mxu0 %vm6244_vm1, %v11774_v57  ;;  %v7792_v6 = vld [vmem:[%s11324_s4 + $0x150] sm:$0xff] }
 0x767   :  { %4961 = vmatprep.subr.mxu0 %v11774_v57  ;;  %v7786_v4 = vld [vmem:[%s11324_s4 + $0x140] sm:$0xff] }
 0x768   :  { %4962 = vmatpush3.msra.mxu0 %v11921_v10  ;;  %v7798_v10 = vld [vmem:[%s11324_s4 + $0x128] sm:$0xff] }
 0x769   :  { %4963 = vmatprep.subr.mxu0 %v11774_v57 }
 0x76a   :  { %4964 = vmatpush3.msra.mxu0 %v11922_v24  ;;  %v7804_v24 = vld [vmem:[%s11324_s4 + $0x138] sm:$0xff] }
 0x76b   :  { %4965 = vmatprep.subr.mxu0 %v11774_v57 }
 0x76c   :  { %4966 = vmatpush3.msra.mxu0 %v11923_v28  ;;  %v7810_v28 = vld [vmem:[%s11324_s4 + $0x120] sm:$0xff] }
 0x76d   :  { %4967 = vmatprep.subr.mxu0 %v11774_v57 }
 0x76e   :  { %4968 = vmatpush3.msra.mxu0 %v11924_v30  ;;  %v7816_v30 = vld [vmem:[%s11324_s4 + $0x130] sm:$0xff] }
 0x76f   :  { %4969 = vmatprep.subr.mxu0 %v11774_v57 }
 0x770   :  { %4970 = vmatpush3.msra.mxu0 %v11925_v46  ;;  %v7822_v46 = vld [vmem:[%s11324_s4 + $0x108] sm:$0xff] }
 0x771   :  { %4971 = vmatprep.subr.mxu0 %v11774_v57 }
 0x772   :  { %4972 = vmatpush3.msra.mxu0 %v11926_v48  ;;  %v7828_v48 = vld [vmem:[%s11324_s4 + $0x118] sm:$0xff] }
 0x773   :  { %4973 = vmatprep.subr.mxu0 %v11774_v57 }
 0x774   :  { %4974 = vmatpush3.msra.mxu0 %v11927_v50  ;;  %v7834_v50 = vld [vmem:[%s11324_s4 + $0x100] sm:$0xff] }
 0x775   :  { %4975 = vmatprep.subr.mxu0 %v11774_v57 }
 0x776   :  { %4976 = vmatpush3.msra.mxu0 %v11928_v52  ;;  %v7840_v52 = vld [vmem:[%s11324_s4 + $0x110] sm:$0xff] }
 0x777   :  { %4977 = vmatprep.subr.mxu0 %v11774_v57 }
 0x778   :  { %4978 = vmatpush3.msra.mxu0 %v11929_v54  ;;  %v7846_v54 = vld [vmem:[%s11324_s4 + $0xe8] sm:$0xff] }
 0x779   :  { %4979 = vmatprep.subr.mxu0 %v11774_v57 }
 0x77a   :  { %4980 = vmatpush3.msra.mxu0 %v11930_v56  ;;  %v7852_v56 = vld [vmem:[%s11324_s4 + $0xf8] sm:$0xff] }
 0x77b   :  { %4981 = vmatprep.subr.mxu0 %v11774_v57  ;;  %11936 = vst [vmem:[#allocation10_spill] sm:$0xff] %v7852_v56 }
 0x77c   :  { %4982 = vmatpush3.msra.mxu0 %v11931_v58  ;;  %v7858_v58 = vld [vmem:[%s11324_s4 + $0xe0] sm:$0xff] }
 0x77d   :  { %4983 = vmatprep.subr.mxu0 %v11774_v57  ;;  %11937 = vst [vmem:[#allocation34_spill] sm:$0xff] %v7858_v58 }
 0x77e   :  { %4984 = vmatpush3.msra.mxu0 %v11932_v60  ;;  %v7864_v60 = vld [vmem:[%s11324_s4 + $0xf0] sm:$0xff] }
 0x77f   :  { %4985 = vmatprep.subr.mxu0 %v11774_v57  ;;  %11938 = vst [vmem:[#allocation11_spill] sm:$0xff] %v7864_v60 }
 0x780   :  { %4986 = vmatpush3.msra.mxu0 %v11933_v0  ;;  %v7870_v0 = vld [vmem:[%s11324_s4 + $0xc8] sm:$0xff] }
 0x781   :  { %4987 = vmatprep.subr.mxu0 %v11774_v57  ;;  %11939 = vst [vmem:[#allocation35_spill] sm:$0xff] %v7870_v0 }
 0x782   :  { %4988 = vmatpush3.msra.mxu0 %v11934_v8  ;;  %v7876_v8 = vld [vmem:[%s11324_s4 + $0xd8] sm:$0xff] }
 0x783   :  { %4989 = vmatprep.subr.mxu0 %v11774_v57  ;;  %11940 = vst [vmem:[#allocation12_spill] sm:$0xff] %v7876_v8 }
 0x784   :  { %4990 = vmatpush3.msra.mxu0 %v11935_v12  ;;  %v7882_v12 = vld [vmem:[%s11324_s4 + $0xc0] sm:$0xff] }
 0x785   :  { %1357 = vmatprep.subr.mxu0 %v7650_v16  ;;  %11941 = vst [vmem:[#allocation36_spill] sm:$0xff] %v7882_v12 }
 0x825   :  { %v1102_v38 = vpop.f32.mrf.mxu0 }
 0x826   :  { %v1107_v63 = vrot.slane %v1102_v38, 7  ;;  %v7888_v38 = vld [vmem:[%s11324_s4 + $0xd0] sm:$0xff] }
 0x827   :  { %v4958_v40 = vpop.f32.mrf.mxu0  ;;  %11942 = vst [vmem:[#allocation79_spill] sm:$0xff] %v7888_v38 }
 0x828   :  { %v1109_v18 = vadd.f32 %v1107_v63, %v7378_v61  ;;  %v7894_v63 = vld [vmem:[%s11324_s4 + $0xa8] sm:$0xff]  ;;  %v7900_v40 = vld [vmem:[%s11324_s4 + $0xb8] sm:$0xff] }
 0x829   :  { %11943 = vst [vmem:[#allocation13_spill] sm:$0xff] %v7894_v63  ;;  %11944 = vst [vmem:[#allocation16_spill] sm:$0xff] %v7900_v40 }
 0x82a   :  { %v1116_v22 = vadd.f32 %v7659_v42, %v1109_v18  ;;  %v7906_v18 = vld [vmem:[%s11324_s4 + $0xa0] sm:$0xff] }
 0x82b   :  { %11945 = vst [vmem:[#allocation37_spill] sm:$0xff] %v7906_v18 }
 0x82c   :  { %v1117_v1 = vmax.f32 %v1116_v22, 0.0  ;;  %v7912_v22 = vld [vmem:[%s11324_s4 + $0xb0] sm:$0xff] }
 0x82d   :  { %11946 = vst [vmem:[#allocation17_spill] sm:$0xff] %v7912_v22 }
 0x82e   :  { %v1119_v3 = vrot.slane %v1117_v1, 1  ;;  %v7918_v1 = vld [vmem:[%s11324_s4 + $0x88] sm:$0xff] }
 0x82f   :  { %11947 = vst [vmem:[#allocation38_spill] sm:$0xff] %v7918_v1 }
 0x830   :  { %1186 = vmatmul.mubr.f32.vlgmr.msra.gmra.mxu1 %v1119_v3  ;;  %4992 = vmatmul.mubr.f32.vlgmr.msra.gmra.mxu0 %v1119_v3  ;;  %v7924_v3 = vld [vmem:[%s11324_s4 + $0x98] sm:$0xff] }
 0x831   :  { %1287 = vmatpush1.msra.mxu1 %v7666_v5  ;;  %1358 = vmatpush1.msra.mxu0 %v7672_v2  ;;  %11948 = vst [vmem:[#allocation18_spill] sm:$0xff] %v7924_v3 }
 0x832   :  { %1288 = vmatprep.subr.mxu1 %v7678_v7  ;;  %1359 = vmatprep.subr.mxu0 %v7684_v9 }
 0x833   :  { %1289 = vmatpush1.msra.mxu1 %v7690_v11  ;;  %1360 = vmatpush1.msra.mxu0 %v7696_v13 }
 0x834   :  { %1290 = vmatprep.subr.mxu1 %v7702_v15  ;;  %1361 = vmatprep.subr.mxu0 %v7708_v17 }
 0x835   :  { %1291 = vmatpush1.msra.mxu1 %v7714_v19  ;;  %1362 = vmatpush1.msra.mxu0 %v7720_v21 }
 0x836   :  { %1292 = vmatprep.subr.mxu1 %v7726_v23  ;;  %1363 = vmatprep.subr.mxu0 %v7732_v27 }
 0x837   :  { %1293 = vmatpush1.msra.mxu1 %v7738_v29  ;;  %1364 = vmatpush1.msra.mxu0 %v7744_v37 }
 0x838   :  { %1294 = vmatprep.subr.mxu1 %v7750_v39  ;;  %1365 = vmatprep.subr.mxu0 %v7756_v41 }
 0x839   :  { %1295 = vmatpush1.msra.mxu1 %v7762_v43  ;;  %1366 = vmatpush1.msra.mxu0 %v7768_v45 }
 0x83a   :  { %1296 = vmatprep.subr.mxu1 %v7774_v49  ;;  %1367 = vmatprep.subr.mxu0 %v7780_v59 }
 0x83b   :  { %1297 = vmatpush1.msra.mxu1 %v7786_v4  ;;  %1368 = vmatpush1.msra.mxu0 %v7792_v6 }
 0x83c   :  { %1298 = vmatprep.subr.mxu1 %v7798_v10  ;;  %1369 = vmatprep.subr.mxu0 %v7804_v24 }
 0x83d   :  { %1299 = vmatpush1.msra.mxu1 %v7810_v28  ;;  %1370 = vmatpush1.msra.mxu0 %v7816_v30 }
 0x83e   :  { %1300 = vmatprep.subr.mxu1 %v7822_v46  ;;  %1371 = vmatprep.subr.mxu0 %v7828_v48 }
 0x83f   :  { %1301 = vmatpush1.msra.mxu1 %v7834_v50  ;;  %1372 = vmatpush1.msra.mxu0 %v7840_v52 }
 0x840   :  { %1302 = vmatprep.subr.mxu1 %v7846_v54  ;;  %1373 = vmatprep.subr.mxu0 %v7852_v56 }
 0x841   :  { %1303 = vmatpush1.msra.mxu1 %v7858_v58  ;;  %1374 = vmatpush1.msra.mxu0 %v7864_v60 }
 0x842   :  { %1304 = vmatprep.subr.mxu1 %v7870_v0  ;;  %1375 = vmatprep.subr.mxu0 %v7876_v8 }
 0x843   :  { %1305 = vmatpush1.msra.mxu1 %v7882_v12  ;;  %1376 = vmatpush1.msra.mxu0 %v7888_v38 }
 0x844   :  { %1306 = vmatprep.subr.mxu1 %v7894_v63  ;;  %1377 = vmatprep.subr.mxu0 %v7900_v40 }
 0x845   :  { %1307 = vmatpush1.msra.mxu1 %v7906_v18  ;;  %1378 = vmatpush1.msra.mxu0 %v7912_v22 }
 0x846   :  { %1308 = vmatprep.subr.mxu1 %v7918_v1  ;;  %1379 = vmatprep.subr.mxu0 %v7924_v3  ;;  %v7942_v1 = vld [vmem:[%s11324_s4 + $0x68] sm:$0xff]  ;;  %v7948_v3 = vld [vmem:[%s11324_s4 + $0x78] sm:$0xff] }
 0x847   :  { %1309 = vmatpush1.msra.mxu1 %v7930_v35  ;;  %1380 = vmatpush1.msra.mxu0 %v7936_v25  ;;  %11951 = vst [vmem:[#allocation40_spill] sm:$0xff] %v7942_v1  ;;  %11952 = vst [vmem:[#allocation20_spill] sm:$0xff] %v7948_v3  ;;  %v7954_v35 = vld [vmem:[%s11324_s4 + $0x60] sm:$0xff]  ;;  %v7960_v25 = vld [vmem:[%s11324_s4 + $0x70] sm:$0xff] }
 0x848   :  { %1310 = vmatprep.subr.mxu1 %v7942_v1  ;;  %1381 = vmatprep.subr.mxu0 %v7948_v3  ;;  %11953 = vst [vmem:[#allocation41_spill] sm:$0xff] %v7954_v35  ;;  %11954 = vst [vmem:[#allocation21_spill] sm:$0xff] %v7960_v25  ;;  %v7966_v1 = vld [vmem:[%s11324_s4 + $0x48] sm:$0xff]  ;;  %v7972_v3 = vld [vmem:[%s11324_s4 + $0x58] sm:$0xff] }
 0x849   :  { %1311 = vmatpush1.msra.mxu1 %v7954_v35  ;;  %1382 = vmatpush1.msra.mxu0 %v7960_v25  ;;  %11955 = vst [vmem:[#allocation42_spill] sm:$0xff] %v7966_v1  ;;  %11956 = vst [vmem:[#allocation22_spill] sm:$0xff] %v7972_v3  ;;  %v7978_v35 = vld [vmem:[%s11324_s4 + $0x40] sm:$0xff]  ;;  %v7984_v25 = vld [vmem:[%s11324_s4 + $0x50] sm:$0xff] }
 0x84a   :  { %1312 = vmatprep.subr.mxu1 %v7966_v1  ;;  %1383 = vmatprep.subr.mxu0 %v7972_v3  ;;  %11957 = vst [vmem:[#allocation43_spill] sm:$0xff] %v7978_v35  ;;  %11958 = vst [vmem:[#allocation23_spill] sm:$0xff] %v7984_v25  ;;  %v7990_v1 = vld [vmem:[%s11324_s4 + $0x28] sm:$0xff]  ;;  %v7996_v3 = vld [vmem:[%s11324_s4 + $0x38] sm:$0xff] }
 0x84b   :  { %1313 = vmatpush1.msra.mxu1 %v7978_v35  ;;  %1384 = vmatpush1.msra.mxu0 %v7984_v25  ;;  %11959 = vst [vmem:[#allocation44_spill] sm:$0xff] %v7990_v1  ;;  %11960 = vst [vmem:[#allocation24_spill] sm:$0xff] %v7996_v3  ;;  %v8002_v35 = vld [vmem:[%s11324_s4 + $0x20] sm:$0xff]  ;;  %v8008_v25 = vld [vmem:[%s11324_s4 + $0x30] sm:$0xff] }
 0x84c   :  { %1314 = vmatprep.subr.mxu1 %v7990_v1  ;;  %1385 = vmatprep.subr.mxu0 %v7996_v3  ;;  %11961 = vst [vmem:[#allocation45_spill] sm:$0xff] %v8002_v35  ;;  %11962 = vst [vmem:[#allocation25_spill] sm:$0xff] %v8008_v25  ;;  %v8014_v1 = vld [vmem:[%s11324_s4 + $0x8] sm:$0xff]  ;;  %v8020_v3 = vld [vmem:[%s11324_s4 + $0x18] sm:$0xff] }
 0x84d   :  { %1315 = vmatpush1.msra.mxu1 %v8002_v35  ;;  %1386 = vmatpush1.msra.mxu0 %v8008_v25  ;;  %11963 = vst [vmem:[#allocation46_spill] sm:$0xff] %v8014_v1  ;;  %11964 = vst [vmem:[#allocation26_spill] sm:$0xff] %v8020_v3  ;;  %v8026_v35 = vld [vmem:[%s11324_s4] sm:$0xff] }
 0x84e   :  { %1316 = vmatprep.subr.mxu1 %v8014_v1  ;;  %1387 = vmatprep.subr.mxu0 %v8020_v3  ;;  %11965 = vst [vmem:[#allocation47_spill] sm:$0xff] %v8026_v35  ;;  %v8033_v1 = vld [vmem:[%s11324_s4 + $0x10] sm:$0xff] }
 0x84f   :  { %1317 = vmatpush1.msra.mxu1 %v8026_v35  ;;  %1350 = vmatprep.mubr.f32.mxu1 %v11774_v57  ;;  %11966 = vst [vmem:[#allocation27_spill] sm:$0xff] %v8033_v1  ;;  %v1262_v35 = vadd.f32 %v7612_v55, %v7466_v31 }
 0x850   :  { %1388 = vmatpush1.msra.mxu0 %v8033_v1  ;;  %1421 = vmatprep.mubr.f32.mxu0 %v11774_v57  ;;  %v1263_v1 = vadd.f32 %v7653_v34, %v7480_v53 }
 0x851   :  { %4994 = vmatprep.subr.mxu1 %v11774_v57  ;;  %5029 = vmatprep.subr.mxu0 %v11774_v57 }
 0x8f0   :  { %v1187_v3 = vpop.f32.mrf.mxu1  ;;  %v1258_v25 = vpop.f32.mrf.mxu0 }
 0x8f1   :  { %v1188_v22 = vadd.f32 %v1187_v3, %v7469_v33  ;;  %v1264_v3 = vadd.f32 %v7655_v36, %v7485_v32  ;;  %v8065_v36 = vld [vmem:[%s11325_s5 + $0x78] sm:$0xff] }
 0x8f2   :  { %v1189_v18 = vpop.f32.mrf.mxu1  ;;  %v4993_v40 = vpop.f32.mrf.mxu0 }
 0x8f3   :  { %v1265_v63 = vadd.f32 %v1262_v35, %v1188_v22  ;;  %v1190_v12 = vadd.f32 %v1189_v18, %v7477_v47  ;;  %v1259_v35 = vadd.f32 %v1258_v25, %v7487_v44  ;;  %v8056_v25 = vld [vmem:[%s11322_s2 + $0x78] sm:$0xff]  ;;  %v8085_v22 = vld [vmem:[%s11322_s2 + $0x68] sm:$0xff] }
 0x8f5   :  { %v4362_v38 = vmul.f32 -1.442695, %v1265_v63  ;;  %v1272_v8 = vadd.f32 %v1263_v1, %v1190_v12  ;;  %v8093_v1 = vld [vmem:[%s11325_s5 + $0x68] sm:$0xff] }
 0x8f6   :  { %11968 = vst [vmem:[#allocation28_spill] sm:$0xff] %v8093_v1 }
 0x8f7   :  { %5647 = vpow2.f32 %v4362_v38  ;;  %v4363_v0 = vmul.f32 -1.442695, %v1272_v8 }
 0x8f9   :  { %5649 = vpow2.f32 %v4363_v0 }
 0x904   :  { %v5648_v60 = vpop.eup %5647 }
 0x905   :  { %v1269_v58 = vadd.f32 1.0, %v5648_v60 }
 0x906   :  { %v5650_v56 = vpop.eup %5649 }
 0x907   :  { %5651 = vrcp.f32 %v1269_v58  ;;  %v1276_v55 = vadd.f32 1.0, %v5650_v56  ;;  %v8071_v56 = vld [vmem:[%s11322_s2 + $0x70] sm:$0xff] }
 0x908   :  { %v8079_v58 = vld [vmem:[%s11325_s5 + $0x70] sm:$0xff] }
 0x909   :  { %5653 = vrcp.f32 %v1276_v55  ;;  %v8099_v55 = vld [vmem:[%s11322_s2 + $0x60] sm:$0xff] }
 0x90a   :  { %11969 = vst [vmem:[#allocation49_spill] sm:$0xff] %v8099_v55 }
 0x914   :  { %v5652_v40 = vpop.eup %5651 }
 0x915   :  { %v1279_v63 = vmul.f32 %v5652_v40, %v1264_v3  ;;  %v8107_v3 = vld [vmem:[%s11325_s5 + $0x60] sm:$0xff]  ;;  %v8113_v40 = vld [vmem:[%s11322_s2 + $0x58] sm:$0xff] }
 0x916   :  { %v5654_v34 = vpop.eup %5653  ;;  %11970 = vst [vmem:[#allocation29_spill] sm:$0xff] %v8107_v3  ;;  %11971 = vst [vmem:[#allocation50_spill] sm:$0xff] %v8113_v40 }
 0x917   :  { %v1280_v18 = vadd.f32 %v1279_v63, %v1259_v35  ;;  %v1282_v38 = vsub.f32 1.0, %v5654_v34  ;;  %v1284_v0 = vmul.f32 %v5654_v34, %v7493_v14  ;;  %v8121_v35 = vld [vmem:[%s11325_s5 + $0x58] sm:$0xff]  ;;  %v8127_v63 = vld [vmem:[%s11322_s2 + $0x50] sm:$0xff]  ;;  %v8141_v34 = vld [vmem:[%s11322_s2 + $0x48] sm:$0xff] }
 0x918   :  { %11972 = vst [vmem:[#allocation30_spill] sm:$0xff] %v8121_v35  ;;  %11973 = vst [vmem:[#allocation51_spill] sm:$0xff] %v8127_v63  ;;  %v8177_v14 = vld [vmem:[%s11325_s5 + $0x38] sm:$0xff] }
 0x919   :  { %5655 = vtanh.f32 %v1280_v18  ;;  %v8135_v18 = vld [vmem:[%s11325_s5 + $0x50] sm:$0xff]  ;;  %11975 = vst [vmem:[#allocation53_spill] sm:$0xff] %v8141_v34  ;;  %11980 = vst [vmem:[#allocation57_spill] sm:$0xff] %v8177_v14 }
 0x91a   :  { %11974 = vst [vmem:[#allocation31_spill] sm:$0xff] %v8135_v18 }
 0x926   :  { %v5656_v12 = vpop.eup %5655 }
 0x927   :  { %v1283_v8 = vmul.f32 %v5656_v12, %v1282_v38  ;;  %v8149_v38 = vld [vmem:[%s11325_s5 + $0x48] sm:$0xff]  ;;  %v8155_v12 = vld [vmem:[%s11322_s2 + $0x40] sm:$0xff] }
 0x928   :  { %11976 = vst [vmem:[#allocation54_spill] sm:$0xff] %v8149_v38  ;;  %11977 = vst [vmem:[#allocation15_spill] sm:$0xff] %v8155_v12 }
 0x929   :  { %v8049_v60 = vadd.f32 %v1284_v0, %v1283_v8  ;;  %v8163_v8 = vld [vmem:[%s11325_s5 + $0x40] sm:$0xff]  ;;  %v8169_v0 = vld [vmem:[%s11322_s2 + $0x38] sm:$0xff] }
 0x92a   :  { %11978 = vst [vmem:[#allocation55_spill] sm:$0xff] %v8163_v8  ;;  %11979 = vst [vmem:[#allocation56_spill] sm:$0xff] %v8169_v0 }
 0x92b   :  { %11967 = vst [vmem:[#allocation48_spill] sm:$0xff] %v8049_v60  ;;  %1351 = vmatmul.mubr.f32.vlgmr.msra.gmra.mxu1 %v8049_v60  ;;  %1422 = vmatmul.mubr.f32.vlgmr.msra.gmra.mxu0 %v8049_v60 }
 0x92c   :  { %4995 = vmatpush3.msra.mxu1 %v8056_v25  ;;  %5026 = vmatprep.mubr.msk.f32.mxu1 %vm6244_vm1, %v11774_v57 }
 0x92d   :  { %4996 = vmatprep.subr.mxu1 %v11774_v57  ;;  %5030 = vmatpush3.msra.mxu0 %v8065_v36 }
 0x92e   :  { %4997 = vmatpush3.msra.mxu1 %v8071_v56  ;;  %5031 = vmatprep.subr.mxu0 %v11774_v57 }
 0x92f   :  { %4998 = vmatprep.subr.mxu1 %v11774_v57  ;;  %5032 = vmatpush3.msra.mxu0 %v8079_v58 }
 0x930   :  { %4999 = vmatpush3.msra.mxu1 %v8085_v22  ;;  %5033 = vmatprep.subr.mxu0 %v11774_v57 }
 0x931   :  { %5000 = vmatprep.subr.mxu1 %v11774_v57  ;;  %5034 = vmatpush3.msra.mxu0 %v8093_v1 }
 0x932   :  { %5001 = vmatpush3.msra.mxu1 %v8099_v55  ;;  %5035 = vmatprep.subr.mxu0 %v11774_v57 }
 0x933   :  { %5002 = vmatprep.subr.mxu1 %v11774_v57  ;;  %5036 = vmatpush3.msra.mxu0 %v8107_v3 }
 0x934   :  { %5003 = vmatpush3.msra.mxu1 %v8113_v40  ;;  %5037 = vmatprep.subr.mxu0 %v11774_v57 }
 0x935   :  { %5004 = vmatprep.subr.mxu1 %v11774_v57  ;;  %5038 = vmatpush3.msra.mxu0 %v8121_v35 }
 0x936   :  { %5005 = vmatpush3.msra.mxu1 %v8127_v63  ;;  %5039 = vmatprep.subr.mxu0 %v11774_v57 }
 0x937   :  { %5006 = vmatprep.subr.mxu1 %v11774_v57  ;;  %5040 = vmatpush3.msra.mxu0 %v8135_v18 }
 0x938   :  { %5007 = vmatpush3.msra.mxu1 %v8141_v34  ;;  %5041 = vmatprep.subr.mxu0 %v11774_v57 }
 0x939   :  { %5008 = vmatprep.subr.mxu1 %v11774_v57  ;;  %5042 = vmatpush3.msra.mxu0 %v8149_v38 }
 0x93a   :  { %5009 = vmatpush3.msra.mxu1 %v8155_v12  ;;  %5043 = vmatprep.subr.mxu0 %v11774_v57 }
 0x93b   :  { %5010 = vmatprep.subr.mxu1 %v11774_v57  ;;  %5044 = vmatpush3.msra.mxu0 %v8163_v8  ;;  %v8183_v8 = vld [vmem:[%s11322_s2 + $0x30] sm:$0xff] }
 0x93c   :  { %5011 = vmatpush3.msra.mxu1 %v8169_v0  ;;  %5045 = vmatprep.subr.mxu0 %v11774_v57  ;;  %11981 = vst [vmem:[#allocation58_spill] sm:$0xff] %v8183_v8  ;;  %v8191_v0 = vld [vmem:[%s11325_s5 + $0x30] sm:$0xff] }
 0x93d   :  { %5012 = vmatprep.subr.mxu1 %v11774_v57  ;;  %5046 = vmatpush3.msra.mxu0 %v8177_v14  ;;  %11982 = vst [vmem:[#allocation59_spill] sm:$0xff] %v8191_v0  ;;  %v8197_v14 = vld [vmem:[%s11322_s2 + $0x28] sm:$0xff] }
 0x93e   :  { %5013 = vmatpush3.msra.mxu1 %v8183_v8  ;;  %5047 = vmatprep.subr.mxu0 %v11774_v57  ;;  %11983 = vst [vmem:[#allocation60_spill] sm:$0xff] %v8197_v14  ;;  %v8205_v8 = vld [vmem:[%s11325_s5 + $0x28] sm:$0xff] }
 0x93f   :  { %5014 = vmatprep.subr.mxu1 %v11774_v57  ;;  %5048 = vmatpush3.msra.mxu0 %v8191_v0  ;;  %11984 = vst [vmem:[#allocation61_spill] sm:$0xff] %v8205_v8  ;;  %v8211_v0 = vld [vmem:[%s11322_s2 + $0x20] sm:$0xff] }
 0x940   :  { %5015 = vmatpush3.msra.mxu1 %v8197_v14  ;;  %5049 = vmatprep.subr.mxu0 %v11774_v57  ;;  %11985 = vst [vmem:[#allocation62_spill] sm:$0xff] %v8211_v0  ;;  %v8219_v14 = vld [vmem:[%s11325_s5 + $0x20] sm:$0xff] }
 0x941   :  { %5016 = vmatprep.subr.mxu1 %v11774_v57  ;;  %5050 = vmatpush3.msra.mxu0 %v8205_v8  ;;  %11986 = vst [vmem:[#allocation63_spill] sm:$0xff] %v8219_v14  ;;  %v8225_v8 = vld [vmem:[%s11322_s2 + $0x18] sm:$0xff] }
 0x942   :  { %5017 = vmatpush3.msra.mxu1 %v8211_v0  ;;  %5051 = vmatprep.subr.mxu0 %v11774_v57  ;;  %11987 = vst [vmem:[#allocation64_spill] sm:$0xff] %v8225_v8  ;;  %v8233_v0 = vld [vmem:[%s11325_s5 + $0x18] sm:$0xff] }
 0x943   :  { %5018 = vmatprep.subr.mxu1 %v11774_v57  ;;  %5052 = vmatpush3.msra.mxu0 %v8219_v14  ;;  %11988 = vst [vmem:[#allocation65_spill] sm:$0xff] %v8233_v0  ;;  %v8239_v14 = vld [vmem:[%s11322_s2 + $0x10] sm:$0xff] }
 0x944   :  { %5019 = vmatpush3.msra.mxu1 %v8225_v8  ;;  %5053 = vmatprep.subr.mxu0 %v11774_v57  ;;  %11989 = vst [vmem:[#allocation66_spill] sm:$0xff] %v8239_v14  ;;  %v8247_v8 = vld [vmem:[%s11325_s5 + $0x10] sm:$0xff] }
 0x945   :  { %5020 = vmatprep.subr.mxu1 %v11774_v57  ;;  %5054 = vmatpush3.msra.mxu0 %v8233_v0  ;;  %11990 = vst [vmem:[#allocation67_spill] sm:$0xff] %v8247_v8  ;;  %v8253_v0 = vld [vmem:[%s11322_s2 + $0x8] sm:$0xff] }
 0x946   :  { %5021 = vmatpush3.msra.mxu1 %v8239_v14  ;;  %5055 = vmatprep.subr.mxu0 %v11774_v57  ;;  %11991 = vst [vmem:[#allocation68_spill] sm:$0xff] %v8253_v0  ;;  %v8261_v14 = vld [vmem:[%s11325_s5 + $0x8] sm:$0xff] }
 0x947   :  { %5022 = vmatprep.subr.mxu1 %v11774_v57  ;;  %5056 = vmatpush3.msra.mxu0 %v8247_v8  ;;  %11992 = vst [vmem:[#allocation69_spill] sm:$0xff] %v8261_v14  ;;  %v8267_v8 = vld [vmem:[%s11322_s2] sm:$0xff] }
 0x948   :  { %5023 = vmatpush3.msra.mxu1 %v8253_v0  ;;  %5057 = vmatprep.subr.mxu0 %v11774_v57  ;;  %11993 = vst [vmem:[#allocation70_spill] sm:$0xff] %v8267_v8  ;;  %v8274_v0 = vld [vmem:[%s11325_s5] sm:$0xff] }
 0x949   :  { %5024 = vmatprep.subr.mxu1 %v11774_v57  ;;  %5058 = vmatpush3.msra.mxu0 %v8261_v14  ;;  %11994 = vst [vmem:[#allocation71_spill] sm:$0xff] %v8274_v0  ;;  %v8282_v14 = vld [vmem:[%s11326_s6 + $0x170] sm:$0xff] }
 0x94a   :  { %5025 = vmatpush3.msra.mxu1 %v8267_v8  ;;  %5059 = vmatprep.subr.mxu0 %v11774_v57  ;;  %11995 = vst [vmem:[#allocation72_spill] sm:$0xff] %v8282_v14 }
 0x94b   :  { %5060 = vmatpush3.msra.mxu0 %v8274_v0  ;;  %5061 = vmatprep.mubr.msk.f32.mxu0 %vm6244_vm1, %v11774_v57 }
 0x94c   :  { %1597 = vmatprep.subr.mxu1 %v8282_v14  ;;  %5064 = vmatprep.subr.mxu0 %v11774_v57 }
 0x9eb   :  { %v1352_v8 = vpop.f32.mrf.mxu1 }
 0x9ec   :  { %v1429_v12 = vrot.slane %v1352_v8, 6  ;;  %v11996_v8 = vld [vmem:[#allocation52_spill] sm:$0xff] }
 0x9ee   :  { %v1431_v38 = vadd.f32 %v1429_v12, %v11888_v26  ;;  %v4176_v12 = vsel %vm446_vm0, %v11996_v8, %v7571_v62  ;;  %v8316_v62 = vld [vmem:[%s11326_s6 + $0x140] sm:$0xff]  ;;  %v8370_v8 = vld [vmem:[%s11326_s6 + $0xd8] sm:$0xff] }
 0x9ef   :  { %12005 = vst [vmem:[#allocation95_spill] sm:$0xff] %v8370_v8 }
 0x9f0   :  { %v1432_v34 = vadd.f32 %v1431_v38, %v7567_v20 }
 0x9f2   :  { %v1434_v0 = vsel %vm1433_vm3, %v1432_v34, -inf }
 0x9f3   :  { %1435 = vmax.xlane.f32.xlu0 %v1434_v0  ;;  %v8364_v0 = vld [vmem:[%s11326_s6 + $0xe0] sm:$0xff] }
 0x9f4   :  { %12004 = vst [vmem:[#allocation94_spill] sm:$0xff] %v8364_v0 }
 0xa7c   :  { %v1436_v18 = vpop.xlane.xlu0 %1435 }
 0xa7d   :  { %v1437_v63 = vsub.f32 %v1432_v34, %v1436_v18  ;;  %v8352_v18 = vld [vmem:[%s11326_s6 + $0xf8] sm:$0xff]  ;;  %v8358_v34 = vld [vmem:[%s11326_s6 + $0xf0] sm:$0xff] }
 0xa7e   :  { %12002 = vst [vmem:[#allocation78_spill] sm:$0xff] %v8352_v18  ;;  %12003 = vst [vmem:[#allocation92_spill] sm:$0xff] %v8358_v34 }
 0xa7f   :  { %v1438_v35 = vmul.f32 1.442695, %v1437_v63  ;;  %v8346_v63 = vld [vmem:[%s11326_s6 + $0x108] sm:$0xff] }
 0xa80   :  { %12001 = vst [vmem:[#allocation77_spill] sm:$0xff] %v8346_v63 }
 0xa81   :  { %5657 = vpow2.f32 %v1438_v35  ;;  %v8297_v35 = vld [vmem:[%s11326_s6 + $0x168] sm:$0xff] }
 0xa8e   :  { %v5658_v40 = vpop.eup %5657 }
 0xa8f   :  { %v1440_v3 = vsel %vm1433_vm3, %v5658_v40, 0.0 }
 0xa90   :  { %1441 = vadd.xlane.f32.xlu1 %v1440_v3  ;;  %v8334_v3 = vld [vmem:[%s11326_s6 + $0x120] sm:$0xff] }
 0xa91   :  { %11999 = vst [vmem:[#allocation75_spill] sm:$0xff] %v8334_v3 }
 0xb19   :  { %v1442_v55 = vpop.xlane.xlu1 %1441 }
 0xb1a   :  { %5659 = vrcp.f32 %v1442_v55  ;;  %v8328_v55 = vld [vmem:[%s11326_s6 + $0x128] sm:$0xff] }
 0xb1b   :  { %11998 = vst [vmem:[#allocation74_spill] sm:$0xff] %v8328_v55 }
 0xb27   :  { %v5660_v14 = vpop.eup %5659 }
 0xb28   :  { %v1444_v1 = vmul.f32 %v5660_v14, %v5658_v40  ;;  %v8304_v14 = vld [vmem:[%s11326_s6 + $0x158] sm:$0xff]  ;;  %v8340_v40 = vld [vmem:[%s11326_s6 + $0x110] sm:$0xff] }
 0xb29   :  { %12000 = vst [vmem:[#allocation76_spill] sm:$0xff] %v8340_v40 }
 0xb2a   :  { %v1446_v26 = vrot.slane %v1444_v1, 2  ;;  %v8292_v38 = vsel %vm4164_vm4, %v4176_v12, %v1444_v1  ;;  %v8322_v1 = vld [vmem:[%s11326_s6 + $0x138] sm:$0xff]  ;;  %v8376_v12 = vld [vmem:[%s11326_s6 + $0xc8] sm:$0xff] }
 0xb2b   :  { %11997 = vst [vmem:[#allocation73_spill] sm:$0xff] %v8322_v1  ;;  %12006 = vst [vmem:[#allocation97_spill] sm:$0xff] %v8376_v12 }
 0xb2c   :  { %5027 = vmatmul.mubr.f32.vlgmr.msra.gmra.mxu1 %v1446_v26  ;;  %v8310_v26 = vld [vmem:[%s11326_s6 + $0x150] sm:$0xff] }
 0xb2d   :  { %1598 = vmatpush1.msra.mxu1 %v8297_v35  ;;  %1661 = vmatprep.mubr.f32.mxu1 %v11774_v57 }
 0xb2e   :  { %1599 = vmatprep.subr.mxu1 %v8304_v14 }
 0xb2f   :  { %1600 = vmatpush1.msra.mxu1 %v8310_v26 }
 0xb30   :  { %1601 = vmatprep.subr.mxu1 %v8316_v62 }
 0xb31   :  { %1602 = vmatpush1.msra.mxu1 %v8322_v1 }
 0xb32   :  { %1603 = vmatprep.subr.mxu1 %v8328_v55 }
 0xb33   :  { %1604 = vmatpush1.msra.mxu1 %v8334_v3 }
 0xb34   :  { %1605 = vmatprep.subr.mxu1 %v8340_v40 }
 0xb35   :  { %1606 = vmatpush1.msra.mxu1 %v8346_v63  ;;  %v8487_v63 = vld [vmem:[%s11326_s6 + $0x178] sm:$0xff] }
 0xb36   :  { %1607 = vmatprep.subr.mxu1 %v8352_v18  ;;  %12024 = vst [vmem:[#allocation99_spill] sm:$0xff] %v8487_v63 }
 0xb37   :  { %1608 = vmatpush1.msra.mxu1 %v8358_v34  ;;  %v8382_v34 = vld [vmem:[%s11326_s6 + $0xc0] sm:$0xff] }
 0xb38   :  { %1609 = vmatprep.subr.mxu1 %v8364_v0  ;;  %12007 = vst [vmem:[#allocation98_spill] sm:$0xff] %v8382_v34  ;;  %v8388_v0 = vld [vmem:[%s11326_s6 + $0xb0] sm:$0xff] }
 0xb39   :  { %1610 = vmatpush1.msra.mxu1 %v8370_v8  ;;  %12008 = vst [vmem:[#allocation100_spill] sm:$0xff] %v8388_v0  ;;  %v8394_v8 = vld [vmem:[%s11326_s6 + $0xa8] sm:$0xff] }
 0xb3a   :  { %1611 = vmatprep.subr.mxu1 %v8376_v12  ;;  %12009 = vst [vmem:[#allocation101_spill] sm:$0xff] %v8394_v8  ;;  %v8400_v12 = vld [vmem:[%s11326_s6 + $0x98] sm:$0xff] }
 0xb3b   :  { %1612 = vmatpush1.msra.mxu1 %v8382_v34  ;;  %12010 = vst [vmem:[#allocation80_spill] sm:$0xff] %v8400_v12  ;;  %v8406_v34 = vld [vmem:[%s11326_s6 + $0x90] sm:$0xff] }
 0xb3c   :  { %1613 = vmatprep.subr.mxu1 %v8388_v0  ;;  %12011 = vst [vmem:[#allocation81_spill] sm:$0xff] %v8406_v34  ;;  %v8412_v0 = vld [vmem:[%s11326_s6 + $0x80] sm:$0xff] }
 0xb3d   :  { %1614 = vmatpush1.msra.mxu1 %v8394_v8  ;;  %12012 = vst [vmem:[#allocation82_spill] sm:$0xff] %v8412_v0  ;;  %v8418_v8 = vld [vmem:[%s11326_s6 + $0x78] sm:$0xff] }
 0xb3e   :  { %1615 = vmatprep.subr.mxu1 %v8400_v12  ;;  %12013 = vst [vmem:[#allocation83_spill] sm:$0xff] %v8418_v8  ;;  %v8424_v12 = vld [vmem:[%s11326_s6 + $0x68] sm:$0xff] }
 0xb3f   :  { %1616 = vmatpush1.msra.mxu1 %v8406_v34  ;;  %12014 = vst [vmem:[#allocation84_spill] sm:$0xff] %v8424_v12  ;;  %v8430_v34 = vld [vmem:[%s11326_s6 + $0x60] sm:$0xff] }
 0xb40   :  { %1617 = vmatprep.subr.mxu1 %v8412_v0  ;;  %12015 = vst [vmem:[#allocation85_spill] sm:$0xff] %v8430_v34  ;;  %v8436_v0 = vld [vmem:[%s11326_s6 + $0x50] sm:$0xff] }
 0xb41   :  { %1618 = vmatpush1.msra.mxu1 %v8418_v8  ;;  %12016 = vst [vmem:[#allocation86_spill] sm:$0xff] %v8436_v0  ;;  %v8442_v8 = vld [vmem:[%s11326_s6 + $0x48] sm:$0xff] }
 0xb42   :  { %1619 = vmatprep.subr.mxu1 %v8424_v12  ;;  %12017 = vst [vmem:[#allocation87_spill] sm:$0xff] %v8442_v8  ;;  %v8448_v12 = vld [vmem:[%s11326_s6 + $0x38] sm:$0xff] }
 0xb43   :  { %1620 = vmatpush1.msra.mxu1 %v8430_v34  ;;  %12018 = vst [vmem:[#allocation88_spill] sm:$0xff] %v8448_v12  ;;  %v8454_v34 = vld [vmem:[%s11326_s6 + $0x30] sm:$0xff] }
 0xb44   :  { %1621 = vmatprep.subr.mxu1 %v8436_v0  ;;  %12019 = vst [vmem:[#allocation89_spill] sm:$0xff] %v8454_v34  ;;  %v8460_v0 = vld [vmem:[%s11326_s6 + $0x20] sm:$0xff] }
 0xb45   :  { %1622 = vmatpush1.msra.mxu1 %v8442_v8  ;;  %12020 = vst [vmem:[#allocation90_spill] sm:$0xff] %v8460_v0  ;;  %v8466_v8 = vld [vmem:[%s11326_s6 + $0x18] sm:$0xff] }
 0xb46   :  { %1623 = vmatprep.subr.mxu1 %v8448_v12  ;;  %12021 = vst [vmem:[#allocation91_spill] sm:$0xff] %v8466_v8  ;;  %v8472_v12 = vld [vmem:[%s11326_s6 + $0x8] sm:$0xff] }
 0xb47   :  { %1624 = vmatpush1.msra.mxu1 %v8454_v34  ;;  %12022 = vst [vmem:[#allocation93_spill] sm:$0xff] %v8472_v12  ;;  %v8478_v34 = vld [vmem:[%s11326_s6] sm:$0xff] }
 0xb48   :  { %1625 = vmatprep.subr.mxu1 %v8460_v0  ;;  %12023 = vst [vmem:[#allocation96_spill] sm:$0xff] %v8478_v34  ;;  %v8482_v0 = vpop.f32.mrf.mxu1 }
 0xb49   :  { %1626 = vmatpush1.msra.mxu1 %v8466_v8 }
 0xb4a   :  { %1627 = vmatprep.subr.mxu1 %v8472_v12 }
 0xb4b   :  { %1628 = vmatpush1.msra.mxu1 %v8478_v34 }
 0xb4c   :  { %1762 = vmatprep.subr.mxu1 %v7609_v51  ;;  %v8496_v51 = vld [vmem:[%s11326_s6 + $0x160] sm:$0xff] }
 0xb4d   :  { %12025 = vst [vmem:[#allocation102_spill] sm:$0xff] %v8496_v51 }
 0xbec   :  { %v1514_v18 = vpop.f32.mrf.mxu1 }
 0xbed   :  { %5062 = vmatmul.mubr.f32.vlgmr.msra.gmra.mxu0 %v1514_v18  ;;  %v8503_v18 = vld [vmem:[%s11326_s6 + $0x148] sm:$0xff] }
 0xbee   :  { %v5028_v8 = vpop.f32.mrf.mxu1  ;;  %5065 = vmatpush3.msra.mxu0 %v8487_v63  ;;  %5096 = vmatprep.mubr.msk.f32.mxu0 %vm6244_vm1, %v11774_v57  ;;  %12026 = vst [vmem:[#allocation52_spill] sm:$0xff] %v8503_v18 }
 0xbef   :  { %5066 = vmatprep.subr.mxu0 %v11774_v57  ;;  %v8510_v8 = vld [vmem:[%s11326_s6 + $0x130] sm:$0xff] }
 0xbf0   :  { %5067 = vmatpush3.msra.mxu0 %v8496_v51  ;;  %12027 = vst [vmem:[#allocation103_spill] sm:$0xff] %v8510_v8  ;;  %v8517_v51 = vld [vmem:[%s11326_s6 + $0x118] sm:$0xff] }
 0xbf1   :  { %5068 = vmatprep.subr.mxu0 %v11774_v57  ;;  %12028 = vst [vmem:[#allocation104_spill] sm:$0xff] %v8517_v51 }
 0xbf2   :  { %5069 = vmatpush3.msra.mxu0 %v8503_v18  ;;  %v8524_v18 = vld [vmem:[%s11326_s6 + $0x100] sm:$0xff] }
 0xbf3   :  { %5070 = vmatprep.subr.mxu0 %v11774_v57  ;;  %12029 = vst [vmem:[#allocation105_spill] sm:$0xff] %v8524_v18 }
 0xbf4   :  { %5071 = vmatpush3.msra.mxu0 %v8510_v8  ;;  %v8531_v8 = vld [vmem:[%s11326_s6 + $0xe8] sm:$0xff] }
 0xbf5   :  { %5072 = vmatprep.subr.mxu0 %v11774_v57  ;;  %12030 = vst [vmem:[#allocation106_spill] sm:$0xff] %v8531_v8 }
 0xbf6   :  { %5073 = vmatpush3.msra.mxu0 %v8517_v51  ;;  %v8538_v51 = vld [vmem:[%s11326_s6 + $0xd0] sm:$0xff] }
 0xbf7   :  { %5074 = vmatprep.subr.mxu0 %v11774_v57  ;;  %12031 = vst [vmem:[#allocation107_spill] sm:$0xff] %v8538_v51 }
 0xbf8   :  { %5075 = vmatpush3.msra.mxu0 %v8524_v18  ;;  %v8545_v18 = vld [vmem:[%s11326_s6 + $0xb8] sm:$0xff] }
 0xbf9   :  { %5076 = vmatprep.subr.mxu0 %v11774_v57  ;;  %12032 = vst [vmem:[#allocation108_spill] sm:$0xff] %v8545_v18 }
 0xbfa   :  { %5077 = vmatpush3.msra.mxu0 %v8531_v8  ;;  %v8552_v8 = vld [vmem:[%s11326_s6 + $0xa0] sm:$0xff] }
 0xbfb   :  { %5078 = vmatprep.subr.mxu0 %v11774_v57  ;;  %12033 = vst [vmem:[#allocation109_spill] sm:$0xff] %v8552_v8 }
 0xbfc   :  { %5079 = vmatpush3.msra.mxu0 %v8538_v51  ;;  %v8559_v51 = vld [vmem:[%s11326_s6 + $0x88] sm:$0xff] }
 0xbfd   :  { %5080 = vmatprep.subr.mxu0 %v11774_v57  ;;  %12034 = vst [vmem:[#allocation110_spill] sm:$0xff] %v8559_v51 }
 0xbfe   :  { %5081 = vmatpush3.msra.mxu0 %v8545_v18  ;;  %v8566_v18 = vld [vmem:[%s11326_s6 + $0x70] sm:$0xff] }
 0xbff   :  { %5082 = vmatprep.subr.mxu0 %v11774_v57  ;;  %12035 = vst [vmem:[#allocation111_spill] sm:$0xff] %v8566_v18 }
 0xc00   :  { %5083 = vmatpush3.msra.mxu0 %v8552_v8  ;;  %v8573_v8 = vld [vmem:[%s11326_s6 + $0x58] sm:$0xff] }
 0xc01   :  { %5084 = vmatprep.subr.mxu0 %v11774_v57  ;;  %12036 = vst [vmem:[#allocation112_spill] sm:$0xff] %v8573_v8 }
 0xc02   :  { %5085 = vmatpush3.msra.mxu0 %v8559_v51  ;;  %v8580_v51 = vld [vmem:[%s11326_s6 + $0x40] sm:$0xff] }
 0xc03   :  { %5086 = vmatprep.subr.mxu0 %v11774_v57  ;;  %12037 = vst [vmem:[#allocation113_spill] sm:$0xff] %v8580_v51 }
 0xc04   :  { %5087 = vmatpush3.msra.mxu0 %v8566_v18  ;;  %v8587_v18 = vld [vmem:[%s11326_s6 + $0x28] sm:$0xff] }
 0xc05   :  { %5088 = vmatprep.subr.mxu0 %v11774_v57  ;;  %12038 = vst [vmem:[#allocation114_spill] sm:$0xff] %v8587_v18 }
 0xc06   :  { %5089 = vmatpush3.msra.mxu0 %v8573_v8  ;;  %v8594_v8 = vld [vmem:[%s11326_s6 + $0x10] sm:$0xff] }
 0xc07   :  { %5090 = vmatprep.subr.mxu0 %v11774_v57 }
 0xc08   :  { %5091 = vmatpush3.msra.mxu0 %v8580_v51  ;;  %v8598_v51 = vpop.f32.mrf.mxu0 }
 0xc09   :  { %5092 = vmatprep.subr.mxu0 %v11774_v57 }
 0xc0a   :  { %5093 = vmatpush3.msra.mxu0 %v8587_v18  ;;  %v8600_v63 = vpop.f32.mrf.mxu0 }
 0xc0b   :  { %5094 = vmatprep.subr.mxu0 %v11774_v57 }
 0xc0c   :  { %5095 = vmatpush3.msra.mxu0 %v8594_v8 }
 0xc0d   :  { %1833 = vmatprep.subr.mxu0 %v7650_v16  ;;  %v12039_v16 = vld [vmem:[#allocation10_spill] sm:$0xff] }
 0xcad   :  { %v1584_v34 = vpop.f32.mrf.mxu0 }
 0xcae   :  { %v1589_v12 = vrot.slane %v1584_v34, 6 }
 0xcaf   :  { %v5063_v40 = vpop.f32.mrf.mxu0 }
 0xcb0   :  { %v1591_v18 = vadd.f32 %v1589_v12, %v7378_v61 }
 0xcb2   :  { %v1592_v3 = vadd.f32 %v1591_v18, %v7659_v42 }
 0xcb4   :  { %v1593_v55 = vmax.f32 %v1592_v3, 0.0 }
 0xcb6   :  { %v1595_v1 = vrot.slane %v1593_v55, 2  ;;  %v1738_v55 = vadd.f32 %v8482_v0, %v7466_v31 }
 0xcb8   :  { %1662 = vmatmul.mubr.f32.vlgmr.msra.gmra.mxu1 %v1595_v1  ;;  %5097 = vmatmul.mubr.f32.vlgmr.msra.gmra.mxu0 %v1595_v1 }
 0xcb9   :  { %1763 = vmatpush1.msra.mxu1 %v7666_v5  ;;  %1834 = vmatpush1.msra.mxu0 %v7672_v2  ;;  %v12040_v5 = vld [vmem:[#allocation34_spill] sm:$0xff]  ;;  %v12041_v2 = vld [vmem:[#allocation11_spill] sm:$0xff] }
 0xcba   :  { %1764 = vmatprep.subr.mxu1 %v7678_v7  ;;  %1835 = vmatprep.subr.mxu0 %v7684_v9  ;;  %v12042_v7 = vld [vmem:[#allocation35_spill] sm:$0xff]  ;;  %v12043_v9 = vld [vmem:[#allocation12_spill] sm:$0xff] }
 0xcbb   :  { %1765 = vmatpush1.msra.mxu1 %v7690_v11  ;;  %1836 = vmatpush1.msra.mxu0 %v7696_v13  ;;  %v12044_v11 = vld [vmem:[#allocation36_spill] sm:$0xff]  ;;  %v12045_v13 = vld [vmem:[#allocation79_spill] sm:$0xff] }
 0xcbc   :  { %1766 = vmatprep.subr.mxu1 %v7702_v15  ;;  %1837 = vmatprep.subr.mxu0 %v7708_v17  ;;  %v12046_v15 = vld [vmem:[#allocation13_spill] sm:$0xff]  ;;  %v12047_v17 = vld [vmem:[#allocation16_spill] sm:$0xff] }
 0xcbd   :  { %1767 = vmatpush1.msra.mxu1 %v7714_v19  ;;  %1838 = vmatpush1.msra.mxu0 %v7720_v21  ;;  %v12048_v19 = vld [vmem:[#allocation37_spill] sm:$0xff] }
 0xcbe   :  { %1768 = vmatprep.subr.mxu1 %v7726_v23  ;;  %1839 = vmatprep.subr.mxu0 %v7732_v27  ;;  %v12049_v21 = vld [vmem:[#allocation17_spill] sm:$0xff]  ;;  %v12050_v23 = vld [vmem:[#allocation38_spill] sm:$0xff] }
 0xcbf   :  { %1769 = vmatpush1.msra.mxu1 %v7738_v29  ;;  %1840 = vmatpush1.msra.mxu0 %v7744_v37  ;;  %v12051_v27 = vld [vmem:[#allocation18_spill] sm:$0xff]  ;;  %v12052_v29 = vld [vmem:[#allocation39_spill] sm:$0xff] }
 0xcc0   :  { %1770 = vmatprep.subr.mxu1 %v7750_v39  ;;  %1841 = vmatprep.subr.mxu0 %v7756_v41  ;;  %v12053_v37 = vld [vmem:[#allocation19_spill] sm:$0xff]  ;;  %v12054_v39 = vld [vmem:[#allocation40_spill] sm:$0xff] }
 0xcc1   :  { %1771 = vmatpush1.msra.mxu1 %v7762_v43  ;;  %1842 = vmatpush1.msra.mxu0 %v7768_v45  ;;  %v12055_v41 = vld [vmem:[#allocation20_spill] sm:$0xff]  ;;  %v12056_v43 = vld [vmem:[#allocation41_spill] sm:$0xff] }
 0xcc2   :  { %1772 = vmatprep.subr.mxu1 %v7774_v49  ;;  %1843 = vmatprep.subr.mxu0 %v7780_v59  ;;  %v12057_v45 = vld [vmem:[#allocation21_spill] sm:$0xff]  ;;  %v12058_v49 = vld [vmem:[#allocation42_spill] sm:$0xff] }
 0xcc3   :  { %1773 = vmatpush1.msra.mxu1 %v7786_v4  ;;  %1844 = vmatpush1.msra.mxu0 %v7792_v6  ;;  %v12059_v59 = vld [vmem:[#allocation22_spill] sm:$0xff]  ;;  %v12060_v4 = vld [vmem:[#allocation43_spill] sm:$0xff] }
 0xcc4   :  { %1774 = vmatprep.subr.mxu1 %v7798_v10  ;;  %1845 = vmatprep.subr.mxu0 %v7804_v24  ;;  %v12061_v6 = vld [vmem:[#allocation23_spill] sm:$0xff]  ;;  %v12062_v10 = vld [vmem:[#allocation44_spill] sm:$0xff] }
 0xcc5   :  { %1775 = vmatpush1.msra.mxu1 %v7810_v28  ;;  %1846 = vmatpush1.msra.mxu0 %v7816_v30  ;;  %v12063_v24 = vld [vmem:[#allocation24_spill] sm:$0xff]  ;;  %v12064_v28 = vld [vmem:[#allocation45_spill] sm:$0xff] }
 0xcc6   :  { %1776 = vmatprep.subr.mxu1 %v7822_v46  ;;  %1847 = vmatprep.subr.mxu0 %v7828_v48  ;;  %v12065_v30 = vld [vmem:[#allocation25_spill] sm:$0xff]  ;;  %v12066_v46 = vld [vmem:[#allocation46_spill] sm:$0xff] }
 0xcc7   :  { %1777 = vmatpush1.msra.mxu1 %v7834_v50  ;;  %1848 = vmatpush1.msra.mxu0 %v7840_v52  ;;  %v12067_v48 = vld [vmem:[#allocation26_spill] sm:$0xff]  ;;  %v12068_v50 = vld [vmem:[#allocation47_spill] sm:$0xff] }
 0xcc8   :  { %1778 = vmatprep.subr.mxu1 %v7846_v54  ;;  %1849 = vmatprep.subr.mxu0 %v12039_v16  ;;  %v12069_v52 = vld [vmem:[#allocation27_spill] sm:$0xff] }
 0xcc9   :  { %1779 = vmatpush1.msra.mxu1 %v12040_v5  ;;  %1850 = vmatpush1.msra.mxu0 %v12041_v2  ;;  %v1739_v5 = vadd.f32 %v8598_v51, %v7480_v53 }
 0xcca   :  { %1780 = vmatprep.subr.mxu1 %v12042_v7  ;;  %1851 = vmatprep.subr.mxu0 %v12043_v9 }
 0xccb   :  { %1781 = vmatpush1.msra.mxu1 %v12044_v11  ;;  %1852 = vmatpush1.msra.mxu0 %v12045_v13 }
 0xccc   :  { %1782 = vmatprep.subr.mxu1 %v12046_v15  ;;  %1853 = vmatprep.subr.mxu0 %v12047_v17  ;;  %v1740_v15 = vadd.f32 %v8600_v63, %v7485_v32  ;;  %v12072_v63 = vld [vmem:[#allocation49_spill] sm:$0xff] }
 0xccd   :  { %1783 = vmatpush1.msra.mxu1 %v12048_v19  ;;  %1854 = vmatpush1.msra.mxu0 %v12049_v21 }
 0xcce   :  { %1784 = vmatprep.subr.mxu1 %v12050_v23  ;;  %1855 = vmatprep.subr.mxu0 %v12051_v27 }
 0xccf   :  { %1785 = vmatpush1.msra.mxu1 %v12052_v29  ;;  %1856 = vmatpush1.msra.mxu0 %v12053_v37 }
 0xcd0   :  { %1786 = vmatprep.subr.mxu1 %v12054_v39  ;;  %1857 = vmatprep.subr.mxu0 %v12055_v41 }
 0xcd1   :  { %1787 = vmatpush1.msra.mxu1 %v12056_v43  ;;  %1858 = vmatpush1.msra.mxu0 %v12057_v45  ;;  %v12077_v43 = vld [vmem:[#allocation31_spill] sm:$0xff]  ;;  %v12078_v45 = vld [vmem:[#allocation53_spill] sm:$0xff] }
 0xcd2   :  { %1788 = vmatprep.subr.mxu1 %v12058_v49  ;;  %1859 = vmatprep.subr.mxu0 %v12059_v59  ;;  %v12079_v49 = vld [vmem:[#allocation54_spill] sm:$0xff]  ;;  %v12080_v59 = vld [vmem:[#allocation15_spill] sm:$0xff] }
 0xcd3   :  { %1789 = vmatpush1.msra.mxu1 %v12060_v4  ;;  %1860 = vmatpush1.msra.mxu0 %v12061_v6  ;;  %v12081_v4 = vld [vmem:[#allocation55_spill] sm:$0xff]  ;;  %v12082_v6 = vld [vmem:[#allocation56_spill] sm:$0xff] }
 0xcd4   :  { %1790 = vmatprep.subr.mxu1 %v12062_v10  ;;  %1861 = vmatprep.subr.mxu0 %v12063_v24  ;;  %v12083_v10 = vld [vmem:[#allocation57_spill] sm:$0xff]  ;;  %v12084_v24 = vld [vmem:[#allocation58_spill] sm:$0xff] }
 0xcd5   :  { %1791 = vmatpush1.msra.mxu1 %v12064_v28  ;;  %1862 = vmatpush1.msra.mxu0 %v12065_v30  ;;  %v12085_v28 = vld [vmem:[#allocation59_spill] sm:$0xff]  ;;  %v12086_v30 = vld [vmem:[#allocation60_spill] sm:$0xff] }
 0xcd6   :  { %1792 = vmatprep.subr.mxu1 %v12066_v46  ;;  %1863 = vmatprep.subr.mxu0 %v12067_v48  ;;  %v12087_v46 = vld [vmem:[#allocation61_spill] sm:$0xff]  ;;  %v12088_v48 = vld [vmem:[#allocation62_spill] sm:$0xff] }
 0xcd7   :  { %1793 = vmatpush1.msra.mxu1 %v12068_v50  ;;  %1826 = vmatprep.mubr.f32.mxu1 %v11774_v57  ;;  %v12089_v50 = vld [vmem:[#allocation63_spill] sm:$0xff] }
 0xcd8   :  { %1864 = vmatpush1.msra.mxu0 %v12069_v52  ;;  %1897 = vmatprep.mubr.f32.mxu0 %v11774_v57  ;;  %v12090_v52 = vld [vmem:[#allocation64_spill] sm:$0xff] }
 0xcd9   :  { %5099 = vmatprep.subr.mxu1 %v11774_v57  ;;  %5134 = vmatprep.subr.mxu0 %v11774_v57 }
 0xd78   :  { %v1663_v54 = vpop.f32.mrf.mxu1  ;;  %v1734_v1 = vpop.f32.mrf.mxu0 }
 0xd79   :  { %v1664_v3 = vadd.f32 %v1663_v54, %v7469_v33  ;;  %v1735_v19 = vadd.f32 %v1734_v1, %v7487_v44  ;;  %v12091_v54 = vld [vmem:[#allocation65_spill] sm:$0xff]  ;;  %v12092_v1 = vld [vmem:[#allocation66_spill] sm:$0xff] }
 0xd7a   :  { %v1665_v40 = vpop.f32.mrf.mxu1  ;;  %v5098_v34 = vpop.f32.mrf.mxu0 }
 0xd7b   :  { %v1741_v12 = vadd.f32 %v1738_v55, %v1664_v3  ;;  %v1666_v16 = vadd.f32 %v1665_v40, %v7477_v47  ;;  %v12093_v55 = vld [vmem:[#allocation67_spill] sm:$0xff]  ;;  %v12094_v3 = vld [vmem:[#allocation68_spill] sm:$0xff]  ;;  %v12095_v40 = vld [vmem:[#allocation69_spill] sm:$0xff] }
 0xd7c   :  { %v12096_v34 = vld [vmem:[#allocation70_spill] sm:$0xff] }
 0xd7d   :  { %v4364_v18 = vmul.f32 -1.442695, %v1741_v12  ;;  %v1748_v2 = vadd.f32 %v1739_v5, %v1666_v16  ;;  %v12097_v12 = vld [vmem:[#allocation71_spill] sm:$0xff] }
 0xd7f   :  { %5661 = vpow2.f32 %v4364_v18  ;;  %v4365_v7 = vmul.f32 -1.442695, %v1748_v2  ;;  %v12098_v18 = vld [vmem:[#allocation72_spill] sm:$0xff]  ;;  %v12099_v2 = vld [vmem:[#allocation14_spill] sm:$0xff] }
 0xd81   :  { %5663 = vpow2.f32 %v4365_v7 }
 0xd8c   :  { %v5662_v9 = vpop.eup %5661 }
 0xd8d   :  { %v1745_v11 = vadd.f32 1.0, %v5662_v9 }
 0xd8e   :  { %v5664_v13 = vpop.eup %5663 }
 0xd8f   :  { %5665 = vrcp.f32 %v1745_v11  ;;  %v1752_v0 = vadd.f32 1.0, %v5664_v13 }
 0xd91   :  { %5667 = vrcp.f32 %v1752_v0 }
 0xd9c   :  { %v5666_v17 = vpop.eup %5665 }
 0xd9d   :  { %v1755_v21 = vmul.f32 %v5666_v17, %v1740_v15 }
 0xd9e   :  { %v5668_v51 = vpop.eup %5667 }
 0xd9f   :  { %v1756_v23 = vadd.f32 %v1755_v21, %v1735_v19  ;;  %v1758_v27 = vsub.f32 1.0, %v5668_v51  ;;  %v1760_v39 = vmul.f32 %v5668_v51, %v8049_v60  ;;  %v9116_v60 = vld [vmem:[%s11324_s4 + $0x90] sm:$0xff] }
 0xda0   :  { %12156 = vst [vmem:[#allocation40_spill] sm:$0xff] %v9116_v60 }
 0xda1   :  { %5669 = vtanh.f32 %v1756_v23 }
 0xdae   :  { %v5670_v29 = vpop.eup %5669 }
 0xdaf   :  { %v1759_v37 = vmul.f32 %v5670_v29, %v1758_v27 }
 0xdb1   :  { %v8680_v41 = vadd.f32 %v1760_v39, %v1759_v37  ;;  %v12100_v37 = vld [vmem:[#allocation73_spill] sm:$0xff]  ;;  %v12101_v39 = vld [vmem:[#allocation74_spill] sm:$0xff] }
 0xdb3   :  { %12070 = vst [vmem:[#allocation10_spill] sm:$0xff] %v8680_v41  ;;  %1827 = vmatmul.mubr.f32.vlgmr.msra.gmra.mxu1 %v8680_v41  ;;  %1898 = vmatmul.mubr.f32.vlgmr.msra.gmra.mxu0 %v8680_v41 }
 0xdb4   :  { %5100 = vmatpush3.msra.mxu1 %v8056_v25  ;;  %5131 = vmatprep.mubr.msk.f32.mxu1 %vm6244_vm1, %v11774_v57  ;;  %v12071_v25 = vld [vmem:[#allocation28_spill] sm:$0xff] }
 0xdb5   :  { %5101 = vmatprep.subr.mxu1 %v11774_v57  ;;  %5135 = vmatpush3.msra.mxu0 %v8065_v36  ;;  %v12073_v36 = vld [vmem:[#allocation29_spill] sm:$0xff] }
 0xdb6   :  { %5102 = vmatpush3.msra.mxu1 %v8071_v56  ;;  %5136 = vmatprep.subr.mxu0 %v11774_v57  ;;  %v12074_v56 = vld [vmem:[#allocation50_spill] sm:$0xff] }
 0xdb7   :  { %5103 = vmatprep.subr.mxu1 %v11774_v57  ;;  %5137 = vmatpush3.msra.mxu0 %v8079_v58  ;;  %v12075_v58 = vld [vmem:[#allocation30_spill] sm:$0xff] }
 0xdb8   :  { %5104 = vmatpush3.msra.mxu1 %v8085_v22  ;;  %5138 = vmatprep.subr.mxu0 %v11774_v57  ;;  %v12076_v22 = vld [vmem:[#allocation51_spill] sm:$0xff] }
 0xdb9   :  { %5105 = vmatprep.subr.mxu1 %v11774_v57  ;;  %5139 = vmatpush3.msra.mxu0 %v12071_v25  ;;  %v12102_v25 = vld [vmem:[#allocation75_spill] sm:$0xff] }
 0xdba   :  { %5106 = vmatpush3.msra.mxu1 %v12072_v63  ;;  %5140 = vmatprep.subr.mxu0 %v11774_v57  ;;  %v12103_v63 = vld [vmem:[#allocation76_spill] sm:$0xff] }
 0xdbb   :  { %5107 = vmatprep.subr.mxu1 %v11774_v57  ;;  %5141 = vmatpush3.msra.mxu0 %v12073_v36  ;;  %v12105_v36 = vld [vmem:[#allocation78_spill] sm:$0xff] }
 0xdbc   :  { %5108 = vmatpush3.msra.mxu1 %v12074_v56  ;;  %5142 = vmatprep.subr.mxu0 %v11774_v57  ;;  %v12107_v56 = vld [vmem:[#allocation94_spill] sm:$0xff] }
 0xdbd   :  { %5109 = vmatprep.subr.mxu1 %v11774_v57  ;;  %5143 = vmatpush3.msra.mxu0 %v12075_v58  ;;  %v12111_v58 = vld [vmem:[#allocation100_spill] sm:$0xff] }
 0xdbe   :  { %5110 = vmatpush3.msra.mxu1 %v12076_v22  ;;  %5144 = vmatprep.subr.mxu0 %v11774_v57  ;;  %v12112_v22 = vld [vmem:[#allocation101_spill] sm:$0xff] }
 0xdbf   :  { %5111 = vmatprep.subr.mxu1 %v11774_v57  ;;  %5145 = vmatpush3.msra.mxu0 %v12077_v43  ;;  %v12113_v43 = vld [vmem:[#allocation80_spill] sm:$0xff] }
 0xdc0   :  { %5112 = vmatpush3.msra.mxu1 %v12078_v45  ;;  %5146 = vmatprep.subr.mxu0 %v11774_v57  ;;  %v12114_v45 = vld [vmem:[#allocation81_spill] sm:$0xff] }
 0xdc1   :  { %5113 = vmatprep.subr.mxu1 %v11774_v57  ;;  %5147 = vmatpush3.msra.mxu0 %v12079_v49  ;;  %v12115_v49 = vld [vmem:[#allocation82_spill] sm:$0xff] }
 0xdc2   :  { %5114 = vmatpush3.msra.mxu1 %v12080_v59  ;;  %5148 = vmatprep.subr.mxu0 %v11774_v57  ;;  %v12116_v59 = vld [vmem:[#allocation83_spill] sm:$0xff] }
 0xdc3   :  { %5115 = vmatprep.subr.mxu1 %v11774_v57  ;;  %5149 = vmatpush3.msra.mxu0 %v12081_v4  ;;  %v12117_v4 = vld [vmem:[#allocation84_spill] sm:$0xff] }
 0xdc4   :  { %5116 = vmatpush3.msra.mxu1 %v12082_v6  ;;  %5150 = vmatprep.subr.mxu0 %v11774_v57  ;;  %v12118_v6 = vld [vmem:[#allocation85_spill] sm:$0xff] }
 0xdc5   :  { %5117 = vmatprep.subr.mxu1 %v11774_v57  ;;  %5151 = vmatpush3.msra.mxu0 %v12083_v10  ;;  %v12119_v10 = vld [vmem:[#allocation86_spill] sm:$0xff] }
 0xdc6   :  { %5118 = vmatpush3.msra.mxu1 %v12084_v24  ;;  %5152 = vmatprep.subr.mxu0 %v11774_v57  ;;  %v12120_v24 = vld [vmem:[#allocation87_spill] sm:$0xff] }
 0xdc7   :  { %5119 = vmatprep.subr.mxu1 %v11774_v57  ;;  %5153 = vmatpush3.msra.mxu0 %v12085_v28  ;;  %v12121_v28 = vld [vmem:[#allocation88_spill] sm:$0xff] }
 0xdc8   :  { %5120 = vmatpush3.msra.mxu1 %v12086_v30  ;;  %5154 = vmatprep.subr.mxu0 %v11774_v57  ;;  %v12122_v30 = vld [vmem:[#allocation89_spill] sm:$0xff] }
 0xdc9   :  { %5121 = vmatprep.subr.mxu1 %v11774_v57  ;;  %5155 = vmatpush3.msra.mxu0 %v12087_v46  ;;  %v12123_v46 = vld [vmem:[#allocation90_spill] sm:$0xff] }
 0xdca   :  { %5122 = vmatpush3.msra.mxu1 %v12088_v48  ;;  %5156 = vmatprep.subr.mxu0 %v11774_v57  ;;  %v12124_v48 = vld [vmem:[#allocation91_spill] sm:$0xff] }
 0xdcb   :  { %5123 = vmatprep.subr.mxu1 %v11774_v57  ;;  %5157 = vmatpush3.msra.mxu0 %v12089_v50  ;;  %v12125_v50 = vld [vmem:[#allocation93_spill] sm:$0xff] }
 0xdcc   :  { %5124 = vmatpush3.msra.mxu1 %v12090_v52  ;;  %5158 = vmatprep.subr.mxu0 %v11774_v57  ;;  %v12126_v52 = vld [vmem:[#allocation96_spill] sm:$0xff] }
 0xdcd   :  { %5125 = vmatprep.subr.mxu1 %v11774_v57  ;;  %5159 = vmatpush3.msra.mxu0 %v12091_v54  ;;  %v8793_v54 = vld [vmem:[%s11324_s4 + $0x1e8] sm:$0xff] }
 0xdce   :  { %5126 = vmatpush3.msra.mxu1 %v12092_v1  ;;  %5160 = vmatprep.subr.mxu0 %v11774_v57 }
 0xdcf   :  { %5127 = vmatprep.subr.mxu1 %v11774_v57  ;;  %5161 = vmatpush3.msra.mxu0 %v12093_v55 }
 0xdd0   :  { %5128 = vmatpush3.msra.mxu1 %v12094_v3  ;;  %5162 = vmatprep.subr.mxu0 %v11774_v57 }
 0xdd1   :  { %5129 = vmatprep.subr.mxu1 %v11774_v57  ;;  %5163 = vmatpush3.msra.mxu0 %v12095_v40  ;;  %v12127_v40 = vld [vmem:[#allocation99_spill] sm:$0xff] }
 0xdd2   :  { %5130 = vmatpush3.msra.mxu1 %v12096_v34  ;;  %5164 = vmatprep.subr.mxu0 %v11774_v57  ;;  %v12128_v34 = vld [vmem:[#allocation102_spill] sm:$0xff] }
 0xdd3   :  { %5165 = vmatpush3.msra.mxu0 %v12097_v12  ;;  %5166 = vmatprep.mubr.msk.f32.mxu0 %vm6244_vm1, %v11774_v57  ;;  %v12129_v12 = vld [vmem:[#allocation52_spill] sm:$0xff] }
 0xdd4   :  { %2073 = vmatprep.subr.mxu1 %v12098_v18  ;;  %5169 = vmatprep.subr.mxu0 %v11774_v57  ;;  %v12130_v18 = vld [vmem:[#allocation103_spill] sm:$0xff] }
 0xe73   :  { %v1828_v16 = vpop.f32.mrf.mxu1 }
 0xe74   :  { %v1905_v5 = vrot.slane %v1828_v16, 5  ;;  %v12131_v16 = vld [vmem:[#allocation104_spill] sm:$0xff] }
 0xe75   :  { %v8796_v1 = vpop.f32.mrf.mxu1 }
 0xe76   :  { %v1907_v7 = vadd.f32 %v1905_v5, %v12099_v2  ;;  %v12132_v5 = vld [vmem:[#allocation105_spill] sm:$0xff] }
 0xe78   :  { %v1908_v9 = vadd.f32 %v1907_v7, %v7567_v20  ;;  %v12133_v7 = vld [vmem:[#allocation106_spill] sm:$0xff] }
 0xe7a   :  { %v1910_v11 = vsel %vm1909_vm5, %v1908_v9, -inf }
 0xe7b   :  { %1911 = vmax.xlane.f32.xlu0 %v1910_v11  ;;  %v12135_v11 = vld [vmem:[#allocation108_spill] sm:$0xff] }
 0xf04   :  { %v1912_v13 = vpop.xlane.xlu0 %1911 }
 0xf05   :  { %v1913_v0 = vsub.f32 %v1908_v9, %v1912_v13  ;;  %v12134_v9 = vld [vmem:[#allocation107_spill] sm:$0xff]  ;;  %v12136_v13 = vld [vmem:[#allocation109_spill] sm:$0xff] }
 0xf07   :  { %v1914_v15 = vmul.f32 1.442695, %v1913_v0  ;;  %v12137_v0 = vld [vmem:[#allocation110_spill] sm:$0xff] }
 0xf09   :  { %5671 = vpow2.f32 %v1914_v15  ;;  %v12138_v15 = vld [vmem:[#allocation111_spill] sm:$0xff] }
 0xf16   :  { %v5672_v17 = vpop.eup %5671 }
 0xf17   :  { %v1916_v19 = vsel %vm1909_vm5, %v5672_v17, 0.0 }
 0xf18   :  { %1917 = vadd.xlane.f32.xlu1 %v1916_v19  ;;  %v12140_v19 = vld [vmem:[#allocation113_spill] sm:$0xff] }
 0xfa1   :  { %v1918_v21 = vpop.xlane.xlu1 %1917 }
 0xfa2   :  { %5673 = vrcp.f32 %v1918_v21  ;;  %v12141_v21 = vld [vmem:[#allocation114_spill] sm:$0xff] }
 0xfaf   :  { %v5674_v23 = vpop.eup %5673 }
 0xfb0   :  { %v1920_v51 = vmul.f32 %v5674_v23, %v5672_v17  ;;  %v12139_v17 = vld [vmem:[#allocation112_spill] sm:$0xff] }
 0xfb1   :  { %v8834_v23 = vld [vmem:[%s11324_s4 + $0x1f8] sm:$0xff] }
 0xfb2   :  { %v1922_v27 = vrot.slane %v1920_v51, 3  ;;  %v8756_v29 = vsel %vm4166_vm6, %v8292_v38, %v1920_v51  ;;  %v12104_v38 = vld [vmem:[#allocation77_spill] sm:$0xff]  ;;  %v8837_v51 = vpop.f32.mrf.mxu0 }
 0xfb4   :  { %5132 = vmatmul.mubr.f32.vlgmr.msra.gmra.mxu1 %v1922_v27  ;;  %v8839_v27 = vpop.f32.mrf.mxu0 }
 0xfb5   :  { %2074 = vmatpush1.msra.mxu1 %v8297_v35  ;;  %2137 = vmatprep.mubr.f32.mxu1 %v11774_v57  ;;  %v12106_v35 = vld [vmem:[#allocation92_spill] sm:$0xff] }
 0xfb6   :  { %2075 = vmatprep.subr.mxu1 %v8304_v14  ;;  %v12108_v14 = vld [vmem:[#allocation95_spill] sm:$0xff] }
 0xfb7   :  { %2076 = vmatpush1.msra.mxu1 %v8310_v26  ;;  %v12109_v26 = vld [vmem:[#allocation97_spill] sm:$0xff] }
 0xfb8   :  { %2077 = vmatprep.subr.mxu1 %v8316_v62  ;;  %v12110_v62 = vld [vmem:[#allocation98_spill] sm:$0xff] }
 0xfb9   :  { %2078 = vmatpush1.msra.mxu1 %v12100_v37 }
 0xfba   :  { %2079 = vmatprep.subr.mxu1 %v12101_v39 }
 0xfbb   :  { %2080 = vmatpush1.msra.mxu1 %v12102_v25 }
 0xfbc   :  { %2081 = vmatprep.subr.mxu1 %v12103_v63 }
 0xfbd   :  { %2082 = vmatpush1.msra.mxu1 %v12104_v38 }
 0xfbe   :  { %2083 = vmatprep.subr.mxu1 %v12105_v36 }
 0xfbf   :  { %2084 = vmatpush1.msra.mxu1 %v12106_v35  ;;  %v8846_v35 = vld [vmem:[%s11324_s4 + $0x1e0] sm:$0xff] }
 0xfc0   :  { %2085 = vmatprep.subr.mxu1 %v12107_v56  ;;  %v8852_v56 = vld [vmem:[%s11324_s4 + $0x1f0] sm:$0xff] }
 0xfc1   :  { %2086 = vmatpush1.msra.mxu1 %v12108_v14  ;;  %v8858_v14 = vld [vmem:[%s11324_s4 + $0x1c8] sm:$0xff] }
 0xfc2   :  { %2087 = vmatprep.subr.mxu1 %v12109_v26  ;;  %v8864_v26 = vld [vmem:[%s11324_s4 + $0x1d8] sm:$0xff] }
 0xfc3   :  { %2088 = vmatpush1.msra.mxu1 %v12110_v62  ;;  %v8870_v62 = vld [vmem:[%s11324_s4 + $0x1c0] sm:$0xff] }
 0xfc4   :  { %2089 = vmatprep.subr.mxu1 %v12111_v58  ;;  %v8876_v58 = vld [vmem:[%s11324_s4 + $0x1d0] sm:$0xff] }
 0xfc5   :  { %2090 = vmatpush1.msra.mxu1 %v12112_v22  ;;  %v8882_v22 = vld [vmem:[%s11324_s4 + $0x1a8] sm:$0xff] }
 0xfc6   :  { %2091 = vmatprep.subr.mxu1 %v12113_v43  ;;  %v8888_v43 = vld [vmem:[%s11324_s4 + $0x1b8] sm:$0xff] }
 0xfc7   :  { %2092 = vmatpush1.msra.mxu1 %v12114_v45  ;;  %v8894_v45 = vld [vmem:[%s11324_s4 + $0x1a0] sm:$0xff] }
 0xfc8   :  { %2093 = vmatprep.subr.mxu1 %v12115_v49  ;;  %v8900_v49 = vld [vmem:[%s11324_s4 + $0x1b0] sm:$0xff] }
 0xfc9   :  { %2094 = vmatpush1.msra.mxu1 %v12116_v59  ;;  %v8906_v59 = vld [vmem:[%s11324_s4 + $0x188] sm:$0xff] }
 0xfca   :  { %2095 = vmatprep.subr.mxu1 %v12117_v4  ;;  %v8912_v4 = vld [vmem:[%s11324_s4 + $0x198] sm:$0xff] }
 0xfcb   :  { %2096 = vmatpush1.msra.mxu1 %v12118_v6  ;;  %v8918_v6 = vld [vmem:[%s11324_s4 + $0x180] sm:$0xff] }
 0xfcc   :  { %2097 = vmatprep.subr.mxu1 %v12119_v10  ;;  %v8924_v10 = vld [vmem:[%s11324_s4 + $0x190] sm:$0xff] }
 0xfcd   :  { %2098 = vmatpush1.msra.mxu1 %v12120_v24  ;;  %v8930_v24 = vld [vmem:[%s11324_s4 + $0x168] sm:$0xff] }
 0xfce   :  { %2099 = vmatprep.subr.mxu1 %v12121_v28  ;;  %v8936_v28 = vld [vmem:[%s11324_s4 + $0x178] sm:$0xff] }
 0xfcf   :  { %2100 = vmatpush1.msra.mxu1 %v12122_v30  ;;  %v8942_v30 = vld [vmem:[%s11324_s4 + $0x160] sm:$0xff] }
 0xfd0   :  { %2101 = vmatprep.subr.mxu1 %v12123_v46  ;;  %v8948_v46 = vld [vmem:[%s11324_s4 + $0x170] sm:$0xff] }
 0xfd1   :  { %2102 = vmatpush1.msra.mxu1 %v12124_v48  ;;  %v8954_v48 = vld [vmem:[%s11324_s4 + $0x148] sm:$0xff] }
 0xfd2   :  { %2103 = vmatprep.subr.mxu1 %v12125_v50  ;;  %v8960_v50 = vld [vmem:[%s11324_s4 + $0x158] sm:$0xff] }
 0xfd3   :  { %2104 = vmatpush1.msra.mxu1 %v12126_v52  ;;  %v8966_v52 = vld [vmem:[%s11324_s4 + $0x140] sm:$0xff] }
 0xfd4   :  { %2238 = vmatprep.subr.mxu1 %v8793_v54 }
0x1074   :  { %v1990_v55 = vpop.f32.mrf.mxu1 }
0x1075   :  { %5167 = vmatmul.mubr.f32.vlgmr.msra.gmra.mxu0 %v1990_v55  ;;  %v8972_v55 = vld [vmem:[%s11324_s4 + $0x150] sm:$0xff] }
0x1076   :  { %v5133_v3 = vpop.f32.mrf.mxu1  ;;  %5170 = vmatpush3.msra.mxu0 %v12127_v40  ;;  %5201 = vmatprep.mubr.msk.f32.mxu0 %vm6244_vm1, %v11774_v57  ;;  %v8984_v40 = vld [vmem:[%s11324_s4 + $0x138] sm:$0xff] }
0x1077   :  { %5171 = vmatprep.subr.mxu0 %v11774_v57  ;;  %v8978_v3 = vld [vmem:[%s11324_s4 + $0x128] sm:$0xff] }
0x1078   :  { %5172 = vmatpush3.msra.mxu0 %v12128_v34  ;;  %v8990_v34 = vld [vmem:[%s11324_s4 + $0x120] sm:$0xff] }
0x1079   :  { %5173 = vmatprep.subr.mxu0 %v11774_v57 }
0x107a   :  { %5174 = vmatpush3.msra.mxu0 %v12129_v12  ;;  %v8996_v12 = vld [vmem:[%s11324_s4 + $0x130] sm:$0xff] }
0x107b   :  { %5175 = vmatprep.subr.mxu0 %v11774_v57 }
0x107c   :  { %5176 = vmatpush3.msra.mxu0 %v12130_v18  ;;  %v9002_v18 = vld [vmem:[%s11324_s4 + $0x108] sm:$0xff] }
0x107d   :  { %5177 = vmatprep.subr.mxu0 %v11774_v57 }
0x107e   :  { %5178 = vmatpush3.msra.mxu0 %v12131_v16  ;;  %v9008_v16 = vld [vmem:[%s11324_s4 + $0x118] sm:$0xff] }
0x107f   :  { %5179 = vmatprep.subr.mxu0 %v11774_v57 }
0x1080   :  { %5180 = vmatpush3.msra.mxu0 %v12132_v5  ;;  %v9014_v5 = vld [vmem:[%s11324_s4 + $0x100] sm:$0xff] }
0x1081   :  { %5181 = vmatprep.subr.mxu0 %v11774_v57 }
0x1082   :  { %5182 = vmatpush3.msra.mxu0 %v12133_v7  ;;  %v9020_v7 = vld [vmem:[%s11324_s4 + $0x110] sm:$0xff] }
0x1083   :  { %5183 = vmatprep.subr.mxu0 %v11774_v57 }
0x1084   :  { %5184 = vmatpush3.msra.mxu0 %v12134_v9  ;;  %v9026_v9 = vld [vmem:[%s11324_s4 + $0xe8] sm:$0xff] }
0x1085   :  { %5185 = vmatprep.subr.mxu0 %v11774_v57 }
0x1086   :  { %5186 = vmatpush3.msra.mxu0 %v12135_v11  ;;  %v9032_v11 = vld [vmem:[%s11324_s4 + $0xf8] sm:$0xff] }
0x1087   :  { %5187 = vmatprep.subr.mxu0 %v11774_v57  ;;  %12142 = vst [vmem:[#allocation34_spill] sm:$0xff] %v9032_v11 }
0x1088   :  { %5188 = vmatpush3.msra.mxu0 %v12136_v13  ;;  %v9038_v13 = vld [vmem:[%s11324_s4 + $0xe0] sm:$0xff] }
0x1089   :  { %5189 = vmatprep.subr.mxu0 %v11774_v57  ;;  %12143 = vst [vmem:[#allocation11_spill] sm:$0xff] %v9038_v13 }
0x108a   :  { %5190 = vmatpush3.msra.mxu0 %v12137_v0  ;;  %v9044_v0 = vld [vmem:[%s11324_s4 + $0xf0] sm:$0xff] }
0x108b   :  { %5191 = vmatprep.subr.mxu0 %v11774_v57  ;;  %12144 = vst [vmem:[#allocation35_spill] sm:$0xff] %v9044_v0 }
0x108c   :  { %5192 = vmatpush3.msra.mxu0 %v12138_v15  ;;  %v9050_v15 = vld [vmem:[%s11324_s4 + $0xc8] sm:$0xff] }
0x108d   :  { %5193 = vmatprep.subr.mxu0 %v11774_v57  ;;  %12145 = vst [vmem:[#allocation12_spill] sm:$0xff] %v9050_v15 }
0x108e   :  { %5194 = vmatpush3.msra.mxu0 %v12139_v17  ;;  %v9056_v17 = vld [vmem:[%s11324_s4 + $0xd8] sm:$0xff] }
0x108f   :  { %5195 = vmatprep.subr.mxu0 %v11774_v57  ;;  %12146 = vst [vmem:[#allocation36_spill] sm:$0xff] %v9056_v17 }
0x1090   :  { %5196 = vmatpush3.msra.mxu0 %v12140_v19  ;;  %v9062_v19 = vld [vmem:[%s11324_s4 + $0xc0] sm:$0xff] }
0x1091   :  { %5197 = vmatprep.subr.mxu0 %v11774_v57  ;;  %12147 = vst [vmem:[#allocation79_spill] sm:$0xff] %v9062_v19 }
0x1092   :  { %5198 = vmatpush3.msra.mxu0 %v12141_v21  ;;  %v9068_v21 = vld [vmem:[%s11324_s4 + $0xd0] sm:$0xff] }
0x1093   :  { %5199 = vmatprep.subr.mxu0 %v11774_v57  ;;  %12148 = vst [vmem:[#allocation13_spill] sm:$0xff] %v9068_v21 }
0x1094   :  { %5200 = vmatpush3.msra.mxu0 %v8594_v8 }
0x1095   :  { %2309 = vmatprep.subr.mxu0 %v8834_v23 }
0x1135   :  { %v2060_v37 = vpop.f32.mrf.mxu0 }
0x1136   :  { %v2065_v39 = vrot.slane %v2060_v37, 5  ;;  %v9074_v37 = vld [vmem:[%s11324_s4 + $0xa8] sm:$0xff] }
0x1137   :  { %v5168_v25 = vpop.f32.mrf.mxu0  ;;  %12149 = vst [vmem:[#allocation16_spill] sm:$0xff] %v9074_v37 }
0x1138   :  { %v2067_v63 = vadd.f32 %v2065_v39, %v7378_v61  ;;  %v9080_v39 = vld [vmem:[%s11324_s4 + $0xb8] sm:$0xff]  ;;  %v9086_v25 = vld [vmem:[%s11324_s4 + $0xa0] sm:$0xff] }
0x1139   :  { %12150 = vst [vmem:[#allocation37_spill] sm:$0xff] %v9080_v39  ;;  %12151 = vst [vmem:[#allocation17_spill] sm:$0xff] %v9086_v25 }
0x113a   :  { %v2068_v38 = vadd.f32 %v2067_v63, %v7659_v42  ;;  %v9092_v63 = vld [vmem:[%s11324_s4 + $0xb0] sm:$0xff] }
0x113b   :  { %12152 = vst [vmem:[#allocation38_spill] sm:$0xff] %v9092_v63 }
0x113c   :  { %v2069_v36 = vmax.f32 %v2068_v38, 0.0  ;;  %v9098_v38 = vld [vmem:[%s11324_s4 + $0x88] sm:$0xff] }
0x113d   :  { %12153 = vst [vmem:[#allocation18_spill] sm:$0xff] %v9098_v38 }
0x113e   :  { %v2071_v8 = vrot.slane %v2069_v36, 3  ;;  %v9104_v36 = vld [vmem:[%s11324_s4 + $0x98] sm:$0xff] }
0x113f   :  { %12154 = vst [vmem:[#allocation39_spill] sm:$0xff] %v9104_v36 }
0x1140   :  { %2138 = vmatmul.mubr.f32.vlgmr.msra.gmra.mxu1 %v2071_v8  ;;  %5202 = vmatmul.mubr.f32.vlgmr.msra.gmra.mxu0 %v2071_v8  ;;  %v9110_v8 = vld [vmem:[%s11324_s4 + $0x80] sm:$0xff] }
0x1141   :  { %2239 = vmatpush1.msra.mxu1 %v8846_v35  ;;  %2310 = vmatpush1.msra.mxu0 %v8852_v56  ;;  %12155 = vst [vmem:[#allocation19_spill] sm:$0xff] %v9110_v8 }
0x1142   :  { %2240 = vmatprep.subr.mxu1 %v8858_v14  ;;  %2311 = vmatprep.subr.mxu0 %v8864_v26 }
0x1143   :  { %2241 = vmatpush1.msra.mxu1 %v8870_v62  ;;  %2312 = vmatpush1.msra.mxu0 %v8876_v58 }
0x1144   :  { %2242 = vmatprep.subr.mxu1 %v8882_v22  ;;  %2313 = vmatprep.subr.mxu0 %v8888_v43 }
0x1145   :  { %2243 = vmatpush1.msra.mxu1 %v8894_v45  ;;  %2314 = vmatpush1.msra.mxu0 %v8900_v49 }
0x1146   :  { %2244 = vmatprep.subr.mxu1 %v8906_v59  ;;  %2315 = vmatprep.subr.mxu0 %v8912_v4 }
0x1147   :  { %2245 = vmatpush1.msra.mxu1 %v8918_v6  ;;  %2316 = vmatpush1.msra.mxu0 %v8924_v10 }
0x1148   :  { %2246 = vmatprep.subr.mxu1 %v8930_v24  ;;  %2317 = vmatprep.subr.mxu0 %v8936_v28 }
0x1149   :  { %2247 = vmatpush1.msra.mxu1 %v8942_v30  ;;  %2318 = vmatpush1.msra.mxu0 %v8948_v46 }
0x114a   :  { %2248 = vmatprep.subr.mxu1 %v8954_v48  ;;  %2319 = vmatprep.subr.mxu0 %v8960_v50 }
0x114b   :  { %2249 = vmatpush1.msra.mxu1 %v8966_v52  ;;  %2320 = vmatpush1.msra.mxu0 %v8972_v55 }
0x114c   :  { %2250 = vmatprep.subr.mxu1 %v8978_v3  ;;  %2321 = vmatprep.subr.mxu0 %v8984_v40 }
0x114d   :  { %2251 = vmatpush1.msra.mxu1 %v8990_v34  ;;  %2322 = vmatpush1.msra.mxu0 %v8996_v12 }
0x114e   :  { %2252 = vmatprep.subr.mxu1 %v9002_v18  ;;  %2323 = vmatprep.subr.mxu0 %v9008_v16 }
0x114f   :  { %2253 = vmatpush1.msra.mxu1 %v9014_v5  ;;  %2324 = vmatpush1.msra.mxu0 %v9020_v7 }
0x1150   :  { %2254 = vmatprep.subr.mxu1 %v9026_v9  ;;  %2325 = vmatprep.subr.mxu0 %v9032_v11 }
0x1151   :  { %2255 = vmatpush1.msra.mxu1 %v9038_v13  ;;  %2326 = vmatpush1.msra.mxu0 %v9044_v0 }
0x1152   :  { %2256 = vmatprep.subr.mxu1 %v9050_v15  ;;  %2327 = vmatprep.subr.mxu0 %v9056_v17 }
0x1153   :  { %2257 = vmatpush1.msra.mxu1 %v9062_v19  ;;  %2328 = vmatpush1.msra.mxu0 %v9068_v21 }
0x1154   :  { %2258 = vmatprep.subr.mxu1 %v9074_v37  ;;  %2329 = vmatprep.subr.mxu0 %v9080_v39 }
0x1155   :  { %2259 = vmatpush1.msra.mxu1 %v9086_v25  ;;  %2330 = vmatpush1.msra.mxu0 %v9092_v63 }
0x1156   :  { %2260 = vmatprep.subr.mxu1 %v9098_v38  ;;  %2331 = vmatprep.subr.mxu0 %v9104_v36  ;;  %v9122_v38 = vld [vmem:[%s11324_s4 + $0x68] sm:$0xff]  ;;  %v9128_v36 = vld [vmem:[%s11324_s4 + $0x78] sm:$0xff] }
0x1157   :  { %2261 = vmatpush1.msra.mxu1 %v9110_v8  ;;  %2332 = vmatpush1.msra.mxu0 %v9116_v60  ;;  %12157 = vst [vmem:[#allocation20_spill] sm:$0xff] %v9122_v38  ;;  %12158 = vst [vmem:[#allocation41_spill] sm:$0xff] %v9128_v36  ;;  %v9134_v8 = vld [vmem:[%s11324_s4 + $0x60] sm:$0xff]  ;;  %v9140_v60 = vld [vmem:[%s11324_s4 + $0x70] sm:$0xff] }
0x1158   :  { %2262 = vmatprep.subr.mxu1 %v9122_v38  ;;  %2333 = vmatprep.subr.mxu0 %v9128_v36  ;;  %12159 = vst [vmem:[#allocation21_spill] sm:$0xff] %v9134_v8  ;;  %12160 = vst [vmem:[#allocation42_spill] sm:$0xff] %v9140_v60  ;;  %v9146_v38 = vld [vmem:[%s11324_s4 + $0x48] sm:$0xff]  ;;  %v9152_v36 = vld [vmem:[%s11324_s4 + $0x58] sm:$0xff] }
0x1159   :  { %2263 = vmatpush1.msra.mxu1 %v9134_v8  ;;  %2334 = vmatpush1.msra.mxu0 %v9140_v60  ;;  %12161 = vst [vmem:[#allocation22_spill] sm:$0xff] %v9146_v38  ;;  %12162 = vst [vmem:[#allocation43_spill] sm:$0xff] %v9152_v36  ;;  %v9158_v8 = vld [vmem:[%s11324_s4 + $0x40] sm:$0xff]  ;;  %v9164_v60 = vld [vmem:[%s11324_s4 + $0x50] sm:$0xff] }
0x115a   :  { %2264 = vmatprep.subr.mxu1 %v9146_v38  ;;  %2335 = vmatprep.subr.mxu0 %v9152_v36  ;;  %12163 = vst [vmem:[#allocation23_spill] sm:$0xff] %v9158_v8  ;;  %12164 = vst [vmem:[#allocation44_spill] sm:$0xff] %v9164_v60  ;;  %v9170_v38 = vld [vmem:[%s11324_s4 + $0x28] sm:$0xff]  ;;  %v9176_v36 = vld [vmem:[%s11324_s4 + $0x38] sm:$0xff] }
0x115b   :  { %2265 = vmatpush1.msra.mxu1 %v9158_v8  ;;  %2336 = vmatpush1.msra.mxu0 %v9164_v60  ;;  %12165 = vst [vmem:[#allocation24_spill] sm:$0xff] %v9170_v38  ;;  %12166 = vst [vmem:[#allocation45_spill] sm:$0xff] %v9176_v36  ;;  %v9182_v8 = vld [vmem:[%s11324_s4 + $0x20] sm:$0xff]  ;;  %v9188_v60 = vld [vmem:[%s11324_s4 + $0x30] sm:$0xff] }
0x115c   :  { %2266 = vmatprep.subr.mxu1 %v9170_v38  ;;  %2337 = vmatprep.subr.mxu0 %v9176_v36  ;;  %12167 = vst [vmem:[#allocation25_spill] sm:$0xff] %v9182_v8  ;;  %12168 = vst [vmem:[#allocation46_spill] sm:$0xff] %v9188_v60  ;;  %v9194_v38 = vld [vmem:[%s11324_s4 + $0x8] sm:$0xff]  ;;  %v9200_v36 = vld [vmem:[%s11324_s4 + $0x18] sm:$0xff] }
0x115d   :  { %2267 = vmatpush1.msra.mxu1 %v9182_v8  ;;  %2338 = vmatpush1.msra.mxu0 %v9188_v60  ;;  %12169 = vst [vmem:[#allocation26_spill] sm:$0xff] %v9194_v38  ;;  %12170 = vst [vmem:[#allocation47_spill] sm:$0xff] %v9200_v36  ;;  %v9206_v8 = vld [vmem:[%s11324_s4] sm:$0xff] }
0x115e   :  { %2268 = vmatprep.subr.mxu1 %v9194_v38  ;;  %2339 = vmatprep.subr.mxu0 %v9200_v36  ;;  %12171 = vst [vmem:[#allocation27_spill] sm:$0xff] %v9206_v8  ;;  %v9213_v38 = vld [vmem:[%s11324_s4 + $0x10] sm:$0xff] }
0x115f   :  { %2269 = vmatpush1.msra.mxu1 %v9206_v8  ;;  %2302 = vmatprep.mubr.f32.mxu1 %v11774_v57  ;;  %12172 = vst [vmem:[#allocation28_spill] sm:$0xff] %v9213_v38  ;;  %v2214_v8 = vadd.f32 %v8796_v1, %v7466_v31 }
0x1160   :  { %2340 = vmatpush1.msra.mxu0 %v9213_v38  ;;  %2373 = vmatprep.mubr.f32.mxu0 %v11774_v57  ;;  %v2215_v38 = vadd.f32 %v8837_v51, %v7480_v53 }
0x1161   :  { %5204 = vmatprep.subr.mxu1 %v11774_v57  ;;  %5239 = vmatprep.subr.mxu0 %v11774_v57 }
0x1200   :  { %v2139_v36 = vpop.f32.mrf.mxu1  ;;  %v2210_v60 = vpop.f32.mrf.mxu0 }
0x1201   :  { %v2140_v63 = vadd.f32 %v2139_v36, %v7469_v33  ;;  %v2216_v36 = vadd.f32 %v8839_v27, %v7485_v32  ;;  %v9245_v27 = vld [vmem:[%s11325_s5 + $0x78] sm:$0xff] }
0x1202   :  { %v2141_v25 = vpop.f32.mrf.mxu1  ;;  %v5203_v39 = vpop.f32.mrf.mxu0 }
0x1203   :  { %v2217_v37 = vadd.f32 %v2214_v8, %v2140_v63  ;;  %v2142_v19 = vadd.f32 %v2141_v25, %v7477_v47  ;;  %v9273_v8 = vld [vmem:[%s11325_s5 + $0x68] sm:$0xff] }
0x1204   :  { %12174 = vst [vmem:[#allocation29_spill] sm:$0xff] %v9273_v8 }
0x1205   :  { %v4366_v21 = vmul.f32 -1.442695, %v2217_v37  ;;  %v2224_v17 = vadd.f32 %v2215_v38, %v2142_v19  ;;  %v2211_v37 = vadd.f32 %v2210_v60, %v7487_v44  ;;  %v9236_v60 = vld [vmem:[%s11322_s2 + $0x78] sm:$0xff]  ;;  %v9265_v38 = vld [vmem:[%s11322_s2 + $0x68] sm:$0xff] }
0x1207   :  { %5675 = vpow2.f32 %v4366_v21  ;;  %v4367_v15 = vmul.f32 -1.442695, %v2224_v17 }
0x1209   :  { %5677 = vpow2.f32 %v4367_v15 }
0x1214   :  { %v5676_v0 = vpop.eup %5675 }
0x1215   :  { %v2221_v13 = vadd.f32 1.0, %v5676_v0 }
0x1216   :  { %v5678_v11 = vpop.eup %5677 }
0x1217   :  { %5679 = vrcp.f32 %v2221_v13  ;;  %v2228_v1 = vadd.f32 1.0, %v5678_v11  ;;  %v9251_v11 = vld [vmem:[%s11322_s2 + $0x70] sm:$0xff] }
0x1218   :  { %v9259_v13 = vld [vmem:[%s11325_s5 + $0x70] sm:$0xff] }
0x1219   :  { %5681 = vrcp.f32 %v2228_v1  ;;  %v9279_v1 = vld [vmem:[%s11322_s2 + $0x60] sm:$0xff] }
0x121a   :  { %12175 = vst [vmem:[#allocation50_spill] sm:$0xff] %v9279_v1 }
0x1224   :  { %v5680_v39 = vpop.eup %5679 }
0x1225   :  { %v2231_v63 = vmul.f32 %v5680_v39, %v2216_v36  ;;  %v9287_v36 = vld [vmem:[%s11325_s5 + $0x60] sm:$0xff]  ;;  %v9293_v39 = vld [vmem:[%s11322_s2 + $0x58] sm:$0xff] }
0x1226   :  { %v5682_v51 = vpop.eup %5681  ;;  %12176 = vst [vmem:[#allocation30_spill] sm:$0xff] %v9287_v36  ;;  %12177 = vst [vmem:[#allocation51_spill] sm:$0xff] %v9293_v39 }
0x1227   :  { %v2232_v25 = vadd.f32 %v2231_v63, %v2211_v37  ;;  %v2234_v21 = vsub.f32 1.0, %v5682_v51  ;;  %v2236_v15 = vmul.f32 %v5682_v51, %v8680_v41  ;;  %v9301_v37 = vld [vmem:[%s11325_s5 + $0x58] sm:$0xff]  ;;  %v9307_v63 = vld [vmem:[%s11322_s2 + $0x50] sm:$0xff]  ;;  %v9321_v51 = vld [vmem:[%s11322_s2 + $0x48] sm:$0xff] }
0x1228   :  { %12178 = vst [vmem:[#allocation31_spill] sm:$0xff] %v9301_v37  ;;  %12179 = vst [vmem:[#allocation53_spill] sm:$0xff] %v9307_v63  ;;  %v9357_v41 = vld [vmem:[%s11325_s5 + $0x38] sm:$0xff] }
0x1229   :  { %5683 = vtanh.f32 %v2232_v25  ;;  %v9315_v25 = vld [vmem:[%s11325_s5 + $0x50] sm:$0xff]  ;;  %12181 = vst [vmem:[#allocation15_spill] sm:$0xff] %v9321_v51  ;;  %12186 = vst [vmem:[#allocation59_spill] sm:$0xff] %v9357_v41 }
0x122a   :  { %12180 = vst [vmem:[#allocation54_spill] sm:$0xff] %v9315_v25 }
0x1236   :  { %v5684_v19 = vpop.eup %5683 }
0x1237   :  { %v2235_v17 = vmul.f32 %v5684_v19, %v2234_v21  ;;  %v9329_v21 = vld [vmem:[%s11325_s5 + $0x48] sm:$0xff]  ;;  %v9335_v19 = vld [vmem:[%s11322_s2 + $0x40] sm:$0xff] }
0x1238   :  { %12182 = vst [vmem:[#allocation55_spill] sm:$0xff] %v9329_v21  ;;  %12183 = vst [vmem:[#allocation56_spill] sm:$0xff] %v9335_v19 }
0x1239   :  { %v9229_v0 = vadd.f32 %v2236_v15, %v2235_v17  ;;  %v9343_v17 = vld [vmem:[%s11325_s5 + $0x40] sm:$0xff]  ;;  %v9349_v15 = vld [vmem:[%s11322_s2 + $0x38] sm:$0xff] }
0x123a   :  { %12184 = vst [vmem:[#allocation57_spill] sm:$0xff] %v9343_v17  ;;  %12185 = vst [vmem:[#allocation58_spill] sm:$0xff] %v9349_v15 }
0x123b   :  { %12173 = vst [vmem:[#allocation49_spill] sm:$0xff] %v9229_v0  ;;  %2303 = vmatmul.mubr.f32.vlgmr.msra.gmra.mxu1 %v9229_v0  ;;  %2374 = vmatmul.mubr.f32.vlgmr.msra.gmra.mxu0 %v9229_v0 }
0x123c   :  { %5205 = vmatpush3.msra.mxu1 %v9236_v60  ;;  %5236 = vmatprep.mubr.msk.f32.mxu1 %vm6244_vm1, %v11774_v57 }
0x123d   :  { %5206 = vmatprep.subr.mxu1 %v11774_v57  ;;  %5240 = vmatpush3.msra.mxu0 %v9245_v27 }
0x123e   :  { %5207 = vmatpush3.msra.mxu1 %v9251_v11  ;;  %5241 = vmatprep.subr.mxu0 %v11774_v57 }
0x123f   :  { %5208 = vmatprep.subr.mxu1 %v11774_v57  ;;  %5242 = vmatpush3.msra.mxu0 %v9259_v13 }
0x1240   :  { %5209 = vmatpush3.msra.mxu1 %v9265_v38  ;;  %5243 = vmatprep.subr.mxu0 %v11774_v57 }
0x1241   :  { %5210 = vmatprep.subr.mxu1 %v11774_v57  ;;  %5244 = vmatpush3.msra.mxu0 %v9273_v8 }
0x1242   :  { %5211 = vmatpush3.msra.mxu1 %v9279_v1  ;;  %5245 = vmatprep.subr.mxu0 %v11774_v57 }
0x1243   :  { %5212 = vmatprep.subr.mxu1 %v11774_v57  ;;  %5246 = vmatpush3.msra.mxu0 %v9287_v36 }
0x1244   :  { %5213 = vmatpush3.msra.mxu1 %v9293_v39  ;;  %5247 = vmatprep.subr.mxu0 %v11774_v57 }
0x1245   :  { %5214 = vmatprep.subr.mxu1 %v11774_v57  ;;  %5248 = vmatpush3.msra.mxu0 %v9301_v37 }
0x1246   :  { %5215 = vmatpush3.msra.mxu1 %v9307_v63  ;;  %5249 = vmatprep.subr.mxu0 %v11774_v57 }
0x1247   :  { %5216 = vmatprep.subr.mxu1 %v11774_v57  ;;  %5250 = vmatpush3.msra.mxu0 %v9315_v25 }
0x1248   :  { %5217 = vmatpush3.msra.mxu1 %v9321_v51  ;;  %5251 = vmatprep.subr.mxu0 %v11774_v57 }
0x1249   :  { %5218 = vmatprep.subr.mxu1 %v11774_v57  ;;  %5252 = vmatpush3.msra.mxu0 %v9329_v21 }
0x124a   :  { %5219 = vmatpush3.msra.mxu1 %v9335_v19  ;;  %5253 = vmatprep.subr.mxu0 %v11774_v57 }
0x124b   :  { %5220 = vmatprep.subr.mxu1 %v11774_v57  ;;  %5254 = vmatpush3.msra.mxu0 %v9343_v17  ;;  %v9363_v17 = vld [vmem:[%s11322_s2 + $0x30] sm:$0xff] }
0x124c   :  { %5221 = vmatpush3.msra.mxu1 %v9349_v15  ;;  %5255 = vmatprep.subr.mxu0 %v11774_v57  ;;  %12187 = vst [vmem:[#allocation60_spill] sm:$0xff] %v9363_v17  ;;  %v9371_v15 = vld [vmem:[%s11325_s5 + $0x30] sm:$0xff] }
0x124d   :  { %5222 = vmatprep.subr.mxu1 %v11774_v57  ;;  %5256 = vmatpush3.msra.mxu0 %v9357_v41  ;;  %12188 = vst [vmem:[#allocation61_spill] sm:$0xff] %v9371_v15  ;;  %v9377_v41 = vld [vmem:[%s11322_s2 + $0x28] sm:$0xff] }
0x124e   :  { %5223 = vmatpush3.msra.mxu1 %v9363_v17  ;;  %5257 = vmatprep.subr.mxu0 %v11774_v57  ;;  %12189 = vst [vmem:[#allocation62_spill] sm:$0xff] %v9377_v41  ;;  %v9385_v17 = vld [vmem:[%s11325_s5 + $0x28] sm:$0xff] }
0x124f   :  { %5224 = vmatprep.subr.mxu1 %v11774_v57  ;;  %5258 = vmatpush3.msra.mxu0 %v9371_v15  ;;  %12190 = vst [vmem:[#allocation63_spill] sm:$0xff] %v9385_v17  ;;  %v9391_v15 = vld [vmem:[%s11322_s2 + $0x20] sm:$0xff] }
0x1250   :  { %5225 = vmatpush3.msra.mxu1 %v9377_v41  ;;  %5259 = vmatprep.subr.mxu0 %v11774_v57  ;;  %12191 = vst [vmem:[#allocation64_spill] sm:$0xff] %v9391_v15  ;;  %v9399_v41 = vld [vmem:[%s11325_s5 + $0x20] sm:$0xff] }
0x1251   :  { %5226 = vmatprep.subr.mxu1 %v11774_v57  ;;  %5260 = vmatpush3.msra.mxu0 %v9385_v17  ;;  %12192 = vst [vmem:[#allocation65_spill] sm:$0xff] %v9399_v41  ;;  %v9405_v17 = vld [vmem:[%s11322_s2 + $0x18] sm:$0xff] }
0x1252   :  { %5227 = vmatpush3.msra.mxu1 %v9391_v15  ;;  %5261 = vmatprep.subr.mxu0 %v11774_v57  ;;  %12193 = vst [vmem:[#allocation66_spill] sm:$0xff] %v9405_v17  ;;  %v9413_v15 = vld [vmem:[%s11325_s5 + $0x18] sm:$0xff] }
0x1253   :  { %5228 = vmatprep.subr.mxu1 %v11774_v57  ;;  %5262 = vmatpush3.msra.mxu0 %v9399_v41  ;;  %12194 = vst [vmem:[#allocation67_spill] sm:$0xff] %v9413_v15  ;;  %v9419_v41 = vld [vmem:[%s11322_s2 + $0x10] sm:$0xff] }
0x1254   :  { %5229 = vmatpush3.msra.mxu1 %v9405_v17  ;;  %5263 = vmatprep.subr.mxu0 %v11774_v57  ;;  %12195 = vst [vmem:[#allocation68_spill] sm:$0xff] %v9419_v41  ;;  %v9427_v17 = vld [vmem:[%s11325_s5 + $0x10] sm:$0xff] }
0x1255   :  { %5230 = vmatprep.subr.mxu1 %v11774_v57  ;;  %5264 = vmatpush3.msra.mxu0 %v9413_v15  ;;  %12196 = vst [vmem:[#allocation69_spill] sm:$0xff] %v9427_v17  ;;  %v9433_v15 = vld [vmem:[%s11322_s2 + $0x8] sm:$0xff] }
0x1256   :  { %5231 = vmatpush3.msra.mxu1 %v9419_v41  ;;  %5265 = vmatprep.subr.mxu0 %v11774_v57  ;;  %12197 = vst [vmem:[#allocation70_spill] sm:$0xff] %v9433_v15  ;;  %v9441_v41 = vld [vmem:[%s11325_s5 + $0x8] sm:$0xff] }
0x1257   :  { %5232 = vmatprep.subr.mxu1 %v11774_v57  ;;  %5266 = vmatpush3.msra.mxu0 %v9427_v17  ;;  %12198 = vst [vmem:[#allocation71_spill] sm:$0xff] %v9441_v41  ;;  %v9447_v17 = vld [vmem:[%s11322_s2] sm:$0xff] }
0x1258   :  { %5233 = vmatpush3.msra.mxu1 %v9433_v15  ;;  %5267 = vmatprep.subr.mxu0 %v11774_v57  ;;  %12199 = vst [vmem:[#allocation72_spill] sm:$0xff] %v9447_v17  ;;  %v9454_v15 = vld [vmem:[%s11325_s5] sm:$0xff] }
0x1259   :  { %5234 = vmatprep.subr.mxu1 %v11774_v57  ;;  %5268 = vmatpush3.msra.mxu0 %v9441_v41  ;;  %12200 = vst [vmem:[#allocation14_spill] sm:$0xff] %v9454_v15  ;;  %v9462_v41 = vld [vmem:[%s11326_s6 + $0x170] sm:$0xff] }
0x125a   :  { %5235 = vmatpush3.msra.mxu1 %v9447_v17  ;;  %5269 = vmatprep.subr.mxu0 %v11774_v57  ;;  %12201 = vst [vmem:[#allocation73_spill] sm:$0xff] %v9462_v41 }
0x125b   :  { %5270 = vmatpush3.msra.mxu0 %v9454_v15  ;;  %5271 = vmatprep.mubr.msk.f32.mxu0 %vm6244_vm1, %v11774_v57 }
0x125c   :  { %2549 = vmatprep.subr.mxu1 %v9462_v41  ;;  %5274 = vmatprep.subr.mxu0 %v11774_v57 }
0x12fb   :  { %v2304_v17 = vpop.f32.mrf.mxu1 }
0x12fc   :  { %v2381_v19 = vrot.slane %v2304_v17, 4 }
0x12fe   :  { %v2383_v21 = vadd.f32 %v2381_v19, %v12099_v2 }
0x1300   :  { %v2384_v51 = vadd.f32 %v2383_v21, %v7567_v20  ;;  %v9536_v21 = vld [vmem:[%s11326_s6 + $0xf0] sm:$0xff] }
0x1301   :  { %12209 = vst [vmem:[#allocation95_spill] sm:$0xff] %v9536_v21 }
0x1302   :  { %v2386_v15 = vsel %vm2385_vm7, %v2384_v51, -inf }
0x1303   :  { %2387 = vmax.xlane.f32.xlu0 %v2386_v15  ;;  %v9542_v15 = vld [vmem:[%s11326_s6 + $0xe0] sm:$0xff] }
0x1304   :  { %12210 = vst [vmem:[#allocation97_spill] sm:$0xff] %v9542_v15 }
0x138c   :  { %v2388_v25 = vpop.xlane.xlu0 %2387 }
0x138d   :  { %v2389_v63 = vsub.f32 %v2384_v51, %v2388_v25  ;;  %v9475_v25 = vld [vmem:[%s11326_s6 + $0x168] sm:$0xff]  ;;  %v9530_v51 = vld [vmem:[%s11326_s6 + $0xf8] sm:$0xff] }
0x138e   :  { %12208 = vst [vmem:[#allocation94_spill] sm:$0xff] %v9530_v51 }
0x138f   :  { %v2390_v37 = vmul.f32 1.442695, %v2389_v63  ;;  %v9524_v63 = vld [vmem:[%s11326_s6 + $0x108] sm:$0xff] }
0x1390   :  { %12207 = vst [vmem:[#allocation92_spill] sm:$0xff] %v9524_v63 }
0x1391   :  { %5685 = vpow2.f32 %v2390_v37  ;;  %v9518_v37 = vld [vmem:[%s11326_s6 + $0x110] sm:$0xff] }
0x1392   :  { %12206 = vst [vmem:[#allocation78_spill] sm:$0xff] %v9518_v37 }
0x139e   :  { %v5686_v39 = vpop.eup %5685 }
0x139f   :  { %v2392_v36 = vsel %vm2385_vm7, %v5686_v39, 0.0 }
0x13a0   :  { %2393 = vadd.xlane.f32.xlu1 %v2392_v36  ;;  %v9506_v36 = vld [vmem:[%s11326_s6 + $0x128] sm:$0xff] }
0x13a1   :  { %12204 = vst [vmem:[#allocation76_spill] sm:$0xff] %v9506_v36 }
0x1429   :  { %v2394_v1 = vpop.xlane.xlu1 %2393 }
0x142a   :  { %5687 = vrcp.f32 %v2394_v1  ;;  %v9482_v1 = vld [vmem:[%s11326_s6 + $0x158] sm:$0xff] }
0x1437   :  { %v5688_v41 = vpop.eup %5687 }
0x1438   :  { %v2396_v8 = vmul.f32 %v5688_v41, %v5686_v39  ;;  %v9488_v41 = vld [vmem:[%s11326_s6 + $0x150] sm:$0xff]  ;;  %v9512_v39 = vld [vmem:[%s11326_s6 + $0x120] sm:$0xff] }
0x1439   :  { %12205 = vst [vmem:[#allocation77_spill] sm:$0xff] %v9512_v39 }
0x143a   :  { %v2398_v17 = vrot.slane %v2396_v8, 4  ;;  %v9470_v19 = vsel %vm4168_vm8, %v8756_v29, %v2396_v8  ;;  %v9494_v29 = vld [vmem:[%s11326_s6 + $0x140] sm:$0xff]  ;;  %v9500_v8 = vld [vmem:[%s11326_s6 + $0x138] sm:$0xff] }
0x143b   :  { %12202 = vst [vmem:[#allocation74_spill] sm:$0xff] %v9494_v29  ;;  %12203 = vst [vmem:[#allocation75_spill] sm:$0xff] %v9500_v8 }
0x143c   :  { %5237 = vmatmul.mubr.f32.vlgmr.msra.gmra.mxu1 %v2398_v17  ;;  %v9548_v17 = vld [vmem:[%s11326_s6 + $0xd8] sm:$0xff] }
0x143d   :  { %2550 = vmatpush1.msra.mxu1 %v9475_v25  ;;  %2613 = vmatprep.mubr.f32.mxu1 %v11774_v57  ;;  %12211 = vst [vmem:[#allocation98_spill] sm:$0xff] %v9548_v17 }
0x143e   :  { %2551 = vmatprep.subr.mxu1 %v9482_v1 }
0x143f   :  { %2552 = vmatpush1.msra.mxu1 %v9488_v41 }
0x1440   :  { %2553 = vmatprep.subr.mxu1 %v9494_v29 }
0x1441   :  { %2554 = vmatpush1.msra.mxu1 %v9500_v8 }
0x1442   :  { %2555 = vmatprep.subr.mxu1 %v9506_v36 }
0x1443   :  { %2556 = vmatpush1.msra.mxu1 %v9512_v39 }
0x1444   :  { %2557 = vmatprep.subr.mxu1 %v9518_v37  ;;  %v9665_v37 = vld [vmem:[%s11326_s6 + $0x178] sm:$0xff] }
0x1445   :  { %2558 = vmatpush1.msra.mxu1 %v9524_v63  ;;  %12230 = vst [vmem:[#allocation52_spill] sm:$0xff] %v9665_v37 }
0x1446   :  { %2559 = vmatprep.subr.mxu1 %v9530_v51  ;;  %v9554_v51 = vld [vmem:[%s11326_s6 + $0xc8] sm:$0xff] }
0x1447   :  { %2560 = vmatpush1.msra.mxu1 %v9536_v21  ;;  %12212 = vst [vmem:[#allocation100_spill] sm:$0xff] %v9554_v51  ;;  %v9560_v21 = vld [vmem:[%s11326_s6 + $0xc0] sm:$0xff] }
0x1448   :  { %2561 = vmatprep.subr.mxu1 %v9542_v15  ;;  %12213 = vst [vmem:[#allocation101_spill] sm:$0xff] %v9560_v21  ;;  %v9566_v15 = vld [vmem:[%s11326_s6 + $0xb0] sm:$0xff] }
0x1449   :  { %2562 = vmatpush1.msra.mxu1 %v9548_v17  ;;  %12214 = vst [vmem:[#allocation80_spill] sm:$0xff] %v9566_v15  ;;  %v9572_v17 = vld [vmem:[%s11326_s6 + $0xa8] sm:$0xff] }
0x144a   :  { %2563 = vmatprep.subr.mxu1 %v9554_v51  ;;  %12215 = vst [vmem:[#allocation81_spill] sm:$0xff] %v9572_v17  ;;  %v9578_v51 = vld [vmem:[%s11326_s6 + $0x98] sm:$0xff] }
0x144b   :  { %2564 = vmatpush1.msra.mxu1 %v9560_v21  ;;  %12216 = vst [vmem:[#allocation82_spill] sm:$0xff] %v9578_v51  ;;  %v9584_v21 = vld [vmem:[%s11326_s6 + $0x90] sm:$0xff] }
0x144c   :  { %2565 = vmatprep.subr.mxu1 %v9566_v15  ;;  %12217 = vst [vmem:[#allocation83_spill] sm:$0xff] %v9584_v21  ;;  %v9590_v15 = vld [vmem:[%s11326_s6 + $0x80] sm:$0xff] }
0x144d   :  { %2566 = vmatpush1.msra.mxu1 %v9572_v17  ;;  %12218 = vst [vmem:[#allocation84_spill] sm:$0xff] %v9590_v15  ;;  %v9596_v17 = vld [vmem:[%s11326_s6 + $0x78] sm:$0xff] }
0x144e   :  { %2567 = vmatprep.subr.mxu1 %v9578_v51  ;;  %12219 = vst [vmem:[#allocation85_spill] sm:$0xff] %v9596_v17  ;;  %v9602_v51 = vld [vmem:[%s11326_s6 + $0x68] sm:$0xff] }
0x144f   :  { %2568 = vmatpush1.msra.mxu1 %v9584_v21  ;;  %12220 = vst [vmem:[#allocation86_spill] sm:$0xff] %v9602_v51  ;;  %v9608_v21 = vld [vmem:[%s11326_s6 + $0x60] sm:$0xff] }
0x1450   :  { %2569 = vmatprep.subr.mxu1 %v9590_v15  ;;  %12221 = vst [vmem:[#allocation87_spill] sm:$0xff] %v9608_v21  ;;  %v9614_v15 = vld [vmem:[%s11326_s6 + $0x50] sm:$0xff] }
0x1451   :  { %2570 = vmatpush1.msra.mxu1 %v9596_v17  ;;  %12222 = vst [vmem:[#allocation88_spill] sm:$0xff] %v9614_v15  ;;  %v9620_v17 = vld [vmem:[%s11326_s6 + $0x48] sm:$0xff] }
0x1452   :  { %2571 = vmatprep.subr.mxu1 %v9602_v51  ;;  %12223 = vst [vmem:[#allocation89_spill] sm:$0xff] %v9620_v17  ;;  %v9626_v51 = vld [vmem:[%s11326_s6 + $0x38] sm:$0xff] }
0x1453   :  { %2572 = vmatpush1.msra.mxu1 %v9608_v21  ;;  %12224 = vst [vmem:[#allocation90_spill] sm:$0xff] %v9626_v51  ;;  %v9632_v21 = vld [vmem:[%s11326_s6 + $0x30] sm:$0xff] }
0x1454   :  { %2573 = vmatprep.subr.mxu1 %v9614_v15  ;;  %12225 = vst [vmem:[#allocation91_spill] sm:$0xff] %v9632_v21  ;;  %v9638_v15 = vld [vmem:[%s11326_s6 + $0x20] sm:$0xff] }
0x1455   :  { %2574 = vmatpush1.msra.mxu1 %v9620_v17  ;;  %12226 = vst [vmem:[#allocation93_spill] sm:$0xff] %v9638_v15  ;;  %v9644_v17 = vld [vmem:[%s11326_s6 + $0x18] sm:$0xff] }
0x1456   :  { %2575 = vmatprep.subr.mxu1 %v9626_v51  ;;  %12227 = vst [vmem:[#allocation96_spill] sm:$0xff] %v9644_v17  ;;  %v9650_v51 = vld [vmem:[%s11326_s6 + $0x8] sm:$0xff] }
0x1457   :  { %2576 = vmatpush1.msra.mxu1 %v9632_v21  ;;  %12228 = vst [vmem:[#allocation99_spill] sm:$0xff] %v9650_v51  ;;  %v9656_v21 = vld [vmem:[%s11326_s6] sm:$0xff] }
0x1458   :  { %2577 = vmatprep.subr.mxu1 %v9638_v15  ;;  %12229 = vst [vmem:[#allocation102_spill] sm:$0xff] %v9656_v21  ;;  %v9660_v15 = vpop.f32.mrf.mxu1 }
0x1459   :  { %2578 = vmatpush1.msra.mxu1 %v9644_v17 }
0x145a   :  { %2579 = vmatprep.subr.mxu1 %v9650_v51 }
0x145b   :  { %2580 = vmatpush1.msra.mxu1 %v9656_v21 }
0x145c   :  { %2714 = vmatprep.subr.mxu1 %v8793_v54  ;;  %v9674_v54 = vld [vmem:[%s11326_s6 + $0x160] sm:$0xff] }
0x145d   :  { %12231 = vst [vmem:[#allocation103_spill] sm:$0xff] %v9674_v54 }
0x14fc   :  { %v2466_v63 = vpop.f32.mrf.mxu1 }
0x14fd   :  { %5272 = vmatmul.mubr.f32.vlgmr.msra.gmra.mxu0 %v2466_v63  ;;  %v9681_v63 = vld [vmem:[%s11326_s6 + $0x148] sm:$0xff] }
0x14fe   :  { %v5238_v17 = vpop.f32.mrf.mxu1  ;;  %5275 = vmatpush3.msra.mxu0 %v9665_v37  ;;  %5306 = vmatprep.mubr.msk.f32.mxu0 %vm6244_vm1, %v11774_v57  ;;  %12232 = vst [vmem:[#allocation104_spill] sm:$0xff] %v9681_v63 }
0x14ff   :  { %5276 = vmatprep.subr.mxu0 %v11774_v57  ;;  %v9688_v17 = vld [vmem:[%s11326_s6 + $0x130] sm:$0xff] }
0x1500   :  { %5277 = vmatpush3.msra.mxu0 %v9674_v54  ;;  %12233 = vst [vmem:[#allocation105_spill] sm:$0xff] %v9688_v17  ;;  %v9695_v54 = vld [vmem:[%s11326_s6 + $0x118] sm:$0xff] }
0x1501   :  { %5278 = vmatprep.subr.mxu0 %v11774_v57  ;;  %12234 = vst [vmem:[#allocation106_spill] sm:$0xff] %v9695_v54 }
0x1502   :  { %5279 = vmatpush3.msra.mxu0 %v9681_v63  ;;  %v9702_v63 = vld [vmem:[%s11326_s6 + $0x100] sm:$0xff] }
0x1503   :  { %5280 = vmatprep.subr.mxu0 %v11774_v57  ;;  %12235 = vst [vmem:[#allocation107_spill] sm:$0xff] %v9702_v63 }
0x1504   :  { %5281 = vmatpush3.msra.mxu0 %v9688_v17  ;;  %v9709_v17 = vld [vmem:[%s11326_s6 + $0xe8] sm:$0xff] }
0x1505   :  { %5282 = vmatprep.subr.mxu0 %v11774_v57  ;;  %12236 = vst [vmem:[#allocation108_spill] sm:$0xff] %v9709_v17 }
0x1506   :  { %5283 = vmatpush3.msra.mxu0 %v9695_v54  ;;  %v9716_v54 = vld [vmem:[%s11326_s6 + $0xd0] sm:$0xff] }
0x1507   :  { %5284 = vmatprep.subr.mxu0 %v11774_v57  ;;  %12237 = vst [vmem:[#allocation109_spill] sm:$0xff] %v9716_v54 }
0x1508   :  { %5285 = vmatpush3.msra.mxu0 %v9702_v63  ;;  %v9723_v63 = vld [vmem:[%s11326_s6 + $0xb8] sm:$0xff] }
0x1509   :  { %5286 = vmatprep.subr.mxu0 %v11774_v57  ;;  %12238 = vst [vmem:[#allocation110_spill] sm:$0xff] %v9723_v63 }
0x150a   :  { %5287 = vmatpush3.msra.mxu0 %v9709_v17  ;;  %v9730_v17 = vld [vmem:[%s11326_s6 + $0xa0] sm:$0xff] }
0x150b   :  { %5288 = vmatprep.subr.mxu0 %v11774_v57  ;;  %12239 = vst [vmem:[#allocation111_spill] sm:$0xff] %v9730_v17 }
0x150c   :  { %5289 = vmatpush3.msra.mxu0 %v9716_v54  ;;  %v9737_v54 = vld [vmem:[%s11326_s6 + $0x88] sm:$0xff] }
0x150d   :  { %5290 = vmatprep.subr.mxu0 %v11774_v57  ;;  %12240 = vst [vmem:[#allocation112_spill] sm:$0xff] %v9737_v54 }
0x150e   :  { %5291 = vmatpush3.msra.mxu0 %v9723_v63  ;;  %v9744_v63 = vld [vmem:[%s11326_s6 + $0x70] sm:$0xff] }
0x150f   :  { %5292 = vmatprep.subr.mxu0 %v11774_v57  ;;  %12241 = vst [vmem:[#allocation113_spill] sm:$0xff] %v9744_v63 }
0x1510   :  { %5293 = vmatpush3.msra.mxu0 %v9730_v17  ;;  %v9751_v17 = vld [vmem:[%s11326_s6 + $0x58] sm:$0xff] }
0x1511   :  { %5294 = vmatprep.subr.mxu0 %v11774_v57  ;;  %12242 = vst [vmem:[#allocation114_spill] sm:$0xff] %v9751_v17 }
0x1512   :  { %5295 = vmatpush3.msra.mxu0 %v9737_v54  ;;  %v9758_v54 = vld [vmem:[%s11326_s6 + $0x40] sm:$0xff] }
0x1513   :  { %5296 = vmatprep.subr.mxu0 %v11774_v57  ;;  %12243 = vst [vmem:[#allocation115_spill] sm:$0xff] %v9758_v54 }
0x1514   :  { %5297 = vmatpush3.msra.mxu0 %v9744_v63  ;;  %v9765_v63 = vld [vmem:[%s11326_s6 + $0x28] sm:$0xff] }
0x1515   :  { %5298 = vmatprep.subr.mxu0 %v11774_v57  ;;  %12244 = vst [vmem:[#allocation116_spill] sm:$0xff] %v9765_v63 }
0x1516   :  { %5299 = vmatpush3.msra.mxu0 %v9751_v17  ;;  %v9772_v17 = vld [vmem:[%s11326_s6 + $0x10] sm:$0xff] }
0x1517   :  { %5300 = vmatprep.subr.mxu0 %v11774_v57 }
0x1518   :  { %5301 = vmatpush3.msra.mxu0 %v9758_v54  ;;  %v9776_v54 = vpop.f32.mrf.mxu0 }
0x1519   :  { %5302 = vmatprep.subr.mxu0 %v11774_v57 }
0x151a   :  { %5303 = vmatpush3.msra.mxu0 %v9765_v63  ;;  %v9778_v37 = vpop.f32.mrf.mxu0 }
0x151b   :  { %5304 = vmatprep.subr.mxu0 %v11774_v57 }
0x151c   :  { %5305 = vmatpush3.msra.mxu0 %v9772_v17 }
0x151d   :  { %2785 = vmatprep.subr.mxu0 %v8834_v23  ;;  %v12245_v23 = vld [vmem:[#allocation34_spill] sm:$0xff] }
0x15bd   :  { %v2536_v21 = vpop.f32.mrf.mxu0 }
0x15be   :  { %v2541_v51 = vrot.slane %v2536_v21, 4 }
0x15bf   :  { %v5273_v39 = vpop.f32.mrf.mxu0 }
0x15c0   :  { %v2543_v63 = vadd.f32 %v2541_v51, %v7378_v61 }
0x15c2   :  { %v2544_v36 = vadd.f32 %v2543_v63, %v7659_v42 }
0x15c4   :  { %v2545_v8 = vmax.f32 %v2544_v36, 0.0 }
0x15c6   :  { %v2547_v29 = vrot.slane %v2545_v8, 4  ;;  %v2690_v8 = vadd.f32 %v9660_v15, %v7466_v31 }
0x15c8   :  { %2614 = vmatmul.mubr.f32.vlgmr.msra.gmra.mxu1 %v2547_v29  ;;  %5307 = vmatmul.mubr.f32.vlgmr.msra.gmra.mxu0 %v2547_v29 }
0x15c9   :  { %2715 = vmatpush1.msra.mxu1 %v8846_v35  ;;  %2786 = vmatpush1.msra.mxu0 %v8852_v56  ;;  %v12246_v35 = vld [vmem:[#allocation11_spill] sm:$0xff] }
0x15ca   :  { %2716 = vmatprep.subr.mxu1 %v8858_v14  ;;  %2787 = vmatprep.subr.mxu0 %v8864_v26  ;;  %v12247_v56 = vld [vmem:[#allocation35_spill] sm:$0xff]  ;;  %v12248_v14 = vld [vmem:[#allocation12_spill] sm:$0xff] }
0x15cb   :  { %2717 = vmatpush1.msra.mxu1 %v8870_v62  ;;  %2788 = vmatpush1.msra.mxu0 %v8876_v58  ;;  %v12249_v26 = vld [vmem:[#allocation36_spill] sm:$0xff]  ;;  %v12250_v62 = vld [vmem:[#allocation79_spill] sm:$0xff]  ;;  %v12251_v58 = vld [vmem:[#allocation13_spill] sm:$0xff] }
0x15cc   :  { %2718 = vmatprep.subr.mxu1 %v8882_v22  ;;  %2789 = vmatprep.subr.mxu0 %v8888_v43  ;;  %v12252_v22 = vld [vmem:[#allocation16_spill] sm:$0xff]  ;;  %v12253_v43 = vld [vmem:[#allocation37_spill] sm:$0xff] }
0x15cd   :  { %2719 = vmatpush1.msra.mxu1 %v8894_v45  ;;  %2790 = vmatpush1.msra.mxu0 %v8900_v49  ;;  %v12254_v45 = vld [vmem:[#allocation17_spill] sm:$0xff]  ;;  %v12255_v49 = vld [vmem:[#allocation38_spill] sm:$0xff] }
0x15ce   :  { %2720 = vmatprep.subr.mxu1 %v8906_v59  ;;  %2791 = vmatprep.subr.mxu0 %v8912_v4  ;;  %v12256_v59 = vld [vmem:[#allocation18_spill] sm:$0xff]  ;;  %v12257_v4 = vld [vmem:[#allocation39_spill] sm:$0xff] }
0x15cf   :  { %2721 = vmatpush1.msra.mxu1 %v8918_v6  ;;  %2792 = vmatpush1.msra.mxu0 %v8924_v10  ;;  %v12258_v6 = vld [vmem:[#allocation19_spill] sm:$0xff]  ;;  %v12259_v10 = vld [vmem:[#allocation40_spill] sm:$0xff] }
0x15d0   :  { %2722 = vmatprep.subr.mxu1 %v8930_v24  ;;  %2793 = vmatprep.subr.mxu0 %v8936_v28  ;;  %v12260_v24 = vld [vmem:[#allocation20_spill] sm:$0xff]  ;;  %v12261_v28 = vld [vmem:[#allocation41_spill] sm:$0xff] }
0x15d1   :  { %2723 = vmatpush1.msra.mxu1 %v8942_v30  ;;  %2794 = vmatpush1.msra.mxu0 %v8948_v46  ;;  %v12262_v30 = vld [vmem:[#allocation21_spill] sm:$0xff]  ;;  %v12263_v46 = vld [vmem:[#allocation42_spill] sm:$0xff] }
0x15d2   :  { %2724 = vmatprep.subr.mxu1 %v8954_v48  ;;  %2795 = vmatprep.subr.mxu0 %v8960_v50  ;;  %v12264_v48 = vld [vmem:[#allocation22_spill] sm:$0xff]  ;;  %v12265_v50 = vld [vmem:[#allocation43_spill] sm:$0xff] }
0x15d3   :  { %2725 = vmatpush1.msra.mxu1 %v8966_v52  ;;  %2796 = vmatpush1.msra.mxu0 %v8972_v55  ;;  %v12266_v52 = vld [vmem:[#allocation23_spill] sm:$0xff]  ;;  %v12267_v55 = vld [vmem:[#allocation44_spill] sm:$0xff] }
0x15d4   :  { %2726 = vmatprep.subr.mxu1 %v8978_v3  ;;  %2797 = vmatprep.subr.mxu0 %v8984_v40  ;;  %v12268_v3 = vld [vmem:[#allocation24_spill] sm:$0xff]  ;;  %v12269_v40 = vld [vmem:[#allocation45_spill] sm:$0xff] }
0x15d5   :  { %2727 = vmatpush1.msra.mxu1 %v8990_v34  ;;  %2798 = vmatpush1.msra.mxu0 %v8996_v12  ;;  %v12270_v34 = vld [vmem:[#allocation25_spill] sm:$0xff]  ;;  %v12271_v12 = vld [vmem:[#allocation46_spill] sm:$0xff] }
0x15d6   :  { %2728 = vmatprep.subr.mxu1 %v9002_v18  ;;  %2799 = vmatprep.subr.mxu0 %v9008_v16  ;;  %v12272_v18 = vld [vmem:[#allocation26_spill] sm:$0xff]  ;;  %v12273_v16 = vld [vmem:[#allocation47_spill] sm:$0xff] }
0x15d7   :  { %2729 = vmatpush1.msra.mxu1 %v9014_v5  ;;  %2800 = vmatpush1.msra.mxu0 %v9020_v7  ;;  %v12274_v5 = vld [vmem:[#allocation27_spill] sm:$0xff]  ;;  %v12275_v7 = vld [vmem:[#allocation28_spill] sm:$0xff] }
0x15d8   :  { %2730 = vmatprep.subr.mxu1 %v9026_v9  ;;  %2801 = vmatprep.subr.mxu0 %v12245_v23 }
0x15d9   :  { %2731 = vmatpush1.msra.mxu1 %v12246_v35  ;;  %2802 = vmatpush1.msra.mxu0 %v12247_v56  ;;  %v2691_v35 = vadd.f32 %v9776_v54, %v7480_v53 }
0x15da   :  { %2732 = vmatprep.subr.mxu1 %v12248_v14  ;;  %2803 = vmatprep.subr.mxu0 %v12249_v26 }
0x15db   :  { %2733 = vmatpush1.msra.mxu1 %v12250_v62  ;;  %2804 = vmatpush1.msra.mxu0 %v12251_v58 }
0x15dc   :  { %2734 = vmatprep.subr.mxu1 %v12252_v22  ;;  %2805 = vmatprep.subr.mxu0 %v12253_v43  ;;  %v2692_v22 = vadd.f32 %v9778_v37, %v7485_v32  ;;  %v12278_v37 = vld [vmem:[#allocation50_spill] sm:$0xff] }
0x15dd   :  { %2735 = vmatpush1.msra.mxu1 %v12254_v45  ;;  %2806 = vmatpush1.msra.mxu0 %v12255_v49 }
0x15de   :  { %2736 = vmatprep.subr.mxu1 %v12256_v59  ;;  %2807 = vmatprep.subr.mxu0 %v12257_v4 }
0x15df   :  { %2737 = vmatpush1.msra.mxu1 %v12258_v6  ;;  %2808 = vmatpush1.msra.mxu0 %v12259_v10 }
0x15e0   :  { %2738 = vmatprep.subr.mxu1 %v12260_v24  ;;  %2809 = vmatprep.subr.mxu0 %v12261_v28 }
0x15e1   :  { %2739 = vmatpush1.msra.mxu1 %v12262_v30  ;;  %2810 = vmatpush1.msra.mxu0 %v12263_v46  ;;  %v12283_v30 = vld [vmem:[#allocation54_spill] sm:$0xff]  ;;  %v12284_v46 = vld [vmem:[#allocation15_spill] sm:$0xff] }
0x15e2   :  { %2740 = vmatprep.subr.mxu1 %v12264_v48  ;;  %2811 = vmatprep.subr.mxu0 %v12265_v50  ;;  %v12285_v48 = vld [vmem:[#allocation55_spill] sm:$0xff]  ;;  %v12286_v50 = vld [vmem:[#allocation56_spill] sm:$0xff] }
0x15e3   :  { %2741 = vmatpush1.msra.mxu1 %v12266_v52  ;;  %2812 = vmatpush1.msra.mxu0 %v12267_v55  ;;  %v12287_v52 = vld [vmem:[#allocation57_spill] sm:$0xff]  ;;  %v12288_v55 = vld [vmem:[#allocation58_spill] sm:$0xff] }
0x15e4   :  { %2742 = vmatprep.subr.mxu1 %v12268_v3  ;;  %2813 = vmatprep.subr.mxu0 %v12269_v40  ;;  %v12289_v3 = vld [vmem:[#allocation59_spill] sm:$0xff]  ;;  %v12290_v40 = vld [vmem:[#allocation60_spill] sm:$0xff] }
0x15e5   :  { %2743 = vmatpush1.msra.mxu1 %v12270_v34  ;;  %2814 = vmatpush1.msra.mxu0 %v12271_v12  ;;  %v12291_v34 = vld [vmem:[#allocation61_spill] sm:$0xff]  ;;  %v12292_v12 = vld [vmem:[#allocation62_spill] sm:$0xff] }
0x15e6   :  { %2744 = vmatprep.subr.mxu1 %v12272_v18  ;;  %2815 = vmatprep.subr.mxu0 %v12273_v16  ;;  %v12293_v18 = vld [vmem:[#allocation63_spill] sm:$0xff]  ;;  %v12294_v16 = vld [vmem:[#allocation64_spill] sm:$0xff] }
0x15e7   :  { %2745 = vmatpush1.msra.mxu1 %v12274_v5  ;;  %2778 = vmatprep.mubr.f32.mxu1 %v11774_v57  ;;  %v12295_v5 = vld [vmem:[#allocation65_spill] sm:$0xff] }
0x15e8   :  { %2816 = vmatpush1.msra.mxu0 %v12275_v7  ;;  %2849 = vmatprep.mubr.f32.mxu0 %v11774_v57  ;;  %v12296_v7 = vld [vmem:[#allocation66_spill] sm:$0xff] }
0x15e9   :  { %5309 = vmatprep.subr.mxu1 %v11774_v57  ;;  %5344 = vmatprep.subr.mxu0 %v11774_v57 }
0x1688   :  { %v2615_v9 = vpop.f32.mrf.mxu1  ;;  %v2686_v29 = vpop.f32.mrf.mxu0 }
0x1689   :  { %v2616_v36 = vadd.f32 %v2615_v9, %v7469_v33  ;;  %v2687_v45 = vadd.f32 %v2686_v29, %v7487_v44  ;;  %v12297_v9 = vld [vmem:[#allocation67_spill] sm:$0xff]  ;;  %v12298_v29 = vld [vmem:[#allocation68_spill] sm:$0xff] }
0x168a   :  { %v2617_v39 = vpop.f32.mrf.mxu1  ;;  %v5308_v51 = vpop.f32.mrf.mxu0 }
0x168b   :  { %v2693_v21 = vadd.f32 %v2690_v8, %v2616_v36  ;;  %v2618_v23 = vadd.f32 %v2617_v39, %v7477_v47  ;;  %v12299_v8 = vld [vmem:[#allocation69_spill] sm:$0xff]  ;;  %v12300_v36 = vld [vmem:[#allocation70_spill] sm:$0xff]  ;;  %v12301_v39 = vld [vmem:[#allocation71_spill] sm:$0xff] }
0x168c   :  { %v12302_v51 = vld [vmem:[#allocation72_spill] sm:$0xff] }
0x168d   :  { %v4368_v63 = vmul.f32 -1.442695, %v2693_v21  ;;  %v2700_v56 = vadd.f32 %v2691_v35, %v2618_v23  ;;  %v12303_v21 = vld [vmem:[#allocation14_spill] sm:$0xff] }
0x168f   :  { %5689 = vpow2.f32 %v4368_v63  ;;  %v4369_v14 = vmul.f32 -1.442695, %v2700_v56  ;;  %v12304_v63 = vld [vmem:[#allocation73_spill] sm:$0xff] }
0x1691   :  { %5691 = vpow2.f32 %v4369_v14 }
0x169c   :  { %v5690_v26 = vpop.eup %5689 }
0x169d   :  { %v2697_v62 = vadd.f32 1.0, %v5690_v26 }
0x169e   :  { %v5692_v58 = vpop.eup %5691 }
0x169f   :  { %5693 = vrcp.f32 %v2697_v62  ;;  %v2704_v15 = vadd.f32 1.0, %v5692_v58 }
0x16a1   :  { %5695 = vrcp.f32 %v2704_v15 }
0x16ac   :  { %v5694_v43 = vpop.eup %5693 }
0x16ad   :  { %v2707_v49 = vmul.f32 %v5694_v43, %v2692_v22 }
0x16ae   :  { %v5696_v54 = vpop.eup %5695 }
0x16af   :  { %v2708_v59 = vadd.f32 %v2707_v49, %v2687_v45  ;;  %v2710_v4 = vsub.f32 1.0, %v5696_v54  ;;  %v2712_v24 = vmul.f32 %v5696_v54, %v9229_v0  ;;  %v10294_v0 = vld [vmem:[%s11324_s4 + $0x90] sm:$0xff] }
0x16b0   :  { %12362 = vst [vmem:[#allocation20_spill] sm:$0xff] %v10294_v0 }
0x16b1   :  { %5697 = vtanh.f32 %v2708_v59 }
0x16be   :  { %v5698_v6 = vpop.eup %5697 }
0x16bf   :  { %v2711_v10 = vmul.f32 %v5698_v6, %v2710_v4  ;;  %v12305_v6 = vld [vmem:[#allocation74_spill] sm:$0xff] }
0x16c1   :  { %v9858_v28 = vadd.f32 %v2712_v24, %v2711_v10  ;;  %v12306_v10 = vld [vmem:[#allocation75_spill] sm:$0xff]  ;;  %v12307_v24 = vld [vmem:[#allocation76_spill] sm:$0xff] }
0x16c3   :  { %12276 = vst [vmem:[#allocation34_spill] sm:$0xff] %v9858_v28  ;;  %2779 = vmatmul.mubr.f32.vlgmr.msra.gmra.mxu1 %v9858_v28  ;;  %2850 = vmatmul.mubr.f32.vlgmr.msra.gmra.mxu0 %v9858_v28 }
0x16c4   :  { %5310 = vmatpush3.msra.mxu1 %v9236_v60  ;;  %5341 = vmatprep.mubr.msk.f32.mxu1 %vm6244_vm1, %v11774_v57  ;;  %v12277_v60 = vld [vmem:[#allocation29_spill] sm:$0xff] }
0x16c5   :  { %5311 = vmatprep.subr.mxu1 %v11774_v57  ;;  %5345 = vmatpush3.msra.mxu0 %v9245_v27  ;;  %v12279_v27 = vld [vmem:[#allocation30_spill] sm:$0xff] }
0x16c6   :  { %5312 = vmatpush3.msra.mxu1 %v9251_v11  ;;  %5346 = vmatprep.subr.mxu0 %v11774_v57  ;;  %v12280_v11 = vld [vmem:[#allocation51_spill] sm:$0xff] }
0x16c7   :  { %5313 = vmatprep.subr.mxu1 %v11774_v57  ;;  %5347 = vmatpush3.msra.mxu0 %v9259_v13  ;;  %v12281_v13 = vld [vmem:[#allocation31_spill] sm:$0xff] }
0x16c8   :  { %5314 = vmatpush3.msra.mxu1 %v9265_v38  ;;  %5348 = vmatprep.subr.mxu0 %v11774_v57  ;;  %v12282_v38 = vld [vmem:[#allocation53_spill] sm:$0xff] }
0x16c9   :  { %5315 = vmatprep.subr.mxu1 %v11774_v57  ;;  %5349 = vmatpush3.msra.mxu0 %v12277_v60  ;;  %v12308_v60 = vld [vmem:[#allocation77_spill] sm:$0xff] }
0x16ca   :  { %5316 = vmatpush3.msra.mxu1 %v12278_v37  ;;  %5350 = vmatprep.subr.mxu0 %v11774_v57  ;;  %v12309_v37 = vld [vmem:[#allocation78_spill] sm:$0xff] }
0x16cb   :  { %5317 = vmatprep.subr.mxu1 %v11774_v57  ;;  %5351 = vmatpush3.msra.mxu0 %v12279_v27  ;;  %v12311_v27 = vld [vmem:[#allocation94_spill] sm:$0xff] }
0x16cc   :  { %5318 = vmatpush3.msra.mxu1 %v12280_v11  ;;  %5352 = vmatprep.subr.mxu0 %v11774_v57  ;;  %v12313_v11 = vld [vmem:[#allocation97_spill] sm:$0xff] }
0x16cd   :  { %5319 = vmatprep.subr.mxu1 %v11774_v57  ;;  %5353 = vmatpush3.msra.mxu0 %v12281_v13  ;;  %v12316_v13 = vld [vmem:[#allocation101_spill] sm:$0xff] }
0x16ce   :  { %5320 = vmatpush3.msra.mxu1 %v12282_v38  ;;  %5354 = vmatprep.subr.mxu0 %v11774_v57  ;;  %v12317_v38 = vld [vmem:[#allocation80_spill] sm:$0xff] }
0x16cf   :  { %5321 = vmatprep.subr.mxu1 %v11774_v57  ;;  %5355 = vmatpush3.msra.mxu0 %v12283_v30  ;;  %v12318_v30 = vld [vmem:[#allocation81_spill] sm:$0xff] }
0x16d0   :  { %5322 = vmatpush3.msra.mxu1 %v12284_v46  ;;  %5356 = vmatprep.subr.mxu0 %v11774_v57  ;;  %v12319_v46 = vld [vmem:[#allocation82_spill] sm:$0xff] }
0x16d1   :  { %5323 = vmatprep.subr.mxu1 %v11774_v57  ;;  %5357 = vmatpush3.msra.mxu0 %v12285_v48  ;;  %v12320_v48 = vld [vmem:[#allocation83_spill] sm:$0xff] }
0x16d2   :  { %5324 = vmatpush3.msra.mxu1 %v12286_v50  ;;  %5358 = vmatprep.subr.mxu0 %v11774_v57  ;;  %v12321_v50 = vld [vmem:[#allocation84_spill] sm:$0xff] }
0x16d3   :  { %5325 = vmatprep.subr.mxu1 %v11774_v57  ;;  %5359 = vmatpush3.msra.mxu0 %v12287_v52  ;;  %v12322_v52 = vld [vmem:[#allocation85_spill] sm:$0xff] }
0x16d4   :  { %5326 = vmatpush3.msra.mxu1 %v12288_v55  ;;  %5360 = vmatprep.subr.mxu0 %v11774_v57  ;;  %v12323_v55 = vld [vmem:[#allocation86_spill] sm:$0xff] }
0x16d5   :  { %5327 = vmatprep.subr.mxu1 %v11774_v57  ;;  %5361 = vmatpush3.msra.mxu0 %v12289_v3  ;;  %v12324_v3 = vld [vmem:[#allocation87_spill] sm:$0xff] }
0x16d6   :  { %5328 = vmatpush3.msra.mxu1 %v12290_v40  ;;  %5362 = vmatprep.subr.mxu0 %v11774_v57  ;;  %v12325_v40 = vld [vmem:[#allocation88_spill] sm:$0xff] }
0x16d7   :  { %5329 = vmatprep.subr.mxu1 %v11774_v57  ;;  %5363 = vmatpush3.msra.mxu0 %v12291_v34  ;;  %v12326_v34 = vld [vmem:[#allocation89_spill] sm:$0xff] }
0x16d8   :  { %5330 = vmatpush3.msra.mxu1 %v12292_v12  ;;  %5364 = vmatprep.subr.mxu0 %v11774_v57  ;;  %v12327_v12 = vld [vmem:[#allocation90_spill] sm:$0xff] }
0x16d9   :  { %5331 = vmatprep.subr.mxu1 %v11774_v57  ;;  %5365 = vmatpush3.msra.mxu0 %v12293_v18  ;;  %v12328_v18 = vld [vmem:[#allocation91_spill] sm:$0xff] }
0x16da   :  { %5332 = vmatpush3.msra.mxu1 %v12294_v16  ;;  %5366 = vmatprep.subr.mxu0 %v11774_v57  ;;  %v12329_v16 = vld [vmem:[#allocation93_spill] sm:$0xff] }
0x16db   :  { %5333 = vmatprep.subr.mxu1 %v11774_v57  ;;  %5367 = vmatpush3.msra.mxu0 %v12295_v5  ;;  %v12330_v5 = vld [vmem:[#allocation96_spill] sm:$0xff] }
0x16dc   :  { %5334 = vmatpush3.msra.mxu1 %v12296_v7  ;;  %5368 = vmatprep.subr.mxu0 %v11774_v57  ;;  %v12331_v7 = vld [vmem:[#allocation99_spill] sm:$0xff] }
0x16dd   :  { %5335 = vmatprep.subr.mxu1 %v11774_v57  ;;  %5369 = vmatpush3.msra.mxu0 %v12297_v9  ;;  %v12332_v9 = vld [vmem:[#allocation102_spill] sm:$0xff] }
0x16de   :  { %5336 = vmatpush3.msra.mxu1 %v12298_v29  ;;  %5370 = vmatprep.subr.mxu0 %v11774_v57  ;;  %v9971_v29 = vld [vmem:[%s11324_s4 + $0x1e8] sm:$0xff] }
0x16df   :  { %5337 = vmatprep.subr.mxu1 %v11774_v57  ;;  %5371 = vmatpush3.msra.mxu0 %v12299_v8 }
0x16e0   :  { %5338 = vmatpush3.msra.mxu1 %v12300_v36  ;;  %5372 = vmatprep.subr.mxu0 %v11774_v57 }
0x16e1   :  { %5339 = vmatprep.subr.mxu1 %v11774_v57  ;;  %5373 = vmatpush3.msra.mxu0 %v12301_v39 }
0x16e2   :  { %5340 = vmatpush3.msra.mxu1 %v12302_v51  ;;  %5374 = vmatprep.subr.mxu0 %v11774_v57  ;;  %v12333_v51 = vld [vmem:[#allocation52_spill] sm:$0xff] }
0x16e3   :  { %5375 = vmatpush3.msra.mxu0 %v12303_v21  ;;  %5376 = vmatprep.mubr.msk.f32.mxu0 %vm6244_vm1, %v11774_v57  ;;  %v12334_v21 = vld [vmem:[#allocation103_spill] sm:$0xff] }
0x16e4   :  { %3025 = vmatprep.subr.mxu1 %v12304_v63  ;;  %5379 = vmatprep.subr.mxu0 %v11774_v57  ;;  %v12335_v63 = vld [vmem:[#allocation104_spill] sm:$0xff] }
0x1783   :  { %v2780_v23 = vpop.f32.mrf.mxu1 }
0x1784   :  { %v2857_v35 = vrot.slane %v2780_v23, 3  ;;  %v12336_v23 = vld [vmem:[#allocation105_spill] sm:$0xff] }
0x1785   :  { %v9974_v8 = vpop.f32.mrf.mxu1 }
0x1786   :  { %v2859_v56 = vadd.f32 %v2857_v35, %v12099_v2  ;;  %v12337_v35 = vld [vmem:[#allocation106_spill] sm:$0xff] }
0x1788   :  { %v2860_v14 = vadd.f32 %v2859_v56, %v7567_v20  ;;  %v12338_v56 = vld [vmem:[#allocation107_spill] sm:$0xff] }
0x178a   :  { %v2862_v26 = vsel %vm2861_vm9, %v2860_v14, -inf }
0x178b   :  { %2863 = vmax.xlane.f32.xlu0 %v2862_v26  ;;  %v12340_v26 = vld [vmem:[#allocation109_spill] sm:$0xff] }
0x1814   :  { %v2864_v62 = vpop.xlane.xlu0 %2863 }
0x1815   :  { %v2865_v58 = vsub.f32 %v2860_v14, %v2864_v62  ;;  %v12339_v14 = vld [vmem:[#allocation108_spill] sm:$0xff]  ;;  %v12341_v62 = vld [vmem:[#allocation110_spill] sm:$0xff] }
0x1817   :  { %v2866_v15 = vmul.f32 1.442695, %v2865_v58  ;;  %v12342_v58 = vld [vmem:[#allocation111_spill] sm:$0xff] }
0x1819   :  { %5699 = vpow2.f32 %v2866_v15  ;;  %v12343_v15 = vld [vmem:[#allocation112_spill] sm:$0xff] }
0x1826   :  { %v5700_v22 = vpop.eup %5699 }
0x1827   :  { %v2868_v43 = vsel %vm2861_vm9, %v5700_v22, 0.0 }
0x1828   :  { %2869 = vadd.xlane.f32.xlu1 %v2868_v43  ;;  %v12345_v43 = vld [vmem:[#allocation114_spill] sm:$0xff] }
0x18b1   :  { %v2870_v45 = vpop.xlane.xlu1 %2869 }
0x18b2   :  { %5701 = vrcp.f32 %v2870_v45  ;;  %v12346_v45 = vld [vmem:[#allocation115_spill] sm:$0xff] }
0x18bf   :  { %v5702_v49 = vpop.eup %5701 }
0x18c0   :  { %v2872_v59 = vmul.f32 %v5702_v49, %v5700_v22  ;;  %v12344_v22 = vld [vmem:[#allocation113_spill] sm:$0xff]  ;;  %v12347_v49 = vld [vmem:[#allocation116_spill] sm:$0xff] }
0x18c2   :  { %v2874_v54 = vrot.slane %v2872_v59, 5  ;;  %v9934_v4 = vsel %vm4170_vm10, %v9470_v19, %v2872_v59  ;;  %v12310_v19 = vld [vmem:[#allocation92_spill] sm:$0xff] }
0x18c3   :  { %v10012_v59 = vld [vmem:[%s11324_s4 + $0x1f8] sm:$0xff] }
0x18c4   :  { %5342 = vmatmul.mubr.f32.vlgmr.msra.gmra.mxu1 %v2874_v54  ;;  %v10015_v54 = vpop.f32.mrf.mxu0 }
0x18c5   :  { %3026 = vmatpush1.msra.mxu1 %v9475_v25  ;;  %3089 = vmatprep.mubr.f32.mxu1 %v11774_v57  ;;  %v12312_v25 = vld [vmem:[#allocation95_spill] sm:$0xff] }
0x18c6   :  { %3027 = vmatprep.subr.mxu1 %v9482_v1  ;;  %v12314_v1 = vld [vmem:[#allocation98_spill] sm:$0xff] }
0x18c7   :  { %3028 = vmatpush1.msra.mxu1 %v9488_v41  ;;  %v12315_v41 = vld [vmem:[#allocation100_spill] sm:$0xff] }
0x18c8   :  { %3029 = vmatprep.subr.mxu1 %v12305_v6  ;;  %v10017_v6 = vpop.f32.mrf.mxu0 }
0x18c9   :  { %3030 = vmatpush1.msra.mxu1 %v12306_v10 }
0x18ca   :  { %3031 = vmatprep.subr.mxu1 %v12307_v24 }
0x18cb   :  { %3032 = vmatpush1.msra.mxu1 %v12308_v60 }
0x18cc   :  { %3033 = vmatprep.subr.mxu1 %v12309_v37 }
0x18cd   :  { %3034 = vmatpush1.msra.mxu1 %v12310_v19 }
0x18ce   :  { %3035 = vmatprep.subr.mxu1 %v12311_v27 }
0x18cf   :  { %3036 = vmatpush1.msra.mxu1 %v12312_v25  ;;  %v10024_v25 = vld [vmem:[%s11324_s4 + $0x1e0] sm:$0xff] }
0x18d0   :  { %3037 = vmatprep.subr.mxu1 %v12313_v11  ;;  %v10030_v11 = vld [vmem:[%s11324_s4 + $0x1f0] sm:$0xff] }
0x18d1   :  { %3038 = vmatpush1.msra.mxu1 %v12314_v1  ;;  %v10036_v1 = vld [vmem:[%s11324_s4 + $0x1c8] sm:$0xff] }
0x18d2   :  { %3039 = vmatprep.subr.mxu1 %v12315_v41  ;;  %v10042_v41 = vld [vmem:[%s11324_s4 + $0x1d8] sm:$0xff] }
0x18d3   :  { %3040 = vmatpush1.msra.mxu1 %v12316_v13  ;;  %v10048_v13 = vld [vmem:[%s11324_s4 + $0x1c0] sm:$0xff] }
0x18d4   :  { %3041 = vmatprep.subr.mxu1 %v12317_v38  ;;  %v10054_v38 = vld [vmem:[%s11324_s4 + $0x1d0] sm:$0xff] }
0x18d5   :  { %3042 = vmatpush1.msra.mxu1 %v12318_v30  ;;  %v10060_v30 = vld [vmem:[%s11324_s4 + $0x1a8] sm:$0xff] }
0x18d6   :  { %3043 = vmatprep.subr.mxu1 %v12319_v46  ;;  %v10066_v46 = vld [vmem:[%s11324_s4 + $0x1b8] sm:$0xff] }
0x18d7   :  { %3044 = vmatpush1.msra.mxu1 %v12320_v48  ;;  %v10072_v48 = vld [vmem:[%s11324_s4 + $0x1a0] sm:$0xff] }
0x18d8   :  { %3045 = vmatprep.subr.mxu1 %v12321_v50  ;;  %v10078_v50 = vld [vmem:[%s11324_s4 + $0x1b0] sm:$0xff] }
0x18d9   :  { %3046 = vmatpush1.msra.mxu1 %v12322_v52  ;;  %v10084_v52 = vld [vmem:[%s11324_s4 + $0x188] sm:$0xff] }
0x18da   :  { %3047 = vmatprep.subr.mxu1 %v12323_v55  ;;  %v10090_v55 = vld [vmem:[%s11324_s4 + $0x198] sm:$0xff] }
0x18db   :  { %3048 = vmatpush1.msra.mxu1 %v12324_v3  ;;  %v10096_v3 = vld [vmem:[%s11324_s4 + $0x180] sm:$0xff] }
0x18dc   :  { %3049 = vmatprep.subr.mxu1 %v12325_v40  ;;  %v10102_v40 = vld [vmem:[%s11324_s4 + $0x190] sm:$0xff] }
0x18dd   :  { %3050 = vmatpush1.msra.mxu1 %v12326_v34  ;;  %v10108_v34 = vld [vmem:[%s11324_s4 + $0x168] sm:$0xff] }
0x18de   :  { %3051 = vmatprep.subr.mxu1 %v12327_v12  ;;  %v10114_v12 = vld [vmem:[%s11324_s4 + $0x178] sm:$0xff] }
0x18df   :  { %3052 = vmatpush1.msra.mxu1 %v12328_v18  ;;  %v10120_v18 = vld [vmem:[%s11324_s4 + $0x160] sm:$0xff] }
0x18e0   :  { %3053 = vmatprep.subr.mxu1 %v12329_v16  ;;  %v10126_v16 = vld [vmem:[%s11324_s4 + $0x170] sm:$0xff] }
0x18e1   :  { %3054 = vmatpush1.msra.mxu1 %v12330_v5  ;;  %v10132_v5 = vld [vmem:[%s11324_s4 + $0x148] sm:$0xff] }
0x18e2   :  { %3055 = vmatprep.subr.mxu1 %v12331_v7  ;;  %v10138_v7 = vld [vmem:[%s11324_s4 + $0x158] sm:$0xff] }
0x18e3   :  { %3056 = vmatpush1.msra.mxu1 %v12332_v9  ;;  %v10144_v9 = vld [vmem:[%s11324_s4 + $0x140] sm:$0xff] }
0x18e4   :  { %3190 = vmatprep.subr.mxu1 %v9971_v29 }
0x1984   :  { %v2942_v36 = vpop.f32.mrf.mxu1 }
0x1985   :  { %5377 = vmatmul.mubr.f32.vlgmr.msra.gmra.mxu0 %v2942_v36  ;;  %v10150_v36 = vld [vmem:[%s11324_s4 + $0x150] sm:$0xff] }
0x1986   :  { %v5343_v39 = vpop.f32.mrf.mxu1  ;;  %5380 = vmatpush3.msra.mxu0 %v12333_v51  ;;  %5411 = vmatprep.mubr.msk.f32.mxu0 %vm6244_vm1, %v11774_v57  ;;  %v10162_v51 = vld [vmem:[%s11324_s4 + $0x138] sm:$0xff] }
0x1987   :  { %5381 = vmatprep.subr.mxu0 %v11774_v57  ;;  %v10156_v39 = vld [vmem:[%s11324_s4 + $0x128] sm:$0xff] }
0x1988   :  { %5382 = vmatpush3.msra.mxu0 %v12334_v21  ;;  %v10168_v21 = vld [vmem:[%s11324_s4 + $0x120] sm:$0xff] }
0x1989   :  { %5383 = vmatprep.subr.mxu0 %v11774_v57 }
0x198a   :  { %5384 = vmatpush3.msra.mxu0 %v12335_v63  ;;  %v10174_v63 = vld [vmem:[%s11324_s4 + $0x130] sm:$0xff] }
0x198b   :  { %5385 = vmatprep.subr.mxu0 %v11774_v57 }
0x198c   :  { %5386 = vmatpush3.msra.mxu0 %v12336_v23  ;;  %v10180_v23 = vld [vmem:[%s11324_s4 + $0x108] sm:$0xff] }
0x198d   :  { %5387 = vmatprep.subr.mxu0 %v11774_v57 }
0x198e   :  { %5388 = vmatpush3.msra.mxu0 %v12337_v35  ;;  %v10186_v35 = vld [vmem:[%s11324_s4 + $0x118] sm:$0xff] }
0x198f   :  { %5389 = vmatprep.subr.mxu0 %v11774_v57 }
0x1990   :  { %5390 = vmatpush3.msra.mxu0 %v12338_v56  ;;  %v10192_v56 = vld [vmem:[%s11324_s4 + $0x100] sm:$0xff] }
0x1991   :  { %5391 = vmatprep.subr.mxu0 %v11774_v57 }
0x1992   :  { %5392 = vmatpush3.msra.mxu0 %v12339_v14  ;;  %v10198_v14 = vld [vmem:[%s11324_s4 + $0x110] sm:$0xff] }
0x1993   :  { %5393 = vmatprep.subr.mxu0 %v11774_v57 }
0x1994   :  { %5394 = vmatpush3.msra.mxu0 %v12340_v26  ;;  %v10204_v26 = vld [vmem:[%s11324_s4 + $0xe8] sm:$0xff] }
0x1995   :  { %5395 = vmatprep.subr.mxu0 %v11774_v57 }
0x1996   :  { %5396 = vmatpush3.msra.mxu0 %v12341_v62  ;;  %v10210_v62 = vld [vmem:[%s11324_s4 + $0xf8] sm:$0xff] }
0x1997   :  { %5397 = vmatprep.subr.mxu0 %v11774_v57  ;;  %12348 = vst [vmem:[#allocation11_spill] sm:$0xff] %v10210_v62 }
0x1998   :  { %5398 = vmatpush3.msra.mxu0 %v12342_v58  ;;  %v10216_v58 = vld [vmem:[%s11324_s4 + $0xe0] sm:$0xff] }
0x1999   :  { %5399 = vmatprep.subr.mxu0 %v11774_v57  ;;  %12349 = vst [vmem:[#allocation35_spill] sm:$0xff] %v10216_v58 }
0x199a   :  { %5400 = vmatpush3.msra.mxu0 %v12343_v15  ;;  %v10222_v15 = vld [vmem:[%s11324_s4 + $0xf0] sm:$0xff] }
0x199b   :  { %5401 = vmatprep.subr.mxu0 %v11774_v57  ;;  %12350 = vst [vmem:[#allocation12_spill] sm:$0xff] %v10222_v15 }
0x199c   :  { %5402 = vmatpush3.msra.mxu0 %v12344_v22  ;;  %v10228_v22 = vld [vmem:[%s11324_s4 + $0xc8] sm:$0xff] }
0x199d   :  { %5403 = vmatprep.subr.mxu0 %v11774_v57  ;;  %12351 = vst [vmem:[#allocation36_spill] sm:$0xff] %v10228_v22 }
0x199e   :  { %5404 = vmatpush3.msra.mxu0 %v12345_v43  ;;  %v10234_v43 = vld [vmem:[%s11324_s4 + $0xd8] sm:$0xff] }
0x199f   :  { %5405 = vmatprep.subr.mxu0 %v11774_v57  ;;  %12352 = vst [vmem:[#allocation79_spill] sm:$0xff] %v10234_v43 }
0x19a0   :  { %5406 = vmatpush3.msra.mxu0 %v12346_v45  ;;  %v10240_v45 = vld [vmem:[%s11324_s4 + $0xc0] sm:$0xff] }
0x19a1   :  { %5407 = vmatprep.subr.mxu0 %v11774_v57  ;;  %12353 = vst [vmem:[#allocation13_spill] sm:$0xff] %v10240_v45 }
0x19a2   :  { %5408 = vmatpush3.msra.mxu0 %v12347_v49  ;;  %v10246_v49 = vld [vmem:[%s11324_s4 + $0xd0] sm:$0xff] }
0x19a3   :  { %5409 = vmatprep.subr.mxu0 %v11774_v57  ;;  %12354 = vst [vmem:[#allocation16_spill] sm:$0xff] %v10246_v49 }
0x19a4   :  { %5410 = vmatpush3.msra.mxu0 %v9772_v17 }
0x19a5   :  { %3261 = vmatprep.subr.mxu0 %v10012_v59 }
0x1a45   :  { %v3012_v10 = vpop.f32.mrf.mxu0 }
0x1a46   :  { %v3017_v24 = vrot.slane %v3012_v10, 3  ;;  %v10252_v10 = vld [vmem:[%s11324_s4 + $0xa8] sm:$0xff] }
0x1a47   :  { %v5378_v60 = vpop.f32.mrf.mxu0  ;;  %12355 = vst [vmem:[#allocation37_spill] sm:$0xff] %v10252_v10 }
0x1a48   :  { %v3019_v37 = vadd.f32 %v3017_v24, %v7378_v61  ;;  %v10258_v24 = vld [vmem:[%s11324_s4 + $0xb8] sm:$0xff]  ;;  %v10264_v60 = vld [vmem:[%s11324_s4 + $0xa0] sm:$0xff] }
0x1a49   :  { %12356 = vst [vmem:[#allocation17_spill] sm:$0xff] %v10258_v24  ;;  %12357 = vst [vmem:[#allocation38_spill] sm:$0xff] %v10264_v60 }
0x1a4a   :  { %v3020_v19 = vadd.f32 %v3019_v37, %v7659_v42  ;;  %v10270_v37 = vld [vmem:[%s11324_s4 + $0xb0] sm:$0xff] }
0x1a4b   :  { %12358 = vst [vmem:[#allocation18_spill] sm:$0xff] %v10270_v37 }
0x1a4c   :  { %v3021_v27 = vmax.f32 %v3020_v19, 0.0  ;;  %v10276_v19 = vld [vmem:[%s11324_s4 + $0x88] sm:$0xff] }
0x1a4d   :  { %12359 = vst [vmem:[#allocation39_spill] sm:$0xff] %v10276_v19 }
0x1a4e   :  { %v3023_v17 = vrot.slane %v3021_v27, 5  ;;  %v10282_v27 = vld [vmem:[%s11324_s4 + $0x98] sm:$0xff] }
0x1a4f   :  { %12360 = vst [vmem:[#allocation19_spill] sm:$0xff] %v10282_v27 }
0x1a50   :  { %3090 = vmatmul.mubr.f32.vlgmr.msra.gmra.mxu1 %v3023_v17  ;;  %5412 = vmatmul.mubr.f32.vlgmr.msra.gmra.mxu0 %v3023_v17  ;;  %v10288_v17 = vld [vmem:[%s11324_s4 + $0x80] sm:$0xff] }
0x1a51   :  { %3191 = vmatpush1.msra.mxu1 %v10024_v25  ;;  %3262 = vmatpush1.msra.mxu0 %v10030_v11  ;;  %12361 = vst [vmem:[#allocation40_spill] sm:$0xff] %v10288_v17 }
0x1a52   :  { %3192 = vmatprep.subr.mxu1 %v10036_v1  ;;  %3263 = vmatprep.subr.mxu0 %v10042_v41 }
0x1a53   :  { %3193 = vmatpush1.msra.mxu1 %v10048_v13  ;;  %3264 = vmatpush1.msra.mxu0 %v10054_v38 }
0x1a54   :  { %3194 = vmatprep.subr.mxu1 %v10060_v30  ;;  %3265 = vmatprep.subr.mxu0 %v10066_v46 }
0x1a55   :  { %3195 = vmatpush1.msra.mxu1 %v10072_v48  ;;  %3266 = vmatpush1.msra.mxu0 %v10078_v50 }
0x1a56   :  { %3196 = vmatprep.subr.mxu1 %v10084_v52  ;;  %3267 = vmatprep.subr.mxu0 %v10090_v55 }
0x1a57   :  { %3197 = vmatpush1.msra.mxu1 %v10096_v3  ;;  %3268 = vmatpush1.msra.mxu0 %v10102_v40 }
0x1a58   :  { %3198 = vmatprep.subr.mxu1 %v10108_v34  ;;  %3269 = vmatprep.subr.mxu0 %v10114_v12 }
0x1a59   :  { %3199 = vmatpush1.msra.mxu1 %v10120_v18  ;;  %3270 = vmatpush1.msra.mxu0 %v10126_v16 }
0x1a5a   :  { %3200 = vmatprep.subr.mxu1 %v10132_v5  ;;  %3271 = vmatprep.subr.mxu0 %v10138_v7 }
0x1a5b   :  { %3201 = vmatpush1.msra.mxu1 %v10144_v9  ;;  %3272 = vmatpush1.msra.mxu0 %v10150_v36 }
0x1a5c   :  { %3202 = vmatprep.subr.mxu1 %v10156_v39  ;;  %3273 = vmatprep.subr.mxu0 %v10162_v51 }
0x1a5d   :  { %3203 = vmatpush1.msra.mxu1 %v10168_v21  ;;  %3274 = vmatpush1.msra.mxu0 %v10174_v63 }
0x1a5e   :  { %3204 = vmatprep.subr.mxu1 %v10180_v23  ;;  %3275 = vmatprep.subr.mxu0 %v10186_v35 }
0x1a5f   :  { %3205 = vmatpush1.msra.mxu1 %v10192_v56  ;;  %3276 = vmatpush1.msra.mxu0 %v10198_v14 }
0x1a60   :  { %3206 = vmatprep.subr.mxu1 %v10204_v26  ;;  %3277 = vmatprep.subr.mxu0 %v10210_v62 }
0x1a61   :  { %3207 = vmatpush1.msra.mxu1 %v10216_v58  ;;  %3278 = vmatpush1.msra.mxu0 %v10222_v15 }
0x1a62   :  { %3208 = vmatprep.subr.mxu1 %v10228_v22  ;;  %3279 = vmatprep.subr.mxu0 %v10234_v43 }
0x1a63   :  { %3209 = vmatpush1.msra.mxu1 %v10240_v45  ;;  %3280 = vmatpush1.msra.mxu0 %v10246_v49 }
0x1a64   :  { %3210 = vmatprep.subr.mxu1 %v10252_v10  ;;  %3281 = vmatprep.subr.mxu0 %v10258_v24 }
0x1a65   :  { %3211 = vmatpush1.msra.mxu1 %v10264_v60  ;;  %3282 = vmatpush1.msra.mxu0 %v10270_v37 }
0x1a66   :  { %3212 = vmatprep.subr.mxu1 %v10276_v19  ;;  %3283 = vmatprep.subr.mxu0 %v10282_v27  ;;  %v10300_v19 = vld [vmem:[%s11324_s4 + $0x68] sm:$0xff]  ;;  %v10306_v27 = vld [vmem:[%s11324_s4 + $0x78] sm:$0xff] }
0x1a67   :  { %3213 = vmatpush1.msra.mxu1 %v10288_v17  ;;  %3284 = vmatpush1.msra.mxu0 %v10294_v0  ;;  %12363 = vst [vmem:[#allocation41_spill] sm:$0xff] %v10300_v19  ;;  %12364 = vst [vmem:[#allocation21_spill] sm:$0xff] %v10306_v27  ;;  %v10312_v17 = vld [vmem:[%s11324_s4 + $0x60] sm:$0xff]  ;;  %v10318_v0 = vld [vmem:[%s11324_s4 + $0x70] sm:$0xff] }
0x1a68   :  { %3214 = vmatprep.subr.mxu1 %v10300_v19  ;;  %3285 = vmatprep.subr.mxu0 %v10306_v27  ;;  %12365 = vst [vmem:[#allocation42_spill] sm:$0xff] %v10312_v17  ;;  %12366 = vst [vmem:[#allocation22_spill] sm:$0xff] %v10318_v0  ;;  %v10324_v19 = vld [vmem:[%s11324_s4 + $0x48] sm:$0xff]  ;;  %v10330_v27 = vld [vmem:[%s11324_s4 + $0x58] sm:$0xff] }
0x1a69   :  { %3215 = vmatpush1.msra.mxu1 %v10312_v17  ;;  %3286 = vmatpush1.msra.mxu0 %v10318_v0  ;;  %12367 = vst [vmem:[#allocation43_spill] sm:$0xff] %v10324_v19  ;;  %12368 = vst [vmem:[#allocation23_spill] sm:$0xff] %v10330_v27  ;;  %v10336_v17 = vld [vmem:[%s11324_s4 + $0x40] sm:$0xff]  ;;  %v10342_v0 = vld [vmem:[%s11324_s4 + $0x50] sm:$0xff] }
0x1a6a   :  { %3216 = vmatprep.subr.mxu1 %v10324_v19  ;;  %3287 = vmatprep.subr.mxu0 %v10330_v27  ;;  %12369 = vst [vmem:[#allocation44_spill] sm:$0xff] %v10336_v17  ;;  %12370 = vst [vmem:[#allocation24_spill] sm:$0xff] %v10342_v0  ;;  %v10348_v19 = vld [vmem:[%s11324_s4 + $0x28] sm:$0xff]  ;;  %v10354_v27 = vld [vmem:[%s11324_s4 + $0x38] sm:$0xff] }
0x1a6b   :  { %3217 = vmatpush1.msra.mxu1 %v10336_v17  ;;  %3288 = vmatpush1.msra.mxu0 %v10342_v0  ;;  %12371 = vst [vmem:[#allocation45_spill] sm:$0xff] %v10348_v19  ;;  %12372 = vst [vmem:[#allocation25_spill] sm:$0xff] %v10354_v27  ;;  %v10360_v17 = vld [vmem:[%s11324_s4 + $0x20] sm:$0xff]  ;;  %v10366_v0 = vld [vmem:[%s11324_s4 + $0x30] sm:$0xff] }
0x1a6c   :  { %3218 = vmatprep.subr.mxu1 %v10348_v19  ;;  %3289 = vmatprep.subr.mxu0 %v10354_v27  ;;  %12373 = vst [vmem:[#allocation46_spill] sm:$0xff] %v10360_v17  ;;  %12374 = vst [vmem:[#allocation26_spill] sm:$0xff] %v10366_v0  ;;  %v10372_v19 = vld [vmem:[%s11324_s4 + $0x8] sm:$0xff]  ;;  %v10378_v27 = vld [vmem:[%s11324_s4 + $0x18] sm:$0xff] }
0x1a6d   :  { %3219 = vmatpush1.msra.mxu1 %v10360_v17  ;;  %3290 = vmatpush1.msra.mxu0 %v10366_v0  ;;  %12375 = vst [vmem:[#allocation47_spill] sm:$0xff] %v10372_v19  ;;  %12376 = vst [vmem:[#allocation27_spill] sm:$0xff] %v10378_v27  ;;  %v10384_v17 = vld [vmem:[%s11324_s4] sm:$0xff] }
0x1a6e   :  { %3220 = vmatprep.subr.mxu1 %v10372_v19  ;;  %3291 = vmatprep.subr.mxu0 %v10378_v27  ;;  %12377 = vst [vmem:[#allocation28_spill] sm:$0xff] %v10384_v17  ;;  %v10391_v19 = vld [vmem:[%s11324_s4 + $0x10] sm:$0xff] }
0x1a6f   :  { %3221 = vmatpush1.msra.mxu1 %v10384_v17  ;;  %3254 = vmatprep.mubr.f32.mxu1 %v11774_v57  ;;  %12378 = vst [vmem:[#allocation29_spill] sm:$0xff] %v10391_v19  ;;  %v3166_v17 = vadd.f32 %v9974_v8, %v7466_v31 }
0x1a70   :  { %3292 = vmatpush1.msra.mxu0 %v10391_v19  ;;  %3325 = vmatprep.mubr.f32.mxu0 %v11774_v57  ;;  %v3167_v19 = vadd.f32 %v10015_v54, %v7480_v53 }
0x1a71   :  { %5414 = vmatprep.subr.mxu1 %v11774_v57  ;;  %5449 = vmatprep.subr.mxu0 %v11774_v57 }
0x1b10   :  { %v3091_v27 = vpop.f32.mrf.mxu1  ;;  %v3162_v0 = vpop.f32.mrf.mxu0 }
0x1b11   :  { %v3092_v37 = vadd.f32 %v3091_v27, %v7469_v33  ;;  %v3168_v27 = vadd.f32 %v10017_v6, %v7485_v32  ;;  %v10423_v6 = vld [vmem:[%s11325_s5 + $0x78] sm:$0xff] }
0x1b12   :  { %v3093_v60 = vpop.f32.mrf.mxu1  ;;  %v5413_v24 = vpop.f32.mrf.mxu0 }
0x1b13   :  { %v3169_v10 = vadd.f32 %v3166_v17, %v3092_v37  ;;  %v3094_v45 = vadd.f32 %v3093_v60, %v7477_v47  ;;  %v10451_v17 = vld [vmem:[%s11325_s5 + $0x68] sm:$0xff] }
0x1b14   :  { %12379 = vst [vmem:[#allocation50_spill] sm:$0xff] %v10451_v17 }
0x1b15   :  { %v4370_v49 = vmul.f32 -1.442695, %v3169_v10  ;;  %v3176_v43 = vadd.f32 %v3167_v19, %v3094_v45  ;;  %v3163_v10 = vadd.f32 %v3162_v0, %v7487_v44  ;;  %v10414_v0 = vld [vmem:[%s11322_s2 + $0x78] sm:$0xff]  ;;  %v10443_v19 = vld [vmem:[%s11322_s2 + $0x68] sm:$0xff] }
0x1b17   :  { %5703 = vpow2.f32 %v4370_v49  ;;  %v4371_v22 = vmul.f32 -1.442695, %v3176_v43 }
0x1b19   :  { %5705 = vpow2.f32 %v4371_v22 }
0x1b24   :  { %v5704_v15 = vpop.eup %5703 }
0x1b25   :  { %v3173_v58 = vadd.f32 1.0, %v5704_v15 }
0x1b26   :  { %v5706_v62 = vpop.eup %5705 }
0x1b27   :  { %5707 = vrcp.f32 %v3173_v58  ;;  %v3180_v8 = vadd.f32 1.0, %v5706_v62  ;;  %v10429_v62 = vld [vmem:[%s11322_s2 + $0x70] sm:$0xff] }
0x1b28   :  { %v10437_v58 = vld [vmem:[%s11325_s5 + $0x70] sm:$0xff] }
0x1b29   :  { %5709 = vrcp.f32 %v3180_v8  ;;  %v10457_v8 = vld [vmem:[%s11322_s2 + $0x60] sm:$0xff] }
0x1b2a   :  { %12380 = vst [vmem:[#allocation30_spill] sm:$0xff] %v10457_v8 }
0x1b34   :  { %v5708_v24 = vpop.eup %5707 }
0x1b35   :  { %v3183_v37 = vmul.f32 %v5708_v24, %v3168_v27  ;;  %v10465_v27 = vld [vmem:[%s11325_s5 + $0x60] sm:$0xff]  ;;  %v10471_v24 = vld [vmem:[%s11322_s2 + $0x58] sm:$0xff] }
0x1b36   :  { %v5710_v54 = vpop.eup %5709  ;;  %12381 = vst [vmem:[#allocation51_spill] sm:$0xff] %v10465_v27  ;;  %12382 = vst [vmem:[#allocation31_spill] sm:$0xff] %v10471_v24 }
0x1b37   :  { %v3184_v60 = vadd.f32 %v3183_v37, %v3163_v10  ;;  %v3186_v49 = vsub.f32 1.0, %v5710_v54  ;;  %v3188_v22 = vmul.f32 %v5710_v54, %v9858_v28  ;;  %v10479_v10 = vld [vmem:[%s11325_s5 + $0x58] sm:$0xff]  ;;  %v10485_v37 = vld [vmem:[%s11322_s2 + $0x50] sm:$0xff]  ;;  %v10499_v54 = vld [vmem:[%s11322_s2 + $0x48] sm:$0xff] }
0x1b38   :  { %12383 = vst [vmem:[#allocation53_spill] sm:$0xff] %v10479_v10  ;;  %12384 = vst [vmem:[#allocation54_spill] sm:$0xff] %v10485_v37  ;;  %v10535_v28 = vld [vmem:[%s11325_s5 + $0x38] sm:$0xff] }
0x1b39   :  { %5711 = vtanh.f32 %v3184_v60  ;;  %v10493_v60 = vld [vmem:[%s11325_s5 + $0x50] sm:$0xff]  ;;  %12386 = vst [vmem:[#allocation55_spill] sm:$0xff] %v10499_v54  ;;  %12391 = vst [vmem:[#allocation60_spill] sm:$0xff] %v10535_v28 }
0x1b3a   :  { %12385 = vst [vmem:[#allocation15_spill] sm:$0xff] %v10493_v60 }
0x1b46   :  { %v5712_v45 = vpop.eup %5711 }
0x1b47   :  { %v3187_v43 = vmul.f32 %v5712_v45, %v3186_v49  ;;  %v10507_v49 = vld [vmem:[%s11325_s5 + $0x48] sm:$0xff]  ;;  %v10513_v45 = vld [vmem:[%s11322_s2 + $0x40] sm:$0xff] }
0x1b48   :  { %12387 = vst [vmem:[#allocation56_spill] sm:$0xff] %v10507_v49  ;;  %12388 = vst [vmem:[#allocation57_spill] sm:$0xff] %v10513_v45 }
0x1b49   :  { %v10407_v15 = vadd.f32 %v3188_v22, %v3187_v43  ;;  %v10521_v43 = vld [vmem:[%s11325_s5 + $0x40] sm:$0xff]  ;;  %v10527_v22 = vld [vmem:[%s11322_s2 + $0x38] sm:$0xff] }
0x1b4a   :  { %12389 = vst [vmem:[#allocation58_spill] sm:$0xff] %v10521_v43  ;;  %12390 = vst [vmem:[#allocation59_spill] sm:$0xff] %v10527_v22 }
0x1b4b   :  { %3255 = vmatmul.mubr.f32.vlgmr.msra.gmra.mxu1 %v10407_v15  ;;  %3326 = vmatmul.mubr.f32.vlgmr.msra.gmra.mxu0 %v10407_v15 }
0x1b4c   :  { %5415 = vmatpush3.msra.mxu1 %v10414_v0  ;;  %5446 = vmatprep.mubr.msk.f32.mxu1 %vm6244_vm1, %v11774_v57 }
0x1b4d   :  { %5416 = vmatprep.subr.mxu1 %v11774_v57  ;;  %5450 = vmatpush3.msra.mxu0 %v10423_v6 }
0x1b4e   :  { %5417 = vmatpush3.msra.mxu1 %v10429_v62  ;;  %5451 = vmatprep.subr.mxu0 %v11774_v57 }
0x1b4f   :  { %5418 = vmatprep.subr.mxu1 %v11774_v57  ;;  %5452 = vmatpush3.msra.mxu0 %v10437_v58 }
0x1b50   :  { %5419 = vmatpush3.msra.mxu1 %v10443_v19  ;;  %5453 = vmatprep.subr.mxu0 %v11774_v57 }
0x1b51   :  { %5420 = vmatprep.subr.mxu1 %v11774_v57  ;;  %5454 = vmatpush3.msra.mxu0 %v10451_v17 }
0x1b52   :  { %5421 = vmatpush3.msra.mxu1 %v10457_v8  ;;  %5455 = vmatprep.subr.mxu0 %v11774_v57 }
0x1b53   :  { %5422 = vmatprep.subr.mxu1 %v11774_v57  ;;  %5456 = vmatpush3.msra.mxu0 %v10465_v27 }
0x1b54   :  { %5423 = vmatpush3.msra.mxu1 %v10471_v24  ;;  %5457 = vmatprep.subr.mxu0 %v11774_v57 }
0x1b55   :  { %5424 = vmatprep.subr.mxu1 %v11774_v57  ;;  %5458 = vmatpush3.msra.mxu0 %v10479_v10 }
0x1b56   :  { %5425 = vmatpush3.msra.mxu1 %v10485_v37  ;;  %5459 = vmatprep.subr.mxu0 %v11774_v57 }
0x1b57   :  { %5426 = vmatprep.subr.mxu1 %v11774_v57  ;;  %5460 = vmatpush3.msra.mxu0 %v10493_v60 }
0x1b58   :  { %5427 = vmatpush3.msra.mxu1 %v10499_v54  ;;  %5461 = vmatprep.subr.mxu0 %v11774_v57 }
0x1b59   :  { %5428 = vmatprep.subr.mxu1 %v11774_v57  ;;  %5462 = vmatpush3.msra.mxu0 %v10507_v49 }
0x1b5a   :  { %5429 = vmatpush3.msra.mxu1 %v10513_v45  ;;  %5463 = vmatprep.subr.mxu0 %v11774_v57 }
0x1b5b   :  { %5430 = vmatprep.subr.mxu1 %v11774_v57  ;;  %5464 = vmatpush3.msra.mxu0 %v10521_v43  ;;  %v10541_v43 = vld [vmem:[%s11322_s2 + $0x30] sm:$0xff] }
0x1b5c   :  { %5431 = vmatpush3.msra.mxu1 %v10527_v22  ;;  %5465 = vmatprep.subr.mxu0 %v11774_v57  ;;  %12392 = vst [vmem:[#allocation61_spill] sm:$0xff] %v10541_v43  ;;  %v10549_v22 = vld [vmem:[%s11325_s5 + $0x30] sm:$0xff] }
0x1b5d   :  { %5432 = vmatprep.subr.mxu1 %v11774_v57  ;;  %5466 = vmatpush3.msra.mxu0 %v10535_v28  ;;  %12393 = vst [vmem:[#allocation62_spill] sm:$0xff] %v10549_v22  ;;  %v10555_v28 = vld [vmem:[%s11322_s2 + $0x28] sm:$0xff] }
0x1b5e   :  { %5433 = vmatpush3.msra.mxu1 %v10541_v43  ;;  %5467 = vmatprep.subr.mxu0 %v11774_v57  ;;  %12394 = vst [vmem:[#allocation63_spill] sm:$0xff] %v10555_v28  ;;  %v10563_v43 = vld [vmem:[%s11325_s5 + $0x28] sm:$0xff] }
0x1b5f   :  { %5434 = vmatprep.subr.mxu1 %v11774_v57  ;;  %5468 = vmatpush3.msra.mxu0 %v10549_v22  ;;  %12395 = vst [vmem:[#allocation64_spill] sm:$0xff] %v10563_v43  ;;  %v10569_v22 = vld [vmem:[%s11322_s2 + $0x20] sm:$0xff] }
0x1b60   :  { %5435 = vmatpush3.msra.mxu1 %v10555_v28  ;;  %5469 = vmatprep.subr.mxu0 %v11774_v57  ;;  %12396 = vst [vmem:[#allocation65_spill] sm:$0xff] %v10569_v22  ;;  %v10577_v28 = vld [vmem:[%s11325_s5 + $0x20] sm:$0xff] }
0x1b61   :  { %5436 = vmatprep.subr.mxu1 %v11774_v57  ;;  %5470 = vmatpush3.msra.mxu0 %v10563_v43  ;;  %12397 = vst [vmem:[#allocation66_spill] sm:$0xff] %v10577_v28  ;;  %v10583_v43 = vld [vmem:[%s11322_s2 + $0x18] sm:$0xff] }
0x1b62   :  { %5437 = vmatpush3.msra.mxu1 %v10569_v22  ;;  %5471 = vmatprep.subr.mxu0 %v11774_v57  ;;  %12398 = vst [vmem:[#allocation67_spill] sm:$0xff] %v10583_v43  ;;  %v10591_v22 = vld [vmem:[%s11325_s5 + $0x18] sm:$0xff] }
0x1b63   :  { %5438 = vmatprep.subr.mxu1 %v11774_v57  ;;  %5472 = vmatpush3.msra.mxu0 %v10577_v28  ;;  %12399 = vst [vmem:[#allocation68_spill] sm:$0xff] %v10591_v22  ;;  %v10597_v28 = vld [vmem:[%s11322_s2 + $0x10] sm:$0xff] }
0x1b64   :  { %5439 = vmatpush3.msra.mxu1 %v10583_v43  ;;  %5473 = vmatprep.subr.mxu0 %v11774_v57  ;;  %12400 = vst [vmem:[#allocation69_spill] sm:$0xff] %v10597_v28  ;;  %v10605_v43 = vld [vmem:[%s11325_s5 + $0x10] sm:$0xff] }
0x1b65   :  { %5440 = vmatprep.subr.mxu1 %v11774_v57  ;;  %5474 = vmatpush3.msra.mxu0 %v10591_v22  ;;  %12401 = vst [vmem:[#allocation70_spill] sm:$0xff] %v10605_v43  ;;  %v10611_v22 = vld [vmem:[%s11322_s2 + $0x8] sm:$0xff] }
0x1b66   :  { %5441 = vmatpush3.msra.mxu1 %v10597_v28  ;;  %5475 = vmatprep.subr.mxu0 %v11774_v57  ;;  %12402 = vst [vmem:[#allocation71_spill] sm:$0xff] %v10611_v22  ;;  %v10619_v28 = vld [vmem:[%s11325_s5 + $0x8] sm:$0xff] }
0x1b67   :  { %5442 = vmatprep.subr.mxu1 %v11774_v57  ;;  %5476 = vmatpush3.msra.mxu0 %v10605_v43  ;;  %12403 = vst [vmem:[#allocation72_spill] sm:$0xff] %v10619_v28  ;;  %v10625_v43 = vld [vmem:[%s11322_s2] sm:$0xff] }
0x1b68   :  { %5443 = vmatpush3.msra.mxu1 %v10611_v22  ;;  %5477 = vmatprep.subr.mxu0 %v11774_v57  ;;  %12404 = vst [vmem:[#allocation14_spill] sm:$0xff] %v10625_v43  ;;  %v10632_v22 = vld [vmem:[%s11325_s5] sm:$0xff] }
0x1b69   :  { %5444 = vmatprep.subr.mxu1 %v11774_v57  ;;  %5478 = vmatpush3.msra.mxu0 %v10619_v28  ;;  %12405 = vst [vmem:[#allocation73_spill] sm:$0xff] %v10632_v22  ;;  %v10640_v28 = vld [vmem:[%s11326_s6 + $0x170] sm:$0xff] }
0x1b6a   :  { %5445 = vmatpush3.msra.mxu1 %v10625_v43  ;;  %5479 = vmatprep.subr.mxu0 %v11774_v57  ;;  %12406 = vst [vmem:[#allocation74_spill] sm:$0xff] %v10640_v28 }
0x1b6b   :  { %5480 = vmatpush3.msra.mxu0 %v10632_v22  ;;  %5481 = vmatprep.mubr.msk.f32.mxu0 %vm6244_vm1, %v11774_v57 }
0x1b6c   :  { %3501 = vmatprep.subr.mxu1 %v10640_v28  ;;  %5484 = vmatprep.subr.mxu0 %v11774_v57 }
0x1c0b   :  { %v3256_v43 = vpop.f32.mrf.mxu1 }
0x1c0c   :  { %v3333_v45 = vrot.slane %v3256_v43, 2 }
0x1c0e   :  { %v3335_v49 = vadd.f32 %v3333_v45, %v12099_v2 }
0x1c10   :  { %v3336_v54 = vadd.f32 %v3335_v49, %v7567_v20  ;;  %v10714_v49 = vld [vmem:[%s11326_s6 + $0xf0] sm:$0xff] }
0x1c11   :  { %12414 = vst [vmem:[#allocation97_spill] sm:$0xff] %v10714_v49 }
0x1c12   :  { %v3338_v22 = vsel %vm3337_vm11, %v3336_v54, -inf }
0x1c13   :  { %3339 = vmax.xlane.f32.xlu0 %v3338_v22  ;;  %v10720_v22 = vld [vmem:[%s11326_s6 + $0xe0] sm:$0xff] }
0x1c14   :  { %12415 = vst [vmem:[#allocation98_spill] sm:$0xff] %v10720_v22 }
0x1c9c   :  { %v3340_v60 = vpop.xlane.xlu0 %3339 }
0x1c9d   :  { %v3341_v37 = vsub.f32 %v3336_v54, %v3340_v60  ;;  %v10653_v60 = vld [vmem:[%s11326_s6 + $0x168] sm:$0xff]  ;;  %v10708_v54 = vld [vmem:[%s11326_s6 + $0xf8] sm:$0xff] }
0x1c9e   :  { %12413 = vst [vmem:[#allocation95_spill] sm:$0xff] %v10708_v54 }
0x1c9f   :  { %v3342_v10 = vmul.f32 1.442695, %v3341_v37  ;;  %v10702_v37 = vld [vmem:[%s11326_s6 + $0x108] sm:$0xff] }
0x1ca0   :  { %12412 = vst [vmem:[#allocation94_spill] sm:$0xff] %v10702_v37 }
0x1ca1   :  { %5713 = vpow2.f32 %v3342_v10  ;;  %v10696_v10 = vld [vmem:[%s11326_s6 + $0x110] sm:$0xff] }
0x1ca2   :  { %12411 = vst [vmem:[#allocation92_spill] sm:$0xff] %v10696_v10 }
0x1cae   :  { %v5714_v24 = vpop.eup %5713 }
0x1caf   :  { %v3344_v27 = vsel %vm3337_vm11, %v5714_v24, 0.0 }
0x1cb0   :  { %3345 = vadd.xlane.f32.xlu1 %v3344_v27  ;;  %v10684_v27 = vld [vmem:[%s11326_s6 + $0x128] sm:$0xff] }
0x1cb1   :  { %12409 = vst [vmem:[#allocation77_spill] sm:$0xff] %v10684_v27 }
0x1d39   :  { %v3346_v8 = vpop.xlane.xlu1 %3345 }
0x1d3a   :  { %5715 = vrcp.f32 %v3346_v8  ;;  %v10660_v8 = vld [vmem:[%s11326_s6 + $0x158] sm:$0xff] }
0x1d47   :  { %v5716_v28 = vpop.eup %5715 }
0x1d48   :  { %v3348_v17 = vmul.f32 %v5716_v28, %v5714_v24  ;;  %v10666_v28 = vld [vmem:[%s11326_s6 + $0x150] sm:$0xff]  ;;  %v10690_v24 = vld [vmem:[%s11326_s6 + $0x120] sm:$0xff] }
0x1d49   :  { %12410 = vst [vmem:[#allocation78_spill] sm:$0xff] %v10690_v24 }
0x1d4a   :  { %v3350_v43 = vrot.slane %v3348_v17, 6  ;;  %v10648_v45 = vsel %vm4172_vm12, %v9934_v4, %v3348_v17  ;;  %v10672_v4 = vld [vmem:[%s11326_s6 + $0x140] sm:$0xff]  ;;  %v10678_v17 = vld [vmem:[%s11326_s6 + $0x138] sm:$0xff] }
0x1d4b   :  { %12407 = vst [vmem:[#allocation75_spill] sm:$0xff] %v10672_v4  ;;  %12408 = vst [vmem:[#allocation76_spill] sm:$0xff] %v10678_v17 }
0x1d4c   :  { %5447 = vmatmul.mubr.f32.vlgmr.msra.gmra.mxu1 %v3350_v43  ;;  %v10726_v43 = vld [vmem:[%s11326_s6 + $0xd8] sm:$0xff] }
0x1d4d   :  { %3502 = vmatpush1.msra.mxu1 %v10653_v60  ;;  %3565 = vmatprep.mubr.f32.mxu1 %v11774_v57  ;;  %12416 = vst [vmem:[#allocation100_spill] sm:$0xff] %v10726_v43 }
0x1d4e   :  { %3503 = vmatprep.subr.mxu1 %v10660_v8 }
0x1d4f   :  { %3504 = vmatpush1.msra.mxu1 %v10666_v28 }
0x1d50   :  { %3505 = vmatprep.subr.mxu1 %v10672_v4 }
0x1d51   :  { %3506 = vmatpush1.msra.mxu1 %v10678_v17 }
0x1d52   :  { %3507 = vmatprep.subr.mxu1 %v10684_v27 }
0x1d53   :  { %3508 = vmatpush1.msra.mxu1 %v10690_v24 }
0x1d54   :  { %3509 = vmatprep.subr.mxu1 %v10696_v10  ;;  %v10843_v10 = vld [vmem:[%s11326_s6 + $0x178] sm:$0xff] }
0x1d55   :  { %3510 = vmatpush1.msra.mxu1 %v10702_v37  ;;  %12435 = vst [vmem:[#allocation103_spill] sm:$0xff] %v10843_v10 }
0x1d56   :  { %3511 = vmatprep.subr.mxu1 %v10708_v54  ;;  %v10732_v54 = vld [vmem:[%s11326_s6 + $0xc8] sm:$0xff] }
0x1d57   :  { %3512 = vmatpush1.msra.mxu1 %v10714_v49  ;;  %12417 = vst [vmem:[#allocation101_spill] sm:$0xff] %v10732_v54  ;;  %v10738_v49 = vld [vmem:[%s11326_s6 + $0xc0] sm:$0xff] }
0x1d58   :  { %3513 = vmatprep.subr.mxu1 %v10720_v22  ;;  %12418 = vst [vmem:[#allocation80_spill] sm:$0xff] %v10738_v49  ;;  %v10744_v22 = vld [vmem:[%s11326_s6 + $0xb0] sm:$0xff] }
0x1d59   :  { %3514 = vmatpush1.msra.mxu1 %v10726_v43  ;;  %12419 = vst [vmem:[#allocation81_spill] sm:$0xff] %v10744_v22  ;;  %v10750_v43 = vld [vmem:[%s11326_s6 + $0xa8] sm:$0xff] }
0x1d5a   :  { %3515 = vmatprep.subr.mxu1 %v10732_v54  ;;  %12420 = vst [vmem:[#allocation82_spill] sm:$0xff] %v10750_v43  ;;  %v10756_v54 = vld [vmem:[%s11326_s6 + $0x98] sm:$0xff] }
0x1d5b   :  { %3516 = vmatpush1.msra.mxu1 %v10738_v49  ;;  %12421 = vst [vmem:[#allocation83_spill] sm:$0xff] %v10756_v54  ;;  %v10762_v49 = vld [vmem:[%s11326_s6 + $0x90] sm:$0xff] }
0x1d5c   :  { %3517 = vmatprep.subr.mxu1 %v10744_v22  ;;  %12422 = vst [vmem:[#allocation84_spill] sm:$0xff] %v10762_v49  ;;  %v10768_v22 = vld [vmem:[%s11326_s6 + $0x80] sm:$0xff] }
0x1d5d   :  { %3518 = vmatpush1.msra.mxu1 %v10750_v43  ;;  %12423 = vst [vmem:[#allocation85_spill] sm:$0xff] %v10768_v22  ;;  %v10774_v43 = vld [vmem:[%s11326_s6 + $0x78] sm:$0xff] }
0x1d5e   :  { %3519 = vmatprep.subr.mxu1 %v10756_v54  ;;  %12424 = vst [vmem:[#allocation86_spill] sm:$0xff] %v10774_v43  ;;  %v10780_v54 = vld [vmem:[%s11326_s6 + $0x68] sm:$0xff] }
0x1d5f   :  { %3520 = vmatpush1.msra.mxu1 %v10762_v49  ;;  %12425 = vst [vmem:[#allocation87_spill] sm:$0xff] %v10780_v54  ;;  %v10786_v49 = vld [vmem:[%s11326_s6 + $0x60] sm:$0xff] }
0x1d60   :  { %3521 = vmatprep.subr.mxu1 %v10768_v22  ;;  %12426 = vst [vmem:[#allocation88_spill] sm:$0xff] %v10786_v49  ;;  %v10792_v22 = vld [vmem:[%s11326_s6 + $0x50] sm:$0xff] }
0x1d61   :  { %3522 = vmatpush1.msra.mxu1 %v10774_v43  ;;  %12427 = vst [vmem:[#allocation89_spill] sm:$0xff] %v10792_v22  ;;  %v10798_v43 = vld [vmem:[%s11326_s6 + $0x48] sm:$0xff] }
0x1d62   :  { %3523 = vmatprep.subr.mxu1 %v10780_v54  ;;  %12428 = vst [vmem:[#allocation90_spill] sm:$0xff] %v10798_v43  ;;  %v10804_v54 = vld [vmem:[%s11326_s6 + $0x38] sm:$0xff] }
0x1d63   :  { %3524 = vmatpush1.msra.mxu1 %v10786_v49  ;;  %12429 = vst [vmem:[#allocation91_spill] sm:$0xff] %v10804_v54  ;;  %v10810_v49 = vld [vmem:[%s11326_s6 + $0x30] sm:$0xff] }
0x1d64   :  { %3525 = vmatprep.subr.mxu1 %v10792_v22  ;;  %12430 = vst [vmem:[#allocation93_spill] sm:$0xff] %v10810_v49  ;;  %v10816_v22 = vld [vmem:[%s11326_s6 + $0x20] sm:$0xff] }
0x1d65   :  { %3526 = vmatpush1.msra.mxu1 %v10798_v43  ;;  %12431 = vst [vmem:[#allocation96_spill] sm:$0xff] %v10816_v22  ;;  %v10822_v43 = vld [vmem:[%s11326_s6 + $0x18] sm:$0xff] }
0x1d66   :  { %3527 = vmatprep.subr.mxu1 %v10804_v54  ;;  %12432 = vst [vmem:[#allocation99_spill] sm:$0xff] %v10822_v43  ;;  %v10828_v54 = vld [vmem:[%s11326_s6 + $0x8] sm:$0xff] }
0x1d67   :  { %3528 = vmatpush1.msra.mxu1 %v10810_v49  ;;  %12433 = vst [vmem:[#allocation102_spill] sm:$0xff] %v10828_v54  ;;  %v10834_v49 = vld [vmem:[%s11326_s6] sm:$0xff] }
0x1d68   :  { %3529 = vmatprep.subr.mxu1 %v10816_v22  ;;  %12434 = vst [vmem:[#allocation52_spill] sm:$0xff] %v10834_v49  ;;  %v10838_v22 = vpop.f32.mrf.mxu1 }
0x1d69   :  { %3530 = vmatpush1.msra.mxu1 %v10822_v43 }
0x1d6a   :  { %3531 = vmatprep.subr.mxu1 %v10828_v54 }
0x1d6b   :  { %3532 = vmatpush1.msra.mxu1 %v10834_v49 }
0x1d6c   :  { %3666 = vmatprep.subr.mxu1 %v9971_v29  ;;  %v10852_v29 = vld [vmem:[%s11326_s6 + $0x160] sm:$0xff] }
0x1d6d   :  { %12436 = vst [vmem:[#allocation104_spill] sm:$0xff] %v10852_v29 }
0x1e0c   :  { %v3418_v37 = vpop.f32.mrf.mxu1 }
0x1e0d   :  { %5482 = vmatmul.mubr.f32.vlgmr.msra.gmra.mxu0 %v3418_v37  ;;  %v10859_v37 = vld [vmem:[%s11326_s6 + $0x148] sm:$0xff] }
0x1e0e   :  { %v5448_v43 = vpop.f32.mrf.mxu1  ;;  %5485 = vmatpush3.msra.mxu0 %v10843_v10  ;;  %5516 = vmatprep.mubr.msk.f32.mxu0 %vm6244_vm1, %v11774_v57  ;;  %12437 = vst [vmem:[#allocation105_spill] sm:$0xff] %v10859_v37 }
0x1e0f   :  { %5486 = vmatprep.subr.mxu0 %v11774_v57  ;;  %v10866_v43 = vld [vmem:[%s11326_s6 + $0x130] sm:$0xff] }
0x1e10   :  { %5487 = vmatpush3.msra.mxu0 %v10852_v29  ;;  %12438 = vst [vmem:[#allocation106_spill] sm:$0xff] %v10866_v43  ;;  %v10873_v29 = vld [vmem:[%s11326_s6 + $0x118] sm:$0xff] }
0x1e11   :  { %5488 = vmatprep.subr.mxu0 %v11774_v57  ;;  %12439 = vst [vmem:[#allocation107_spill] sm:$0xff] %v10873_v29 }
0x1e12   :  { %5489 = vmatpush3.msra.mxu0 %v10859_v37  ;;  %v10880_v37 = vld [vmem:[%s11326_s6 + $0x100] sm:$0xff] }
0x1e13   :  { %5490 = vmatprep.subr.mxu0 %v11774_v57  ;;  %12440 = vst [vmem:[#allocation108_spill] sm:$0xff] %v10880_v37 }
0x1e14   :  { %5491 = vmatpush3.msra.mxu0 %v10866_v43  ;;  %v10887_v43 = vld [vmem:[%s11326_s6 + $0xe8] sm:$0xff] }
0x1e15   :  { %5492 = vmatprep.subr.mxu0 %v11774_v57  ;;  %12441 = vst [vmem:[#allocation109_spill] sm:$0xff] %v10887_v43 }
0x1e16   :  { %5493 = vmatpush3.msra.mxu0 %v10873_v29  ;;  %v10894_v29 = vld [vmem:[%s11326_s6 + $0xd0] sm:$0xff] }
0x1e17   :  { %5494 = vmatprep.subr.mxu0 %v11774_v57  ;;  %12442 = vst [vmem:[#allocation110_spill] sm:$0xff] %v10894_v29 }
0x1e18   :  { %5495 = vmatpush3.msra.mxu0 %v10880_v37  ;;  %v10901_v37 = vld [vmem:[%s11326_s6 + $0xb8] sm:$0xff] }
0x1e19   :  { %5496 = vmatprep.subr.mxu0 %v11774_v57  ;;  %12443 = vst [vmem:[#allocation111_spill] sm:$0xff] %v10901_v37 }
0x1e1a   :  { %5497 = vmatpush3.msra.mxu0 %v10887_v43  ;;  %v10908_v43 = vld [vmem:[%s11326_s6 + $0xa0] sm:$0xff] }
0x1e1b   :  { %5498 = vmatprep.subr.mxu0 %v11774_v57  ;;  %12444 = vst [vmem:[#allocation112_spill] sm:$0xff] %v10908_v43 }
0x1e1c   :  { %5499 = vmatpush3.msra.mxu0 %v10894_v29  ;;  %v10915_v29 = vld [vmem:[%s11326_s6 + $0x88] sm:$0xff] }
0x1e1d   :  { %5500 = vmatprep.subr.mxu0 %v11774_v57  ;;  %12445 = vst [vmem:[#allocation113_spill] sm:$0xff] %v10915_v29 }
0x1e1e   :  { %5501 = vmatpush3.msra.mxu0 %v10901_v37  ;;  %v10922_v37 = vld [vmem:[%s11326_s6 + $0x70] sm:$0xff] }
0x1e1f   :  { %5502 = vmatprep.subr.mxu0 %v11774_v57  ;;  %12446 = vst [vmem:[#allocation114_spill] sm:$0xff] %v10922_v37 }
0x1e20   :  { %5503 = vmatpush3.msra.mxu0 %v10908_v43  ;;  %v10929_v43 = vld [vmem:[%s11326_s6 + $0x58] sm:$0xff] }
0x1e21   :  { %5504 = vmatprep.subr.mxu0 %v11774_v57  ;;  %12447 = vst [vmem:[#allocation115_spill] sm:$0xff] %v10929_v43 }
0x1e22   :  { %5505 = vmatpush3.msra.mxu0 %v10915_v29  ;;  %v10936_v29 = vld [vmem:[%s11326_s6 + $0x40] sm:$0xff] }
0x1e23   :  { %5506 = vmatprep.subr.mxu0 %v11774_v57  ;;  %12448 = vst [vmem:[#allocation116_spill] sm:$0xff] %v10936_v29 }
0x1e24   :  { %5507 = vmatpush3.msra.mxu0 %v10922_v37  ;;  %v10943_v37 = vld [vmem:[%s11326_s6 + $0x28] sm:$0xff] }
0x1e25   :  { %5508 = vmatprep.subr.mxu0 %v11774_v57  ;;  %12449 = vst [vmem:[#allocation117_spill] sm:$0xff] %v10943_v37 }
0x1e26   :  { %5509 = vmatpush3.msra.mxu0 %v10929_v43  ;;  %v10950_v43 = vld [vmem:[%s11326_s6 + $0x10] sm:$0xff] }
0x1e27   :  { %5510 = vmatprep.subr.mxu0 %v11774_v57 }
0x1e28   :  { %5511 = vmatpush3.msra.mxu0 %v10936_v29  ;;  %v10954_v29 = vpop.f32.mrf.mxu0 }
0x1e29   :  { %5512 = vmatprep.subr.mxu0 %v11774_v57 }
0x1e2a   :  { %5513 = vmatpush3.msra.mxu0 %v10943_v37  ;;  %v10956_v10 = vpop.f32.mrf.mxu0 }
0x1e2b   :  { %5514 = vmatprep.subr.mxu0 %v11774_v57 }
0x1e2c   :  { %5515 = vmatpush3.msra.mxu0 %v10950_v43 }
0x1e2d   :  { %3737 = vmatprep.subr.mxu0 %v10012_v59  ;;  %v12450_v59 = vld [vmem:[#allocation11_spill] sm:$0xff] }
0x1ecd   :  { %v3488_v49 = vpop.f32.mrf.mxu0 }
0x1ece   :  { %v3493_v54 = vrot.slane %v3488_v49, 2 }
0x1ecf   :  { %v5483_v24 = vpop.f32.mrf.mxu0 }
0x1ed0   :  { %v3495_v37 = vadd.f32 %v3493_v54, %v7378_v61 }
0x1ed2   :  { %v3496_v27 = vadd.f32 %v3495_v37, %v7659_v42 }
0x1ed4   :  { %v3497_v17 = vmax.f32 %v3496_v27, 0.0 }
0x1ed6   :  { %v3499_v4 = vrot.slane %v3497_v17, 6  ;;  %v3642_v17 = vadd.f32 %v10838_v22, %v7466_v31 }
0x1ed8   :  { %3566 = vmatmul.mubr.f32.vlgmr.msra.gmra.mxu1 %v3499_v4  ;;  %5517 = vmatmul.mubr.f32.vlgmr.msra.gmra.mxu0 %v3499_v4 }
0x1ed9   :  { %3667 = vmatpush1.msra.mxu1 %v10024_v25  ;;  %3738 = vmatpush1.msra.mxu0 %v10030_v11  ;;  %v12451_v25 = vld [vmem:[#allocation35_spill] sm:$0xff]  ;;  %v12452_v11 = vld [vmem:[#allocation12_spill] sm:$0xff] }
0x1eda   :  { %3668 = vmatprep.subr.mxu1 %v10036_v1  ;;  %3739 = vmatprep.subr.mxu0 %v10042_v41  ;;  %v12453_v1 = vld [vmem:[#allocation36_spill] sm:$0xff]  ;;  %v12454_v41 = vld [vmem:[#allocation79_spill] sm:$0xff] }
0x1edb   :  { %3669 = vmatpush1.msra.mxu1 %v10048_v13  ;;  %3740 = vmatpush1.msra.mxu0 %v10054_v38  ;;  %v12455_v13 = vld [vmem:[#allocation13_spill] sm:$0xff]  ;;  %v12456_v38 = vld [vmem:[#allocation16_spill] sm:$0xff] }
0x1edc   :  { %3670 = vmatprep.subr.mxu1 %v10060_v30  ;;  %3741 = vmatprep.subr.mxu0 %v10066_v46  ;;  %v12457_v30 = vld [vmem:[#allocation37_spill] sm:$0xff] }
0x1edd   :  { %3671 = vmatpush1.msra.mxu1 %v10072_v48  ;;  %3742 = vmatpush1.msra.mxu0 %v10078_v50  ;;  %v12458_v46 = vld [vmem:[#allocation17_spill] sm:$0xff]  ;;  %v12459_v48 = vld [vmem:[#allocation38_spill] sm:$0xff] }
0x1ede   :  { %3672 = vmatprep.subr.mxu1 %v10084_v52  ;;  %3743 = vmatprep.subr.mxu0 %v10090_v55  ;;  %v12460_v50 = vld [vmem:[#allocation18_spill] sm:$0xff]  ;;  %v12461_v52 = vld [vmem:[#allocation39_spill] sm:$0xff] }
0x1edf   :  { %3673 = vmatpush1.msra.mxu1 %v10096_v3  ;;  %3744 = vmatpush1.msra.mxu0 %v10102_v40  ;;  %v12462_v55 = vld [vmem:[#allocation19_spill] sm:$0xff]  ;;  %v12463_v3 = vld [vmem:[#allocation40_spill] sm:$0xff] }
0x1ee0   :  { %3674 = vmatprep.subr.mxu1 %v10108_v34  ;;  %3745 = vmatprep.subr.mxu0 %v10114_v12  ;;  %v12464_v40 = vld [vmem:[#allocation20_spill] sm:$0xff]  ;;  %v12465_v34 = vld [vmem:[#allocation41_spill] sm:$0xff] }
0x1ee1   :  { %3675 = vmatpush1.msra.mxu1 %v10120_v18  ;;  %3746 = vmatpush1.msra.mxu0 %v10126_v16  ;;  %v12466_v12 = vld [vmem:[#allocation21_spill] sm:$0xff]  ;;  %v12467_v18 = vld [vmem:[#allocation42_spill] sm:$0xff] }
0x1ee2   :  { %3676 = vmatprep.subr.mxu1 %v10132_v5  ;;  %3747 = vmatprep.subr.mxu0 %v10138_v7  ;;  %v12468_v16 = vld [vmem:[#allocation22_spill] sm:$0xff]  ;;  %v12469_v5 = vld [vmem:[#allocation43_spill] sm:$0xff] }
0x1ee3   :  { %3677 = vmatpush1.msra.mxu1 %v10144_v9  ;;  %3748 = vmatpush1.msra.mxu0 %v10150_v36  ;;  %v12470_v7 = vld [vmem:[#allocation23_spill] sm:$0xff]  ;;  %v12471_v9 = vld [vmem:[#allocation44_spill] sm:$0xff] }
0x1ee4   :  { %3678 = vmatprep.subr.mxu1 %v10156_v39  ;;  %3749 = vmatprep.subr.mxu0 %v10162_v51  ;;  %v12472_v36 = vld [vmem:[#allocation24_spill] sm:$0xff]  ;;  %v12473_v39 = vld [vmem:[#allocation45_spill] sm:$0xff] }
0x1ee5   :  { %3679 = vmatpush1.msra.mxu1 %v10168_v21  ;;  %3750 = vmatpush1.msra.mxu0 %v10174_v63  ;;  %v12474_v51 = vld [vmem:[#allocation25_spill] sm:$0xff]  ;;  %v12475_v21 = vld [vmem:[#allocation46_spill] sm:$0xff] }
0x1ee6   :  { %3680 = vmatprep.subr.mxu1 %v10180_v23  ;;  %3751 = vmatprep.subr.mxu0 %v10186_v35  ;;  %v12476_v63 = vld [vmem:[#allocation26_spill] sm:$0xff]  ;;  %v12477_v23 = vld [vmem:[#allocation47_spill] sm:$0xff] }
0x1ee7   :  { %3681 = vmatpush1.msra.mxu1 %v10192_v56  ;;  %3752 = vmatpush1.msra.mxu0 %v10198_v14  ;;  %v12478_v35 = vld [vmem:[#allocation27_spill] sm:$0xff]  ;;  %v12479_v56 = vld [vmem:[#allocation28_spill] sm:$0xff]  ;;  %v12480_v14 = vld [vmem:[#allocation29_spill] sm:$0xff] }
0x1ee8   :  { %3682 = vmatprep.subr.mxu1 %v10204_v26  ;;  %3753 = vmatprep.subr.mxu0 %v12450_v59 }
0x1ee9   :  { %3683 = vmatpush1.msra.mxu1 %v12451_v25  ;;  %3754 = vmatpush1.msra.mxu0 %v12452_v11  ;;  %v3643_v25 = vadd.f32 %v10954_v29, %v7480_v53 }
0x1eea   :  { %3684 = vmatprep.subr.mxu1 %v12453_v1  ;;  %3755 = vmatprep.subr.mxu0 %v12454_v41 }
0x1eeb   :  { %3685 = vmatpush1.msra.mxu1 %v12455_v13  ;;  %3756 = vmatpush1.msra.mxu0 %v12456_v38 }
0x1eec   :  { %3686 = vmatprep.subr.mxu1 %v12457_v30  ;;  %3757 = vmatprep.subr.mxu0 %v12458_v46  ;;  %v3644_v30 = vadd.f32 %v10956_v10, %v7485_v32  ;;  %v12482_v10 = vld [vmem:[#allocation30_spill] sm:$0xff] }
0x1eed   :  { %3687 = vmatpush1.msra.mxu1 %v12459_v48  ;;  %3758 = vmatpush1.msra.mxu0 %v12460_v50 }
0x1eee   :  { %3688 = vmatprep.subr.mxu1 %v12461_v52  ;;  %3759 = vmatprep.subr.mxu0 %v12462_v55 }
0x1eef   :  { %3689 = vmatpush1.msra.mxu1 %v12463_v3  ;;  %3760 = vmatpush1.msra.mxu0 %v12464_v40 }
0x1ef0   :  { %3690 = vmatprep.subr.mxu1 %v12465_v34  ;;  %3761 = vmatprep.subr.mxu0 %v12466_v12 }
0x1ef1   :  { %3691 = vmatpush1.msra.mxu1 %v12467_v18  ;;  %3762 = vmatpush1.msra.mxu0 %v12468_v16  ;;  %v12487_v18 = vld [vmem:[#allocation15_spill] sm:$0xff] }
0x1ef2   :  { %3692 = vmatprep.subr.mxu1 %v12469_v5  ;;  %3763 = vmatprep.subr.mxu0 %v12470_v7  ;;  %v12488_v16 = vld [vmem:[#allocation55_spill] sm:$0xff]  ;;  %v12489_v5 = vld [vmem:[#allocation56_spill] sm:$0xff]  ;;  %v12490_v7 = vld [vmem:[#allocation57_spill] sm:$0xff] }
0x1ef3   :  { %3693 = vmatpush1.msra.mxu1 %v12471_v9  ;;  %3764 = vmatpush1.msra.mxu0 %v12472_v36  ;;  %v12491_v9 = vld [vmem:[#allocation58_spill] sm:$0xff]  ;;  %v12492_v36 = vld [vmem:[#allocation59_spill] sm:$0xff] }
0x1ef4   :  { %3694 = vmatprep.subr.mxu1 %v12473_v39  ;;  %3765 = vmatprep.subr.mxu0 %v12474_v51  ;;  %v12493_v39 = vld [vmem:[#allocation60_spill] sm:$0xff]  ;;  %v12494_v51 = vld [vmem:[#allocation61_spill] sm:$0xff] }
0x1ef5   :  { %3695 = vmatpush1.msra.mxu1 %v12475_v21  ;;  %3766 = vmatpush1.msra.mxu0 %v12476_v63  ;;  %v12495_v21 = vld [vmem:[#allocation62_spill] sm:$0xff]  ;;  %v12496_v63 = vld [vmem:[#allocation63_spill] sm:$0xff] }
0x1ef6   :  { %3696 = vmatprep.subr.mxu1 %v12477_v23  ;;  %3767 = vmatprep.subr.mxu0 %v12478_v35  ;;  %v12497_v23 = vld [vmem:[#allocation64_spill] sm:$0xff]  ;;  %v12498_v35 = vld [vmem:[#allocation65_spill] sm:$0xff] }
0x1ef7   :  { %3697 = vmatpush1.msra.mxu1 %v12479_v56  ;;  %3730 = vmatprep.mubr.f32.mxu1 %v11774_v57  ;;  %v12499_v56 = vld [vmem:[#allocation66_spill] sm:$0xff] }
0x1ef8   :  { %3768 = vmatpush1.msra.mxu0 %v12480_v14  ;;  %3801 = vmatprep.mubr.f32.mxu0 %v11774_v57  ;;  %v12500_v14 = vld [vmem:[#allocation67_spill] sm:$0xff] }
0x1ef9   :  { %5519 = vmatprep.subr.mxu1 %v11774_v57  ;;  %5554 = vmatprep.subr.mxu0 %v11774_v57 }
0x1f98   :  { %v3567_v26 = vpop.f32.mrf.mxu1  ;;  %v3638_v4 = vpop.f32.mrf.mxu0 }
0x1f99   :  { %v3568_v27 = vadd.f32 %v3567_v26, %v7469_v33  ;;  %v3639_v48 = vadd.f32 %v3638_v4, %v7487_v44  ;;  %v12501_v26 = vld [vmem:[#allocation68_spill] sm:$0xff]  ;;  %v12502_v4 = vld [vmem:[#allocation69_spill] sm:$0xff] }
0x1f9a   :  { %v3569_v24 = vpop.f32.mrf.mxu1  ;;  %v5518_v54 = vpop.f32.mrf.mxu0 }
0x1f9b   :  { %v3645_v49 = vadd.f32 %v3642_v17, %v3568_v27  ;;  %v3570_v59 = vadd.f32 %v3569_v24, %v7477_v47  ;;  %v12503_v17 = vld [vmem:[#allocation70_spill] sm:$0xff]  ;;  %v12504_v27 = vld [vmem:[#allocation71_spill] sm:$0xff]  ;;  %v12505_v24 = vld [vmem:[#allocation72_spill] sm:$0xff] }
0x1f9c   :  { %v12506_v54 = vld [vmem:[#allocation14_spill] sm:$0xff] }
0x1f9d   :  { %v4372_v37 = vmul.f32 -1.442695, %v3645_v49  ;;  %v3652_v11 = vadd.f32 %v3643_v25, %v3570_v59  ;;  %v12507_v49 = vld [vmem:[#allocation73_spill] sm:$0xff] }
0x1f9f   :  { %5717 = vpow2.f32 %v4372_v37  ;;  %v4373_v1 = vmul.f32 -1.442695, %v3652_v11  ;;  %v12508_v37 = vld [vmem:[#allocation74_spill] sm:$0xff] }
0x1fa1   :  { %5719 = vpow2.f32 %v4373_v1 }
0x1fac   :  { %v5718_v41 = vpop.eup %5717 }
0x1fad   :  { %v3649_v13 = vadd.f32 1.0, %v5718_v41 }
0x1fae   :  { %v5720_v38 = vpop.eup %5719 }
0x1faf   :  { %5721 = vrcp.f32 %v3649_v13  ;;  %v3656_v22 = vadd.f32 1.0, %v5720_v38 }
0x1fb1   :  { %5723 = vrcp.f32 %v3656_v22 }
0x1fbc   :  { %v5722_v46 = vpop.eup %5721 }
0x1fbd   :  { %v3659_v50 = vmul.f32 %v5722_v46, %v3644_v30 }
0x1fbe   :  { %v5724_v29 = vpop.eup %5723 }
0x1fbf   :  { %v3660_v52 = vadd.f32 %v3659_v50, %v3639_v48  ;;  %v3662_v55 = vsub.f32 1.0, %v5724_v29  ;;  %v3664_v34 = vmul.f32 %v5724_v29, %v10407_v15 }
0x1fc1   :  { %5725 = vtanh.f32 %v3660_v52 }
0x1fce   :  { %v5726_v3 = vpop.eup %5725 }
0x1fcf   :  { %v3663_v40 = vmul.f32 %v5726_v3, %v3662_v55  ;;  %v12510_v55 = vld [vmem:[#allocation76_spill] sm:$0xff]  ;;  %v12511_v3 = vld [vmem:[#allocation77_spill] sm:$0xff] }
0x1fd1   :  { %v11036_v12 = vadd.f32 %v3664_v34, %v3663_v40  ;;  %v12512_v40 = vld [vmem:[#allocation78_spill] sm:$0xff]  ;;  %v12513_v34 = vld [vmem:[#allocation92_spill] sm:$0xff] }
0x1fd3   :  { %3731 = vmatmul.mubr.f32.vlgmr.msra.gmra.mxu1 %v11036_v12  ;;  %3802 = vmatmul.mubr.f32.vlgmr.msra.gmra.mxu0 %v11036_v12 }
0x1fd4   :  { %5520 = vmatpush3.msra.mxu1 %v10414_v0  ;;  %5551 = vmatprep.mubr.msk.f32.mxu1 %vm6244_vm1, %v11774_v57  ;;  %v12481_v0 = vld [vmem:[#allocation50_spill] sm:$0xff] }
0x1fd5   :  { %5521 = vmatprep.subr.mxu1 %v11774_v57  ;;  %5555 = vmatpush3.msra.mxu0 %v10423_v6  ;;  %v12483_v6 = vld [vmem:[#allocation51_spill] sm:$0xff] }
0x1fd6   :  { %5522 = vmatpush3.msra.mxu1 %v10429_v62  ;;  %5556 = vmatprep.subr.mxu0 %v11774_v57  ;;  %v12484_v62 = vld [vmem:[#allocation31_spill] sm:$0xff] }
0x1fd7   :  { %5523 = vmatprep.subr.mxu1 %v11774_v57  ;;  %5557 = vmatpush3.msra.mxu0 %v10437_v58  ;;  %v12485_v58 = vld [vmem:[#allocation53_spill] sm:$0xff] }
0x1fd8   :  { %5524 = vmatpush3.msra.mxu1 %v10443_v19  ;;  %5558 = vmatprep.subr.mxu0 %v11774_v57  ;;  %v12486_v19 = vld [vmem:[#allocation54_spill] sm:$0xff] }
0x1fd9   :  { %5525 = vmatprep.subr.mxu1 %v11774_v57  ;;  %5559 = vmatpush3.msra.mxu0 %v12481_v0  ;;  %v12515_v0 = vld [vmem:[#allocation95_spill] sm:$0xff] }
0x1fda   :  { %5526 = vmatpush3.msra.mxu1 %v12482_v10  ;;  %5560 = vmatprep.subr.mxu0 %v11774_v57  ;;  %v12517_v10 = vld [vmem:[#allocation98_spill] sm:$0xff] }
0x1fdb   :  { %5527 = vmatprep.subr.mxu1 %v11774_v57  ;;  %5561 = vmatpush3.msra.mxu0 %v12483_v6  ;;  %v12520_v6 = vld [vmem:[#allocation80_spill] sm:$0xff] }
0x1fdc   :  { %5528 = vmatpush3.msra.mxu1 %v12484_v62  ;;  %5562 = vmatprep.subr.mxu0 %v11774_v57  ;;  %v12521_v62 = vld [vmem:[#allocation81_spill] sm:$0xff] }
0x1fdd   :  { %5529 = vmatprep.subr.mxu1 %v11774_v57  ;;  %5563 = vmatpush3.msra.mxu0 %v12485_v58  ;;  %v12522_v58 = vld [vmem:[#allocation82_spill] sm:$0xff] }
0x1fde   :  { %5530 = vmatpush3.msra.mxu1 %v12486_v19  ;;  %5564 = vmatprep.subr.mxu0 %v11774_v57  ;;  %v12523_v19 = vld [vmem:[#allocation83_spill] sm:$0xff] }
0x1fdf   :  { %5531 = vmatprep.subr.mxu1 %v11774_v57  ;;  %5565 = vmatpush3.msra.mxu0 %v12487_v18  ;;  %v12524_v18 = vld [vmem:[#allocation84_spill] sm:$0xff] }
0x1fe0   :  { %5532 = vmatpush3.msra.mxu1 %v12488_v16  ;;  %5566 = vmatprep.subr.mxu0 %v11774_v57  ;;  %v12525_v16 = vld [vmem:[#allocation85_spill] sm:$0xff] }
0x1fe1   :  { %5533 = vmatprep.subr.mxu1 %v11774_v57  ;;  %5567 = vmatpush3.msra.mxu0 %v12489_v5  ;;  %v12526_v5 = vld [vmem:[#allocation86_spill] sm:$0xff] }
0x1fe2   :  { %5534 = vmatpush3.msra.mxu1 %v12490_v7  ;;  %5568 = vmatprep.subr.mxu0 %v11774_v57  ;;  %v12527_v7 = vld [vmem:[#allocation87_spill] sm:$0xff] }
0x1fe3   :  { %5535 = vmatprep.subr.mxu1 %v11774_v57  ;;  %5569 = vmatpush3.msra.mxu0 %v12491_v9  ;;  %v12528_v9 = vld [vmem:[#allocation88_spill] sm:$0xff] }
0x1fe4   :  { %5536 = vmatpush3.msra.mxu1 %v12492_v36  ;;  %5570 = vmatprep.subr.mxu0 %v11774_v57  ;;  %v12529_v36 = vld [vmem:[#allocation89_spill] sm:$0xff] }
0x1fe5   :  { %5537 = vmatprep.subr.mxu1 %v11774_v57  ;;  %5571 = vmatpush3.msra.mxu0 %v12493_v39  ;;  %v12530_v39 = vld [vmem:[#allocation90_spill] sm:$0xff] }
0x1fe6   :  { %5538 = vmatpush3.msra.mxu1 %v12494_v51  ;;  %5572 = vmatprep.subr.mxu0 %v11774_v57  ;;  %v12531_v51 = vld [vmem:[#allocation91_spill] sm:$0xff] }
0x1fe7   :  { %5539 = vmatprep.subr.mxu1 %v11774_v57  ;;  %5573 = vmatpush3.msra.mxu0 %v12495_v21  ;;  %v12532_v21 = vld [vmem:[#allocation93_spill] sm:$0xff] }
0x1fe8   :  { %5540 = vmatpush3.msra.mxu1 %v12496_v63  ;;  %5574 = vmatprep.subr.mxu0 %v11774_v57  ;;  %v12533_v63 = vld [vmem:[#allocation96_spill] sm:$0xff] }
0x1fe9   :  { %5541 = vmatprep.subr.mxu1 %v11774_v57  ;;  %5575 = vmatpush3.msra.mxu0 %v12497_v23  ;;  %v12534_v23 = vld [vmem:[#allocation99_spill] sm:$0xff] }
0x1fea   :  { %5542 = vmatpush3.msra.mxu1 %v12498_v35  ;;  %5576 = vmatprep.subr.mxu0 %v11774_v57  ;;  %v12535_v35 = vld [vmem:[#allocation102_spill] sm:$0xff] }
0x1feb   :  { %5543 = vmatprep.subr.mxu1 %v11774_v57  ;;  %5577 = vmatpush3.msra.mxu0 %v12499_v56  ;;  %v12536_v56 = vld [vmem:[#allocation52_spill] sm:$0xff] }
0x1fec   :  { %5544 = vmatpush3.msra.mxu1 %v12500_v14  ;;  %5578 = vmatprep.subr.mxu0 %v11774_v57 }
0x1fed   :  { %5545 = vmatprep.subr.mxu1 %v11774_v57  ;;  %5579 = vmatpush3.msra.mxu0 %v12501_v26 }
0x1fee   :  { %5546 = vmatpush3.msra.mxu1 %v12502_v4  ;;  %5580 = vmatprep.subr.mxu0 %v11774_v57 }
0x1fef   :  { %5547 = vmatprep.subr.mxu1 %v11774_v57  ;;  %5581 = vmatpush3.msra.mxu0 %v12503_v17  ;;  %v12537_v17 = vld [vmem:[#allocation103_spill] sm:$0xff] }
0x1ff0   :  { %5548 = vmatpush3.msra.mxu1 %v12504_v27  ;;  %5582 = vmatprep.subr.mxu0 %v11774_v57  ;;  %v12538_v27 = vld [vmem:[#allocation104_spill] sm:$0xff] }
0x1ff1   :  { %5549 = vmatprep.subr.mxu1 %v11774_v57  ;;  %5583 = vmatpush3.msra.mxu0 %v12505_v24  ;;  %v12539_v24 = vld [vmem:[#allocation105_spill] sm:$0xff] }
0x1ff2   :  { %5550 = vmatpush3.msra.mxu1 %v12506_v54  ;;  %5584 = vmatprep.subr.mxu0 %v11774_v57  ;;  %v12540_v54 = vld [vmem:[#allocation106_spill] sm:$0xff] }
0x1ff3   :  { %5585 = vmatpush3.msra.mxu0 %v12507_v49  ;;  %5586 = vmatprep.mubr.msk.f32.mxu0 %vm6244_vm1, %v11774_v57  ;;  %v12541_v49 = vld [vmem:[#allocation107_spill] sm:$0xff] }
0x1ff4   :  { %3977 = vmatprep.subr.mxu1 %v12508_v37  ;;  %5589 = vmatprep.subr.mxu0 %v11774_v57  ;;  %v12542_v37 = vld [vmem:[#allocation108_spill] sm:$0xff] }
0x2093   :  { %v3732_v59 = vpop.f32.mrf.mxu1 }
0x2094   :  { %v3809_v25 = vrot.slane %v3732_v59, 1  ;;  %v12543_v59 = vld [vmem:[#allocation109_spill] sm:$0xff] }
0x2095   :  { %v11144_v14 = vpop.f32.mrf.mxu1 }
0x2096   :  { %v3811_v11 = vadd.f32 %v3809_v25, %v12099_v2  ;;  %v12544_v25 = vld [vmem:[#allocation110_spill] sm:$0xff] }
0x2098   :  { %v3812_v1 = vadd.f32 %v3811_v11, %v7567_v20  ;;  %v12509_v20 = vld [vmem:[#allocation75_spill] sm:$0xff] }
0x2099   :  { %v12545_v11 = vld [vmem:[#allocation111_spill] sm:$0xff] }
0x209a   :  { %v3814_v41 = vsel %vm3813_vm13, %v3812_v1, -inf }
0x209b   :  { %3815 = vmax.xlane.f32.xlu0 %v3814_v41  ;;  %v12547_v41 = vld [vmem:[#allocation113_spill] sm:$0xff] }
0x2124   :  { %v3816_v13 = vpop.xlane.xlu0 %3815 }
0x2125   :  { %v3817_v38 = vsub.f32 %v3812_v1, %v3816_v13  ;;  %v12546_v1 = vld [vmem:[#allocation112_spill] sm:$0xff]  ;;  %v12548_v13 = vld [vmem:[#allocation114_spill] sm:$0xff] }
0x2127   :  { %v3818_v22 = vmul.f32 1.442695, %v3817_v38  ;;  %v12549_v38 = vld [vmem:[#allocation115_spill] sm:$0xff] }
0x2129   :  { %5727 = vpow2.f32 %v3818_v22  ;;  %v12550_v22 = vld [vmem:[#allocation116_spill] sm:$0xff] }
0x2136   :  { %v5728_v30 = vpop.eup %5727 }
0x2137   :  { %v3820_v46 = vsel %vm3813_vm13, %v5728_v30, 0.0 }
0x2138   :  { %3821 = vadd.xlane.f32.xlu1 %v3820_v46  ;;  %v11179_v46 = vpop.f32.mrf.mxu0 }
0x21c1   :  { %v3822_v48 = vpop.xlane.xlu1 %3821 }
0x21c2   :  { %5729 = vrcp.f32 %v3822_v48  ;;  %v11181_v48 = vpop.f32.mrf.mxu0 }
0x21cf   :  { %v5730_v50 = vpop.eup %5729 }
0x21d0   :  { %v3824_v52 = vmul.f32 %v5730_v50, %v5728_v30  ;;  %v12551_v30 = vld [vmem:[#allocation117_spill] sm:$0xff] }
0x21d2   :  { %v3826_v29 = vrot.slane %v3824_v52, 7  ;;  %v4182_v2 = vsel %vm4174_vm14, %v10648_v45, %v3824_v52  ;;  %v12514_v45 = vld [vmem:[#allocation94_spill] sm:$0xff] }
0x21d3   :  { %4318 = vst [vmem:[#allocation6] sm:$0xff] %v4182_v2 }
0x21d4   :  { %5552 = vmatmul.mubr.f32.vlgmr.msra.gmra.mxu1 %v3826_v29 }
0x21d5   :  { %3978 = vmatpush1.msra.mxu1 %v10653_v60  ;;  %4041 = vmatprep.mubr.f32.mxu1 %v11774_v57  ;;  %v12516_v60 = vld [vmem:[#allocation97_spill] sm:$0xff] }
0x21d6   :  { %3979 = vmatprep.subr.mxu1 %v10660_v8  ;;  %v12518_v8 = vld [vmem:[#allocation100_spill] sm:$0xff] }
0x21d7   :  { %3980 = vmatpush1.msra.mxu1 %v10666_v28  ;;  %v12519_v28 = vld [vmem:[#allocation101_spill] sm:$0xff] }
0x21d8   :  { %3981 = vmatprep.subr.mxu1 %v12509_v20 }
0x21d9   :  { %3982 = vmatpush1.msra.mxu1 %v12510_v55 }
0x21da   :  { %3983 = vmatprep.subr.mxu1 %v12511_v3 }
0x21db   :  { %3984 = vmatpush1.msra.mxu1 %v12512_v40  ;;  %v4213_v40 = vld [vmem:[%s11331_s11 + $0xf0] sm:$0xff] }
0x21dc   :  { %3985 = vmatprep.subr.mxu1 %v12513_v34  ;;  %v4209_v34 = vld [vmem:[%s11331_s11 + $0xd0] sm:$0xff] }
0x21dd   :  { %3986 = vmatpush1.msra.mxu1 %v12514_v45  ;;  %v4208_v45 = vld [vmem:[%s11331_s11 + $0xc8] sm:$0xff] }
0x21de   :  { %3987 = vmatprep.subr.mxu1 %v12515_v0  ;;  %v4207_v0 = vld [vmem:[%s11331_s11 + $0xc0] sm:$0xff] }
0x21df   :  { %3988 = vmatpush1.msra.mxu1 %v12516_v60  ;;  %v4206_v60 = vld [vmem:[%s11331_s11 + $0xb8] sm:$0xff] }
0x21e0   :  { %3989 = vmatprep.subr.mxu1 %v12517_v10  ;;  %v4205_v10 = vld [vmem:[%s11331_s11 + $0xb0] sm:$0xff] }
0x21e1   :  { %3990 = vmatpush1.msra.mxu1 %v12518_v8  ;;  %v4204_v8 = vld [vmem:[%s11331_s11 + $0xa8] sm:$0xff] }
0x21e2   :  { %3991 = vmatprep.subr.mxu1 %v12519_v28  ;;  %v4203_v28 = vld [vmem:[%s11331_s11 + $0xa0] sm:$0xff] }
0x21e3   :  { %3992 = vmatpush1.msra.mxu1 %v12520_v6  ;;  %v4202_v6 = vld [vmem:[%s11331_s11 + $0x98] sm:$0xff] }
0x21e4   :  { %3993 = vmatprep.subr.mxu1 %v12521_v62  ;;  %v4201_v62 = vld [vmem:[%s11331_s11 + $0x90] sm:$0xff] }
0x21e5   :  { %3994 = vmatpush1.msra.mxu1 %v12522_v58  ;;  %v4200_v58 = vld [vmem:[%s11331_s11 + $0x88] sm:$0xff] }
0x21e6   :  { %3995 = vmatprep.subr.mxu1 %v12523_v19  ;;  %v4199_v19 = vld [vmem:[%s11331_s11 + $0x80] sm:$0xff] }
0x21e7   :  { %3996 = vmatpush1.msra.mxu1 %v12524_v18  ;;  %v4198_v18 = vld [vmem:[%s11331_s11 + $0x78] sm:$0xff] }
0x21e8   :  { %3997 = vmatprep.subr.mxu1 %v12525_v16  ;;  %v4197_v16 = vld [vmem:[%s11331_s11 + $0x70] sm:$0xff] }
0x21e9   :  { %3998 = vmatpush1.msra.mxu1 %v12526_v5  ;;  %v4196_v5 = vld [vmem:[%s11331_s11 + $0x68] sm:$0xff] }
0x21ea   :  { %3999 = vmatprep.subr.mxu1 %v12527_v7  ;;  %v4195_v7 = vld [vmem:[%s11331_s11 + $0x60] sm:$0xff] }
0x21eb   :  { %4000 = vmatpush1.msra.mxu1 %v12528_v9  ;;  %v4194_v9 = vld [vmem:[%s11331_s11 + $0x58] sm:$0xff] }
0x21ec   :  { %4001 = vmatprep.subr.mxu1 %v12529_v36  ;;  %v4193_v36 = vld [vmem:[%s11331_s11 + $0x50] sm:$0xff] }
0x21ed   :  { %4002 = vmatpush1.msra.mxu1 %v12530_v39  ;;  %v4192_v39 = vld [vmem:[%s11331_s11 + $0x48] sm:$0xff] }
0x21ee   :  { %4003 = vmatprep.subr.mxu1 %v12531_v51  ;;  %v4191_v51 = vld [vmem:[%s11331_s11 + $0x40] sm:$0xff] }
0x21ef   :  { %4004 = vmatpush1.msra.mxu1 %v12532_v21  ;;  %v4190_v21 = vld [vmem:[%s11331_s11 + $0x38] sm:$0xff] }
0x21f0   :  { %4005 = vmatprep.subr.mxu1 %v12533_v63  ;;  %v4189_v63 = vld [vmem:[%s11331_s11 + $0x30] sm:$0xff] }
0x21f1   :  { %4006 = vmatpush1.msra.mxu1 %v12534_v23  ;;  %v4188_v23 = vld [vmem:[%s11331_s11 + $0x28] sm:$0xff] }
0x21f2   :  { %4007 = vmatprep.subr.mxu1 %v12535_v35  ;;  %v4187_v35 = vld [vmem:[%s11331_s11 + $0x20] sm:$0xff] }
0x21f3   :  { %4008 = vmatpush1.msra.mxu1 %v12536_v56  ;;  %v4186_v56 = vld [vmem:[%s11331_s11 + $0x18] sm:$0xff] }
0x2294   :  { %v3894_v26 = vpop.f32.mrf.mxu1 }
0x2295   :  { %5587 = vmatmul.mubr.f32.vlgmr.msra.gmra.mxu0 %v3894_v26  ;;  %v4185_v26 = vld [vmem:[%s11331_s11 + $0x10] sm:$0xff] }
0x2296   :  { %v5553_v4 = vpop.f32.mrf.mxu1  ;;  %5590 = vmatpush3.msra.mxu0 %v12537_v17  ;;  %5621 = vmatprep.mubr.msk.f32.mxu0 %vm6244_vm1, %v11774_v57  ;;  %v4183_v17 = vld [vmem:[%s11331_s11] sm:$0xff] }
0x2297   :  { %5591 = vmatprep.subr.mxu0 %v11774_v57  ;;  %v4184_v4 = vld [vmem:[%s11331_s11 + $0x8] sm:$0xff] }
0x2298   :  { %5592 = vmatpush3.msra.mxu0 %v12538_v27 }
0x2299   :  { %5593 = vmatprep.subr.mxu0 %v11774_v57 }
0x229a   :  { %5594 = vmatpush3.msra.mxu0 %v12539_v24 }
0x229b   :  { %5595 = vmatprep.subr.mxu0 %v11774_v57 }
0x229c   :  { %5596 = vmatpush3.msra.mxu0 %v12540_v54  ;;  %v4118_v54 = vadd.f32 %v11144_v14, %v7466_v31 }
0x229d   :  { %5597 = vmatprep.subr.mxu0 %v11774_v57 }
0x229e   :  { %5598 = vmatpush3.msra.mxu0 %v12541_v49 }
0x229f   :  { %5599 = vmatprep.subr.mxu0 %v11774_v57 }
0x22a0   :  { %5600 = vmatpush3.msra.mxu0 %v12542_v37 }
0x22a1   :  { %5601 = vmatprep.subr.mxu0 %v11774_v57 }
0x22a2   :  { %5602 = vmatpush3.msra.mxu0 %v12543_v59 }
0x22a3   :  { %5603 = vmatprep.subr.mxu0 %v11774_v57 }
0x22a4   :  { %5604 = vmatpush3.msra.mxu0 %v12544_v25 }
0x22a5   :  { %5605 = vmatprep.subr.mxu0 %v11774_v57 }
0x22a6   :  { %5606 = vmatpush3.msra.mxu0 %v12545_v11 }
0x22a7   :  { %5607 = vmatprep.subr.mxu0 %v11774_v57 }
0x22a8   :  { %5608 = vmatpush3.msra.mxu0 %v12546_v1 }
0x22a9   :  { %5609 = vmatprep.subr.mxu0 %v11774_v57 }
0x22aa   :  { %5610 = vmatpush3.msra.mxu0 %v12547_v41  ;;  %v4119_v41 = vadd.f32 %v11179_v46, %v7480_v53  ;;  %v12552_v46 = vld [vmem:[#allocation48_spill] sm:$0xff] }
0x22ab   :  { %5611 = vmatprep.subr.mxu0 %v11774_v57 }
0x22ac   :  { %5612 = vmatpush3.msra.mxu0 %v12548_v13 }
0x22ad   :  { %5613 = vmatprep.subr.mxu0 %v11774_v57 }
0x22ae   :  { %5614 = vmatpush3.msra.mxu0 %v12549_v38 }
0x22af   :  { %5615 = vmatprep.subr.mxu0 %v11774_v57 }
0x22b0   :  { %5616 = vmatpush3.msra.mxu0 %v12550_v22 }
0x22b1   :  { %5617 = vmatprep.subr.mxu0 %v11774_v57 }
0x22b2   :  { %5618 = vmatpush3.msra.mxu0 %v12551_v30 }
0x22b3   :  { %5619 = vmatprep.subr.mxu0 %v11774_v57 }
0x22b4   :  { %5620 = vmatpush3.msra.mxu0 %v10950_v43  ;;  %v4214_v43 = vld [vmem:[%s11331_s11 + $0xf8] sm:$0xff] }
0x22b5   :  { %4227 = vmatprep.subr.mxu1 %v4214_v43 }
0x2355   :  { %v3964_v50 = vpop.f32.mrf.mxu0 }
0x2356   :  { %v3969_v52 = vrot.slane %v3964_v50, 1 }
0x2357   :  { %v5588_v29 = vpop.f32.mrf.mxu0 }
0x2358   :  { %v3971_v2 = vadd.f32 %v3969_v52, %v7378_v61  ;;  %v4212_v61 = vld [vmem:[%s11331_s11 + $0xe8] sm:$0xff] }
0x235a   :  { %v3972_v20 = vadd.f32 %v3971_v2, %v7659_v42  ;;  %v4211_v42 = vld [vmem:[%s11331_s11 + $0xe0] sm:$0xff]  ;;  %v4143_v2 = vrot.slane %v12552_v46, 7 }
0x235c   :  { %v3973_v55 = vmax.f32 %v3972_v20, 0.0  ;;  %v12553_v20 = vld [vmem:[#allocation10_spill] sm:$0xff] }
0x235e   :  { %v3975_v3 = vrot.slane %v3973_v55, 7  ;;  %v4146_v55 = vrot.slane %v12553_v20, 6 }
0x2360   :  { %4042 = vmatmul.mubr.f32.vlgmr.msra.gmra.mxu1 %v3975_v3  ;;  %5622 = vmatmul.mubr.f32.vlgmr.msra.gmra.mxu0 %v3975_v3  ;;  %v12554_v3 = vld [vmem:[#allocation49_spill] sm:$0xff] }
0x2361   :  { %4291 = vmatprep.mubr.f32.mxu1 %v11774_v57  ;;  %4228 = vmatpush1.msra.mxu1 %v4213_v40  ;;  %v4210_v57 = vld [vmem:[%s11331_s11 + $0xd8] sm:$0xff]  ;;  %v4149_v43 = vrot.slane %v12554_v3, 5 }
0x2362   :  { %4229 = vmatprep.subr.mxu1 %v4212_v61 }
0x2363   :  { %4230 = vmatpush1.msra.mxu1 %v4211_v42  ;;  %v12555_v42 = vld [vmem:[#allocation34_spill] sm:$0xff] }
0x2364   :  { %4231 = vmatprep.subr.mxu1 %v4210_v57  ;;  %v4152_v57 = vrot.slane %v12555_v42, 4 }
0x2365   :  { %4232 = vmatpush1.msra.mxu1 %v4209_v34 }
0x2366   :  { %4233 = vmatprep.subr.mxu1 %v4208_v45 }
0x2367   :  { %4234 = vmatpush1.msra.mxu1 %v4207_v0  ;;  %v4158_v0 = vrot.slane %v11036_v12, 2 }
0x2368   :  { %4235 = vmatprep.subr.mxu1 %v4206_v60 }
0x2369   :  { %4236 = vmatpush1.msra.mxu1 %v4205_v10 }
0x236a   :  { %4237 = vmatprep.subr.mxu1 %v4204_v8 }
0x236b   :  { %4238 = vmatpush1.msra.mxu1 %v4203_v28 }
0x236c   :  { %4239 = vmatprep.subr.mxu1 %v4202_v6 }
0x236d   :  { %4240 = vmatpush1.msra.mxu1 %v4201_v62 }
0x236e   :  { %4241 = vmatprep.subr.mxu1 %v4200_v58 }
0x236f   :  { %4242 = vmatpush1.msra.mxu1 %v4199_v19 }
0x2370   :  { %4243 = vmatprep.subr.mxu1 %v4198_v18 }
0x2371   :  { %4244 = vmatpush1.msra.mxu1 %v4197_v16  ;;  %v12558_v16 = vld [vmem:[#allocation9_spill] sm:$0xff] }
0x2372   :  { %4245 = vmatprep.subr.mxu1 %v4196_v5 }
0x2373   :  { %4246 = vmatpush1.msra.mxu1 %v4195_v7 }
0x2374   :  { %4247 = vmatprep.subr.mxu1 %v4194_v9 }
0x2375   :  { %4248 = vmatpush1.msra.mxu1 %v4193_v36 }
0x2376   :  { %4249 = vmatprep.subr.mxu1 %v4192_v39 }
0x2377   :  { %4250 = vmatpush1.msra.mxu1 %v4191_v51 }
0x2378   :  { %4251 = vmatprep.subr.mxu1 %v4190_v21 }
0x2379   :  { %4252 = vmatpush1.msra.mxu1 %v4189_v63 }
0x237a   :  { %4253 = vmatprep.subr.mxu1 %v4188_v23 }
0x237b   :  { %4254 = vmatpush1.msra.mxu1 %v4187_v35 }
0x237c   :  { %4255 = vmatprep.subr.mxu1 %v4186_v56 }
0x237d   :  { %4256 = vmatpush1.msra.mxu1 %v4185_v26 }
0x237e   :  { %4257 = vmatprep.subr.mxu1 %v4184_v4 }
0x237f   :  { %4258 = vmatpush1.msra.mxu1 %v4183_v17 }
0x2420   :  { %v4043_v27 = vpop.f32.mrf.mxu1  ;;  %v4114_v24 = vpop.f32.mrf.mxu0 }
0x2421   :  { %v4044_v49 = vadd.f32 %v4043_v27, %v7469_v33  ;;  %v4120_v33 = vadd.f32 %v11181_v48, %v7485_v32  ;;  %v4115_v52 = vadd.f32 %v4114_v24, %v7487_v44  ;;  %v4155_v44 = vrot.slane %v10407_v15, 3  ;;  %v12556_v48 = vld [vmem:[#allocation33_spill] sm:$0xff] }
0x2422   :  { %v4045_v37 = vpop.f32.mrf.mxu1  ;;  %v5623_v59 = vpop.f32.mrf.mxu0  ;;  %v4163_v45 = vsel %vm446_vm0, %v12556_v48, %v4143_v2  ;;  %v4215_v15 = vld [vmem:[%s11332_s12] sm:$0x3]  ;;  %s6245_s12 = smov [#allocation4]  }
0x2423   :  { %v4121_v25 = vadd.f32 %v4118_v54, %v4044_v49  ;;  %v4046_v1 = vadd.f32 %v4045_v37, %v7477_v47  ;;  %v4165_v60 = vsel %vm4164_vm4, %v4163_v45, %v4146_v55  ;;  %v4224_v5 = vrot.slane %v4215_v15, %v12558_v16  ;;  %s4335_s9 = sshll.u32 %s6245_s12, 4  ;;  %s4336_s9 = int_to_ptr.vmem [resolvable:$true] %s4335_s9 }
0x2424   :  { %v4167_v8 = vsel %vm4166_vm6, %v4165_v60, %v4149_v43  ;;  %s6179_s10 = scalar_lea.vmem %s4336_s9, 128  ;;  %p6184_p1 = scmp.lt.s32.totalorder %s4336_s9, %s4336_s9 }
0x2425   :  { %v4374_v11 = vmul.f32 -1.442695, %v4121_v25  ;;  %v4128_v13 = vadd.f32 %v4119_v41, %v4046_v1  ;;  %v4169_v28 = vsel %vm4168_vm8, %v4167_v8, %v4152_v57  ;;  %p6180_p0 = scmp.ne.s32.totalorder %s4336_s9, %s6179_s10  ;;  %p6185_p2 = scmp.lt.s32.totalorder %s6179_s10, %s6179_s10 }
0x2426   :  { %v4171_v62 = vsel %vm4170_vm10, %v4169_v28, %v4155_v44 }
0x2427   :  { %5731 = vpow2.f32 %v4374_v11  ;;  %v4375_v38 = vmul.f32 -1.442695, %v4128_v13  ;;  %v4173_v58 = vsel %vm4172_vm12, %v4171_v62, %v4158_v0  ;;  %p6186_p3 = por %p6185_p2, %p6184_p1 }
0x2429   :  { %5733 = vpow2.f32 %v4375_v38  ;;  %p6187_p4 = pnand %p6186_p3, %p6180_p0 }
0x2434   :  { %v5732_v22 = vpop.eup %5731 }
0x2435   :  { %v4125_v30 = vadd.f32 1.0, %v5732_v22 }
0x2436   :  { %v5734_v50 = vpop.eup %5733 }
0x2437   :  { %5735 = vrcp.f32 %v4125_v30  ;;  %v4132_v31 = vadd.f32 1.0, %v5734_v50 }
0x2439   :  { %5737 = vrcp.f32 %v4132_v31 }
0x2444   :  { %v5736_v14 = vpop.eup %5735 }
0x2445   :  { %v4135_v29 = vmul.f32 %v5736_v14, %v4120_v33 }
0x2446   :  { %v5738_v53 = vpop.eup %5737 }
0x2447   :  { %v4136_v47 = vadd.f32 %v4135_v29, %v4115_v52  ;;  %v4138_v40 = vsub.f32 1.0, %v5738_v53  ;;  %v4140_v32 = vmul.f32 %v5738_v53, %v11036_v12  ;;  %v12557_v12 = vld [vmem:[#allocation32_spill] sm:$0xff] }
0x2448   :  { %v4220_v18 = vrot.slane %v4215_v15, %v12557_v12 }
0x2449   :  { %5739 = vtanh.f32 %v4136_v47 }
0x2456   :  { %v5740_v61 = vpop.eup %5739 }
0x2457   :  { %v4139_v34 = vmul.f32 %v5740_v61, %v4138_v40 }
0x2459   :  { %v4141_v10 = vadd.f32 %v4140_v32, %v4139_v34 }
0x245b   :  { %v4161_v6 = vrot.slane %v4141_v10, 1 }
0x245d   :  { %v4175_v19 = vsel %vm4174_vm14, %v4173_v58, %v4161_v6 }
0x245e   :  { %4292 = vmatmul.mubr.f32.vlgmr.msra.gmra.mxu1 %v4175_v19  ;;  %4317 = vst [vmem:[#allocation4] sm:$0xff] %v4175_v19 }
0x251e   :  { %v4293_v7 = vpop.f32.mrf.mxu1 }
0x251f   :  { %v4294_v36 = vadd.f32 %v4293_v7, %v4220_v18 }
0x2520   :  { %v4295_v9 = vpop.f32.mrf.mxu1 }
0x2521   :  { %v4296_v39 = vadd.f32 %v4295_v9, %v4224_v5 }
0x2523   :  { %v4298_v51 = vmax.f32 %v4294_v36, %v4296_v39 }
0x2525   :  { %4299 = vmax.xlane.f32.xlu0 %v4298_v51 }
0x25ae   :  { %v4300_v21 = vpop.xlane.xlu0 %4299 }
0x25af   :  { %v4301_v63 = vsub.f32 %v4294_v36, %v4300_v21  ;;  %v4302_v23 = vsub.f32 %v4296_v39, %v4300_v21 }
0x25b1   :  { %v4303_v35 = vmul.f32 1.442695, %v4301_v63  ;;  %v4305_v56 = vmul.f32 1.442695, %v4302_v23 }
0x25b3   :  { %5741 = vpow2.f32 %v4303_v35 }
0x25b4   :  { %5743 = vpow2.f32 %v4305_v56 }
0x25c0   :  { %v5742_v26 = vpop.eup %5741 }
0x25c1   :  { %v5744_v4 = vpop.eup %5743 }
0x25c2   :  { %v4307_v17 = vadd.f32 %v5744_v4, %v5742_v26 }
0x25c4   :  { %4308 = vadd.xlane.f32.xlu1 %v4307_v17 }
0x25c5   :  { %6190 = shalt.err (!%p6187_p4)
}
0x25c6   :  { %4338 = dma.vmem_to_hbm [thread:$0]  %s4336_s9, 128, %s11334_s14, [#allocation5]  }
0x25c7   :  { %s6246_s17 = smov [#allocation6]  }
0x25c8   :  { %s4345_s7 = sshll.u32 %s6246_s17, 4  ;;  %s4346_s7 = int_to_ptr.vmem [resolvable:$true] %s4345_s7 }
0x25c9   :  { %s6199_s18 = scalar_lea.vmem %s4346_s7, 128  ;;  %p6204_p6 = scmp.lt.s32.totalorder %s4346_s7, %s4346_s7 }
0x25ca   :  { %p6200_p5 = scmp.ne.s32.totalorder %s4346_s7, %s6199_s18  ;;  %p6205_p7 = scmp.lt.s32.totalorder %s6199_s18, %s6199_s18 }
0x25cc   :  { %p6206_p8 = por %p6205_p7, %p6204_p6 }
0x25ce   :  { %p6207_p9 = pnand %p6206_p8, %p6200_p5 }
0x25d0   :  { %6210 = shalt.err (!%p6207_p9)
}
0x25d1   :  { %4348 = dma.vmem_to_hbm [thread:$0]  %s4346_s7, 128, %s11335_s15, [#allocation5]  }
0x25d2   :  { %s6247_s21 = smov [#allocation2]  }
0x25d3   :  { %s4325_s14 = sshll.u32 %s6247_s21, 4  ;;  %s4326_s14 = int_to_ptr.vmem [resolvable:$true] %s4325_s14 }
0x25d4   :  { %s6219_s22 = scalar_lea.vmem %s4326_s14, 256  ;;  %p6224_p11 = scmp.lt.s32.totalorder %s4326_s14, %s4326_s14 }
0x25d5   :  { %p6220_p10 = scmp.ne.s32.totalorder %s4326_s14, %s6219_s22  ;;  %p6225_p12 = scmp.lt.s32.totalorder %s6219_s22, %s6219_s22 }
0x25d7   :  { %p6226_p13 = por %p6225_p12, %p6224_p11 }
0x25d9   :  { %p6227_p0 = pnand %p6226_p13, %p6220_p10 }
0x264d   :  { %v4309_v27 = vpop.xlane.xlu1 %4308 }
0x264e   :  { %5745 = vlog2.f32 %v4309_v27 }
0x265b   :  { %v5746_v24 = vpop.eup %5745 }
0x265c   :  { %v4311_v54 = vmul.f32 0.6931472, %v5746_v24 }
0x265e   :  { %v4312_v49 = vadd.f32 %v4311_v54, %v4300_v21 }
0x2660   :  { %v4313_v37 = vsub.f32 %v4294_v36, %v4312_v49  ;;  %v4314_v59 = vsub.f32 %v4296_v39, %v4312_v49 }
0x2662   :  { %4315 = vst [vmem:[#allocation2] sm:$0xff] %v4313_v37  ;;  %4316 = vst [vmem:[#allocation2 + $0x8] sm:$0xff] %v4314_v59 }
0x2663   :  { %6230 = shalt.err (!%p6227_p0)
}
0x2664   :  { %4328 = dma.vmem_to_hbm [thread:$0]  %s4326_s14, 256, %s11333_s13, [#allocation3]  }
0x2665   :  { %6239 = dma.done.wait [#allocation3], 256  }
0x2666   :  { %6240 = vsyncadd [#allocation3], 4294967040 }
0x2667   :  { %6241 = dma.done.wait [#allocation5], 256  }
0x2668   :  { %6242 = vsyncadd [#allocation5], 4294967040 }
0x2669   :  { %4358 = vsyncpa [#allocation3], 1 }
0x266a   :  { %4359 = vsyncpa [#allocation5], 1 }

</bundles_post_ra>
